<compile_context>
chip_gen: v7x
topology: tpu7x:2x2x1
jax: 0.10.0
libtpu: 0.0.40
codegen_flags: <defaults>
</compile_context>

<pallas_src>
import functools

import jax
import jax.numpy as jnp
from jax import lax
from jax.experimental import pallas as pl
from jax.experimental.pallas import tpu as pltpu

_EPS = 1e-5


# ----------------------------------------------------------------------------
# Kernel 1: matmul + bias, optional fused InstanceNorm (+ReLU).
# For the sub-pixel ConvTranspose lowering, `groups`=4 output column groups
# share per-channel statistics (all 4 spatial phases of one channel).
# ----------------------------------------------------------------------------
def _matmul_kernel(a_ref, b_ref, bias_ref, o_ref, *, fuse_in, relu, groups,
                   n_pos):
    acc = jnp.dot(a_ref[...], b_ref[...], preferred_element_type=jnp.float32)
    acc = acc + bias_ref[...]
    if fuse_in:
        s1 = jnp.sum(acc, axis=0, keepdims=True)
        s2 = jnp.sum(acc * acc, axis=0, keepdims=True)
        if groups > 1:
            C = acc.shape[1] // groups
            s1 = sum(s1[:, g * C:(g + 1) * C] for g in range(groups))
            s2 = sum(s2[:, g * C:(g + 1) * C] for g in range(groups))
        mean = s1 * (1.0 / n_pos)
        var = s2 * (1.0 / n_pos) - mean * mean          # biased variance
        scale = lax.rsqrt(var + _EPS)
        shift = -mean * scale
        if groups > 1:
            scale = jnp.concatenate([scale] * groups, axis=1)
            shift = jnp.concatenate([shift] * groups, axis=1)
        acc = acc * scale + shift
        if relu:
            acc = jnp.maximum(acc, 0.0)
    o_ref[...] = acc


@functools.lru_cache(maxsize=None)
def _build_matmul(M, K, Ncol, tm, fuse_in, relu, groups):
    n_pos = tm * groups
    return pl.pallas_call(
        functools.partial(_matmul_kernel, fuse_in=fuse_in, relu=relu,
                          groups=groups, n_pos=n_pos),
        out_shape=jax.ShapeDtypeStruct((M, Ncol), jnp.float32),
        grid=(M // tm,),
        in_specs=[pl.BlockSpec((tm, K), lambda i: (i, 0)),      # full-K block
                  pl.BlockSpec((K, Ncol), lambda i: (0, 0)),    # weights resident
                  pl.BlockSpec((1, Ncol), lambda i: (0, 0))],
        out_specs=pl.BlockSpec((tm, Ncol), lambda i: (i, 0)),
        compiler_params=pltpu.CompilerParams(
            dimension_semantics=("parallel",)),
    )


def matmul_bias(a, b, bias, *, fuse_in=False, relu=False, groups=1,
                rows_per_sample=None):
    M, K = a.shape
    Ncol = b.shape[1]
    if fuse_in:
        tm = rows_per_sample            # one sample's spatial rows per block
    else:
        tm = M
        for cand in (256, 128):
            if M > cand and M % cand == 0:
                tm = cand
                break
    return _build_matmul(M, K, Ncol, tm, bool(fuse_in), bool(relu),
                         int(groups))(a, b, bias)


# ----------------------------------------------------------------------------
# Convolution wrappers (im2col glue in JAX, matmul(+IN+ReLU) in Pallas)
# ----------------------------------------------------------------------------
def _im2col(x, k, stride, padding):
    N, H, W, C = x.shape
    xp = jnp.pad(x, ((0, 0), (padding, padding), (padding, padding), (0, 0)))
    Ho = (H + 2 * padding - k) // stride + 1
    Wo = (W + 2 * padding - k) // stride + 1
    cols = []
    for dy in range(k):
        for dx in range(k):
            cols.append(xp[:, dy:dy + stride * Ho:stride,
                           dx:dx + stride * Wo:stride, :])
    patches = jnp.stack(cols, axis=3)                  # (N, Ho, Wo, k*k, C)
    return patches.reshape(N * Ho * Wo, k * k * C), Ho, Wo


def conv2d(x, w2, b2, *, k, stride=1, padding=0, fuse_in=False, relu=False):
    # w2: pre-packed (k*k*cin, cout) bf16; b2: (1, cout) f32; x: NHWC f32
    N = x.shape[0]
    patches, Ho, Wo = _im2col(x.astype(jnp.bfloat16), k, stride, padding)
    out = matmul_bias(patches, w2, b2, fuse_in=fuse_in, relu=relu,
                      groups=1, rows_per_sample=Ho * Wo)
    return out.reshape(N, Ho, Wo, w2.shape[1])


def conv_transpose2d_in_relu(x, w4, b4):
    # ConvTranspose2d(k=3, s=2, p=1, out_p=1) -> InstanceNorm -> ReLU via
    # sub-pixel decomposition: one matmul over the 2x2 input neighbourhood
    # produces the four output phases at once (no 75%-zero dilated im2col).
    N, H, W, C = x.shape
    cout = w4.shape[1] // 4
    xb = jnp.pad(x.astype(jnp.bfloat16), ((0, 0), (0, 1), (0, 1), (0, 0)))
    p = jnp.concatenate([xb[:, :H, :W, :], xb[:, :H, 1:, :],
                         xb[:, 1:, :W, :], xb[:, 1:, 1:, :]], axis=-1)
    out = matmul_bias(p.reshape(N * H * W, 4 * C), w4, b4,
                      fuse_in=True, relu=True, groups=4, rows_per_sample=H * W)
    out = out.reshape(N, H, W, 2, 2, cout)             # (n, h, w, py, px, c)
    return jnp.transpose(out, (0, 1, 3, 2, 4, 5)).reshape(N, 2 * H, 2 * W, cout)


# ----------------------------------------------------------------------------
# Kernel 2: all 8 residual blocks in one pallas_call.
# Layout (H*W, C): C=64 on lanes, depthwise conv done with flat row-padding +
# per-column masks, 1x1 convs on the MXU, IN single-pass stats, state carried
# across the block grid axis in a VMEM scratch.
# ----------------------------------------------------------------------------
def _resblocks_kernel(x_ref, d1w_ref, d1b_ref, p1w_ref, p1b_ref,
                      d2w_ref, d2b_ref, p2w_ref, p2b_ref,
                      o_ref, state_ref, *, H, W):
    blk = pl.program_id(1)
    HW = H * W

    @pl.when(blk == 0)
    def _():
        state_ref[...] = x_ref[0]

    cur = state_ref[...]                               # (HW, C) f32

    col = lax.broadcasted_iota(jnp.int32, (HW, 1), 0) % W
    mask_l = (col != 0).astype(jnp.float32)            # valid for dx = -1
    mask_r = (col != (W - 1)).astype(jnp.float32)      # valid for dx = +1

    def dw3x3(v, w9, b):
        pad = jnp.zeros((W + 1, v.shape[1]), jnp.float32)
        vp = jnp.concatenate([pad, v, pad], axis=0)    # (HW + 2W + 2, C)
        acc = jnp.zeros_like(v)
        for tap in range(9):
            dy, dx = tap // 3 - 1, tap % 3 - 1
            off = (W + 1) + dy * W + dx
            t = vp[off:off + HW, :]
            if dx == -1:
                t = t * mask_l
            elif dx == 1:
                t = t * mask_r
            acc = acc + t * w9[tap:tap + 1, :]
        return acc + b

    def inorm(v):
        m = jnp.mean(v, axis=0, keepdims=True)
        var = jnp.mean(v * v, axis=0, keepdims=True) - m * m
        return (v - m) * lax.rsqrt(var + _EPS)

    def pw1x1(v, w, b):
        return jnp.dot(v.astype(jnp.bfloat16), w,
                       preferred_element_type=jnp.float32) + b

    y = dw3x3(cur, d1w_ref[blk], d1b_ref[blk])
    y = inorm(y)
    y = pw1x1(y, p1w_ref[blk], p1b_ref[blk])
    y = jnp.maximum(inorm(y), 0.0)
    y = dw3x3(y, d2w_ref[blk], d2b_ref[blk])
    y = inorm(y)
    y = pw1x1(y, p2w_ref[blk], p2b_ref[blk])
    y = inorm(y)
    new = cur + y
    state_ref[...] = new

    @pl.when(blk == pl.num_programs(1) - 1)
    def _():
        o_ref[0] = new


@functools.lru_cache(maxsize=None)
def _build_resblocks(N, H, W, C, nblk):
    HW = H * W

    def wspec(shape):
        return pl.BlockSpec(shape, lambda n, b: (0, 0, 0))

    io_spec = pl.BlockSpec((1, HW, C), lambda n, b: (n, 0, 0))
    return pl.pallas_call(
        functools.partial(_resblocks_kernel, H=H, W=W),
        out_shape=jax.ShapeDtypeStruct((N, HW, C), jnp.float32),
        grid=(N, nblk),
        in_specs=[io_spec,
                  wspec((nblk, 9, C)), wspec((nblk, 1, C)),
                  wspec((nblk, C, C)), wspec((nblk, 1, C)),
                  wspec((nblk, 9, C)), wspec((nblk, 1, C)),
                  wspec((nblk, C, C)), wspec((nblk, 1, C))],
        out_specs=io_spec,
        scratch_shapes=[pltpu.VMEM((HW, C), jnp.float32)],
        compiler_params=pltpu.CompilerParams(
            dimension_semantics=("parallel", "arbitrary")),
    )


def residual_blocks(x, rp):
    N, H, W, C = x.shape
    nblk = rp['d1w'].shape[0]
    y = _build_resblocks(N, H, W, C, nblk)(
        x.reshape(N, H * W, C),
        rp['d1w'], rp['d1b'], rp['p1w'], rp['p1b'],
        rp['d2w'], rp['d2b'], rp['p2w'], rp['p2b'])
    return y.reshape(N, H, W, C)


# ----------------------------------------------------------------------------
# Kernel 3: fused tanh(content) / softmax(attention) / mixing, lane-dense
# (C, H*W) layout, outputs written slice-by-slice (no in-kernel concat).
# ----------------------------------------------------------------------------
def _fusion_kernel(x_ref, content_ref, att_ref,
                   img_ref, attn_ref, outs_ref, all_ref):
    img = jnp.tanh(content_ref[0])                     # (27, HW)
    logits = att_ref[0]                                # (10, HW)
    m = jnp.max(logits, axis=0, keepdims=True)
    e = jnp.exp(logits - m)
    att = e / jnp.sum(e, axis=0, keepdims=True)        # softmax over channels
    x = x_ref[0]                                       # (3, HW)

    img_ref[0] = img
    attn_ref[0] = att

    allout = x * att[9:10, :]                          # output10 = input * mask10
    outs_ref[0, 27:30, :] = allout
    for i in range(9):
        o = img[3 * i:3 * i + 3, :] * att[i:i + 1, :]
        outs_ref[0, 3 * i:3 * i + 3, :] = o
        allout = allout + o
    all_ref[0] = allout


@functools.lru_cache(maxsize=None)
def _build_fusion(N, HW):
    def spec(c):
        return pl.BlockSpec((1, c, HW), lambda n: (n, 0, 0))

    return pl.pallas_call(
        _fusion_kernel,
        out_shape=(jax.ShapeDtypeStruct((N, 27, HW), jnp.float32),
                   jax.ShapeDtypeStruct((N, 10, HW), jnp.float32),
                   jax.ShapeDtypeStruct((N, 30, HW), jnp.float32),
                   jax.ShapeDtypeStruct((N, 3, HW), jnp.float32)),
        grid=(N,),
        in_specs=[spec(3), spec(27), spec(10)],
        out_specs=(spec(27), spec(10), spec(30), spec(3)),
        compiler_params=pltpu.CompilerParams(
            dimension_semantics=("parallel",)),
    )


# ----------------------------------------------------------------------------
# Deterministic parameter init.  Weights are packed once into matmul-ready
# matrices (bf16 for MXU operands, f32 biases / depthwise taps).
# Note: up_conv / out_conv / deconv3_attention_mask are constructed by the
# PyTorch module but never used in generator_att.forward -> not initialized.
# ----------------------------------------------------------------------------
def init_params(key, dim_in=3, hd=16):
    keys = iter(jax.random.split(key, 128))

    def rnd(shape):
        return jax.random.normal(next(keys), shape, jnp.float32) * 0.05

    def pack_conv(cout, cin, k):
        w = rnd((cout, cin, k, k))
        b = rnd((cout,))
        w2 = jnp.transpose(w, (2, 3, 1, 0)).reshape(k * k * cin, cout)
        return w2.astype(jnp.bfloat16), b.reshape(1, cout)

    def pack_convT(cin, cout):
        # PyTorch ConvTranspose2d weight layout (cin, cout, 3, 3), s=2, p=1, op=1.
        w = rnd((cin, cout, 3, 3))
        b = rnd((cout,))
        z = jnp.zeros((cin, cout), jnp.float32)
        t = lambda ky, kx: w[:, :, ky, kx]
        rows = [  # rows: 2x2 input taps; cols: 4 output phases (py, px)
            jnp.concatenate([t(1, 1), t(1, 2), t(2, 1), t(2, 2)], axis=1),
            jnp.concatenate([z,       t(1, 0), z,       t(2, 0)], axis=1),
            jnp.concatenate([z,       z,       t(0, 1), t(0, 2)], axis=1),
            jnp.concatenate([z,       z,       z,       t(0, 0)], axis=1),
        ]
        w4 = jnp.concatenate(rows, axis=0).astype(jnp.bfloat16)
        b4 = jnp.tile(b, 4).reshape(1, 4 * cout)
        return w4, b4

    p = {}
    p['in_conv'] = pack_conv(hd, dim_in, 7)
    p['down1'] = pack_conv(2 * hd, hd, 3)
    p['down2'] = pack_conv(2 * hd, 2 * hd, 3)
    p['down3'] = pack_conv(4 * hd, 2 * hd, 3)
    p['down4'] = pack_conv(4 * hd, 4 * hd, 3)

    C = 4 * hd
    nblk = 8

    def dw_pack():
        w = rnd((C, 1, 3, 3))
        b = rnd((C,))
        return jnp.transpose(w.reshape(C, 9), (1, 0)), b.reshape(1, C)

    def pw_pack():
        w = rnd((C, C, 1, 1))
        b = rnd((C,))
        return jnp.transpose(w[:, :, 0, 0], (1, 0)).astype(jnp.bfloat16), \
            b.reshape(1, C)

    res = {k: [] for k in ('d1w', 'd1b', 'p1w', 'p1b',
                           'd2w', 'd2b', 'p2w', 'p2b')}
    for _ in range(nblk):
        w, b = dw_pack(); res['d1w'].append(w); res['d1b'].append(b)
        w, b = pw_pack(); res['p1w'].append(w); res['p1b'].append(b)
        w, b = dw_pack(); res['d2w'].append(w); res['d2b'].append(b)
        w, b = pw_pack(); res['p2w'].append(w); res['p2b'].append(b)
    p['res'] = {k: jnp.stack(v, axis=0) for k, v in res.items()}

    p['upc1'] = pack_convT(4 * hd, 2 * hd)
    p['upc2'] = pack_convT(2 * hd, hd)
    p['content'] = pack_conv(27, hd, 7)
    p['upa1'] = pack_convT(4 * hd, 2 * hd)
    p['upa2'] = pack_convT(2 * hd, hd)
    p['att_out'] = pack_conv(10, hd, 1)
    return p


# ----------------------------------------------------------------------------
# Forward pass of generator_att.
# (reference code bugs: `self.tanh` is undefined and `input` is the Python
#  builtin; we implement the intended semantics: tanh(...) and the input x.
#  The reference's debug print() calls are dropped.)
# ----------------------------------------------------------------------------
def generator_att_forward(params, x_nchw):
    x = jnp.transpose(x_nchw, (0, 2, 3, 1)).astype(jnp.float32)   # -> NHWC
    N, H, W, _ = x.shape

    h = conv2d(x, *params['in_conv'], k=7, stride=1, padding=3,
               fuse_in=True, relu=True)
    h = conv2d(h, *params['down1'], k=3, stride=2, padding=1)
    h = conv2d(h, *params['down2'], k=3, stride=1, padding=1,
               fuse_in=True, relu=True)
    h = conv2d(h, *params['down3'], k=3, stride=2, padding=1)
    h = conv2d(h, *params['down4'], k=3, stride=1, padding=1,
               fuse_in=True, relu=True)

    h = residual_blocks(h, params['res'])

    # content branch
    c = conv_transpose2d_in_relu(h, *params['upc1'])
    c = conv_transpose2d_in_relu(c, *params['upc2'])
    c = jnp.pad(c, ((0, 0), (3, 3), (3, 3), (0, 0)), mode='reflect')
    content = conv2d(c, *params['content'], k=7, stride=1, padding=0)   # (N,H,W,27)

    # attention branch
    a = conv_transpose2d_in_relu(h, *params['upa1'])
    a = conv_transpose2d_in_relu(a, *params['upa2'])
    att_logits = conv2d(a, *params['att_out'], k=1, stride=1, padding=0)  # (N,H,W,10)

    # fused tanh / softmax / mixing kernel, lane-dense (N, C, H*W) layout
    HW = H * W
    x_f = x_nchw.astype(jnp.float32).reshape(N, 3, HW)
    content_f = jnp.transpose(content, (0, 3, 1, 2)).reshape(N, 27, HW)
    att_f = jnp.transpose(att_logits, (0, 3, 1, 2)).reshape(N, 10, HW)
    image_mask, attention, outs, allout = _build_fusion(N, HW)(
        x_f, content_f, att_f)

    image_mask = image_mask.reshape(N, 27, H, W)
    attention = attention.reshape(N, 10, H, W)
    outs = outs.reshape(N, 30, H, W)
    allout = allout.reshape(N, 3, H, W)

    outputs = tuple(outs[:, 3 * i:3 * i + 3] for i in range(10))
    att_masks = tuple(jnp.repeat(attention[:, i:i + 1], 3, axis=1)
                      for i in range(10))
    img_masks = tuple(image_mask[:, 3 * i:3 * i + 3] for i in range(9))

    # matches the PyTorch return tuple (all NCHW):
    # (AllOutPut, output1..10, attention_mask1..10, image_mask1..9)
    return (allout,) + outputs + att_masks + img_masks


# ----------------------------------------------------------------------------
if __name__ == "__main__":
    key = jax.random.PRNGKey(0)
    pkey, xkey = jax.random.split(key)
    params = init_params(pkey, dim_in=3, hd=16)
    x = jax.random.normal(xkey, (2, 3, 16, 16), jnp.float32)   # NCHW input

    fwd = jax.jit(generator_att_forward)
    out = jax.block_until_ready(fwd(params, x))

    assert len(out) == 30
    assert out[0].shape == (2, 3, 16, 16)               # AllOutPut
    assert out[1].shape == (2, 3, 16, 16)               # output1
    assert out[11].shape == (2, 3, 16, 16)              # attention_mask1 (3ch)
    assert out[21].shape == (2, 3, 16, 16)              # image_mask1
    assert bool(jnp.all(jnp.isfinite(out[0])))
    print("KERNEL_OK")
</pallas_src>

<mosaic_0001>
module attributes {stable_mosaic.version = 11 : i64} {
  func.func @_matmul_kernel(%arg0: i32, %arg1: memref<256x147xbf16, #tpu.memory_space<vmem>>, %arg2: memref<147x16xbf16, #tpu.memory_space<vmem>>, %arg3: memref<1x16xf32, #tpu.memory_space<vmem>>, %arg4: memref<256x16xf32, #tpu.memory_space<vmem>>) attributes {dimension_semantics = [#tpu.dimension_semantics<parallel>], iteration_bounds = array<i64: 2>, scalar_prefetch = 0 : i64, scratch_operands = 0 : i64, tpu.core_type = #tpu.core_type<tc>, window_params = [{transform_indices = @transform_0, window_bounds = array<i64: 256, 147>}, {pipeline_mode = #tpu.pipeline_mode<synchronous>, transform_indices = @transform_1, window_bounds = array<i64: 147, 16>}, {pipeline_mode = #tpu.pipeline_mode<synchronous>, transform_indices = @transform_2, window_bounds = array<i64: 1, 16>}, {transform_indices = @transform_3, window_bounds = array<i64: 256, 16>}]} {
    %c0 = arith.constant 0 : index
    %c0_0 = arith.constant 0 : index
    %0 = vector.load %arg1[%c0, %c0_0] : memref<256x147xbf16, #tpu.memory_space<vmem>>, vector<256x147xbf16>
    %c0_1 = arith.constant 0 : index
    %c0_2 = arith.constant 0 : index
    %1 = vector.load %arg2[%c0_1, %c0_2] : memref<147x16xbf16, #tpu.memory_space<vmem>>, vector<147x16xbf16>
    %cst = arith.constant dense<0.000000e+00> : vector<256x16xf32>
    %2 = tpu.matmul %0, %1, %cst {dimension_numbers = #tpu.dot_dimension_numbers<[1], [0], [0], [1], [0, 0, 1, 1], [], []>} : vector<256x147xbf16>, vector<147x16xbf16>, vector<256x16xf32> -> vector<256x16xf32>
    %c0_3 = arith.constant 0 : index
    %c0_4 = arith.constant 0 : index
    %3 = vector.load %arg3[%c0_3, %c0_4] : memref<1x16xf32, #tpu.memory_space<vmem>>, vector<1x16xf32>
    %4 = vector.broadcast %3 : vector<1x16xf32> to vector<256x16xf32>
    %5 = arith.addf %2, %4 : vector<256x16xf32>
    %cst_5 = arith.constant dense<0.000000e+00> : vector<16xf32>
    %6 = vector.multi_reduction <add>, %5, %cst_5 [0] : vector<256x16xf32> to vector<16xf32>
    %7 = vector.shape_cast %6 : vector<16xf32> to vector<1x16xf32>
    %8 = arith.mulf %5, %5 : vector<256x16xf32>
    %cst_6 = arith.constant dense<0.000000e+00> : vector<16xf32>
    %9 = vector.multi_reduction <add>, %8, %cst_6 [0] : vector<256x16xf32> to vector<16xf32>
    %10 = vector.shape_cast %9 : vector<16xf32> to vector<1x16xf32>
    %cst_7 = arith.constant 3.906250e-03 : f32
    %11 = vector.broadcast %cst_7 : f32 to vector<1x16xf32>
    %12 = arith.mulf %7, %11 : vector<1x16xf32>
    %cst_8 = arith.constant 3.906250e-03 : f32
    %13 = vector.broadcast %cst_8 : f32 to vector<1x16xf32>
    %14 = arith.mulf %10, %13 : vector<1x16xf32>
    %15 = arith.mulf %12, %12 : vector<1x16xf32>
    %16 = arith.subf %14, %15 : vector<1x16xf32>
    %cst_9 = arith.constant 9.99999974E-6 : f32
    %17 = vector.broadcast %cst_9 : f32 to vector<1x16xf32>
    %18 = arith.addf %16, %17 : vector<1x16xf32>
    %19 = math.rsqrt %18 : vector<1x16xf32>
    %cst_10 = arith.constant 0.000000e+00 : f32
    %20 = vector.broadcast %cst_10 : f32 to vector<1x16xf32>
    %21 = arith.subf %20, %12 : vector<1x16xf32>
    %22 = arith.mulf %21, %19 : vector<1x16xf32>
    %23 = vector.broadcast %19 : vector<1x16xf32> to vector<256x16xf32>
    %24 = arith.mulf %5, %23 : vector<256x16xf32>
    %25 = vector.broadcast %22 : vector<1x16xf32> to vector<256x16xf32>
    %26 = arith.addf %24, %25 : vector<256x16xf32>
    %cst_11 = arith.constant 0.000000e+00 : f32
    %27 = vector.broadcast %cst_11 : f32 to vector<256x16xf32>
    %28 = arith.maximumf %26, %27 : vector<256x16xf32>
    %c0_12 = arith.constant 0 : index
    %c0_13 = arith.constant 0 : index
    %29 = vector.load %arg4[%c0_12, %c0_13] : memref<256x16xf32, #tpu.memory_space<vmem>>, vector<256x16xf32>
    tpu.vector_store %arg4[%c0_12, %c0_13], %28 {strides = array<i32>} : memref<256x16xf32, #tpu.memory_space<vmem>>, vector<256x16xf32>,
    return
  }
  func.func @transform_0(%arg0: i32) -> (i32, i32) {
    %c0_i32 = arith.constant 0 : i32
    %c0_i32_0 = arith.constant 0 : i32
    return %arg0, %c0_i32 : i32, i32
  }
  func.func @transform_1(%arg0: i32) -> (i32, i32) {
    %c0_i32 = arith.constant 0 : i32
    %c0_i32_0 = arith.constant 0 : i32
    %c0_i32_1 = arith.constant 0 : i32
    return %c0_i32, %c0_i32_0 : i32, i32
  }
  func.func @transform_2(%arg0: i32) -> (i32, i32) {
    %c0_i32 = arith.constant 0 : i32
    %c0_i32_0 = arith.constant 0 : i32
    %c0_i32_1 = arith.constant 0 : i32
    return %c0_i32, %c0_i32_0 : i32, i32
  }
  func.func @transform_3(%arg0: i32) -> (i32, i32) {
    %c0_i32 = arith.constant 0 : i32
    %c0_i32_0 = arith.constant 0 : i32
    return %arg0, %c0_i32 : i32, i32
  }
}

module attributes {stable_mosaic.version = 11 : i64} {
  func.func @_matmul_kernel(%arg0: i32, %arg1: memref<128x144xbf16, #tpu.memory_space<vmem>>, %arg2: memref<144x32xbf16, #tpu.memory_space<vmem>>, %arg3: memref<1x32xf32, #tpu.memory_space<vmem>>, %arg4: memref<128x32xf32, #tpu.memory_space<vmem>>) attributes {dimension_semantics = [#tpu.dimension_semantics<parallel>], iteration_bounds = array<i64: 1>, scalar_prefetch = 0 : i64, scratch_operands = 0 : i64, tpu.core_type = #tpu.core_type<tc>, window_params = [{transform_indices = @transform_0, window_bounds = array<i64: 128, 144>}, {pipeline_mode = #tpu.pipeline_mode<synchronous>, transform_indices = @transform_1, window_bounds = array<i64: 144, 32>}, {pipeline_mode = #tpu.pipeline_mode<synchronous>, transform_indices = @transform_2, window_bounds = array<i64: 1, 32>}, {transform_indices = @transform_3, window_bounds = array<i64: 128, 32>}]} {
    %c0 = arith.constant 0 : index
    %c0_0 = arith.constant 0 : index
    %0 = vector.load %arg1[%c0, %c0_0] : memref<128x144xbf16, #tpu.memory_space<vmem>>, vector<128x144xbf16>
    %c0_1 = arith.constant 0 : index
    %c0_2 = arith.constant 0 : index
    %1 = vector.load %arg2[%c0_1, %c0_2] : memref<144x32xbf16, #tpu.memory_space<vmem>>, vector<144x32xbf16>
    %cst = arith.constant dense<0.000000e+00> : vector<128x32xf32>
    %2 = tpu.matmul %0, %1, %cst {dimension_numbers = #tpu.dot_dimension_numbers<[1], [0], [0], [1], [0, 0, 1, 1], [], []>} : vector<128x144xbf16>, vector<144x32xbf16>, vector<128x32xf32> -> vector<128x32xf32>
    %c0_3 = arith.constant 0 : index
    %c0_4 = arith.constant 0 : index
    %3 = vector.load %arg3[%c0_3, %c0_4] : memref<1x32xf32, #tpu.memory_space<vmem>>, vector<1x32xf32>
    %4 = vector.broadcast %3 : vector<1x32xf32> to vector<128x32xf32>
    %5 = arith.addf %2, %4 : vector<128x32xf32>
    %c0_5 = arith.constant 0 : index
    %c0_6 = arith.constant 0 : index
    %6 = vector.load %arg4[%c0_5, %c0_6] : memref<128x32xf32, #tpu.memory_space<vmem>>, vector<128x32xf32>
    tpu.vector_store %arg4[%c0_5, %c0_6], %5 {strides = array<i32>} : memref<128x32xf32, #tpu.memory_space<vmem>>, vector<128x32xf32>,
    return
  }
  func.func @transform_0(%arg0: i32) -> (i32, i32) {
    %c0_i32 = arith.constant 0 : i32
    %c0_i32_0 = arith.constant 0 : i32
    return %arg0, %c0_i32 : i32, i32
  }
  func.func @transform_1(%arg0: i32) -> (i32, i32) {
    %c0_i32 = arith.constant 0 : i32
    %c0_i32_0 = arith.constant 0 : i32
    %c0_i32_1 = arith.constant 0 : i32
    return %c0_i32, %c0_i32_0 : i32, i32
  }
  func.func @transform_2(%arg0: i32) -> (i32, i32) {
    %c0_i32 = arith.constant 0 : i32
    %c0_i32_0 = arith.constant 0 : i32
    %c0_i32_1 = arith.constant 0 : i32
    return %c0_i32, %c0_i32_0 : i32, i32
  }
  func.func @transform_3(%arg0: i32) -> (i32, i32) {
    %c0_i32 = arith.constant 0 : i32
    %c0_i32_0 = arith.constant 0 : i32
    return %arg0, %c0_i32 : i32, i32
  }
}

module attributes {stable_mosaic.version = 11 : i64} {
  func.func @_matmul_kernel(%arg0: i32, %arg1: memref<64x288xbf16, #tpu.memory_space<vmem>>, %arg2: memref<288x32xbf16, #tpu.memory_space<vmem>>, %arg3: memref<1x32xf32, #tpu.memory_space<vmem>>, %arg4: memref<64x32xf32, #tpu.memory_space<vmem>>) attributes {dimension_semantics = [#tpu.dimension_semantics<parallel>], iteration_bounds = array<i64: 2>, scalar_prefetch = 0 : i64, scratch_operands = 0 : i64, tpu.core_type = #tpu.core_type<tc>, window_params = [{transform_indices = @transform_0, window_bounds = array<i64: 64, 288>}, {pipeline_mode = #tpu.pipeline_mode<synchronous>, transform_indices = @transform_1, window_bounds = array<i64: 288, 32>}, {pipeline_mode = #tpu.pipeline_mode<synchronous>, transform_indices = @transform_2, window_bounds = array<i64: 1, 32>}, {transform_indices = @transform_3, window_bounds = array<i64: 64, 32>}]} {
    %c0 = arith.constant 0 : index
    %c0_0 = arith.constant 0 : index
    %0 = vector.load %arg1[%c0, %c0_0] : memref<64x288xbf16, #tpu.memory_space<vmem>>, vector<64x288xbf16>
    %c0_1 = arith.constant 0 : index
    %c0_2 = arith.constant 0 : index
    %1 = vector.load %arg2[%c0_1, %c0_2] : memref<288x32xbf16, #tpu.memory_space<vmem>>, vector<288x32xbf16>
    %cst = arith.constant dense<0.000000e+00> : vector<64x32xf32>
    %2 = tpu.matmul %0, %1, %cst {dimension_numbers = #tpu.dot_dimension_numbers<[1], [0], [0], [1], [0, 0, 1, 1], [], []>} : vector<64x288xbf16>, vector<288x32xbf16>, vector<64x32xf32> -> vector<64x32xf32>
    %c0_3 = arith.constant 0 : index
    %c0_4 = arith.constant 0 : index
    %3 = vector.load %arg3[%c0_3, %c0_4] : memref<1x32xf32, #tpu.memory_space<vmem>>, vector<1x32xf32>
    %4 = vector.broadcast %3 : vector<1x32xf32> to vector<64x32xf32>
    %5 = arith.addf %2, %4 : vector<64x32xf32>
    %cst_5 = arith.constant dense<0.000000e+00> : vector<32xf32>
    %6 = vector.multi_reduction <add>, %5, %cst_5 [0] : vector<64x32xf32> to vector<32xf32>
    %7 = vector.shape_cast %6 : vector<32xf32> to vector<1x32xf32>
    %8 = arith.mulf %5, %5 : vector<64x32xf32>
    %cst_6 = arith.constant dense<0.000000e+00> : vector<32xf32>
    %9 = vector.multi_reduction <add>, %8, %cst_6 [0] : vector<64x32xf32> to vector<32xf32>
    %10 = vector.shape_cast %9 : vector<32xf32> to vector<1x32xf32>
    %cst_7 = arith.constant 1.562500e-02 : f32
    %11 = vector.broadcast %cst_7 : f32 to vector<1x32xf32>
    %12 = arith.mulf %7, %11 : vector<1x32xf32>
    %cst_8 = arith.constant 1.562500e-02 : f32
    %13 = vector.broadcast %cst_8 : f32 to vector<1x32xf32>
    %14 = arith.mulf %10, %13 : vector<1x32xf32>
    %15 = arith.mulf %12, %12 : vector<1x32xf32>
    %16 = arith.subf %14, %15 : vector<1x32xf32>
    %cst_9 = arith.constant 9.99999974E-6 : f32
    %17 = vector.broadcast %cst_9 : f32 to vector<1x32xf32>
    %18 = arith.addf %16, %17 : vector<1x32xf32>
    %19 = math.rsqrt %18 : vector<1x32xf32>
    %cst_10 = arith.constant 0.000000e+00 : f32
    %20 = vector.broadcast %cst_10 : f32 to vector<1x32xf32>
    %21 = arith.subf %20, %12 : vector<1x32xf32>
    %22 = arith.mulf %21, %19 : vector<1x32xf32>
    %23 = vector.broadcast %19 : vector<1x32xf32> to vector<64x32xf32>
    %24 = arith.mulf %5, %23 : vector<64x32xf32>
    %25 = vector.broadcast %22 : vector<1x32xf32> to vector<64x32xf32>
    %26 = arith.addf %24, %25 : vector<64x32xf32>
    %cst_11 = arith.constant 0.000000e+00 : f32
    %27 = vector.broadcast %cst_11 : f32 to vector<64x32xf32>
    %28 = arith.maximumf %26, %27 : vector<64x32xf32>
    %c0_12 = arith.constant 0 : index
    %c0_13 = arith.constant 0 : index
    %29 = vector.load %arg4[%c0_12, %c0_13] : memref<64x32xf32, #tpu.memory_space<vmem>>, vector<64x32xf32>
    tpu.vector_store %arg4[%c0_12, %c0_13], %28 {strides = array<i32>} : memref<64x32xf32, #tpu.memory_space<vmem>>, vector<64x32xf32>,
    return
  }
  func.func @transform_0(%arg0: i32) -> (i32, i32) {
    %c0_i32 = arith.constant 0 : i32
    %c0_i32_0 = arith.constant 0 : i32
    return %arg0, %c0_i32 : i32, i32
  }
  func.func @transform_1(%arg0: i32) -> (i32, i32) {
    %c0_i32 = arith.constant 0 : i32
    %c0_i32_0 = arith.constant 0 : i32
    %c0_i32_1 = arith.constant 0 : i32
    return %c0_i32, %c0_i32_0 : i32, i32
  }
  func.func @transform_2(%arg0: i32) -> (i32, i32) {
    %c0_i32 = arith.constant 0 : i32
    %c0_i32_0 = arith.constant 0 : i32
    %c0_i32_1 = arith.constant 0 : i32
    return %c0_i32, %c0_i32_0 : i32, i32
  }
  func.func @transform_3(%arg0: i32) -> (i32, i32) {
    %c0_i32 = arith.constant 0 : i32
    %c0_i32_0 = arith.constant 0 : i32
    return %arg0, %c0_i32 : i32, i32
  }
}

module attributes {stable_mosaic.version = 11 : i64} {
  func.func @_matmul_kernel(%arg0: i32, %arg1: memref<32x288xbf16, #tpu.memory_space<vmem>>, %arg2: memref<288x64xbf16, #tpu.memory_space<vmem>>, %arg3: memref<1x64xf32, #tpu.memory_space<vmem>>, %arg4: memref<32x64xf32, #tpu.memory_space<vmem>>) attributes {dimension_semantics = [#tpu.dimension_semantics<parallel>], iteration_bounds = array<i64: 1>, scalar_prefetch = 0 : i64, scratch_operands = 0 : i64, tpu.core_type = #tpu.core_type<tc>, window_params = [{transform_indices = @transform_0, window_bounds = array<i64: 32, 288>}, {pipeline_mode = #tpu.pipeline_mode<synchronous>, transform_indices = @transform_1, window_bounds = array<i64: 288, 64>}, {pipeline_mode = #tpu.pipeline_mode<synchronous>, transform_indices = @transform_2, window_bounds = array<i64: 1, 64>}, {transform_indices = @transform_3, window_bounds = array<i64: 32, 64>}]} {
    %c0 = arith.constant 0 : index
    %c0_0 = arith.constant 0 : index
    %0 = vector.load %arg1[%c0, %c0_0] : memref<32x288xbf16, #tpu.memory_space<vmem>>, vector<32x288xbf16>
    %c0_1 = arith.constant 0 : index
    %c0_2 = arith.constant 0 : index
    %1 = vector.load %arg2[%c0_1, %c0_2] : memref<288x64xbf16, #tpu.memory_space<vmem>>, vector<288x64xbf16>
    %cst = arith.constant dense<0.000000e+00> : vector<32x64xf32>
    %2 = tpu.matmul %0, %1, %cst {dimension_numbers = #tpu.dot_dimension_numbers<[1], [0], [0], [1], [0, 0, 1, 1], [], []>} : vector<32x288xbf16>, vector<288x64xbf16>, vector<32x64xf32> -> vector<32x64xf32>
    %c0_3 = arith.constant 0 : index
    %c0_4 = arith.constant 0 : index
    %3 = vector.load %arg3[%c0_3, %c0_4] : memref<1x64xf32, #tpu.memory_space<vmem>>, vector<1x64xf32>
    %4 = vector.broadcast %3 : vector<1x64xf32> to vector<32x64xf32>
    %5 = arith.addf %2, %4 : vector<32x64xf32>
    %c0_5 = arith.constant 0 : index
    %c0_6 = arith.constant 0 : index
    %6 = vector.load %arg4[%c0_5, %c0_6] : memref<32x64xf32, #tpu.memory_space<vmem>>, vector<32x64xf32>
    tpu.vector_store %arg4[%c0_5, %c0_6], %5 {strides = array<i32>} : memref<32x64xf32, #tpu.memory_space<vmem>>, vector<32x64xf32>,
    return
  }
  func.func @transform_0(%arg0: i32) -> (i32, i32) {
    %c0_i32 = arith.constant 0 : i32
    %c0_i32_0 = arith.constant 0 : i32
    return %arg0, %c0_i32 : i32, i32
  }
  func.func @transform_1(%arg0: i32) -> (i32, i32) {
    %c0_i32 = arith.constant 0 : i32
    %c0_i32_0 = arith.constant 0 : i32
    %c0_i32_1 = arith.constant 0 : i32
    return %c0_i32, %c0_i32_0 : i32, i32
  }
  func.func @transform_2(%arg0: i32) -> (i32, i32) {
    %c0_i32 = arith.constant 0 : i32
    %c0_i32_0 = arith.constant 0 : i32
    %c0_i32_1 = arith.constant 0 : i32
    return %c0_i32, %c0_i32_0 : i32, i32
  }
  func.func @transform_3(%arg0: i32) -> (i32, i32) {
    %c0_i32 = arith.constant 0 : i32
    %c0_i32_0 = arith.constant 0 : i32
    return %arg0, %c0_i32 : i32, i32
  }
}

module attributes {stable_mosaic.version = 11 : i64} {
  func.func @_matmul_kernel(%arg0: i32, %arg1: memref<16x576xbf16, #tpu.memory_space<vmem>>, %arg2: memref<576x64xbf16, #tpu.memory_space<vmem>>, %arg3: memref<1x64xf32, #tpu.memory_space<vmem>>, %arg4: memref<16x64xf32, #tpu.memory_space<vmem>>) attributes {dimension_semantics = [#tpu.dimension_semantics<parallel>], iteration_bounds = array<i64: 2>, scalar_prefetch = 0 : i64, scratch_operands = 0 : i64, tpu.core_type = #tpu.core_type<tc>, window_params = [{transform_indices = @transform_0, window_bounds = array<i64: 16, 576>}, {pipeline_mode = #tpu.pipeline_mode<synchronous>, transform_indices = @transform_1, window_bounds = array<i64: 576, 64>}, {pipeline_mode = #tpu.pipeline_mode<synchronous>, transform_indices = @transform_2, window_bounds = array<i64: 1, 64>}, {transform_indices = @transform_3, window_bounds = array<i64: 16, 64>}]} {
    %c0 = arith.constant 0 : index
    %c0_0 = arith.constant 0 : index
    %0 = vector.load %arg1[%c0, %c0_0] : memref<16x576xbf16, #tpu.memory_space<vmem>>, vector<16x576xbf16>
    %c0_1 = arith.constant 0 : index
    %c0_2 = arith.constant 0 : index
    %1 = vector.load %arg2[%c0_1, %c0_2] : memref<576x64xbf16, #tpu.memory_space<vmem>>, vector<576x64xbf16>
    %cst = arith.constant dense<0.000000e+00> : vector<16x64xf32>
    %2 = tpu.matmul %0, %1, %cst {dimension_numbers = #tpu.dot_dimension_numbers<[1], [0], [0], [1], [0, 0, 1, 1], [], []>} : vector<16x576xbf16>, vector<576x64xbf16>, vector<16x64xf32> -> vector<16x64xf32>
    %c0_3 = arith.constant 0 : index
    %c0_4 = arith.constant 0 : index
    %3 = vector.load %arg3[%c0_3, %c0_4] : memref<1x64xf32, #tpu.memory_space<vmem>>, vector<1x64xf32>
    %4 = vector.broadcast %3 : vector<1x64xf32> to vector<16x64xf32>
    %5 = arith.addf %2, %4 : vector<16x64xf32>
    %cst_5 = arith.constant dense<0.000000e+00> : vector<64xf32>
    %6 = vector.multi_reduction <add>, %5, %cst_5 [0] : vector<16x64xf32> to vector<64xf32>
    %7 = vector.shape_cast %6 : vector<64xf32> to vector<1x64xf32>
    %8 = arith.mulf %5, %5 : vector<16x64xf32>
    %cst_6 = arith.constant dense<0.000000e+00> : vector<64xf32>
    %9 = vector.multi_reduction <add>, %8, %cst_6 [0] : vector<16x64xf32> to vector<64xf32>
    %10 = vector.shape_cast %9 : vector<64xf32> to vector<1x64xf32>
    %cst_7 = arith.constant 6.250000e-02 : f32
    %11 = vector.broadcast %cst_7 : f32 to vector<1x64xf32>
    %12 = arith.mulf %7, %11 : vector<1x64xf32>
    %cst_8 = arith.constant 6.250000e-02 : f32
    %13 = vector.broadcast %cst_8 : f32 to vector<1x64xf32>
    %14 = arith.mulf %10, %13 : vector<1x64xf32>
    %15 = arith.mulf %12, %12 : vector<1x64xf32>
    %16 = arith.subf %14, %15 : vector<1x64xf32>
    %cst_9 = arith.constant 9.99999974E-6 : f32
    %17 = vector.broadcast %cst_9 : f32 to vector<1x64xf32>
    %18 = arith.addf %16, %17 : vector<1x64xf32>
    %19 = math.rsqrt %18 : vector<1x64xf32>
    %cst_10 = arith.constant 0.000000e+00 : f32
    %20 = vector.broadcast %cst_10 : f32 to vector<1x64xf32>
    %21 = arith.subf %20, %12 : vector<1x64xf32>
    %22 = arith.mulf %21, %19 : vector<1x64xf32>
    %23 = vector.broadcast %19 : vector<1x64xf32> to vector<16x64xf32>
    %24 = arith.mulf %5, %23 : vector<16x64xf32>
    %25 = vector.broadcast %22 : vector<1x64xf32> to vector<16x64xf32>
    %26 = arith.addf %24, %25 : vector<16x64xf32>
    %cst_11 = arith.constant 0.000000e+00 : f32
    %27 = vector.broadcast %cst_11 : f32 to vector<16x64xf32>
    %28 = arith.maximumf %26, %27 : vector<16x64xf32>
    %c0_12 = arith.constant 0 : index
    %c0_13 = arith.constant 0 : index
    %29 = vector.load %arg4[%c0_12, %c0_13] : memref<16x64xf32, #tpu.memory_space<vmem>>, vector<16x64xf32>
    tpu.vector_store %arg4[%c0_12, %c0_13], %28 {strides = array<i32>} : memref<16x64xf32, #tpu.memory_space<vmem>>, vector<16x64xf32>,
    return
  }
  func.func @transform_0(%arg0: i32) -> (i32, i32) {
    %c0_i32 = arith.constant 0 : i32
    %c0_i32_0 = arith.constant 0 : i32
    return %arg0, %c0_i32 : i32, i32
  }
  func.func @transform_1(%arg0: i32) -> (i32, i32) {
    %c0_i32 = arith.constant 0 : i32
    %c0_i32_0 = arith.constant 0 : i32
    %c0_i32_1 = arith.constant 0 : i32
    return %c0_i32, %c0_i32_0 : i32, i32
  }
  func.func @transform_2(%arg0: i32) -> (i32, i32) {
    %c0_i32 = arith.constant 0 : i32
    %c0_i32_0 = arith.constant 0 : i32
    %c0_i32_1 = arith.constant 0 : i32
    return %c0_i32, %c0_i32_0 : i32, i32
  }
  func.func @transform_3(%arg0: i32) -> (i32, i32) {
    %c0_i32 = arith.constant 0 : i32
    %c0_i32_0 = arith.constant 0 : i32
    return %arg0, %c0_i32 : i32, i32
  }
}

module attributes {stable_mosaic.version = 11 : i64} {
  func.func @_resblocks_kernel(%arg0: i32, %arg1: i32, %arg2: memref<1x16x64xf32, #tpu.memory_space<vmem>>, %arg3: memref<8x9x64xf32, #tpu.memory_space<vmem>>, %arg4: memref<8x1x64xf32, #tpu.memory_space<vmem>>, %arg5: memref<8x64x64xbf16, #tpu.memory_space<vmem>>, %arg6: memref<8x1x64xf32, #tpu.memory_space<vmem>>, %arg7: memref<8x9x64xf32, #tpu.memory_space<vmem>>, %arg8: memref<8x1x64xf32, #tpu.memory_space<vmem>>, %arg9: memref<8x64x64xbf16, #tpu.memory_space<vmem>>, %arg10: memref<8x1x64xf32, #tpu.memory_space<vmem>>, %arg11: memref<1x16x64xf32, #tpu.memory_space<vmem>>, %arg12: memref<16x64xf32, #tpu.memory_space<vmem>>) attributes {dimension_semantics = [#tpu.dimension_semantics<parallel>, #tpu.dimension_semantics<arbitrary>], iteration_bounds = array<i64: 2, 8>, scalar_prefetch = 0 : i64, scratch_operands = 1 : i64, tpu.core_type = #tpu.core_type<tc>, window_params = [{transform_indices = @transform_0, window_bounds = array<i64: 1, 16, 64>}, {pipeline_mode = #tpu.pipeline_mode<synchronous>, transform_indices = @transform_1, window_bounds = array<i64: 8, 9, 64>}, {pipeline_mode = #tpu.pipeline_mode<synchronous>, transform_indices = @transform_2, window_bounds = array<i64: 8, 1, 64>}, {pipeline_mode = #tpu.pipeline_mode<synchronous>, transform_indices = @transform_3, window_bounds = array<i64: 8, 64, 64>}, {pipeline_mode = #tpu.pipeline_mode<synchronous>, transform_indices = @transform_4, window_bounds = array<i64: 8, 1, 64>}, {pipeline_mode = #tpu.pipeline_mode<synchronous>, transform_indices = @transform_5, window_bounds = array<i64: 8, 9, 64>}, {pipeline_mode = #tpu.pipeline_mode<synchronous>, transform_indices = @transform_6, window_bounds = array<i64: 8, 1, 64>}, {pipeline_mode = #tpu.pipeline_mode<synchronous>, transform_indices = @transform_7, window_bounds = array<i64: 8, 64, 64>}, {pipeline_mode = #tpu.pipeline_mode<synchronous>, transform_indices = @transform_8, window_bounds = array<i64: 8, 1, 64>}, {transform_indices = @transform_9, window_bounds = array<i64: 1, 16, 64>}]} {
    %c0_i32 = arith.constant 0 : i32
    %0 = arith.cmpi eq, %arg1, %c0_i32 : i32
    %1 = arith.extui %0 : i1 to i32
    %c0_i32_0 = arith.constant 0 : i32
    %2 = arith.cmpi ne, %1, %c0_i32_0 : i32
    scf.if %2 {
      %c0_52 = arith.constant 0 : index
      %c0_53 = arith.constant 0 : index
      %c0_54 = arith.constant 0 : index
      %264 = vector.load %arg2[%c0_52, %c0_53, %c0_54] : memref<1x16x64xf32, #tpu.memory_space<vmem>>, vector<1x16x64xf32>
      %265 = vector.shape_cast %264 : vector<1x16x64xf32> to vector<16x64xf32>
      %c0_55 = arith.constant 0 : index
      %c0_56 = arith.constant 0 : index
      %266 = vector.load %arg12[%c0_55, %c0_56] : memref<16x64xf32, #tpu.memory_space<vmem>>, vector<16x64xf32>
      tpu.vector_store %arg12[%c0_55, %c0_56], %265 {strides = array<i32>} : memref<16x64xf32, #tpu.memory_space<vmem>>, vector<16x64xf32>,
    } else {
    }
    %c0 = arith.constant 0 : index
    %c0_1 = arith.constant 0 : index
    %3 = vector.load %arg12[%c0, %c0_1] : memref<16x64xf32, #tpu.memory_space<vmem>>, vector<16x64xf32>
    %4 = tpu.iota {dimensions = array<i32: 0>} : vector<16x1xi32>
    %c4_i32 = arith.constant 4 : i32
    %c0_i32_2 = arith.constant 0 : i32
    %5 = arith.cmpi eq, %c4_i32, %c0_i32_2 : i32
    %c1_i32 = arith.constant 1 : i32
    %6 = arith.select %5, %c1_i32, %c4_i32 : i32
    %7 = vector.broadcast %6 : i32 to vector<16x1xi32>
    %8 = arith.remsi %4, %7 : vector<16x1xi32>
    %c0_i32_3 = arith.constant 0 : i32
    %9 = vector.broadcast %c0_i32_3 : i32 to vector<16x1xi32>
    %10 = arith.cmpi ne, %8, %9 : vector<16x1xi32>
    %c0_i32_4 = arith.constant 0 : i32
    %11 = vector.broadcast %c0_i32_4 : i32 to vector<16x1xi32>
    %12 = arith.cmpi slt, %8, %11 : vector<16x1xi32>
    %c0_i32_5 = arith.constant 0 : i32
    %13 = arith.cmpi slt, %6, %c0_i32_5 : i32
    %14 = vector.broadcast %13 : i1 to vector<16x1xi1>
    %15 = vector.broadcast %14 : vector<16x1xi1> to vector<16x1xi1>
    %16 = arith.xori %12, %15 : vector<16x1xi1>
    %17 = arith.andi %16, %10 : vector<16x1xi1>
    %18 = vector.broadcast %6 : i32 to vector<16x1xi32>
    %19 = arith.addi %8, %18 : vector<16x1xi32>
    %20 = arith.select %17, %19, %8 : vector<16x1xi1>, vector<16x1xi32>
    %c0_i32_6 = arith.constant 0 : i32
    %21 = vector.broadcast %c0_i32_6 : i32 to vector<16x1xi32>
    %22 = arith.cmpi ne, %20, %21 : vector<16x1xi32>
    %23 = arith.extui %22 : vector<16x1xi1> to vector<16x1xi32>
    %24 = arith.sitofp %23 : vector<16x1xi32> to vector<16x1xf32>
    %c3_i32 = arith.constant 3 : i32
    %25 = vector.broadcast %c3_i32 : i32 to vector<16x1xi32>
    %26 = arith.cmpi ne, %20, %25 : vector<16x1xi32>
    %27 = arith.extui %26 : vector<16x1xi1> to vector<16x1xi32>
    %28 = arith.sitofp %27 : vector<16x1xi32> to vector<16x1xf32>
    %29 = arith.index_cast %arg1 : i32 to index
    %c0_7 = arith.constant 0 : index
    %c0_8 = arith.constant 0 : index
    %30 = vector.load %arg3[%29, %c0_7, %c0_8] : memref<8x9x64xf32, #tpu.memory_space<vmem>>, vector<1x9x64xf32>
    %31 = vector.shape_cast %30 : vector<1x9x64xf32> to vector<9x64xf32>
    %32 = arith.index_cast %arg1 : i32 to index
    %c0_9 = arith.constant 0 : index
    %c0_10 = arith.constant 0 : index
    %33 = vector.load %arg4[%32, %c0_9, %c0_10] : memref<8x1x64xf32, #tpu.memory_space<vmem>>, vector<1x1x64xf32>
    %34 = vector.shape_cast %33 : vector<1x1x64xf32> to vector<1x64xf32>
    %cst = arith.constant 0.000000e+00 : f32
    %35 = vector.broadcast %cst : f32 to vector<5x64xf32>
    %36 = tpu.concatenate %35, %3, %35 in 0 : vector<5x64xf32>, vector<16x64xf32>, vector<5x64xf32> -> vector<26x64xf32>
    %cst_11 = arith.constant 0.000000e+00 : f32
    %37 = vector.broadcast %cst_11 : f32 to vector<16x64xf32>
    %38 = vector.extract_strided_slice %36 {offsets = [0, 0], sizes = [16, 64], strides = [1, 1]} : vector<26x64xf32> to vector<16x64xf32>
    %39 = vector.broadcast %24 : vector<16x1xf32> to vector<16x64xf32>
    %40 = arith.mulf %38, %39 : vector<16x64xf32>
    %41 = vector.extract_strided_slice %31 {offsets = [0, 0], sizes = [1, 64], strides = [1, 1]} : vector<9x64xf32> to vector<1x64xf32>
    %42 = vector.broadcast %41 : vector<1x64xf32> to vector<16x64xf32>
    %43 = arith.mulf %40, %42 : vector<16x64xf32>
    %44 = arith.addf %37, %43 : vector<16x64xf32>
    %45 = vector.extract_strided_slice %36 {offsets = [1, 0], sizes = [16, 64], strides = [1, 1]} : vector<26x64xf32> to vector<16x64xf32>
    %46 = vector.extract_strided_slice %31 {offsets = [1, 0], sizes = [1, 64], strides = [1, 1]} : vector<9x64xf32> to vector<1x64xf32>
    %47 = vector.broadcast %46 : vector<1x64xf32> to vector<16x64xf32>
    %48 = arith.mulf %45, %47 : vector<16x64xf32>
    %49 = arith.addf %44, %48 : vector<16x64xf32>
    %50 = vector.extract_strided_slice %36 {offsets = [2, 0], sizes = [16, 64], strides = [1, 1]} : vector<26x64xf32> to vector<16x64xf32>
    %51 = vector.broadcast %28 : vector<16x1xf32> to vector<16x64xf32>
    %52 = arith.mulf %50, %51 : vector<16x64xf32>
    %53 = vector.extract_strided_slice %31 {offsets = [2, 0], sizes = [1, 64], strides = [1, 1]} : vector<9x64xf32> to vector<1x64xf32>
    %54 = vector.broadcast %53 : vector<1x64xf32> to vector<16x64xf32>
    %55 = arith.mulf %52, %54 : vector<16x64xf32>
    %56 = arith.addf %49, %55 : vector<16x64xf32>
    %57 = vector.extract_strided_slice %36 {offsets = [4, 0], sizes = [16, 64], strides = [1, 1]} : vector<26x64xf32> to vector<16x64xf32>
    %58 = vector.broadcast %24 : vector<16x1xf32> to vector<16x64xf32>
    %59 = arith.mulf %57, %58 : vector<16x64xf32>
    %60 = vector.extract_strided_slice %31 {offsets = [3, 0], sizes = [1, 64], strides = [1, 1]} : vector<9x64xf32> to vector<1x64xf32>
    %61 = vector.broadcast %60 : vector<1x64xf32> to vector<16x64xf32>
    %62 = arith.mulf %59, %61 : vector<16x64xf32>
    %63 = arith.addf %56, %62 : vector<16x64xf32>
    %64 = vector.extract_strided_slice %36 {offsets = [5, 0], sizes = [16, 64], strides = [1, 1]} : vector<26x64xf32> to vector<16x64xf32>
    %65 = vector.extract_strided_slice %31 {offsets = [4, 0], sizes = [1, 64], strides = [1, 1]} : vector<9x64xf32> to vector<1x64xf32>
    %66 = vector.broadcast %65 : vector<1x64xf32> to vector<16x64xf32>
    %67 = arith.mulf %64, %66 : vector<16x64xf32>
    %68 = arith.addf %63, %67 : vector<16x64xf32>
    %69 = vector.extract_strided_slice %36 {offsets = [6, 0], sizes = [16, 64], strides = [1, 1]} : vector<26x64xf32> to vector<16x64xf32>
    %70 = vector.broadcast %28 : vector<16x1xf32> to vector<16x64xf32>
    %71 = arith.mulf %69, %70 : vector<16x64xf32>
    %72 = vector.extract_strided_slice %31 {offsets = [5, 0], sizes = [1, 64], strides = [1, 1]} : vector<9x64xf32> to vector<1x64xf32>
    %73 = vector.broadcast %72 : vector<1x64xf32> to vector<16x64xf32>
    %74 = arith.mulf %71, %73 : vector<16x64xf32>
    %75 = arith.addf %68, %74 : vector<16x64xf32>
    %76 = vector.extract_strided_slice %36 {offsets = [8, 0], sizes = [16, 64], strides = [1, 1]} : vector<26x64xf32> to vector<16x64xf32>
    %77 = vector.broadcast %24 : vector<16x1xf32> to vector<16x64xf32>
    %78 = arith.mulf %76, %77 : vector<16x64xf32>
    %79 = vector.extract_strided_slice %31 {offsets = [6, 0], sizes = [1, 64], strides = [1, 1]} : vector<9x64xf32> to vector<1x64xf32>
    %80 = vector.broadcast %79 : vector<1x64xf32> to vector<16x64xf32>
    %81 = arith.mulf %78, %80 : vector<16x64xf32>
    %82 = arith.addf %75, %81 : vector<16x64xf32>
    %83 = vector.extract_strided_slice %36 {offsets = [9, 0], sizes = [16, 64], strides = [1, 1]} : vector<26x64xf32> to vector<16x64xf32>
    %84 = vector.extract_strided_slice %31 {offsets = [7, 0], sizes = [1, 64], strides = [1, 1]} : vector<9x64xf32> to vector<1x64xf32>
    %85 = vector.broadcast %84 : vector<1x64xf32> to vector<16x64xf32>
    %86 = arith.mulf %83, %85 : vector<16x64xf32>
    %87 = arith.addf %82, %86 : vector<16x64xf32>
    %88 = vector.extract_strided_slice %36 {offsets = [10, 0], sizes = [16, 64], strides = [1, 1]} : vector<26x64xf32> to vector<16x64xf32>
    %89 = vector.broadcast %28 : vector<16x1xf32> to vector<16x64xf32>
    %90 = arith.mulf %88, %89 : vector<16x64xf32>
    %91 = vector.extract_strided_slice %31 {offsets = [8, 0], sizes = [1, 64], strides = [1, 1]} : vector<9x64xf32> to vector<1x64xf32>
    %92 = vector.broadcast %91 : vector<1x64xf32> to vector<16x64xf32>
    %93 = arith.mulf %90, %92 : vector<16x64xf32>
    %94 = arith.addf %87, %93 : vector<16x64xf32>
    %95 = vector.broadcast %34 : vector<1x64xf32> to vector<16x64xf32>
    %96 = arith.addf %94, %95 : vector<16x64xf32>
    %cst_12 = arith.constant dense<0.000000e+00> : vector<64xf32>
    %97 = vector.multi_reduction <add>, %96, %cst_12 [0] : vector<16x64xf32> to vector<64xf32>
    %98 = vector.shape_cast %97 : vector<64xf32> to vector<1x64xf32>
    %cst_13 = arith.constant 1.600000e+01 : f32
    %99 = vector.broadcast %cst_13 : f32 to vector<1x64xf32>
    %100 = arith.divf %98, %99 : vector<1x64xf32>
    %101 = arith.mulf %96, %96 : vector<16x64xf32>
    %cst_14 = arith.constant dense<0.000000e+00> : vector<64xf32>
    %102 = vector.multi_reduction <add>, %101, %cst_14 [0] : vector<16x64xf32> to vector<64xf32>
    %103 = vector.shape_cast %102 : vector<64xf32> to vector<1x64xf32>
    %cst_15 = arith.constant 1.600000e+01 : f32
    %104 = vector.broadcast %cst_15 : f32 to vector<1x64xf32>
    %105 = arith.divf %103, %104 : vector<1x64xf32>
    %106 = arith.mulf %100, %100 : vector<1x64xf32>
    %107 = arith.subf %105, %106 : vector<1x64xf32>
    %108 = vector.broadcast %100 : vector<1x64xf32> to vector<16x64xf32>
    %109 = arith.subf %96, %108 : vector<16x64xf32>
    %cst_16 = arith.constant 9.99999974E-6 : f32
    %110 = vector.broadcast %cst_16 : f32 to vector<1x64xf32>
    %111 = arith.addf %107, %110 : vector<1x64xf32>
    %112 = math.rsqrt %111 : vector<1x64xf32>
    %113 = vector.broadcast %112 : vector<1x64xf32> to vector<16x64xf32>
    %114 = arith.mulf %109, %113 : vector<16x64xf32>
    %115 = arith.index_cast %arg1 : i32 to index
    %c0_17 = arith.constant 0 : index
    %c0_18 = arith.constant 0 : index
    %116 = vector.load %arg5[%115, %c0_17, %c0_18] : memref<8x64x64xbf16, #tpu.memory_space<vmem>>, vector<1x64x64xbf16>
    %117 = vector.shape_cast %116 : vector<1x64x64xbf16> to vector<64x64xbf16>
    %118 = arith.index_cast %arg1 : i32 to index
    %c0_19 = arith.constant 0 : index
    %c0_20 = arith.constant 0 : index
    %119 = vector.load %arg6[%118, %c0_19, %c0_20] : memref<8x1x64xf32, #tpu.memory_space<vmem>>, vector<1x1x64xf32>
    %120 = vector.shape_cast %119 : vector<1x1x64xf32> to vector<1x64xf32>
    %121 = arith.truncf %114 : vector<16x64xf32> to vector<16x64xbf16>
    %cst_21 = arith.constant dense<0.000000e+00> : vector<16x64xf32>
    %122 = tpu.matmul %121, %117, %cst_21 {dimension_numbers = #tpu.dot_dimension_numbers<[1], [0], [0], [1], [0, 0, 1, 1], [], []>} : vector<16x64xbf16>, vector<64x64xbf16>, vector<16x64xf32> -> vector<16x64xf32>
    %123 = vector.broadcast %120 : vector<1x64xf32> to vector<16x64xf32>
    %124 = arith.addf %122, %123 : vector<16x64xf32>
    %cst_22 = arith.constant dense<0.000000e+00> : vector<64xf32>
    %125 = vector.multi_reduction <add>, %124, %cst_22 [0] : vector<16x64xf32> to vector<64xf32>
    %126 = vector.shape_cast %125 : vector<64xf32> to vector<1x64xf32>
    %cst_23 = arith.constant 1.600000e+01 : f32
    %127 = vector.broadcast %cst_23 : f32 to vector<1x64xf32>
    %128 = arith.divf %126, %127 : vector<1x64xf32>
    %129 = arith.mulf %124, %124 : vector<16x64xf32>
    %cst_24 = arith.constant dense<0.000000e+00> : vector<64xf32>
    %130 = vector.multi_reduction <add>, %129, %cst_24 [0] : vector<16x64xf32> to vector<64xf32>
    %131 = vector.shape_cast %130 : vector<64xf32> to vector<1x64xf32>
    %cst_25 = arith.constant 1.600000e+01 : f32
    %132 = vector.broadcast %cst_25 : f32 to vector<1x64xf32>
    %133 = arith.divf %131, %132 : vector<1x64xf32>
    %134 = arith.mulf %128, %128 : vector<1x64xf32>
    %135 = arith.subf %133, %134 : vector<1x64xf32>
    %136 = vector.broadcast %128 : vector<1x64xf32> to vector<16x64xf32>
    %137 = arith.subf %124, %136 : vector<16x64xf32>
    %cst_26 = arith.constant 9.99999974E-6 : f32
    %138 = vector.broadcast %cst_26 : f32 to vector<1x64xf32>
    %139 = arith.addf %135, %138 : vector<1x64xf32>
    %140 = math.rsqrt %139 : vector<1x64xf32>
    %141 = vector.broadcast %140 : vector<1x64xf32> to vector<16x64xf32>
    %142 = arith.mulf %137, %141 : vector<16x64xf32>
    %cst_27 = arith.constant 0.000000e+00 : f32
    %143 = vector.broadcast %cst_27 : f32 to vector<16x64xf32>
    %144 = arith.maximumf %142, %143 : vector<16x64xf32>
    %145 = arith.index_cast %arg1 : i32 to index
    %c0_28 = arith.constant 0 : index
    %c0_29 = arith.constant 0 : index
    %146 = vector.load %arg7[%145, %c0_28, %c0_29] : memref<8x9x64xf32, #tpu.memory_space<vmem>>, vector<1x9x64xf32>
    %147 = vector.shape_cast %146 : vector<1x9x64xf32> to vector<9x64xf32>
    %148 = arith.index_cast %arg1 : i32 to index
    %c0_30 = arith.constant 0 : index
    %c0_31 = arith.constant 0 : index
    %149 = vector.load %arg8[%148, %c0_30, %c0_31] : memref<8x1x64xf32, #tpu.memory_space<vmem>>, vector<1x1x64xf32>
    %150 = vector.shape_cast %149 : vector<1x1x64xf32> to vector<1x64xf32>
    %cst_32 = arith.constant 0.000000e+00 : f32
    %151 = vector.broadcast %cst_32 : f32 to vector<5x64xf32>
    %152 = tpu.concatenate %151, %144, %151 in 0 : vector<5x64xf32>, vector<16x64xf32>, vector<5x64xf32> -> vector<26x64xf32>
    %cst_33 = arith.constant 0.000000e+00 : f32
    %153 = vector.broadcast %cst_33 : f32 to vector<16x64xf32>
    %154 = vector.extract_strided_slice %152 {offsets = [0, 0], sizes = [16, 64], strides = [1, 1]} : vector<26x64xf32> to vector<16x64xf32>
    %155 = vector.broadcast %24 : vector<16x1xf32> to vector<16x64xf32>
    %156 = arith.mulf %154, %155 : vector<16x64xf32>
    %157 = vector.extract_strided_slice %147 {offsets = [0, 0], sizes = [1, 64], strides = [1, 1]} : vector<9x64xf32> to vector<1x64xf32>
    %158 = vector.broadcast %157 : vector<1x64xf32> to vector<16x64xf32>
    %159 = arith.mulf %156, %158 : vector<16x64xf32>
    %160 = arith.addf %153, %159 : vector<16x64xf32>
    %161 = vector.extract_strided_slice %152 {offsets = [1, 0], sizes = [16, 64], strides = [1, 1]} : vector<26x64xf32> to vector<16x64xf32>
    %162 = vector.extract_strided_slice %147 {offsets = [1, 0], sizes = [1, 64], strides = [1, 1]} : vector<9x64xf32> to vector<1x64xf32>
    %163 = vector.broadcast %162 : vector<1x64xf32> to vector<16x64xf32>
    %164 = arith.mulf %161, %163 : vector<16x64xf32>
    %165 = arith.addf %160, %164 : vector<16x64xf32>
    %166 = vector.extract_strided_slice %152 {offsets = [2, 0], sizes = [16, 64], strides = [1, 1]} : vector<26x64xf32> to vector<16x64xf32>
    %167 = vector.broadcast %28 : vector<16x1xf32> to vector<16x64xf32>
    %168 = arith.mulf %166, %167 : vector<16x64xf32>
    %169 = vector.extract_strided_slice %147 {offsets = [2, 0], sizes = [1, 64], strides = [1, 1]} : vector<9x64xf32> to vector<1x64xf32>
    %170 = vector.broadcast %169 : vector<1x64xf32> to vector<16x64xf32>
    %171 = arith.mulf %168, %170 : vector<16x64xf32>
    %172 = arith.addf %165, %171 : vector<16x64xf32>
    %173 = vector.extract_strided_slice %152 {offsets = [4, 0], sizes = [16, 64], strides = [1, 1]} : vector<26x64xf32> to vector<16x64xf32>
    %174 = vector.broadcast %24 : vector<16x1xf32> to vector<16x64xf32>
    %175 = arith.mulf %173, %174 : vector<16x64xf32>
    %176 = vector.extract_strided_slice %147 {offsets = [3, 0], sizes = [1, 64], strides = [1, 1]} : vector<9x64xf32> to vector<1x64xf32>
    %177 = vector.broadcast %176 : vector<1x64xf32> to vector<16x64xf32>
    %178 = arith.mulf %175, %177 : vector<16x64xf32>
    %179 = arith.addf %172, %178 : vector<16x64xf32>
    %180 = vector.extract_strided_slice %152 {offsets = [5, 0], sizes = [16, 64], strides = [1, 1]} : vector<26x64xf32> to vector<16x64xf32>
    %181 = vector.extract_strided_slice %147 {offsets = [4, 0], sizes = [1, 64], strides = [1, 1]} : vector<9x64xf32> to vector<1x64xf32>
    %182 = vector.broadcast %181 : vector<1x64xf32> to vector<16x64xf32>
    %183 = arith.mulf %180, %182 : vector<16x64xf32>
    %184 = arith.addf %179, %183 : vector<16x64xf32>
    %185 = vector.extract_strided_slice %152 {offsets = [6, 0], sizes = [16, 64], strides = [1, 1]} : vector<26x64xf32> to vector<16x64xf32>
    %186 = vector.broadcast %28 : vector<16x1xf32> to vector<16x64xf32>
    %187 = arith.mulf %185, %186 : vector<16x64xf32>
    %188 = vector.extract_strided_slice %147 {offsets = [5, 0], sizes = [1, 64], strides = [1, 1]} : vector<9x64xf32> to vector<1x64xf32>
    %189 = vector.broadcast %188 : vector<1x64xf32> to vector<16x64xf32>
    %190 = arith.mulf %187, %189 : vector<16x64xf32>
    %191 = arith.addf %184, %190 : vector<16x64xf32>
    %192 = vector.extract_strided_slice %152 {offsets = [8, 0], sizes = [16, 64], strides = [1, 1]} : vector<26x64xf32> to vector<16x64xf32>
    %193 = vector.broadcast %24 : vector<16x1xf32> to vector<16x64xf32>
    %194 = arith.mulf %192, %193 : vector<16x64xf32>
    %195 = vector.extract_strided_slice %147 {offsets = [6, 0], sizes = [1, 64], strides = [1, 1]} : vector<9x64xf32> to vector<1x64xf32>
    %196 = vector.broadcast %195 : vector<1x64xf32> to vector<16x64xf32>
    %197 = arith.mulf %194, %196 : vector<16x64xf32>
    %198 = arith.addf %191, %197 : vector<16x64xf32>
    %199 = vector.extract_strided_slice %152 {offsets = [9, 0], sizes = [16, 64], strides = [1, 1]} : vector<26x64xf32> to vector<16x64xf32>
    %200 = vector.extract_strided_slice %147 {offsets = [7, 0], sizes = [1, 64], strides = [1, 1]} : vector<9x64xf32> to vector<1x64xf32>
    %201 = vector.broadcast %200 : vector<1x64xf32> to vector<16x64xf32>
    %202 = arith.mulf %199, %201 : vector<16x64xf32>
    %203 = arith.addf %198, %202 : vector<16x64xf32>
    %204 = vector.extract_strided_slice %152 {offsets = [10, 0], sizes = [16, 64], strides = [1, 1]} : vector<26x64xf32> to vector<16x64xf32>
    %205 = vector.broadcast %28 : vector<16x1xf32> to vector<16x64xf32>
    %206 = arith.mulf %204, %205 : vector<16x64xf32>
    %207 = vector.extract_strided_slice %147 {offsets = [8, 0], sizes = [1, 64], strides = [1, 1]} : vector<9x64xf32> to vector<1x64xf32>
    %208 = vector.broadcast %207 : vector<1x64xf32> to vector<16x64xf32>
    %209 = arith.mulf %206, %208 : vector<16x64xf32>
    %210 = arith.addf %203, %209 : vector<16x64xf32>
    %211 = vector.broadcast %150 : vector<1x64xf32> to vector<16x64xf32>
    %212 = arith.addf %210, %211 : vector<16x64xf32>
    %cst_34 = arith.constant dense<0.000000e+00> : vector<64xf32>
    %213 = vector.multi_reduction <add>, %212, %cst_34 [0] : vector<16x64xf32> to vector<64xf32>
    %214 = vector.shape_cast %213 : vector<64xf32> to vector<1x64xf32>
    %cst_35 = arith.constant 1.600000e+01 : f32
    %215 = vector.broadcast %cst_35 : f32 to vector<1x64xf32>
    %216 = arith.divf %214, %215 : vector<1x64xf32>
    %217 = arith.mulf %212, %212 : vector<16x64xf32>
    %cst_36 = arith.constant dense<0.000000e+00> : vector<64xf32>
    %218 = vector.multi_reduction <add>, %217, %cst_36 [0] : vector<16x64xf32> to vector<64xf32>
    %219 = vector.shape_cast %218 : vector<64xf32> to vector<1x64xf32>
    %cst_37 = arith.constant 1.600000e+01 : f32
    %220 = vector.broadcast %cst_37 : f32 to vector<1x64xf32>
    %221 = arith.divf %219, %220 : vector<1x64xf32>
    %222 = arith.mulf %216, %216 : vector<1x64xf32>
    %223 = arith.subf %221, %222 : vector<1x64xf32>
    %224 = vector.broadcast %216 : vector<1x64xf32> to vector<16x64xf32>
    %225 = arith.subf %212, %224 : vector<16x64xf32>
    %cst_38 = arith.constant 9.99999974E-6 : f32
    %226 = vector.broadcast %cst_38 : f32 to vector<1x64xf32>
    %227 = arith.addf %223, %226 : vector<1x64xf32>
    %228 = math.rsqrt %227 : vector<1x64xf32>
    %229 = vector.broadcast %228 : vector<1x64xf32> to vector<16x64xf32>
    %230 = arith.mulf %225, %229 : vector<16x64xf32>
    %231 = arith.index_cast %arg1 : i32 to index
    %c0_39 = arith.constant 0 : index
    %c0_40 = arith.constant 0 : index
    %232 = vector.load %arg9[%231, %c0_39, %c0_40] : memref<8x64x64xbf16, #tpu.memory_space<vmem>>, vector<1x64x64xbf16>
    %233 = vector.shape_cast %232 : vector<1x64x64xbf16> to vector<64x64xbf16>
    %234 = arith.index_cast %arg1 : i32 to index
    %c0_41 = arith.constant 0 : index
    %c0_42 = arith.constant 0 : index
    %235 = vector.load %arg10[%234, %c0_41, %c0_42] : memref<8x1x64xf32, #tpu.memory_space<vmem>>, vector<1x1x64xf32>
    %236 = vector.shape_cast %235 : vector<1x1x64xf32> to vector<1x64xf32>
    %237 = arith.truncf %230 : vector<16x64xf32> to vector<16x64xbf16>
    %cst_43 = arith.constant dense<0.000000e+00> : vector<16x64xf32>
    %238 = tpu.matmul %237, %233, %cst_43 {dimension_numbers = #tpu.dot_dimension_numbers<[1], [0], [0], [1], [0, 0, 1, 1], [], []>} : vector<16x64xbf16>, vector<64x64xbf16>, vector<16x64xf32> -> vector<16x64xf32>
    %239 = vector.broadcast %236 : vector<1x64xf32> to vector<16x64xf32>
    %240 = arith.addf %238, %239 : vector<16x64xf32>
    %cst_44 = arith.constant dense<0.000000e+00> : vector<64xf32>
    %241 = vector.multi_reduction <add>, %240, %cst_44 [0] : vector<16x64xf32> to vector<64xf32>
    %242 = vector.shape_cast %241 : vector<64xf32> to vector<1x64xf32>
    %cst_45 = arith.constant 1.600000e+01 : f32
    %243 = vector.broadcast %cst_45 : f32 to vector<1x64xf32>
    %244 = arith.divf %242, %243 : vector<1x64xf32>
    %245 = arith.mulf %240, %240 : vector<16x64xf32>
    %cst_46 = arith.constant dense<0.000000e+00> : vector<64xf32>
    %246 = vector.multi_reduction <add>, %245, %cst_46 [0] : vector<16x64xf32> to vector<64xf32>
    %247 = vector.shape_cast %246 : vector<64xf32> to vector<1x64xf32>
    %cst_47 = arith.constant 1.600000e+01 : f32
    %248 = vector.broadcast %cst_47 : f32 to vector<1x64xf32>
    %249 = arith.divf %247, %248 : vector<1x64xf32>
    %250 = arith.mulf %244, %244 : vector<1x64xf32>
    %251 = arith.subf %249, %250 : vector<1x64xf32>
    %252 = vector.broadcast %244 : vector<1x64xf32> to vector<16x64xf32>
    %253 = arith.subf %240, %252 : vector<16x64xf32>
    %cst_48 = arith.constant 9.99999974E-6 : f32
    %254 = vector.broadcast %cst_48 : f32 to vector<1x64xf32>
    %255 = arith.addf %251, %254 : vector<1x64xf32>
    %256 = math.rsqrt %255 : vector<1x64xf32>
    %257 = vector.broadcast %256 : vector<1x64xf32> to vector<16x64xf32>
    %258 = arith.mulf %253, %257 : vector<16x64xf32>
    %259 = arith.addf %3, %258 : vector<16x64xf32>
    %c0_49 = arith.constant 0 : index
    %c0_50 = arith.constant 0 : index
    %260 = vector.load %arg12[%c0_49, %c0_50] : memref<16x64xf32, #tpu.memory_space<vmem>>, vector<16x64xf32>
    tpu.vector_store %arg12[%c0_49, %c0_50], %259 {strides = array<i32>} : memref<16x64xf32, #tpu.memory_space<vmem>>, vector<16x64xf32>,
    %c7_i32 = arith.constant 7 : i32
    %261 = arith.cmpi eq, %arg1, %c7_i32 : i32
    %262 = arith.extui %261 : i1 to i32
    %c0_i32_51 = arith.constant 0 : i32
    %263 = arith.cmpi ne, %262, %c0_i32_51 : i32
    scf.if %263 {
      %c0_52 = arith.constant 0 : index
      %c0_53 = arith.constant 0 : index
      %c0_54 = arith.constant 0 : index
      %264 = vector.load %arg11[%c0_52, %c0_53, %c0_54] : memref<1x16x64xf32, #tpu.memory_space<vmem>>, vector<1x16x64xf32>
      %265 = vector.shape_cast %264 : vector<1x16x64xf32> to vector<16x64xf32>
      %266 = vector.shape_cast %259 : vector<16x64xf32> to vector<1x16x64xf32>
      tpu.vector_store %arg11[%c0_52, %c0_53, %c0_54], %266 {strides = array<i32>} : memref<1x16x64xf32, #tpu.memory_space<vmem>>, vector<1x16x64xf32>,
    } else {
    }
    return
  }
  func.func @transform_0(%arg0: i32, %arg1: i32) -> (i32, i32, i32) {
    %c0_i32 = arith.constant 0 : i32
    %c0_i32_0 = arith.constant 0 : i32
    %c0_i32_1 = arith.constant 0 : i32
    return %arg0, %c0_i32, %c0_i32_0 : i32, i32, i32
  }
  func.func @transform_1(%arg0: i32, %arg1: i32) -> (i32, i32, i32) {
    %c0_i32 = arith.constant 0 : i32
    %c0_i32_0 = arith.constant 0 : i32
    %c0_i32_1 = arith.constant 0 : i32
    %c0_i32_2 = arith.constant 0 : i32
    return %c0_i32, %c0_i32_0, %c0_i32_1 : i32, i32, i32
  }
  func.func @transform_2(%arg0: i32, %arg1: i32) -> (i32, i32, i32) {
    %c0_i32 = arith.constant 0 : i32
    %c0_i32_0 = arith.constant 0 : i32
    %c0_i32_1 = arith.constant 0 : i32
    %c0_i32_2 = arith.constant 0 : i32
    return %c0_i32, %c0_i32_0, %c0_i32_1 : i32, i32, i32
  }
  func.func @transform_3(%arg0: i32, %arg1: i32) -> (i32, i32, i32) {
    %c0_i32 = arith.constant 0 : i32
    %c0_i32_0 = arith.constant 0 : i32
    %c0_i32_1 = arith.constant 0 : i32
    %c0_i32_2 = arith.constant 0 : i32
    return %c0_i32, %c0_i32_0, %c0_i32_1 : i32, i32, i32
  }
  func.func @transform_4(%arg0: i32, %arg1: i32) -> (i32, i32, i32) {
    %c0_i32 = arith.constant 0 : i32
    %c0_i32_0 = arith.constant 0 : i32
    %c0_i32_1 = arith.constant 0 : i32
    %c0_i32_2 = arith.constant 0 : i32
    return %c0_i32, %c0_i32_0, %c0_i32_1 : i32, i32, i32
  }
  func.func @transform_5(%arg0: i32, %arg1: i32) -> (i32, i32, i32) {
    %c0_i32 = arith.constant 0 : i32
    %c0_i32_0 = arith.constant 0 : i32
    %c0_i32_1 = arith.constant 0 : i32
    %c0_i32_2 = arith.constant 0 : i32
    return %c0_i32, %c0_i32_0, %c0_i32_1 : i32, i32, i32
  }
  func.func @transform_6(%arg0: i32, %arg1: i32) -> (i32, i32, i32) {
    %c0_i32 = arith.constant 0 : i32
    %c0_i32_0 = arith.constant 0 : i32
    %c0_i32_1 = arith.constant 0 : i32
    %c0_i32_2 = arith.constant 0 : i32
    return %c0_i32, %c0_i32_0, %c0_i32_1 : i32, i32, i32
  }
  func.func @transform_7(%arg0: i32, %arg1: i32) -> (i32, i32, i32) {
    %c0_i32 = arith.constant 0 : i32
    %c0_i32_0 = arith.constant 0 : i32
    %c0_i32_1 = arith.constant 0 : i32
    %c0_i32_2 = arith.constant 0 : i32
    return %c0_i32, %c0_i32_0, %c0_i32_1 : i32, i32, i32
  }
  func.func @transform_8(%arg0: i32, %arg1: i32) -> (i32, i32, i32) {
    %c0_i32 = arith.constant 0 : i32
    %c0_i32_0 = arith.constant 0 : i32
    %c0_i32_1 = arith.constant 0 : i32
    %c0_i32_2 = arith.constant 0 : i32
    return %c0_i32, %c0_i32_0, %c0_i32_1 : i32, i32, i32
  }
  func.func @transform_9(%arg0: i32, %arg1: i32) -> (i32, i32, i32) {
    %c0_i32 = arith.constant 0 : i32
    %c0_i32_0 = arith.constant 0 : i32
    %c0_i32_1 = arith.constant 0 : i32
    return %arg0, %c0_i32, %c0_i32_0 : i32, i32, i32
  }
}

module attributes {stable_mosaic.version = 11 : i64} {
  func.func @_matmul_kernel(%arg0: i32, %arg1: memref<16x256xbf16, #tpu.memory_space<vmem>>, %arg2: memref<256x128xbf16, #tpu.memory_space<vmem>>, %arg3: memref<1x128xf32, #tpu.memory_space<vmem>>, %arg4: memref<16x128xf32, #tpu.memory_space<vmem>>) attributes {dimension_semantics = [#tpu.dimension_semantics<parallel>], iteration_bounds = array<i64: 2>, scalar_prefetch = 0 : i64, scratch_operands = 0 : i64, tpu.core_type = #tpu.core_type<tc>, window_params = [{transform_indices = @transform_0, window_bounds = array<i64: 16, 256>}, {pipeline_mode = #tpu.pipeline_mode<synchronous>, transform_indices = @transform_1, window_bounds = array<i64: 256, 128>}, {pipeline_mode = #tpu.pipeline_mode<synchronous>, transform_indices = @transform_2, window_bounds = array<i64: 1, 128>}, {transform_indices = @transform_3, window_bounds = array<i64: 16, 128>}]} {
    %c0 = arith.constant 0 : index
    %c0_0 = arith.constant 0 : index
    %0 = vector.load %arg1[%c0, %c0_0] : memref<16x256xbf16, #tpu.memory_space<vmem>>, vector<16x256xbf16>
    %c0_1 = arith.constant 0 : index
    %c0_2 = arith.constant 0 : index
    %1 = vector.load %arg2[%c0_1, %c0_2] : memref<256x128xbf16, #tpu.memory_space<vmem>>, vector<256x128xbf16>
    %cst = arith.constant dense<0.000000e+00> : vector<16x128xf32>
    %2 = tpu.matmul %0, %1, %cst {dimension_numbers = #tpu.dot_dimension_numbers<[1], [0], [0], [1], [0, 0, 1, 1], [], []>} : vector<16x256xbf16>, vector<256x128xbf16>, vector<16x128xf32> -> vector<16x128xf32>
    %c0_3 = arith.constant 0 : index
    %c0_4 = arith.constant 0 : index
    %3 = vector.load %arg3[%c0_3, %c0_4] : memref<1x128xf32, #tpu.memory_space<vmem>>, vector<1x128xf32>
    %4 = vector.broadcast %3 : vector<1x128xf32> to vector<16x128xf32>
    %5 = arith.addf %2, %4 : vector<16x128xf32>
    %cst_5 = arith.constant dense<0.000000e+00> : vector<128xf32>
    %6 = vector.multi_reduction <add>, %5, %cst_5 [0] : vector<16x128xf32> to vector<128xf32>
    %7 = vector.shape_cast %6 : vector<128xf32> to vector<1x128xf32>
    %8 = arith.mulf %5, %5 : vector<16x128xf32>
    %cst_6 = arith.constant dense<0.000000e+00> : vector<128xf32>
    %9 = vector.multi_reduction <add>, %8, %cst_6 [0] : vector<16x128xf32> to vector<128xf32>
    %10 = vector.shape_cast %9 : vector<128xf32> to vector<1x128xf32>
    %11 = vector.extract_strided_slice %7 {offsets = [0, 0], sizes = [1, 32], strides = [1, 1]} : vector<1x128xf32> to vector<1x32xf32>
    %cst_7 = arith.constant 0.000000e+00 : f32
    %12 = vector.broadcast %cst_7 : f32 to vector<1x32xf32>
    %13 = arith.addf %12, %11 : vector<1x32xf32>
    %14 = vector.extract_strided_slice %7 {offsets = [0, 32], sizes = [1, 32], strides = [1, 1]} : vector<1x128xf32> to vector<1x32xf32>
    %15 = arith.addf %13, %14 : vector<1x32xf32>
    %16 = vector.extract_strided_slice %7 {offsets = [0, 64], sizes = [1, 32], strides = [1, 1]} : vector<1x128xf32> to vector<1x32xf32>
    %17 = arith.addf %15, %16 : vector<1x32xf32>
    %18 = vector.extract_strided_slice %7 {offsets = [0, 96], sizes = [1, 32], strides = [1, 1]} : vector<1x128xf32> to vector<1x32xf32>
    %19 = arith.addf %17, %18 : vector<1x32xf32>
    %20 = vector.extract_strided_slice %10 {offsets = [0, 0], sizes = [1, 32], strides = [1, 1]} : vector<1x128xf32> to vector<1x32xf32>
    %cst_8 = arith.constant 0.000000e+00 : f32
    %21 = vector.broadcast %cst_8 : f32 to vector<1x32xf32>
    %22 = arith.addf %21, %20 : vector<1x32xf32>
    %23 = vector.extract_strided_slice %10 {offsets = [0, 32], sizes = [1, 32], strides = [1, 1]} : vector<1x128xf32> to vector<1x32xf32>
    %24 = arith.addf %22, %23 : vector<1x32xf32>
    %25 = vector.extract_strided_slice %10 {offsets = [0, 64], sizes = [1, 32], strides = [1, 1]} : vector<1x128xf32> to vector<1x32xf32>
    %26 = arith.addf %24, %25 : vector<1x32xf32>
    %27 = vector.extract_strided_slice %10 {offsets = [0, 96], sizes = [1, 32], strides = [1, 1]} : vector<1x128xf32> to vector<1x32xf32>
    %28 = arith.addf %26, %27 : vector<1x32xf32>
    %cst_9 = arith.constant 1.562500e-02 : f32
    %29 = vector.broadcast %cst_9 : f32 to vector<1x32xf32>
    %30 = arith.mulf %19, %29 : vector<1x32xf32>
    %cst_10 = arith.constant 1.562500e-02 : f32
    %31 = vector.broadcast %cst_10 : f32 to vector<1x32xf32>
    %32 = arith.mulf %28, %31 : vector<1x32xf32>
    %33 = arith.mulf %30, %30 : vector<1x32xf32>
    %34 = arith.subf %32, %33 : vector<1x32xf32>
    %cst_11 = arith.constant 9.99999974E-6 : f32
    %35 = vector.broadcast %cst_11 : f32 to vector<1x32xf32>
    %36 = arith.addf %34, %35 : vector<1x32xf32>
    %37 = math.rsqrt %36 : vector<1x32xf32>
    %cst_12 = arith.constant 0.000000e+00 : f32
    %38 = vector.broadcast %cst_12 : f32 to vector<1x32xf32>
    %39 = arith.subf %38, %30 : vector<1x32xf32>
    %40 = arith.mulf %39, %37 : vector<1x32xf32>
    %41 = tpu.concatenate %37, %37, %37, %37 in 1 : vector<1x32xf32>, vector<1x32xf32>, vector<1x32xf32>, vector<1x32xf32> -> vector<1x128xf32>
    %42 = tpu.concatenate %40, %40, %40, %40 in 1 : vector<1x32xf32>, vector<1x32xf32>, vector<1x32xf32>, vector<1x32xf32> -> vector<1x128xf32>
    %43 = vector.broadcast %41 : vector<1x128xf32> to vector<16x128xf32>
    %44 = arith.mulf %5, %43 : vector<16x128xf32>
    %45 = vector.broadcast %42 : vector<1x128xf32> to vector<16x128xf32>
    %46 = arith.addf %44, %45 : vector<16x128xf32>
    %cst_13 = arith.constant 0.000000e+00 : f32
    %47 = vector.broadcast %cst_13 : f32 to vector<16x128xf32>
    %48 = arith.maximumf %46, %47 : vector<16x128xf32>
    %c0_14 = arith.constant 0 : index
    %c0_15 = arith.constant 0 : index
    %49 = vector.load %arg4[%c0_14, %c0_15] : memref<16x128xf32, #tpu.memory_space<vmem>>, vector<16x128xf32>
    tpu.vector_store %arg4[%c0_14, %c0_15], %48 {strides = array<i32>} : memref<16x128xf32, #tpu.memory_space<vmem>>, vector<16x128xf32>,
    return
  }
  func.func @transform_0(%arg0: i32) -> (i32, i32) {
    %c0_i32 = arith.constant 0 : i32
    %c0_i32_0 = arith.constant 0 : i32
    return %arg0, %c0_i32 : i32, i32
  }
  func.func @transform_1(%arg0: i32) -> (i32, i32) {
    %c0_i32 = arith.constant 0 : i32
    %c0_i32_0 = arith.constant 0 : i32
    %c0_i32_1 = arith.constant 0 : i32
    return %c0_i32, %c0_i32_0 : i32, i32
  }
  func.func @transform_2(%arg0: i32) -> (i32, i32) {
    %c0_i32 = arith.constant 0 : i32
    %c0_i32_0 = arith.constant 0 : i32
    %c0_i32_1 = arith.constant 0 : i32
    return %c0_i32, %c0_i32_0 : i32, i32
  }
  func.func @transform_3(%arg0: i32) -> (i32, i32) {
    %c0_i32 = arith.constant 0 : i32
    %c0_i32_0 = arith.constant 0 : i32
    return %arg0, %c0_i32 : i32, i32
  }
}

module attributes {stable_mosaic.version = 11 : i64} {
  func.func @_matmul_kernel(%arg0: i32, %arg1: memref<64x128xbf16, #tpu.memory_space<vmem>>, %arg2: memref<128x64xbf16, #tpu.memory_space<vmem>>, %arg3: memref<1x64xf32, #tpu.memory_space<vmem>>, %arg4: memref<64x64xf32, #tpu.memory_space<vmem>>) attributes {dimension_semantics = [#tpu.dimension_semantics<parallel>], iteration_bounds = array<i64: 2>, scalar_prefetch = 0 : i64, scratch_operands = 0 : i64, tpu.core_type = #tpu.core_type<tc>, window_params = [{transform_indices = @transform_0, window_bounds = array<i64: 64, 128>}, {pipeline_mode = #tpu.pipeline_mode<synchronous>, transform_indices = @transform_1, window_bounds = array<i64: 128, 64>}, {pipeline_mode = #tpu.pipeline_mode<synchronous>, transform_indices = @transform_2, window_bounds = array<i64: 1, 64>}, {transform_indices = @transform_3, window_bounds = array<i64: 64, 64>}]} {
    %c0 = arith.constant 0 : index
    %c0_0 = arith.constant 0 : index
    %0 = vector.load %arg1[%c0, %c0_0] : memref<64x128xbf16, #tpu.memory_space<vmem>>, vector<64x128xbf16>
    %c0_1 = arith.constant 0 : index
    %c0_2 = arith.constant 0 : index
    %1 = vector.load %arg2[%c0_1, %c0_2] : memref<128x64xbf16, #tpu.memory_space<vmem>>, vector<128x64xbf16>
    %cst = arith.constant dense<0.000000e+00> : vector<64x64xf32>
    %2 = tpu.matmul %0, %1, %cst {dimension_numbers = #tpu.dot_dimension_numbers<[1], [0], [0], [1], [0, 0, 1, 1], [], []>} : vector<64x128xbf16>, vector<128x64xbf16>, vector<64x64xf32> -> vector<64x64xf32>
    %c0_3 = arith.constant 0 : index
    %c0_4 = arith.constant 0 : index
    %3 = vector.load %arg3[%c0_3, %c0_4] : memref<1x64xf32, #tpu.memory_space<vmem>>, vector<1x64xf32>
    %4 = vector.broadcast %3 : vector<1x64xf32> to vector<64x64xf32>
    %5 = arith.addf %2, %4 : vector<64x64xf32>
    %cst_5 = arith.constant dense<0.000000e+00> : vector<64xf32>
    %6 = vector.multi_reduction <add>, %5, %cst_5 [0] : vector<64x64xf32> to vector<64xf32>
    %7 = vector.shape_cast %6 : vector<64xf32> to vector<1x64xf32>
    %8 = arith.mulf %5, %5 : vector<64x64xf32>
    %cst_6 = arith.constant dense<0.000000e+00> : vector<64xf32>
    %9 = vector.multi_reduction <add>, %8, %cst_6 [0] : vector<64x64xf32> to vector<64xf32>
    %10 = vector.shape_cast %9 : vector<64xf32> to vector<1x64xf32>
    %11 = vector.extract_strided_slice %7 {offsets = [0, 0], sizes = [1, 16], strides = [1, 1]} : vector<1x64xf32> to vector<1x16xf32>
    %cst_7 = arith.constant 0.000000e+00 : f32
    %12 = vector.broadcast %cst_7 : f32 to vector<1x16xf32>
    %13 = arith.addf %12, %11 : vector<1x16xf32>
    %14 = vector.extract_strided_slice %7 {offsets = [0, 16], sizes = [1, 16], strides = [1, 1]} : vector<1x64xf32> to vector<1x16xf32>
    %15 = arith.addf %13, %14 : vector<1x16xf32>
    %16 = vector.extract_strided_slice %7 {offsets = [0, 32], sizes = [1, 16], strides = [1, 1]} : vector<1x64xf32> to vector<1x16xf32>
    %17 = arith.addf %15, %16 : vector<1x16xf32>
    %18 = vector.extract_strided_slice %7 {offsets = [0, 48], sizes = [1, 16], strides = [1, 1]} : vector<1x64xf32> to vector<1x16xf32>
    %19 = arith.addf %17, %18 : vector<1x16xf32>
    %20 = vector.extract_strided_slice %10 {offsets = [0, 0], sizes = [1, 16], strides = [1, 1]} : vector<1x64xf32> to vector<1x16xf32>
    %cst_8 = arith.constant 0.000000e+00 : f32
    %21 = vector.broadcast %cst_8 : f32 to vector<1x16xf32>
    %22 = arith.addf %21, %20 : vector<1x16xf32>
    %23 = vector.extract_strided_slice %10 {offsets = [0, 16], sizes = [1, 16], strides = [1, 1]} : vector<1x64xf32> to vector<1x16xf32>
    %24 = arith.addf %22, %23 : vector<1x16xf32>
    %25 = vector.extract_strided_slice %10 {offsets = [0, 32], sizes = [1, 16], strides = [1, 1]} : vector<1x64xf32> to vector<1x16xf32>
    %26 = arith.addf %24, %25 : vector<1x16xf32>
    %27 = vector.extract_strided_slice %10 {offsets = [0, 48], sizes = [1, 16], strides = [1, 1]} : vector<1x64xf32> to vector<1x16xf32>
    %28 = arith.addf %26, %27 : vector<1x16xf32>
    %cst_9 = arith.constant 3.906250e-03 : f32
    %29 = vector.broadcast %cst_9 : f32 to vector<1x16xf32>
    %30 = arith.mulf %19, %29 : vector<1x16xf32>
    %cst_10 = arith.constant 3.906250e-03 : f32
    %31 = vector.broadcast %cst_10 : f32 to vector<1x16xf32>
    %32 = arith.mulf %28, %31 : vector<1x16xf32>
    %33 = arith.mulf %30, %30 : vector<1x16xf32>
    %34 = arith.subf %32, %33 : vector<1x16xf32>
    %cst_11 = arith.constant 9.99999974E-6 : f32
    %35 = vector.broadcast %cst_11 : f32 to vector<1x16xf32>
    %36 = arith.addf %34, %35 : vector<1x16xf32>
    %37 = math.rsqrt %36 : vector<1x16xf32>
    %cst_12 = arith.constant 0.000000e+00 : f32
    %38 = vector.broadcast %cst_12 : f32 to vector<1x16xf32>
    %39 = arith.subf %38, %30 : vector<1x16xf32>
    %40 = arith.mulf %39, %37 : vector<1x16xf32>
    %41 = tpu.concatenate %37, %37, %37, %37 in 1 : vector<1x16xf32>, vector<1x16xf32>, vector<1x16xf32>, vector<1x16xf32> -> vector<1x64xf32>
    %42 = tpu.concatenate %40, %40, %40, %40 in 1 : vector<1x16xf32>, vector<1x16xf32>, vector<1x16xf32>, vector<1x16xf32> -> vector<1x64xf32>
    %43 = vector.broadcast %41 : vector<1x64xf32> to vector<64x64xf32>
    %44 = arith.mulf %5, %43 : vector<64x64xf32>
    %45 = vector.broadcast %42 : vector<1x64xf32> to vector<64x64xf32>
    %46 = arith.addf %44, %45 : vector<64x64xf32>
    %cst_13 = arith.constant 0.000000e+00 : f32
    %47 = vector.broadcast %cst_13 : f32 to vector<64x64xf32>
    %48 = arith.maximumf %46, %47 : vector<64x64xf32>
    %c0_14 = arith.constant 0 : index
    %c0_15 = arith.constant 0 : index
    %49 = vector.load %arg4[%c0_14, %c0_15] : memref<64x64xf32, #tpu.memory_space<vmem>>, vector<64x64xf32>
    tpu.vector_store %arg4[%c0_14, %c0_15], %48 {strides = array<i32>} : memref<64x64xf32, #tpu.memory_space<vmem>>, vector<64x64xf32>,
    return
  }
  func.func @transform_0(%arg0: i32) -> (i32, i32) {
    %c0_i32 = arith.constant 0 : i32
    %c0_i32_0 = arith.constant 0 : i32
    return %arg0, %c0_i32 : i32, i32
  }
  func.func @transform_1(%arg0: i32) -> (i32, i32) {
    %c0_i32 = arith.constant 0 : i32
    %c0_i32_0 = arith.constant 0 : i32
    %c0_i32_1 = arith.constant 0 : i32
    return %c0_i32, %c0_i32_0 : i32, i32
  }
  func.func @transform_2(%arg0: i32) -> (i32, i32) {
    %c0_i32 = arith.constant 0 : i32
    %c0_i32_0 = arith.constant 0 : i32
    %c0_i32_1 = arith.constant 0 : i32
    return %c0_i32, %c0_i32_0 : i32, i32
  }
  func.func @transform_3(%arg0: i32) -> (i32, i32) {
    %c0_i32 = arith.constant 0 : i32
    %c0_i32_0 = arith.constant 0 : i32
    return %arg0, %c0_i32 : i32, i32
  }
}

module attributes {stable_mosaic.version = 11 : i64} {
  func.func @_matmul_kernel(%arg0: i32, %arg1: memref<256x784xbf16, #tpu.memory_space<vmem>>, %arg2: memref<784x27xbf16, #tpu.memory_space<vmem>>, %arg3: memref<1x27xf32, #tpu.memory_space<vmem>>, %arg4: memref<256x27xf32, #tpu.memory_space<vmem>>) attributes {dimension_semantics = [#tpu.dimension_semantics<parallel>], iteration_bounds = array<i64: 2>, scalar_prefetch = 0 : i64, scratch_operands = 0 : i64, tpu.core_type = #tpu.core_type<tc>, window_params = [{transform_indices = @transform_0, window_bounds = array<i64: 256, 784>}, {pipeline_mode = #tpu.pipeline_mode<synchronous>, transform_indices = @transform_1, window_bounds = array<i64: 784, 27>}, {pipeline_mode = #tpu.pipeline_mode<synchronous>, transform_indices = @transform_2, window_bounds = array<i64: 1, 27>}, {transform_indices = @transform_3, window_bounds = array<i64: 256, 27>}]} {
    %c0 = arith.constant 0 : index
    %c0_0 = arith.constant 0 : index
    %0 = vector.load %arg1[%c0, %c0_0] : memref<256x784xbf16, #tpu.memory_space<vmem>>, vector<256x784xbf16>
    %c0_1 = arith.constant 0 : index
    %c0_2 = arith.constant 0 : index
    %1 = vector.load %arg2[%c0_1, %c0_2] : memref<784x27xbf16, #tpu.memory_space<vmem>>, vector<784x27xbf16>
    %cst = arith.constant dense<0.000000e+00> : vector<256x27xf32>
    %2 = tpu.matmul %0, %1, %cst {dimension_numbers = #tpu.dot_dimension_numbers<[1], [0], [0], [1], [0, 0, 1, 1], [], []>} : vector<256x784xbf16>, vector<784x27xbf16>, vector<256x27xf32> -> vector<256x27xf32>
    %c0_3 = arith.constant 0 : index
    %c0_4 = arith.constant 0 : index
    %3 = vector.load %arg3[%c0_3, %c0_4] : memref<1x27xf32, #tpu.memory_space<vmem>>, vector<1x27xf32>
    %4 = vector.broadcast %3 : vector<1x27xf32> to vector<256x27xf32>
    %5 = arith.addf %2, %4 : vector<256x27xf32>
    %c0_5 = arith.constant 0 : index
    %c0_6 = arith.constant 0 : index
    %6 = vector.load %arg4[%c0_5, %c0_6] : memref<256x27xf32, #tpu.memory_space<vmem>>, vector<256x27xf32>
    tpu.vector_store %arg4[%c0_5, %c0_6], %5 {strides = array<i32>} : memref<256x27xf32, #tpu.memory_space<vmem>>, vector<256x27xf32>,
    return
  }
  func.func @transform_0(%arg0: i32) -> (i32, i32) {
    %c0_i32 = arith.constant 0 : i32
    %c0_i32_0 = arith.constant 0 : i32
    return %arg0, %c0_i32 : i32, i32
  }
  func.func @transform_1(%arg0: i32) -> (i32, i32) {
    %c0_i32 = arith.constant 0 : i32
    %c0_i32_0 = arith.constant 0 : i32
    %c0_i32_1 = arith.constant 0 : i32
    return %c0_i32, %c0_i32_0 : i32, i32
  }
  func.func @transform_2(%arg0: i32) -> (i32, i32) {
    %c0_i32 = arith.constant 0 : i32
    %c0_i32_0 = arith.constant 0 : i32
    %c0_i32_1 = arith.constant 0 : i32
    return %c0_i32, %c0_i32_0 : i32, i32
  }
  func.func @transform_3(%arg0: i32) -> (i32, i32) {
    %c0_i32 = arith.constant 0 : i32
    %c0_i32_0 = arith.constant 0 : i32
    return %arg0, %c0_i32 : i32, i32
  }
}

module attributes {stable_mosaic.version = 11 : i64} {
  func.func @_matmul_kernel(%arg0: i32, %arg1: memref<256x16xbf16, #tpu.memory_space<vmem>>, %arg2: memref<16x10xbf16, #tpu.memory_space<vmem>>, %arg3: memref<1x10xf32, #tpu.memory_space<vmem>>, %arg4: memref<256x10xf32, #tpu.memory_space<vmem>>) attributes {dimension_semantics = [#tpu.dimension_semantics<parallel>], iteration_bounds = array<i64: 2>, scalar_prefetch = 0 : i64, scratch_operands = 0 : i64, tpu.core_type = #tpu.core_type<tc>, window_params = [{transform_indices = @transform_0, window_bounds = array<i64: 256, 16>}, {pipeline_mode = #tpu.pipeline_mode<synchronous>, transform_indices = @transform_1, window_bounds = array<i64: 16, 10>}, {pipeline_mode = #tpu.pipeline_mode<synchronous>, transform_indices = @transform_2, window_bounds = array<i64: 1, 10>}, {transform_indices = @transform_3, window_bounds = array<i64: 256, 10>}]} {
    %c0 = arith.constant 0 : index
    %c0_0 = arith.constant 0 : index
    %0 = vector.load %arg1[%c0, %c0_0] : memref<256x16xbf16, #tpu.memory_space<vmem>>, vector<256x16xbf16>
    %c0_1 = arith.constant 0 : index
    %c0_2 = arith.constant 0 : index
    %1 = vector.load %arg2[%c0_1, %c0_2] : memref<16x10xbf16, #tpu.memory_space<vmem>>, vector<16x10xbf16>
    %cst = arith.constant dense<0.000000e+00> : vector<256x10xf32>
    %2 = tpu.matmul %0, %1, %cst {dimension_numbers = #tpu.dot_dimension_numbers<[1], [0], [0], [1], [0, 0, 1, 1], [], []>} : vector<256x16xbf16>, vector<16x10xbf16>, vector<256x10xf32> -> vector<256x10xf32>
    %c0_3 = arith.constant 0 : index
    %c0_4 = arith.constant 0 : index
    %3 = vector.load %arg3[%c0_3, %c0_4] : memref<1x10xf32, #tpu.memory_space<vmem>>, vector<1x10xf32>
    %4 = vector.broadcast %3 : vector<1x10xf32> to vector<256x10xf32>
    %5 = arith.addf %2, %4 : vector<256x10xf32>
    %c0_5 = arith.constant 0 : index
    %c0_6 = arith.constant 0 : index
    %6 = vector.load %arg4[%c0_5, %c0_6] : memref<256x10xf32, #tpu.memory_space<vmem>>, vector<256x10xf32>
    tpu.vector_store %arg4[%c0_5, %c0_6], %5 {strides = array<i32>} : memref<256x10xf32, #tpu.memory_space<vmem>>, vector<256x10xf32>,
    return
  }
  func.func @transform_0(%arg0: i32) -> (i32, i32) {
    %c0_i32 = arith.constant 0 : i32
    %c0_i32_0 = arith.constant 0 : i32
    return %arg0, %c0_i32 : i32, i32
  }
  func.func @transform_1(%arg0: i32) -> (i32, i32) {
    %c0_i32 = arith.constant 0 : i32
    %c0_i32_0 = arith.constant 0 : i32
    %c0_i32_1 = arith.constant 0 : i32
    return %c0_i32, %c0_i32_0 : i32, i32
  }
  func.func @transform_2(%arg0: i32) -> (i32, i32) {
    %c0_i32 = arith.constant 0 : i32
    %c0_i32_0 = arith.constant 0 : i32
    %c0_i32_1 = arith.constant 0 : i32
    return %c0_i32, %c0_i32_0 : i32, i32
  }
  func.func @transform_3(%arg0: i32) -> (i32, i32) {
    %c0_i32 = arith.constant 0 : i32
    %c0_i32_0 = arith.constant 0 : i32
    return %arg0, %c0_i32 : i32, i32
  }
}

module attributes {stable_mosaic.version = 11 : i64} {
  func.func @_fusion_kernel(%arg0: i32, %arg1: memref<1x3x256xf32, #tpu.memory_space<vmem>>, %arg2: memref<1x27x256xf32, #tpu.memory_space<vmem>>, %arg3: memref<1x10x256xf32, #tpu.memory_space<vmem>>, %arg4: memref<1x27x256xf32, #tpu.memory_space<vmem>>, %arg5: memref<1x10x256xf32, #tpu.memory_space<vmem>>, %arg6: memref<1x30x256xf32, #tpu.memory_space<vmem>>, %arg7: memref<1x3x256xf32, #tpu.memory_space<vmem>>) attributes {dimension_semantics = [#tpu.dimension_semantics<parallel>], iteration_bounds = array<i64: 2>, scalar_prefetch = 0 : i64, scratch_operands = 0 : i64, tpu.core_type = #tpu.core_type<tc>, window_params = [{transform_indices = @transform_0, window_bounds = array<i64: 1, 3, 256>}, {transform_indices = @transform_1, window_bounds = array<i64: 1, 27, 256>}, {transform_indices = @transform_2, window_bounds = array<i64: 1, 10, 256>}, {transform_indices = @transform_3, window_bounds = array<i64: 1, 27, 256>}, {transform_indices = @transform_4, window_bounds = array<i64: 1, 10, 256>}, {transform_indices = @transform_5, window_bounds = array<i64: 1, 30, 256>}, {transform_indices = @transform_6, window_bounds = array<i64: 1, 3, 256>}]} {
    %c0 = arith.constant 0 : index
    %c0_0 = arith.constant 0 : index
    %c0_1 = arith.constant 0 : index
    %0 = vector.load %arg2[%c0, %c0_0, %c0_1] : memref<1x27x256xf32, #tpu.memory_space<vmem>>, vector<1x27x256xf32>
    %1 = vector.shape_cast %0 : vector<1x27x256xf32> to vector<27x256xf32>
    %2 = math.tanh %1 : vector<27x256xf32>
    %c0_2 = arith.constant 0 : index
    %c0_3 = arith.constant 0 : index
    %c0_4 = arith.constant 0 : index
    %3 = vector.load %arg3[%c0_2, %c0_3, %c0_4] : memref<1x10x256xf32, #tpu.memory_space<vmem>>, vector<1x10x256xf32>
    %4 = vector.shape_cast %3 : vector<1x10x256xf32> to vector<10x256xf32>
    %cst = arith.constant dense<0xFF800000> : vector<256xf32>
    %5 = vector.multi_reduction <maximumf>, %4, %cst [0] : vector<10x256xf32> to vector<256xf32>
    %6 = vector.shape_cast %5 : vector<256xf32> to vector<1x256xf32>
    %7 = vector.broadcast %6 : vector<1x256xf32> to vector<10x256xf32>
    %8 = arith.subf %4, %7 : vector<10x256xf32>
    %9 = math.exp %8 : vector<10x256xf32>
    %cst_5 = arith.constant dense<0.000000e+00> : vector<256xf32>
    %10 = vector.multi_reduction <add>, %9, %cst_5 [0] : vector<10x256xf32> to vector<256xf32>
    %11 = vector.shape_cast %10 : vector<256xf32> to vector<1x256xf32>
    %12 = vector.broadcast %11 : vector<1x256xf32> to vector<10x256xf32>
    %13 = arith.divf %9, %12 : vector<10x256xf32>
    %c0_6 = arith.constant 0 : index
    %c0_7 = arith.constant 0 : index
    %c0_8 = arith.constant 0 : index
    %14 = vector.load %arg1[%c0_6, %c0_7, %c0_8] : memref<1x3x256xf32, #tpu.memory_space<vmem>>, vector<1x3x256xf32>
    %15 = vector.shape_cast %14 : vector<1x3x256xf32> to vector<3x256xf32>
    %c0_9 = arith.constant 0 : index
    %c0_10 = arith.constant 0 : index
    %c0_11 = arith.constant 0 : index
    %16 = vector.load %arg4[%c0_9, %c0_10, %c0_11] : memref<1x27x256xf32, #tpu.memory_space<vmem>>, vector<1x27x256xf32>
    %17 = vector.shape_cast %16 : vector<1x27x256xf32> to vector<27x256xf32>
    %18 = vector.shape_cast %2 : vector<27x256xf32> to vector<1x27x256xf32>
    tpu.vector_store %arg4[%c0_9, %c0_10, %c0_11], %18 {strides = array<i32>} : memref<1x27x256xf32, #tpu.memory_space<vmem>>, vector<1x27x256xf32>,
    %c0_12 = arith.constant 0 : index
    %c0_13 = arith.constant 0 : index
    %c0_14 = arith.constant 0 : index
    %19 = vector.load %arg5[%c0_12, %c0_13, %c0_14] : memref<1x10x256xf32, #tpu.memory_space<vmem>>, vector<1x10x256xf32>
    %20 = vector.shape_cast %19 : vector<1x10x256xf32> to vector<10x256xf32>
    %21 = vector.shape_cast %13 : vector<10x256xf32> to vector<1x10x256xf32>
    tpu.vector_store %arg5[%c0_12, %c0_13, %c0_14], %21 {strides = array<i32>} : memref<1x10x256xf32, #tpu.memory_space<vmem>>, vector<1x10x256xf32>,
    %22 = vector.extract_strided_slice %13 {offsets = [9, 0], sizes = [1, 256], strides = [1, 1]} : vector<10x256xf32> to vector<1x256xf32>
    %23 = vector.broadcast %22 : vector<1x256xf32> to vector<3x256xf32>
    %24 = arith.mulf %15, %23 : vector<3x256xf32>
    %c0_15 = arith.constant 0 : index
    %c27 = arith.constant 27 : index
    %c0_16 = arith.constant 0 : index
    %25 = vector.load %arg6[%c0_15, %c27, %c0_16] : memref<1x30x256xf32, #tpu.memory_space<vmem>>, vector<1x3x256xf32>
    %26 = vector.shape_cast %25 : vector<1x3x256xf32> to vector<3x256xf32>
    %27 = vector.shape_cast %24 : vector<3x256xf32> to vector<1x3x256xf32>
    tpu.vector_store %arg6[%c0_15, %c27, %c0_16], %27 {strides = array<i32>} : memref<1x30x256xf32, #tpu.memory_space<vmem>>, vector<1x3x256xf32>,
    %28 = vector.extract_strided_slice %2 {offsets = [0, 0], sizes = [3, 256], strides = [1, 1]} : vector<27x256xf32> to vector<3x256xf32>
    %29 = vector.extract_strided_slice %13 {offsets = [0, 0], sizes = [1, 256], strides = [1, 1]} : vector<10x256xf32> to vector<1x256xf32>
    %30 = vector.broadcast %29 : vector<1x256xf32> to vector<3x256xf32>
    %31 = arith.mulf %28, %30 : vector<3x256xf32>
    %c0_17 = arith.constant 0 : index
    %c0_18 = arith.constant 0 : index
    %c0_19 = arith.constant 0 : index
    %32 = vector.load %arg6[%c0_17, %c0_18, %c0_19] : memref<1x30x256xf32, #tpu.memory_space<vmem>>, vector<1x3x256xf32>
    %33 = vector.shape_cast %32 : vector<1x3x256xf32> to vector<3x256xf32>
    %34 = vector.shape_cast %31 : vector<3x256xf32> to vector<1x3x256xf32>
    tpu.vector_store %arg6[%c0_17, %c0_18, %c0_19], %34 {strides = array<i32>} : memref<1x30x256xf32, #tpu.memory_space<vmem>>, vector<1x3x256xf32>,
    %35 = arith.addf %24, %31 : vector<3x256xf32>
    %36 = vector.extract_strided_slice %2 {offsets = [3, 0], sizes = [3, 256], strides = [1, 1]} : vector<27x256xf32> to vector<3x256xf32>
    %37 = vector.extract_strided_slice %13 {offsets = [1, 0], sizes = [1, 256], strides = [1, 1]} : vector<10x256xf32> to vector<1x256xf32>
    %38 = vector.broadcast %37 : vector<1x256xf32> to vector<3x256xf32>
    %39 = arith.mulf %36, %38 : vector<3x256xf32>
    %c0_20 = arith.constant 0 : index
    %c3 = arith.constant 3 : index
    %c0_21 = arith.constant 0 : index
    %40 = vector.load %arg6[%c0_20, %c3, %c0_21] : memref<1x30x256xf32, #tpu.memory_space<vmem>>, vector<1x3x256xf32>
    %41 = vector.shape_cast %40 : vector<1x3x256xf32> to vector<3x256xf32>
    %42 = vector.shape_cast %39 : vector<3x256xf32> to vector<1x3x256xf32>
    tpu.vector_store %arg6[%c0_20, %c3, %c0_21], %42 {strides = array<i32>} : memref<1x30x256xf32, #tpu.memory_space<vmem>>, vector<1x3x256xf32>,
    %43 = arith.addf %35, %39 : vector<3x256xf32>
    %44 = vector.extract_strided_slice %2 {offsets = [6, 0], sizes = [3, 256], strides = [1, 1]} : vector<27x256xf32> to vector<3x256xf32>
    %45 = vector.extract_strided_slice %13 {offsets = [2, 0], sizes = [1, 256], strides = [1, 1]} : vector<10x256xf32> to vector<1x256xf32>
    %46 = vector.broadcast %45 : vector<1x256xf32> to vector<3x256xf32>
    %47 = arith.mulf %44, %46 : vector<3x256xf32>
    %c0_22 = arith.constant 0 : index
    %c6 = arith.constant 6 : index
    %c0_23 = arith.constant 0 : index
    %48 = vector.load %arg6[%c0_22, %c6, %c0_23] : memref<1x30x256xf32, #tpu.memory_space<vmem>>, vector<1x3x256xf32>
    %49 = vector.shape_cast %48 : vector<1x3x256xf32> to vector<3x256xf32>
    %50 = vector.shape_cast %47 : vector<3x256xf32> to vector<1x3x256xf32>
    tpu.vector_store %arg6[%c0_22, %c6, %c0_23], %50 {strides = array<i32>} : memref<1x30x256xf32, #tpu.memory_space<vmem>>, vector<1x3x256xf32>,
    %51 = arith.addf %43, %47 : vector<3x256xf32>
    %52 = vector.extract_strided_slice %2 {offsets = [9, 0], sizes = [3, 256], strides = [1, 1]} : vector<27x256xf32> to vector<3x256xf32>
    %53 = vector.extract_strided_slice %13 {offsets = [3, 0], sizes = [1, 256], strides = [1, 1]} : vector<10x256xf32> to vector<1x256xf32>
    %54 = vector.broadcast %53 : vector<1x256xf32> to vector<3x256xf32>
    %55 = arith.mulf %52, %54 : vector<3x256xf32>
    %c0_24 = arith.constant 0 : index
    %c9 = arith.constant 9 : index
    %c0_25 = arith.constant 0 : index
    %56 = vector.load %arg6[%c0_24, %c9, %c0_25] : memref<1x30x256xf32, #tpu.memory_space<vmem>>, vector<1x3x256xf32>
    %57 = vector.shape_cast %56 : vector<1x3x256xf32> to vector<3x256xf32>
    %58 = vector.shape_cast %55 : vector<3x256xf32> to vector<1x3x256xf32>
    tpu.vector_store %arg6[%c0_24, %c9, %c0_25], %58 {strides = array<i32>} : memref<1x30x256xf32, #tpu.memory_space<vmem>>, vector<1x3x256xf32>,
    %59 = arith.addf %51, %55 : vector<3x256xf32>
    %60 = vector.extract_strided_slice %2 {offsets = [12, 0], sizes = [3, 256], strides = [1, 1]} : vector<27x256xf32> to vector<3x256xf32>
    %61 = vector.extract_strided_slice %13 {offsets = [4, 0], sizes = [1, 256], strides = [1, 1]} : vector<10x256xf32> to vector<1x256xf32>
    %62 = vector.broadcast %61 : vector<1x256xf32> to vector<3x256xf32>
    %63 = arith.mulf %60, %62 : vector<3x256xf32>
    %c0_26 = arith.constant 0 : index
    %c12 = arith.constant 12 : index
    %c0_27 = arith.constant 0 : index
    %64 = vector.load %arg6[%c0_26, %c12, %c0_27] : memref<1x30x256xf32, #tpu.memory_space<vmem>>, vector<1x3x256xf32>
    %65 = vector.shape_cast %64 : vector<1x3x256xf32> to vector<3x256xf32>
    %66 = vector.shape_cast %63 : vector<3x256xf32> to vector<1x3x256xf32>
    tpu.vector_store %arg6[%c0_26, %c12, %c0_27], %66 {strides = array<i32>} : memref<1x30x256xf32, #tpu.memory_space<vmem>>, vector<1x3x256xf32>,
    %67 = arith.addf %59, %63 : vector<3x256xf32>
    %68 = vector.extract_strided_slice %2 {offsets = [15, 0], sizes = [3, 256], strides = [1, 1]} : vector<27x256xf32> to vector<3x256xf32>
    %69 = vector.extract_strided_slice %13 {offsets = [5, 0], sizes = [1, 256], strides = [1, 1]} : vector<10x256xf32> to vector<1x256xf32>
    %70 = vector.broadcast %69 : vector<1x256xf32> to vector<3x256xf32>
    %71 = arith.mulf %68, %70 : vector<3x256xf32>
    %c0_28 = arith.constant 0 : index
    %c15 = arith.constant 15 : index
    %c0_29 = arith.constant 0 : index
    %72 = vector.load %arg6[%c0_28, %c15, %c0_29] : memref<1x30x256xf32, #tpu.memory_space<vmem>>, vector<1x3x256xf32>
    %73 = vector.shape_cast %72 : vector<1x3x256xf32> to vector<3x256xf32>
    %74 = vector.shape_cast %71 : vector<3x256xf32> to vector<1x3x256xf32>
    tpu.vector_store %arg6[%c0_28, %c15, %c0_29], %74 {strides = array<i32>} : memref<1x30x256xf32, #tpu.memory_space<vmem>>, vector<1x3x256xf32>,
    %75 = arith.addf %67, %71 : vector<3x256xf32>
    %76 = vector.extract_strided_slice %2 {offsets = [18, 0], sizes = [3, 256], strides = [1, 1]} : vector<27x256xf32> to vector<3x256xf32>
    %77 = vector.extract_strided_slice %13 {offsets = [6, 0], sizes = [1, 256], strides = [1, 1]} : vector<10x256xf32> to vector<1x256xf32>
    %78 = vector.broadcast %77 : vector<1x256xf32> to vector<3x256xf32>
    %79 = arith.mulf %76, %78 : vector<3x256xf32>
    %c0_30 = arith.constant 0 : index
    %c18 = arith.constant 18 : index
    %c0_31 = arith.constant 0 : index
    %80 = vector.load %arg6[%c0_30, %c18, %c0_31] : memref<1x30x256xf32, #tpu.memory_space<vmem>>, vector<1x3x256xf32>
    %81 = vector.shape_cast %80 : vector<1x3x256xf32> to vector<3x256xf32>
    %82 = vector.shape_cast %79 : vector<3x256xf32> to vector<1x3x256xf32>
    tpu.vector_store %arg6[%c0_30, %c18, %c0_31], %82 {strides = array<i32>} : memref<1x30x256xf32, #tpu.memory_space<vmem>>, vector<1x3x256xf32>,
    %83 = arith.addf %75, %79 : vector<3x256xf32>
    %84 = vector.extract_strided_slice %2 {offsets = [21, 0], sizes = [3, 256], strides = [1, 1]} : vector<27x256xf32> to vector<3x256xf32>
    %85 = vector.extract_strided_slice %13 {offsets = [7, 0], sizes = [1, 256], strides = [1, 1]} : vector<10x256xf32> to vector<1x256xf32>
    %86 = vector.broadcast %85 : vector<1x256xf32> to vector<3x256xf32>
    %87 = arith.mulf %84, %86 : vector<3x256xf32>
    %c0_32 = arith.constant 0 : index
    %c21 = arith.constant 21 : index
    %c0_33 = arith.constant 0 : index
    %88 = vector.load %arg6[%c0_32, %c21, %c0_33] : memref<1x30x256xf32, #tpu.memory_space<vmem>>, vector<1x3x256xf32>
    %89 = vector.shape_cast %88 : vector<1x3x256xf32> to vector<3x256xf32>
    %90 = vector.shape_cast %87 : vector<3x256xf32> to vector<1x3x256xf32>
    tpu.vector_store %arg6[%c0_32, %c21, %c0_33], %90 {strides = array<i32>} : memref<1x30x256xf32, #tpu.memory_space<vmem>>, vector<1x3x256xf32>,
    %91 = arith.addf %83, %87 : vector<3x256xf32>
    %92 = vector.extract_strided_slice %2 {offsets = [24, 0], sizes = [3, 256], strides = [1, 1]} : vector<27x256xf32> to vector<3x256xf32>
    %93 = vector.extract_strided_slice %13 {offsets = [8, 0], sizes = [1, 256], strides = [1, 1]} : vector<10x256xf32> to vector<1x256xf32>
    %94 = vector.broadcast %93 : vector<1x256xf32> to vector<3x256xf32>
    %95 = arith.mulf %92, %94 : vector<3x256xf32>
    %c0_34 = arith.constant 0 : index
    %c24 = arith.constant 24 : index
    %c0_35 = arith.constant 0 : index
    %96 = vector.load %arg6[%c0_34, %c24, %c0_35] : memref<1x30x256xf32, #tpu.memory_space<vmem>>, vector<1x3x256xf32>
    %97 = vector.shape_cast %96 : vector<1x3x256xf32> to vector<3x256xf32>
    %98 = vector.shape_cast %95 : vector<3x256xf32> to vector<1x3x256xf32>
    tpu.vector_store %arg6[%c0_34, %c24, %c0_35], %98 {strides = array<i32>} : memref<1x30x256xf32, #tpu.memory_space<vmem>>, vector<1x3x256xf32>,
    %99 = arith.addf %91, %95 : vector<3x256xf32>
    %c0_36 = arith.constant 0 : index
    %c0_37 = arith.constant 0 : index
    %c0_38 = arith.constant 0 : index
    %100 = vector.load %arg7[%c0_36, %c0_37, %c0_38] : memref<1x3x256xf32, #tpu.memory_space<vmem>>, vector<1x3x256xf32>
    %101 = vector.shape_cast %100 : vector<1x3x256xf32> to vector<3x256xf32>
    %102 = vector.shape_cast %99 : vector<3x256xf32> to vector<1x3x256xf32>
    tpu.vector_store %arg7[%c0_36, %c0_37, %c0_38], %102 {strides = array<i32>} : memref<1x3x256xf32, #tpu.memory_space<vmem>>, vector<1x3x256xf32>,
    return
  }
  func.func @transform_0(%arg0: i32) -> (i32, i32, i32) {
    %c0_i32 = arith.constant 0 : i32
    %c0_i32_0 = arith.constant 0 : i32
    %c0_i32_1 = arith.constant 0 : i32
    return %arg0, %c0_i32, %c0_i32_0 : i32, i32, i32
  }
  func.func @transform_1(%arg0: i32) -> (i32, i32, i32) {
    %c0_i32 = arith.constant 0 : i32
    %c0_i32_0 = arith.constant 0 : i32
    %c0_i32_1 = arith.constant 0 : i32
    return %arg0, %c0_i32, %c0_i32_0 : i32, i32, i32
  }
  func.func @transform_2(%arg0: i32) -> (i32, i32, i32) {
    %c0_i32 = arith.constant 0 : i32
    %c0_i32_0 = arith.constant 0 : i32
    %c0_i32_1 = arith.constant 0 : i32
    return %arg0, %c0_i32, %c0_i32_0 : i32, i32, i32
  }
  func.func @transform_3(%arg0: i32) -> (i32, i32, i32) {
    %c0_i32 = arith.constant 0 : i32
    %c0_i32_0 = arith.constant 0 : i32
    %c0_i32_1 = arith.constant 0 : i32
    return %arg0, %c0_i32, %c0_i32_0 : i32, i32, i32
  }
  func.func @transform_4(%arg0: i32) -> (i32, i32, i32) {
    %c0_i32 = arith.constant 0 : i32
    %c0_i32_0 = arith.constant 0 : i32
    %c0_i32_1 = arith.constant 0 : i32
    return %arg0, %c0_i32, %c0_i32_0 : i32, i32, i32
  }
  func.func @transform_5(%arg0: i32) -> (i32, i32, i32) {
    %c0_i32 = arith.constant 0 : i32
    %c0_i32_0 = arith.constant 0 : i32
    %c0_i32_1 = arith.constant 0 : i32
    return %arg0, %c0_i32, %c0_i32_0 : i32, i32, i32
  }
  func.func @transform_6(%arg0: i32) -> (i32, i32, i32) {
    %c0_i32 = arith.constant 0 : i32
    %c0_i32_0 = arith.constant 0 : i32
    %c0_i32_1 = arith.constant 0 : i32
    return %arg0, %c0_i32, %c0_i32_0 : i32, i32, i32
  }
}

</mosaic_0001>

<bundles_post_ra>
// kernel: generator_att_forward.13
= control target key start
LH: loop header
LB: loop body
LE: loop exit
PB: predicated region body
PF: predicated region fallthrough
CT: control target
= control target key end

     0   :  { %s1209_s12 = smov 0   ;;  %s1793_s0 = inlined_call_operand.vmem [shape: bf16[512,147], index: 0, kind: input, shape index: {}]   ;;  %s1794_s1 = inlined_call_operand.vmem [shape: bf16[147,16], index: 1, kind: input, shape index: {}]   ;;  %s1795_s2 = inlined_call_operand.vmem [shape: f32[1,16], index: 2, kind: input, shape index: {}]   ;;  %s1796_s3 = inlined_call_operand.vmem [shape: f32[512,16], index: 3, kind: output, shape index: {}]  }
   0x1 LB: > { %s1017_s13 = sadd.s32 4294967295, %s1185_s12   ;;  %p1021_p0 = scmp.ge.s32.totalorder %s1185_s12, 1  ;;  %s1185_s12 = sphi %s1209_s12, %s13_s12  }
   0x2   : > { %p139_p1 = scmp.lt.s32.totalorder %s1185_s12, 3 }
   0x4   : > { %p140_p2 = pnand %p1021_p0, %p139_p1 }
   0x5   : > { %v1119_v0 = vld [vmem:[%s1794_s1] sm:$0xff] (!%p140_p2)   ;;  %v1187_v1 = vmov (!%p140_p2), 0   ;;  %v1120_v2 = vld [vmem:[%s1794_s1 + $0x8] sm:$0xff] (!%p140_p2)   ;;  %v1121_v3 = vld [vmem:[%s1794_s1 + $0x10] sm:$0xff] (!%p140_p2)   ;;  %s1022_s20 = sshll.u32 (!%p140_p2), %s1017_s13, 5  ;;  %vm437_vm0 = vcmask (!%p140_p2), 154624  }
   0x6   : > { %143 = sbr.rel (%p140_p2) target bundleno = 418 (0x1a2), region = 32  ;;  %493 = vmatprep.subr.bf16.mxu0 (!%p140_p2), %v1187_v1  ;;  %1089 = vmatprep.subr.bf16.mxu1 (!%p140_p2), %v1187_v1  ;;  %p165_p3 = scmp.lt.s32.totalorder (!%p140_p2), %s1022_s20, 63  ;;  %v1122_v4 = vld [vmem:[%s1794_s1 + $0x18] sm:$0xff] (!%p140_p2)   ;;  %v1123_v5 = vld [vmem:[%s1794_s1 + $0x20] sm:$0xff] (!%p140_p2)   ;;  %v1124_v7 = vld [vmem:[%s1794_s1 + $0x28] sm:$0xff] (!%p140_p2)   ;;  %vm486_vm1 = vcmask (!%p140_p2), 1040384  }
   0x7   : > { %494 = vmatpush1.bf16.msra.mxu0 (!%p140_p2), %v1119_v0  ;;  %1099 = vmatpush1.bf16.msra.mxu1 (!%p140_p2), %v1119_v0  ;;  %v1125_v9 = vld [vmem:[%s1794_s1 + $0x30] sm:$0xff] (!%p140_p2)   ;;  %v1126_v10 = vld [vmem:[%s1794_s1 + $0x38] sm:$0xff] (!%p140_p2)   ;;  %vm487_vm2 = vcmask (!%p140_p2), 1041408   ;;  %v1188_v11 = vmov (!%p140_p2), 65535   ;;  %v1127_v13 = vld [vmem:[%s1794_s1 + $0x40] sm:$0xff] (!%p140_p2)   ;;  %vm654_vm3 = vcmask (!%p140_p2), 130048  }
   0x8   : > { %495 = vmatprep.subr.bf16.mxu0 (!%p140_p2), %v1187_v1  ;;  %1090 = vmatprep.subr.bf16.mxu1 (!%p140_p2), %v1187_v1  ;;  %v488_v12 = vsel (!%p140_p2), %vm486_vm1, 4294967295, %v1188_v11  ;;  %v1128_v14 = vld [vmem:[%s1794_s1 + $0x48] ss:$0 sps:$4 sm:$0x33] (!%p140_p2)   ;;  %v1316_v63 = vld [vmem:[%s1795_s2] ss:$0 sm:$0xff] (!%p140_p2) }
   0x9   : > { %v489_v15 = vsel (!%p140_p2), %vm487_vm2, %v488_v12, 0 }
   0xa   : > { %v491_v16 = vand.u32 (!%p140_p2), %v1128_v14, %v489_v15 }
   0xb   : > { %496 = vmatpush1.bf16.msra.mxu0 (!%p140_p2), %v1120_v2  ;;  %1100 = vmatpush1.bf16.msra.mxu1 (!%p140_p2), %v1120_v2 }
   0xc   : > { %497 = vmatprep.subr.bf16.mxu0 (!%p140_p2), %v1187_v1  ;;  %1091 = vmatprep.subr.bf16.mxu1 (!%p140_p2), %v1187_v1 }
   0xd   : > { %s1798_s20 = smov (!%p165_p3, %s1022_s20), 63 }
   0xe   : > { %s1088_s23 = sshll.u32 %s1798_s20, 3 }
   0xf   : > { %498 = vmatpush1.bf16.msra.mxu0 %v1121_v3  ;;  %1101 = vmatpush1.bf16.msra.mxu1 %v1121_v3  ;;  %s1237_s26 = scalar_lea.vmem %s1793_s0, %s1088_s23  ;;  %s1696_s17 = scalar_lea.vmem %s1796_s3, %s1088_s23 }
  0x10   : > { %499 = vmatprep.subr.bf16.mxu0 %v1187_v1  ;;  %1092 = vmatprep.subr.bf16.mxu1 %v1187_v1  ;;  %v1131_v6 = vld [vmem:[%s1237_s26 + $0x4] ss:$8 sps:$4 sm:$0xff]   ;;  %v1129_v17 = vld [vmem:[%s1237_s26] ss:$8 sps:$4 sm:$0xff]   ;;  %v1132_v19 = vld [vmem:[%s1237_s26 + $0x14] ss:$8 sps:$4 sm:$0xff]  }
  0x11   : > { %1070 = vmatprep.mubr.msk.bf16.mxu0 %vm437_vm0, %v1131_v6  ;;  %v1143_v8 = vld [vmem:[%s1237_s26 + $0x84] ss:$8 sps:$4 sm:$0xff]   ;;  %v1141_v18 = vld [vmem:[%s1237_s26 + $0x80] ss:$8 sps:$4 sm:$0xff]   ;;  %v1147_v20 = vld [vmem:[%s1237_s26 + $0x94] ss:$8 sps:$4 sm:$0xff]  }
  0x12   : > { %1078 = vmatprep.mubr.msk.bf16.mxu1 %vm437_vm0, %v1143_v8  ;;  %v1134_v21 = vld [vmem:[%s1237_s26 + $0x10] ss:$8 sps:$4 sm:$0xff]   ;;  %v1135_v23 = vld [vmem:[%s1237_s26 + $0x24] ss:$8 sps:$4 sm:$0xff]   ;;  %v1137_v25 = vld [vmem:[%s1237_s26 + $0x20] ss:$8 sps:$4 sm:$0xff]  }
  0x13   : > { %500 = vmatpush1.bf16.msra.mxu0 %v1122_v4  ;;  %1102 = vmatpush1.bf16.msra.mxu1 %v1122_v4  ;;  %v1149_v22 = vld [vmem:[%s1237_s26 + $0x90] ss:$8 sps:$4 sm:$0xff]   ;;  %v1153_v24 = vld [vmem:[%s1237_s26 + $0xa4] ss:$8 sps:$4 sm:$0xff]   ;;  %v1155_v26 = vld [vmem:[%s1237_s26 + $0xa0] ss:$8 sps:$4 sm:$0xff]  }
  0x14   : > { %501 = vmatprep.subr.bf16.mxu0 %v1187_v1  ;;  %1093 = vmatprep.subr.bf16.mxu1 %v1187_v1  ;;  %v1138_v27 = vld [vmem:[%s1237_s26 + $0x34] ss:$8 sps:$4 sm:$0xff]   ;;  %v1140_v29 = vld [vmem:[%s1237_s26 + $0x30] ss:$8 sps:$4 sm:$0xff]   ;;  %v1144_v31 = vld [vmem:[%s1237_s26 + $0x44] ss:$8 sps:$4 sm:$0xff]  }
  0x15   : > { %v1159_v28 = vld [vmem:[%s1237_s26 + $0xb4] ss:$8 sps:$4 sm:$0xff]   ;;  %v1161_v30 = vld [vmem:[%s1237_s26 + $0xb0] ss:$8 sps:$4 sm:$0xff]   ;;  %v1165_v32 = vld [vmem:[%s1237_s26 + $0xc4] ss:$8 sps:$4 sm:$0xff]  }
  0x16   : > { %v1146_v33 = vld [vmem:[%s1237_s26 + $0x40] ss:$8 sps:$4 sm:$0xff]   ;;  %v1150_v35 = vld [vmem:[%s1237_s26 + $0x54] ss:$8 sps:$4 sm:$0xff]   ;;  %v1152_v37 = vld [vmem:[%s1237_s26 + $0x50] ss:$8 sps:$4 sm:$0xff]  }
  0x17   : > { %502 = vmatpush1.bf16.msra.mxu0 %v1123_v5  ;;  %1103 = vmatpush1.bf16.msra.mxu1 %v1123_v5  ;;  %v1167_v34 = vld [vmem:[%s1237_s26 + $0xc0] ss:$8 sps:$4 sm:$0xff]   ;;  %v1168_v36 = vld [vmem:[%s1237_s26 + $0xd4] ss:$8 sps:$4 sm:$0xff]   ;;  %v1170_v38 = vld [vmem:[%s1237_s26 + $0xd0] ss:$8 sps:$4 sm:$0xff]  }
  0x18   : > { %503 = vmatprep.subr.bf16.mxu0 %v1187_v1  ;;  %1094 = vmatprep.subr.bf16.mxu1 %v1187_v1  ;;  %v1156_v39 = vld [vmem:[%s1237_s26 + $0x64] ss:$8 sps:$4 sm:$0xff]   ;;  %v1158_v41 = vld [vmem:[%s1237_s26 + $0x60] ss:$8 sps:$4 sm:$0xff]   ;;  %v1162_v43 = vld [vmem:[%s1237_s26 + $0x74] ss:$8 sps:$4 sm:$0xff]  }
  0x19   : > { %v1171_v40 = vld [vmem:[%s1237_s26 + $0xe4] ss:$8 sps:$4 sm:$0xff]   ;;  %v1173_v42 = vld [vmem:[%s1237_s26 + $0xe0] ss:$8 sps:$4 sm:$0xff]   ;;  %v1174_v44 = vld [vmem:[%s1237_s26 + $0xf4] ss:$8 sps:$4 sm:$0xff]  }
  0x1a   : > { %v1164_v45 = vld [vmem:[%s1237_s26 + $0x70] ss:$8 sps:$4 sm:$0xff]  }
  0x1b   : > { %504 = vmatpush1.bf16.msra.mxu0 %v1124_v7  ;;  %1104 = vmatpush1.bf16.msra.mxu1 %v1124_v7  ;;  %v1176_v46 = vld [vmem:[%s1237_s26 + $0xf0] ss:$8 sps:$4 sm:$0xff]  }
  0x1c   : > { %505 = vmatprep.subr.bf16.mxu0 %v1187_v1  ;;  %1095 = vmatprep.subr.bf16.mxu1 %v1187_v1 }
  0x1f   : > { %506 = vmatpush1.bf16.msra.mxu0 %v1125_v9  ;;  %1105 = vmatpush1.bf16.msra.mxu1 %v1125_v9 }
  0x20   : > { %507 = vmatprep.subr.bf16.mxu0 %v1187_v1  ;;  %1096 = vmatprep.subr.bf16.mxu1 %v1187_v1 }
  0x23   : > { %508 = vmatpush1.bf16.msra.mxu0 %v1126_v10  ;;  %1106 = vmatpush1.bf16.msra.mxu1 %v1126_v10 }
  0x24   : > { %509 = vmatprep.subr.bf16.mxu0 %v1187_v1  ;;  %1097 = vmatprep.subr.bf16.mxu1 %v1187_v1 }
  0x27   : > { %510 = vmatpush1.bf16.msra.mxu0 %v1127_v13  ;;  %1107 = vmatpush1.bf16.msra.mxu1 %v1127_v13 }
  0x28   : > { %511 = vmatprep.subr.bf16.mxu0 %v1187_v1  ;;  %1098 = vmatprep.subr.bf16.mxu1 %v1187_v1 }
  0x2b   : > { %512 = vmatpush1.bf16.msra.mxu0 %v491_v16  ;;  %1108 = vmatpush1.bf16.msra.mxu1 %v491_v16 }
  0x2e   : > { %526 = vmatmul.mubr.bf16.vlgmr.msra.gmra.mrb[0].mxu0 %v1129_v17  ;;  %590 = vmatmul.mubr.bf16.vlgmr.msra.gmra.mrb[0].mxu1 %v1141_v18 }
  0x2f   : > { %1071 = vmatprep.mubr.msk.bf16.mxu0 %vm437_vm0, %v1132_v19  ;;  %1079 = vmatprep.mubr.msk.bf16.mxu1 %vm437_vm0, %v1147_v20 }
  0x36   : > { %534 = vmatmul.mubr.bf16.gmra.mrb[4].mxu0 %v1134_v21  ;;  %598 = vmatmul.mubr.bf16.gmra.mrb[4].mxu1 %v1149_v22 }
  0x37   : > { %1072 = vmatprep.mubr.msk.bf16.mxu0 %vm437_vm0, %v1135_v23  ;;  %1080 = vmatprep.mubr.msk.bf16.mxu1 %vm437_vm0, %v1153_v24 }
  0x3e   : > { %542 = vmatmul.mubr.bf16.gmra.mrb[8].mxu0 %v1137_v25  ;;  %606 = vmatmul.mubr.bf16.gmra.mrb[8].mxu1 %v1155_v26 }
  0x3f   : > { %1073 = vmatprep.mubr.msk.bf16.mxu0 %vm437_vm0, %v1138_v27  ;;  %1081 = vmatprep.mubr.msk.bf16.mxu1 %vm437_vm0, %v1159_v28 }
  0x46   : > { %550 = vmatmul.mubr.bf16.gmra.mrb[12].mxu0 %v1140_v29  ;;  %614 = vmatmul.mubr.bf16.gmra.mrb[12].mxu1 %v1161_v30 }
  0x47   : > { %1074 = vmatprep.mubr.msk.bf16.mxu0 %vm437_vm0, %v1144_v31  ;;  %1082 = vmatprep.mubr.msk.bf16.mxu1 %vm437_vm0, %v1165_v32 }
  0x4e   : > { %558 = vmatmul.mubr.bf16.gmra.mrb[16].mxu0 %v1146_v33  ;;  %622 = vmatmul.mubr.bf16.gmra.mrb[16].mxu1 %v1167_v34 }
  0x4f   : > { %1075 = vmatprep.mubr.msk.bf16.mxu0 %vm437_vm0, %v1150_v35  ;;  %1083 = vmatprep.mubr.msk.bf16.mxu1 %vm437_vm0, %v1168_v36 }
  0x56   : > { %566 = vmatmul.mubr.bf16.gmra.mrb[20].mxu0 %v1152_v37  ;;  %630 = vmatmul.mubr.bf16.gmra.mrb[20].mxu1 %v1170_v38 }
  0x57   : > { %1076 = vmatprep.mubr.msk.bf16.mxu0 %vm437_vm0, %v1156_v39  ;;  %1084 = vmatprep.mubr.msk.bf16.mxu1 %vm437_vm0, %v1171_v40 }
  0x5e   : > { %574 = vmatmul.mubr.bf16.gmra.mrb[24].mxu0 %v1158_v41  ;;  %638 = vmatmul.mubr.bf16.gmra.mrb[24].mxu1 %v1173_v42 }
  0x5f   : > { %1077 = vmatprep.mubr.msk.bf16.mxu0 %vm437_vm0, %v1162_v43  ;;  %1085 = vmatprep.mubr.msk.bf16.mxu1 %vm437_vm0, %v1174_v44 }
  0x66   : > { %582 = vmatmul.mubr.bf16.gmra.mrb[28].mxu0 %v1164_v45  ;;  %646 = vmatmul.mubr.bf16.gmra.mrb[28].mxu1 %v1176_v46 }
 0x101   : > { %v527_v47 = vpop.f32.mrb[0].mxu0  ;;  %v1305_v48 = vpop.f32.mrb[0].mxu1 }
 0x102   : > { %v529_v49 = vpop.f32.mrb[1].mxu0  ;;  %v593_v50 = vpop.f32.mrb[1].mxu1  ;;  %v1322_v1 = vadd.f32 %v1316_v63, %v527_v47 }
 0x103   : > { %v530_v51 = vpop.f32.mrb[2].mxu0  ;;  %v1307_v52 = vpop.f32.mrb[2].mxu1 }
 0x104   : > { %v532_v53 = vpop.f32.mrb[3].mxu0  ;;  %v596_v54 = vpop.f32.mrb[3].mxu1  ;;  %v1319_v0 = vadd.f32 %v1316_v63, %v530_v51  ;;  %v724_v10 = vmul.f32 %v1322_v1, %v1322_v1  ;;  %v655_v16 = vsel %vm654_vm3, %v1322_v1, 0.0 }
 0x106   : > { %v725_v5 = vmul.f32 %v1319_v0, %v1319_v0  ;;  %v656_v11 = vsel %vm654_vm3, %v1319_v0, 0.0  ;;  %v756_v21 = vsel %vm654_vm3, %v724_v10, 0.0 }
 0x107   : > { %v657_v20 = vadd.f32 %v656_v11, %v655_v16 }
 0x108   : > { %v757_v17 = vsel %vm654_vm3, %v725_v5, 0.0 }
 0x109   : > { %v535_v55 = vpop.f32.mrb[4].mxu0  ;;  %v1309_v56 = vpop.f32.mrb[4].mxu1  ;;  %v758_v24 = vadd.f32 %v757_v17, %v756_v21 }
 0x10a   : > { %v537_v57 = vpop.f32.mrb[5].mxu0  ;;  %v601_v58 = vpop.f32.mrb[5].mxu1  ;;  %v1325_v2 = vadd.f32 %v1316_v63, %v535_v55 }
 0x10b   : > { %v538_v59 = vpop.f32.mrb[6].mxu0  ;;  %v1311_v60 = vpop.f32.mrb[6].mxu1 }
 0x10c   : > { %v540_v61 = vpop.f32.mrb[7].mxu0  ;;  %v604_v62 = vpop.f32.mrb[7].mxu1  ;;  %v726_v12 = vmul.f32 %v1325_v2, %v1325_v2  ;;  %v1340_v13 = vadd.f32 %v1316_v63, %v538_v59  ;;  %v658_v18 = vsel %vm654_vm3, %v1325_v2, 0.0 }
 0x10d   : > { %v659_v25 = vadd.f32 %v658_v18, %v657_v20 }
 0x10e   : > { %v759_v22 = vsel %vm654_vm3, %v726_v12, 0.0  ;;  %v727_v23 = vmul.f32 %v1340_v13, %v1340_v13  ;;  %v660_v28 = vsel %vm654_vm3, %v1340_v13, 0.0 }
 0x10f   : > { %v760_v33 = vadd.f32 %v759_v22, %v758_v24  ;;  %v661_v41 = vadd.f32 %v660_v28, %v659_v25 }
 0x110   : > { %v761_v36 = vsel %vm654_vm3, %v727_v23, 0.0 }
 0x111   : > { %v543_v3 = vpop.f32.mrb[8].mxu0  ;;  %v1327_v4 = vpop.f32.mrb[8].mxu1  ;;  %v762_v44 = vadd.f32 %v761_v36, %v760_v33 }
 0x112   : > { %v545_v6 = vpop.f32.mrb[9].mxu0  ;;  %v609_v7 = vpop.f32.mrb[9].mxu1  ;;  %v1348_v19 = vadd.f32 %v1316_v63, %v543_v3 }
 0x113   : > { %v546_v8 = vpop.f32.mrb[10].mxu0  ;;  %v1331_v9 = vpop.f32.mrb[10].mxu1 }
 0x114   : > { %v548_v14 = vpop.f32.mrb[11].mxu0  ;;  %v612_v15 = vpop.f32.mrb[11].mxu1  ;;  %v728_v29 = vmul.f32 %v1348_v19, %v1348_v19  ;;  %v1361_v30 = vadd.f32 %v1316_v63, %v546_v8  ;;  %v662_v37 = vsel %vm654_vm3, %v1348_v19, 0.0 }
 0x115   : > { %v663_v45 = vadd.f32 %v662_v37, %v661_v41 }
 0x116   : > { %v763_v42 = vsel %vm654_vm3, %v728_v29, 0.0  ;;  %v729_v43 = vmul.f32 %v1361_v30, %v1361_v30  ;;  %v664_v46 = vsel %vm654_vm3, %v1361_v30, 0.0 }
 0x117   : > { %v764_v50 = vadd.f32 %v763_v42, %v762_v44  ;;  %v665_v61 = vadd.f32 %v664_v46, %v663_v45 }
 0x118   : > { %v765_v54 = vsel %vm654_vm3, %v729_v43, 0.0 }
 0x119   : > { %v551_v26 = vpop.f32.mrb[12].mxu0  ;;  %v1354_v27 = vpop.f32.mrb[12].mxu1  ;;  %v766_v10 = vadd.f32 %v765_v54, %v764_v50 }
 0x11a   : > { %v553_v31 = vpop.f32.mrb[13].mxu0  ;;  %v617_v32 = vpop.f32.mrb[13].mxu1  ;;  %v1369_v38 = vadd.f32 %v1316_v63, %v551_v26 }
 0x11b   : > { %v554_v34 = vpop.f32.mrb[14].mxu0  ;;  %v1363_v35 = vpop.f32.mrb[14].mxu1 }
 0x11c   : > { %v556_v39 = vpop.f32.mrb[15].mxu0  ;;  %v620_v40 = vpop.f32.mrb[15].mxu1  ;;  %v730_v47 = vmul.f32 %v1369_v38, %v1369_v38  ;;  %v1379_v49 = vadd.f32 %v1316_v63, %v554_v34  ;;  %v666_v55 = vsel %vm654_vm3, %v1369_v38, 0.0 }
 0x11d   : > { %v667_v11 = vadd.f32 %v666_v55, %v665_v61 }
 0x11e   : > { %v767_v5 = vsel %vm654_vm3, %v730_v47, 0.0  ;;  %v731_v6 = vmul.f32 %v1379_v49, %v1379_v49  ;;  %v668_v12 = vsel %vm654_vm3, %v1379_v49, 0.0 }
 0x11f   : > { %v768_v16 = vadd.f32 %v767_v5, %v766_v10  ;;  %v669_v20 = vadd.f32 %v668_v12, %v667_v11 }
 0x120   : > { %v769_v17 = vsel %vm654_vm3, %v731_v6, 0.0 }
 0x121   : > { %v559_v51 = vpop.f32.mrb[16].mxu0  ;;  %v1381_v53 = vpop.f32.mrb[16].mxu1  ;;  %v770_v29 = vadd.f32 %v769_v17, %v768_v16 }
 0x122   : > { %v1387_v57 = vadd.f32 %v1316_v63, %v559_v51  ;;  %v561_v58 = vpop.f32.mrb[17].mxu0  ;;  %v625_v59 = vpop.f32.mrb[17].mxu1 }
 0x123   : > { %v562_v62 = vpop.f32.mrb[18].mxu0  ;;  %v1389_v3 = vpop.f32.mrb[18].mxu1 }
 0x124   : > { %v564_v7 = vpop.f32.mrb[19].mxu0  ;;  %v628_v8 = vpop.f32.mrb[19].mxu1  ;;  %v732_v14 = vmul.f32 %v1387_v57, %v1387_v57  ;;  %v1399_v15 = vadd.f32 %v1316_v63, %v562_v62  ;;  %v670_v18 = vsel %vm654_vm3, %v1387_v57, 0.0 }
 0x125   : > { %v671_v31 = vadd.f32 %v670_v18, %v669_v20 }
 0x126   : > { %v771_v23 = vsel %vm654_vm3, %v732_v14, 0.0  ;;  %v733_v24 = vmul.f32 %v1399_v15, %v1399_v15  ;;  %v672_v34 = vsel %vm654_vm3, %v1399_v15, 0.0 }
 0x127   : > { %v772_v41 = vadd.f32 %v771_v23, %v770_v29  ;;  %v673_v44 = vadd.f32 %v672_v34, %v671_v31 }
 0x128   : > { %v773_v42 = vsel %vm654_vm3, %v733_v24, 0.0  ;;  %v1451_v24 = vadd.f32 %v1316_v63, %v1305_v48 }
 0x129   : > { %v567_v21 = vpop.f32.mrb[20].mxu0  ;;  %v1404_v22 = vpop.f32.mrb[20].mxu1  ;;  %v774_v47 = vadd.f32 %v773_v42, %v772_v41  ;;  %v1463_v42 = vadd.f32 %v1316_v63, %v1307_v52  ;;  %v1476_v52 = vadd.f32 %v1316_v63, %v1309_v56  ;;  %v1489_v56 = vadd.f32 %v1316_v63, %v1311_v60 }
 0x12a   : > { %v1410_v25 = vadd.f32 %v1316_v63, %v567_v21  ;;  %v569_v26 = vpop.f32.mrb[21].mxu0  ;;  %v633_v28 = vpop.f32.mrb[21].mxu1 }
 0x12b   : > { %v570_v32 = vpop.f32.mrb[22].mxu0  ;;  %v1412_v33 = vpop.f32.mrb[22].mxu1 }
 0x12c   : > { %v734_v36 = vmul.f32 %v1410_v25, %v1410_v25  ;;  %v1419_v37 = vadd.f32 %v1316_v63, %v570_v32  ;;  %v572_v39 = vpop.f32.mrb[23].mxu0  ;;  %v636_v40 = vpop.f32.mrb[23].mxu1  ;;  %v674_v43 = vsel %vm654_vm3, %v1410_v25, 0.0 }
 0x12d   : > { %v675_v50 = vadd.f32 %v674_v43, %v673_v44 }
 0x12e   : > { %v775_v45 = vsel %vm654_vm3, %v734_v36, 0.0  ;;  %v735_v46 = vmul.f32 %v1419_v37, %v1419_v37  ;;  %v676_v55 = vsel %vm654_vm3, %v1419_v37, 0.0 }
 0x12f   : > { %v776_v62 = vadd.f32 %v775_v45, %v774_v47  ;;  %v677_v16 = vadd.f32 %v676_v55, %v675_v50  ;;  %v740_v47 = vmul.f32 %v1451_v24, %v1451_v24 }
 0x130   : > { %v777_v7 = vsel %vm654_vm3, %v735_v46, 0.0 }
 0x131   : > { %v575_v51 = vpop.f32.mrb[24].mxu0  ;;  %v1427_v54 = vpop.f32.mrb[24].mxu1  ;;  %v778_v20 = vadd.f32 %v777_v7, %v776_v62  ;;  %v686_v7 = vsel %vm654_vm3, %v1451_v24, 0.0 }
 0x132   : > { %v1432_v58 = vadd.f32 %v1316_v63, %v575_v51  ;;  %v577_v59 = vpop.f32.mrb[25].mxu0  ;;  %v641_v61 = vpop.f32.mrb[25].mxu1 }
 0x133   : > { %v578_v5 = vpop.f32.mrb[26].mxu0  ;;  %v1434_v6 = vpop.f32.mrb[26].mxu1 }
 0x134   : > { %v678_v8 = vsel %vm654_vm3, %v1432_v58, 0.0  ;;  %v736_v10 = vmul.f32 %v1432_v58, %v1432_v58  ;;  %v1442_v11 = vadd.f32 %v1316_v63, %v578_v5  ;;  %v580_v12 = vpop.f32.mrb[27].mxu0  ;;  %v644_v14 = vpop.f32.mrb[27].mxu1 }
 0x135   : > { %v679_v21 = vadd.f32 %v678_v8, %v677_v16  ;;  %v741_v8 = vmul.f32 %v1463_v42, %v1463_v42  ;;  %v787_v16 = vsel %vm654_vm3, %v740_v47, 0.0 }
 0x136   : > { %v779_v17 = vsel %vm654_vm3, %v736_v10, 0.0  ;;  %v737_v18 = vmul.f32 %v1442_v11, %v1442_v11  ;;  %v680_v23 = vsel %vm654_vm3, %v1442_v11, 0.0 }
 0x137   : > { %v780_v26 = vadd.f32 %v779_v17, %v778_v20  ;;  %v681_v39 = vadd.f32 %v680_v23, %v679_v21  ;;  %v688_v17 = vsel %vm654_vm3, %v1463_v42, 0.0  ;;  %v1499_v20 = vadd.f32 %v1316_v63, %v1327_v4 }
 0x138   : > { %v781_v31 = vsel %vm654_vm3, %v737_v18, 0.0  ;;  %v742_v18 = vmul.f32 %v1476_v52, %v1476_v52  ;;  %v789_v60 = vsel %vm654_vm3, %v741_v8, 0.0  ;;  %v692_v4 = vsel %vm654_vm3, %v1489_v56, 0.0 }
 0x139   : > { %v583_v28 = vpop.f32.mrb[28].mxu0  ;;  %v1453_v29 = vpop.f32.mrb[28].mxu1  ;;  %v782_v50 = vadd.f32 %v781_v31, %v780_v26  ;;  %v690_v26 = vsel %vm654_vm3, %v1476_v52, 0.0  ;;  %v1508_v31 = vadd.f32 %v1316_v63, %v1331_v9  ;;  %v694_v9 = vsel %vm654_vm3, %v1499_v20, 0.0 }
 0x13a   : > { %v1457_v32 = vadd.f32 %v1316_v63, %v583_v28  ;;  %v585_v34 = vpop.f32.mrb[29].mxu0  ;;  %v649_v36 = vpop.f32.mrb[29].mxu1  ;;  %v743_v28 = vmul.f32 %v1489_v56, %v1489_v56 }
 0x13b   : > { %v586_v40 = vpop.f32.mrb[30].mxu0  ;;  %v1459_v41 = vpop.f32.mrb[30].mxu1  ;;  %v745_v47 = vmul.f32 %v1508_v31, %v1508_v31 }
 0x13c   : > { %v682_v48 = vsel %vm654_vm3, %v1457_v32, 0.0  ;;  %v738_v43 = vmul.f32 %v1457_v32, %v1457_v32  ;;  %v1470_v44 = vadd.f32 %v1316_v63, %v586_v40  ;;  %v588_v45 = vpop.f32.mrb[31].mxu0  ;;  %v652_v46 = vpop.f32.mrb[31].mxu1  ;;  %v744_v40 = vmul.f32 %v1499_v20, %v1499_v20 }
 0x13d   : > { %v683_v51 = vadd.f32 %v682_v48, %v681_v39  ;;  %v791_v39 = vsel %vm654_vm3, %v742_v18, 0.0  ;;  %v1517_v48 = vadd.f32 %v1316_v63, %v1354_v27  ;;  %v793_v46 = vsel %vm654_vm3, %v743_v28, 0.0 }
 0x13e   : > { %v783_v55 = vsel %vm654_vm3, %v738_v43, 0.0  ;;  %v684_v59 = vsel %vm654_vm3, %v1470_v44, 0.0  ;;  %v739_v61 = vmul.f32 %v1470_v44, %v1470_v44  ;;  %v696_v27 = vsel %vm654_vm3, %v1508_v31, 0.0 }
 0x13f   : > { %v784_v62 = vadd.f32 %v783_v55, %v782_v50  ;;  %v685_v5 = vadd.f32 %v684_v59, %v683_v51  ;;  %v1526_v50 = vadd.f32 %v1316_v63, %v1363_v35  ;;  %v795_v59 = vsel %vm654_vm3, %v744_v40, 0.0 }
 0x140   : > { %v785_v10 = vsel %vm654_vm3, %v739_v61, 0.0  ;;  %v746_v61 = vmul.f32 %v1517_v48, %v1517_v48  ;;  %v797_v8 = vsel %vm654_vm3, %v745_v47, 0.0  ;;  %v698_v35 = vsel %vm654_vm3, %v1517_v48, 0.0 }
 0x141   : > { %v687_v12 = vadd.f32 %v686_v7, %v685_v5  ;;  %v786_v14 = vadd.f32 %v785_v10, %v784_v62  ;;  %v1535_v62 = vadd.f32 %v1316_v63, %v1381_v53  ;;  %v747_v10 = vmul.f32 %v1526_v50, %v1526_v50 }
 0x142   : > { %v700_v53 = vsel %vm654_vm3, %v1526_v50, 0.0 }
 0x143   : > { %v689_v21 = vadd.f32 %v688_v17, %v687_v12  ;;  %v788_v23 = vadd.f32 %v787_v16, %v786_v14  ;;  %v1544_v12 = vadd.f32 %v1316_v63, %v1389_v3  ;;  %v799_v17 = vsel %vm654_vm3, %v746_v61, 0.0 }
 0x144   : > { %v748_v18 = vmul.f32 %v1535_v62, %v1535_v62  ;;  %v1557_v3 = vadd.f32 %v1316_v63, %v1412_v33  ;;  %v702_v28 = vsel %vm654_vm3, %v1535_v62, 0.0  ;;  %v1571_v33 = vadd.f32 %v1316_v63, %v1427_v54 }
 0x145   : > { %v691_v34 = vadd.f32 %v690_v26, %v689_v21  ;;  %v790_v36 = vadd.f32 %v789_v60, %v788_v23  ;;  %v1553_v21 = vadd.f32 %v1316_v63, %v1404_v22  ;;  %v801_v26 = vsel %vm654_vm3, %v747_v10, 0.0 }
 0x146   : > { %v704_v22 = vsel %vm654_vm3, %v1544_v12, 0.0  ;;  %v708_v61 = vsel %vm654_vm3, %v1557_v3, 0.0 }
 0x147   : > { %v693_v43 = vadd.f32 %v692_v4, %v691_v34  ;;  %v792_v45 = vadd.f32 %v791_v39, %v790_v36  ;;  %v749_v34 = vmul.f32 %v1544_v12, %v1544_v12  ;;  %v803_v4 = vsel %vm654_vm3, %v748_v18, 0.0 }
 0x148   : > { %v750_v40 = vmul.f32 %v1553_v21, %v1553_v21  ;;  %v706_v47 = vsel %vm654_vm3, %v1553_v21, 0.0 }
 0x149   : > { %v794_v51 = vadd.f32 %v793_v46, %v792_v45  ;;  %v695_v55 = vadd.f32 %v694_v9, %v693_v43  ;;  %v751_v46 = vmul.f32 %v1557_v3, %v1557_v3  ;;  %v805_v9 = vsel %vm654_vm3, %v749_v34, 0.0 }
 0x14b   : > { %v697_v5 = vadd.f32 %v696_v27, %v695_v55  ;;  %v796_v7 = vadd.f32 %v795_v59, %v794_v51  ;;  %v1580_v51 = vadd.f32 %v1316_v63, %v1434_v6  ;;  %v1584_v55 = vadd.f32 %v1316_v63, %v1453_v29 }
 0x14c   : > { %v807_v27 = vsel %vm654_vm3, %v750_v40, 0.0  ;;  %v710_v6 = vsel %vm654_vm3, %v1571_v33, 0.0 }
 0x14d   : > { %v699_v14 = vadd.f32 %v698_v35, %v697_v5  ;;  %v798_v16 = vadd.f32 %v797_v8, %v796_v7  ;;  %v752_v5 = vmul.f32 %v1571_v33, %v1571_v33  ;;  %v809_v35 = vsel %vm654_vm3, %v751_v46, 0.0 }
 0x14e   : > { %v753_v29 = vmul.f32 %v1580_v51, %v1580_v51  ;;  %v754_v10 = vmul.f32 %v1584_v55, %v1584_v55  ;;  %v712_v18 = vsel %vm654_vm3, %v1580_v51, 0.0 }
 0x14f   : > { %v701_v23 = vadd.f32 %v700_v53, %v699_v14  ;;  %v800_v60 = vadd.f32 %v799_v17, %v798_v16  ;;  %v1600_v14 = vadd.f32 %v1316_v63, %v1459_v41  ;;  %v811_v53 = vsel %vm654_vm3, %v752_v5, 0.0 }
 0x150   : > { %v815_v34 = vsel %vm654_vm3, %v754_v10, 0.0 }
 0x151   : > { %v703_v36 = vadd.f32 %v702_v28, %v701_v23  ;;  %v802_v39 = vadd.f32 %v801_v26, %v800_v60  ;;  %v714_v23 = vsel %vm654_vm3, %v1584_v55, 0.0  ;;  %v813_v28 = vsel %vm654_vm3, %v753_v29, 0.0 }
 0x152   : > { %v755_v63 = vmul.f32 %v1600_v14, %v1600_v14 }
 0x153   : > { %v804_v43 = vadd.f32 %v803_v4, %v802_v39  ;;  %v705_v45 = vadd.f32 %v704_v22, %v703_v36  ;;  %v716_v39 = vsel %vm654_vm3, %v1600_v14, 0.0 }
 0x154   : > { %v817_v40 = vsel %vm654_vm3, %v755_v63, 0.0 }
 0x155   : > { %v806_v54 = vadd.f32 %v805_v9, %v804_v43  ;;  %v707_v59 = vadd.f32 %v706_v47, %v705_v45 }
 0x157   : > { %v808_v7 = vadd.f32 %v807_v27, %v806_v54  ;;  %v709_v8 = vadd.f32 %v708_v61, %v707_v59 }
 0x159   : > { %v810_v16 = vadd.f32 %v809_v35, %v808_v7  ;;  %v711_v17 = vadd.f32 %v710_v6, %v709_v8 }
 0x15b   : > { %v812_v60 = vadd.f32 %v811_v53, %v810_v16  ;;  %v713_v26 = vadd.f32 %v712_v18, %v711_v17 }
 0x15d   : > { %v814_v41 = vadd.f32 %v813_v28, %v812_v60  ;;  %v715_v36 = vadd.f32 %v714_v23, %v713_v26 }
 0x15f   : > { %v816_v4 = vadd.f32 %v815_v34, %v814_v41  ;;  %v717_v22 = vadd.f32 %v716_v39, %v715_v36 }
 0x161   : > { %v718_v43 = vrot.slane %v717_v22, 4  ;;  %v818_v45 = vadd.f32 %v817_v40, %v816_v4 }
 0x163   : > { %v719_v46 = vadd.f32 %v718_v43, %v717_v22  ;;  %v819_v9 = vrot.slane %v818_v45, 4 }
 0x165   : > { %v720_v47 = vrot.slane %v719_v46, 2  ;;  %v820_v54 = vadd.f32 %v819_v9, %v818_v45 }
 0x167   : > { %v721_v59 = vadd.f32 %v720_v47, %v719_v46  ;;  %v821_v27 = vrot.slane %v820_v54, 2 }
 0x169   : > { %v722_v61 = vrot.slane %v721_v59, 1  ;;  %v822_v5 = vadd.f32 %v821_v27, %v820_v54 }
 0x16b   : > { %v723_v7 = vadd.f32 %v722_v61, %v721_v59  ;;  %v823_v8 = vrot.slane %v822_v5, 1 }
 0x16d   : > { %v824_v35 = vadd.f32 %v823_v8, %v822_v5  ;;  %v825_v6 = vmul.f32 0.00390625, %v723_v7 }
 0x16f   : > { %v826_v29 = vmul.f32 0.00390625, %v824_v35  ;;  %v827_v10 = vmul.f32 %v825_v6, %v825_v6  ;;  %v831_v53 = vsub.f32 0.0, %v825_v6 }
 0x171   : > { %v828_v16 = vsub.f32 %v826_v29, %v827_v10 }
 0x173   : > { %v829_v17 = vadd.f32 1e-05, %v828_v16 }
 0x175   : > { %1177 = vrsqrt.f32 %v829_v17 }
 0x17f   : > { %v1178_v18 = vpop.eup %1177 }
 0x180   : > { %v1614_v23 = vmul.f32 %v1178_v18, %v831_v53  ;;  %v833_v60 = vmul.f32 %v1178_v18, %v1322_v1  ;;  %v834_v26 = vmul.f32 %v1178_v18, %v1319_v0  ;;  %v835_v28 = vmul.f32 %v1178_v18, %v1325_v2 }
 0x181   : > { %v836_v34 = vmul.f32 %v1178_v18, %v1340_v13  ;;  %v837_v63 = vmul.f32 %v1178_v18, %v1348_v19  ;;  %v838_v41 = vmul.f32 %v1178_v18, %v1361_v30  ;;  %v839_v36 = vmul.f32 %v1178_v18, %v1369_v38 }
 0x182   : > { %v840_v39 = vmul.f32 %v1178_v18, %v1379_v49  ;;  %v841_v4 = vmul.f32 %v1178_v18, %v1387_v57  ;;  %v842_v22 = vmul.f32 %v1178_v18, %v1399_v15  ;;  %v843_v1 = vmul.f32 %v1178_v18, %v1410_v25 }
 0x183   : > { %v844_v0 = vmul.f32 %v1178_v18, %v1419_v37  ;;  %v845_v2 = vmul.f32 %v1178_v18, %v1432_v58  ;;  %v846_v13 = vmul.f32 %v1178_v18, %v1442_v11  ;;  %v847_v19 = vmul.f32 %v1178_v18, %v1457_v32 }
 0x184   : > { %v848_v30 = vmul.f32 %v1178_v18, %v1470_v44  ;;  %v849_v38 = vmul.f32 %v1178_v18, %v1451_v24  ;;  %v850_v49 = vmul.f32 %v1178_v18, %v1463_v42  ;;  %v851_v57 = vmul.f32 %v1178_v18, %v1476_v52 }
 0x185   : > { %v852_v15 = vmul.f32 %v1178_v18, %v1489_v56  ;;  %v853_v25 = vmul.f32 %v1178_v18, %v1499_v20  ;;  %v854_v37 = vmul.f32 %v1178_v18, %v1508_v31  ;;  %v855_v58 = vmul.f32 %v1178_v18, %v1517_v48 }
 0x186   : > { %v856_v11 = vmul.f32 %v1178_v18, %v1526_v50  ;;  %v857_v32 = vmul.f32 %v1178_v18, %v1535_v62  ;;  %v858_v44 = vmul.f32 %v1178_v18, %v1544_v12  ;;  %v859_v24 = vmul.f32 %v1178_v18, %v1553_v21 }
 0x187   : > { %v860_v42 = vmul.f32 %v1178_v18, %v1557_v3  ;;  %v861_v52 = vmul.f32 %v1178_v18, %v1571_v33  ;;  %v862_v56 = vmul.f32 %v1178_v18, %v1580_v51  ;;  %v863_v20 = vmul.f32 %v1178_v18, %v1584_v55 }
 0x188   : > { %v864_v31 = vmul.f32 %v1178_v18, %v1600_v14  ;;  %v865_v48 = vadd.f32 %v833_v60, %v1614_v23  ;;  %v866_v50 = vadd.f32 %v834_v26, %v1614_v23  ;;  %v867_v62 = vadd.f32 %v835_v28, %v1614_v23 }
 0x189   : > { %v868_v12 = vadd.f32 %v836_v34, %v1614_v23  ;;  %v869_v21 = vadd.f32 %v837_v63, %v1614_v23  ;;  %v870_v3 = vadd.f32 %v838_v41, %v1614_v23  ;;  %v871_v33 = vadd.f32 %v839_v36, %v1614_v23 }
 0x18a   : > { %v872_v51 = vadd.f32 %v840_v39, %v1614_v23  ;;  %v873_v55 = vadd.f32 %v841_v4, %v1614_v23  ;;  %v874_v14 = vadd.f32 %v842_v22, %v1614_v23  ;;  %v875_v40 = vadd.f32 %v843_v1, %v1614_v23 }
 0x18b   : > { %v876_v43 = vadd.f32 %v844_v0, %v1614_v23  ;;  %v877_v45 = vadd.f32 %v845_v2, %v1614_v23  ;;  %v878_v46 = vadd.f32 %v846_v13, %v1614_v23  ;;  %v879_v9 = vadd.f32 %v847_v19, %v1614_v23 }
 0x18c   : > { %v880_v47 = vadd.f32 %v848_v30, %v1614_v23  ;;  %v881_v54 = vadd.f32 %v849_v38, %v1614_v23  ;;  %v882_v59 = vadd.f32 %v850_v49, %v1614_v23  ;;  %v883_v27 = vadd.f32 %v851_v57, %v1614_v23 }
 0x18d   : > { %v1668_v61 = vadd.f32 %v852_v15, %v1614_v23  ;;  %v1671_v5 = vadd.f32 %v853_v25, %v1614_v23  ;;  %v1674_v7 = vadd.f32 %v854_v37, %v1614_v23  ;;  %v1677_v8 = vadd.f32 %v855_v58, %v1614_v23 }
 0x18e   : > { %v1680_v35 = vadd.f32 %v856_v11, %v1614_v23  ;;  %v1683_v6 = vadd.f32 %v857_v32, %v1614_v23  ;;  %v1686_v29 = vadd.f32 %v858_v44, %v1614_v23  ;;  %v1689_v10 = vadd.f32 %v859_v24, %v1614_v23 }
 0x18f   : > { %v1699_v16 = vadd.f32 %v860_v42, %v1614_v23  ;;  %v1702_v17 = vadd.f32 %v861_v52, %v1614_v23  ;;  %v1705_v53 = vadd.f32 %v862_v56, %v1614_v23  ;;  %v1708_v18 = vadd.f32 %v863_v20, %v1614_v23 }
 0x190   : > { %v1711_v60 = vadd.f32 %v864_v31, %v1614_v23  ;;  %v897_v26 = vmax.f32 %v865_v48, 0.0  ;;  %v898_v28 = vmax.f32 %v866_v50, 0.0  ;;  %v899_v34 = vmax.f32 %v867_v62, 0.0 }
 0x191   : > { %v900_v63 = vmax.f32 %v868_v12, 0.0  ;;  %v901_v41 = vmax.f32 %v869_v21, 0.0  ;;  %v902_v36 = vmax.f32 %v870_v3, 0.0  ;;  %v903_v39 = vmax.f32 %v871_v33, 0.0 }
 0x192   : > { %v904_v4 = vmax.f32 %v872_v51, 0.0  ;;  %v905_v22 = vmax.f32 %v873_v55, 0.0  ;;  %v906_v1 = vmax.f32 %v874_v14, 0.0  ;;  %v907_v0 = vmax.f32 %v875_v40, 0.0  ;;  %929 = vst.msk [vmem:[%s1696_s17] sm:$0xff] %vm654_vm3, %v897_v26  ;;  %930 = vst.msk [vmem:[%s1696_s17 + $0x8] sm:$0xff] %vm654_vm3, %v898_v28 }
 0x193   : > { %931 = vst.msk [vmem:[%s1696_s17 + $0x10] sm:$0xff] %vm654_vm3, %v899_v34  ;;  %v908_v23 = vmax.f32 %v876_v43, 0.0  ;;  %v909_v2 = vmax.f32 %v877_v45, 0.0  ;;  %v910_v13 = vmax.f32 %v878_v46, 0.0  ;;  %v911_v19 = vmax.f32 %v879_v9, 0.0  ;;  %932 = vst.msk [vmem:[%s1696_s17 + $0x18] sm:$0xff] %vm654_vm3, %v900_v63 }
 0x194   : > { %933 = vst.msk [vmem:[%s1696_s17 + $0x20] sm:$0xff] %vm654_vm3, %v901_v41  ;;  %934 = vst.msk [vmem:[%s1696_s17 + $0x28] sm:$0xff] %vm654_vm3, %v902_v36  ;;  %v912_v30 = vmax.f32 %v880_v47, 0.0  ;;  %v913_v38 = vmax.f32 %v881_v54, 0.0  ;;  %v914_v49 = vmax.f32 %v882_v59, 0.0  ;;  %v915_v57 = vmax.f32 %v883_v27, 0.0 }
 0x195   : > { %935 = vst.msk [vmem:[%s1696_s17 + $0x30] sm:$0xff] %vm654_vm3, %v903_v39  ;;  %936 = vst.msk [vmem:[%s1696_s17 + $0x38] sm:$0xff] %vm654_vm3, %v904_v4  ;;  %v916_v15 = vmax.f32 %v1668_v61, 0.0  ;;  %v917_v25 = vmax.f32 %v1671_v5, 0.0  ;;  %v918_v37 = vmax.f32 %v1674_v7, 0.0  ;;  %v919_v58 = vmax.f32 %v1677_v8, 0.0 }
 0x196   : > { %937 = vst.msk [vmem:[%s1696_s17 + $0x40] sm:$0xff] %vm654_vm3, %v905_v22  ;;  %938 = vst.msk [vmem:[%s1696_s17 + $0x48] sm:$0xff] %vm654_vm3, %v906_v1  ;;  %v920_v11 = vmax.f32 %v1680_v35, 0.0  ;;  %v921_v32 = vmax.f32 %v1683_v6, 0.0  ;;  %v922_v44 = vmax.f32 %v1686_v29, 0.0  ;;  %v923_v24 = vmax.f32 %v1689_v10, 0.0 }
 0x197   : > { %939 = vst.msk [vmem:[%s1696_s17 + $0x50] sm:$0xff] %vm654_vm3, %v907_v0  ;;  %940 = vst.msk [vmem:[%s1696_s17 + $0x58] sm:$0xff] %vm654_vm3, %v908_v23  ;;  %v924_v42 = vmax.f32 %v1699_v16, 0.0  ;;  %v925_v52 = vmax.f32 %v1702_v17, 0.0  ;;  %v926_v56 = vmax.f32 %v1705_v53, 0.0  ;;  %v927_v20 = vmax.f32 %v1708_v18, 0.0 }
 0x198   : > { %941 = vst.msk [vmem:[%s1696_s17 + $0x60] sm:$0xff] %vm654_vm3, %v909_v2  ;;  %942 = vst.msk [vmem:[%s1696_s17 + $0x68] sm:$0xff] %vm654_vm3, %v910_v13  ;;  %v928_v31 = vmax.f32 %v1711_v60, 0.0 }
 0x199   : > { %943 = vst.msk [vmem:[%s1696_s17 + $0x70] sm:$0xff] %vm654_vm3, %v911_v19  ;;  %944 = vst.msk [vmem:[%s1696_s17 + $0x78] sm:$0xff] %vm654_vm3, %v912_v30 }
 0x19a   : > { %945 = vst.msk [vmem:[%s1696_s17 + $0x80] sm:$0xff] %vm654_vm3, %v913_v38  ;;  %946 = vst.msk [vmem:[%s1696_s17 + $0x88] sm:$0xff] %vm654_vm3, %v914_v49 }
 0x19b   : > { %947 = vst.msk [vmem:[%s1696_s17 + $0x90] sm:$0xff] %vm654_vm3, %v915_v57  ;;  %948 = vst.msk [vmem:[%s1696_s17 + $0x98] sm:$0xff] %vm654_vm3, %v916_v15 }
 0x19c   : > { %949 = vst.msk [vmem:[%s1696_s17 + $0xa0] sm:$0xff] %vm654_vm3, %v917_v25  ;;  %950 = vst.msk [vmem:[%s1696_s17 + $0xa8] sm:$0xff] %vm654_vm3, %v918_v37 }
 0x19d   : > { %951 = vst.msk [vmem:[%s1696_s17 + $0xb0] sm:$0xff] %vm654_vm3, %v919_v58  ;;  %952 = vst.msk [vmem:[%s1696_s17 + $0xb8] sm:$0xff] %vm654_vm3, %v920_v11 }
 0x19e   : > { %953 = vst.msk [vmem:[%s1696_s17 + $0xc0] sm:$0xff] %vm654_vm3, %v921_v32  ;;  %954 = vst.msk [vmem:[%s1696_s17 + $0xc8] sm:$0xff] %vm654_vm3, %v922_v44 }
 0x19f   : > { %955 = vst.msk [vmem:[%s1696_s17 + $0xd0] sm:$0xff] %vm654_vm3, %v923_v24  ;;  %956 = vst.msk [vmem:[%s1696_s17 + $0xd8] sm:$0xff] %vm654_vm3, %v924_v42 }
 0x1a0   : > { %957 = vst.msk [vmem:[%s1696_s17 + $0xe0] sm:$0xff] %vm654_vm3, %v925_v52  ;;  %958 = vst.msk [vmem:[%s1696_s17 + $0xe8] sm:$0xff] %vm654_vm3, %v926_v56 }
 0x1a1   : > { %959 = vst.msk [vmem:[%s1696_s17 + $0xf0] sm:$0xff] %vm654_vm3, %v927_v20  ;;  %960 = vst.msk [vmem:[%s1696_s17 + $0xf8] sm:$0xff] %vm654_vm3, %v928_v31 }
 0x1a2 PF: > { %s13_s12 = sadd.s32 1, %s1185_s12  }
 0x1a3   : > { %p10_p4 = scmp.ge.s32.totalorder %s13_s12, 4  }
 0x1a5   :  { %12 = sbr.rel (!%p10_p4) target bundleno = 1 (0x1), region = 62 }

// kernel: generator_att_forward.14
= control target key start
LH: loop header
LB: loop body
LE: loop exit
PB: predicated region body
PF: predicated region fallthrough
CT: control target
= control target key end

     0   :  { %v411_v0 = vmov 0   ;;  %vm182_vm0 = vcmask 130048   ;;  %vm304_vm1 = vcmask 261120   ;;  %s582_s1 = inlined_call_operand.vmem [shape: bf16[144,32], index: 1, kind: input, shape index: {}]   ;;  %s583_s0 = inlined_call_operand.vmem [shape: bf16[128,144], index: 0, kind: input, shape index: {}]   ;;  %s584_s2 = inlined_call_operand.vmem [shape: f32[1,32], index: 2, kind: input, shape index: {}]   ;;  %s585_s3 = inlined_call_operand.vmem [shape: f32[128,32], index: 3, kind: output, shape index: {}]  }
   0x1   :  { %207 = vmatprep.subr.bf16.mxu0 %v411_v0  ;;  %359 = vmatprep.subr.bf16.mxu1 %v411_v0  ;;  %v378_v1 = vld [vmem:[%s582_s1] sm:$0xff]   ;;  %v379_v2 = vld [vmem:[%s582_s1 + $0x8] sm:$0xff]   ;;  %v380_v3 = vld [vmem:[%s582_s1 + $0x10] sm:$0xff]  }
   0x2   :  { %208 = vmatpush1.bf16.msra.mxu0 %v378_v1  ;;  %368 = vmatpush1.bf16.msra.mxu1 %v378_v1  ;;  %v381_v4 = vld [vmem:[%s582_s1 + $0x18] sm:$0xff]   ;;  %v389_v5 = vld [vmem:[%s583_s0 + $0x4] ss:$8 sps:$4 sm:$0xff]   ;;  %v384_v9 = vld [vmem:[%s582_s1 + $0x30] sm:$0xff]  }
   0x3   :  { %209 = vmatprep.subr.bf16.mxu0 %v411_v0  ;;  %360 = vmatprep.subr.bf16.mxu1 %v411_v0  ;;  %v392_v6 = vld [vmem:[%s583_s0 + $0x44] ss:$8 sps:$4 sm:$0xff]   ;;  %v385_v10 = vld [vmem:[%s582_s1 + $0x38] sm:$0xff]   ;;  %v387_v12 = vld [vmem:[%s583_s0] ss:$8 sps:$4 sm:$0xff]  }
   0x4   :  { %351 = vmatprep.mubr.msk.bf16.mxu0 %vm182_vm0, %v389_v5  ;;  %355 = vmatprep.mubr.msk.bf16.mxu1 %vm182_vm0, %v392_v6  ;;  %v382_v7 = vld [vmem:[%s582_s1 + $0x20] sm:$0xff]   ;;  %v383_v8 = vld [vmem:[%s582_s1 + $0x28] sm:$0xff]   ;;  %v393_v14 = vld [vmem:[%s583_s0 + $0x14] ss:$8 sps:$4 sm:$0xff]  }
   0x5   :  { %v386_v11 = vld [vmem:[%s582_s1 + $0x40] sm:$0xff]   ;;  %v395_v15 = vld [vmem:[%s583_s0 + $0x54] ss:$8 sps:$4 sm:$0xff]   ;;  %v397_v16 = vld [vmem:[%s583_s0 + $0x10] ss:$8 sps:$4 sm:$0xff]  }
   0x6   :  { %210 = vmatpush1.bf16.msra.mxu0 %v379_v2  ;;  %369 = vmatpush1.bf16.msra.mxu1 %v379_v2  ;;  %v390_v13 = vld [vmem:[%s583_s0 + $0x40] ss:$8 sps:$4 sm:$0xff]   ;;  %v398_v17 = vld [vmem:[%s583_s0 + $0x50] ss:$8 sps:$4 sm:$0xff]   ;;  %v399_v18 = vld [vmem:[%s583_s0 + $0x24] ss:$8 sps:$4 sm:$0xff]  }
   0x7   :  { %211 = vmatprep.subr.bf16.mxu0 %v411_v0  ;;  %361 = vmatprep.subr.bf16.mxu1 %v411_v0  ;;  %v401_v19 = vld [vmem:[%s583_s0 + $0x64] ss:$8 sps:$4 sm:$0xff]   ;;  %v403_v20 = vld [vmem:[%s583_s0 + $0x20] ss:$8 sps:$4 sm:$0xff]   ;;  %v405_v22 = vld [vmem:[%s583_s0 + $0x34] ss:$8 sps:$4 sm:$0xff]  }
   0x8   :  { %v404_v21 = vld [vmem:[%s583_s0 + $0x60] ss:$8 sps:$4 sm:$0xff]   ;;  %v407_v23 = vld [vmem:[%s583_s0 + $0x74] ss:$8 sps:$4 sm:$0xff]   ;;  %v409_v24 = vld [vmem:[%s583_s0 + $0x30] ss:$8 sps:$4 sm:$0xff]  }
   0x9   :  { %v410_v25 = vld [vmem:[%s583_s0 + $0x70] ss:$8 sps:$4 sm:$0xff]   ;;  %v325_v26 = vld [vmem:[%s584_s2] ss:$0 sm:$0xff] }
   0xa   :  { %212 = vmatpush1.bf16.msra.mxu0 %v380_v3  ;;  %370 = vmatpush1.bf16.msra.mxu1 %v380_v3 }
   0xb   :  { %213 = vmatprep.subr.bf16.mxu0 %v411_v0  ;;  %362 = vmatprep.subr.bf16.mxu1 %v411_v0 }
   0xe   :  { %214 = vmatpush1.bf16.msra.mxu0 %v381_v4  ;;  %371 = vmatpush1.bf16.msra.mxu1 %v381_v4 }
   0xf   :  { %215 = vmatprep.subr.bf16.mxu0 %v411_v0  ;;  %363 = vmatprep.subr.bf16.mxu1 %v411_v0 }
  0x12   :  { %216 = vmatpush1.bf16.msra.mxu0 %v382_v7  ;;  %372 = vmatpush1.bf16.msra.mxu1 %v382_v7 }
  0x13   :  { %217 = vmatprep.subr.bf16.mxu0 %v411_v0  ;;  %364 = vmatprep.subr.bf16.mxu1 %v411_v0 }
  0x16   :  { %218 = vmatpush1.bf16.msra.mxu0 %v383_v8  ;;  %373 = vmatpush1.bf16.msra.mxu1 %v383_v8 }
  0x17   :  { %219 = vmatprep.subr.bf16.mxu0 %v411_v0  ;;  %365 = vmatprep.subr.bf16.mxu1 %v411_v0 }
  0x1a   :  { %220 = vmatpush1.bf16.msra.mxu0 %v384_v9  ;;  %374 = vmatpush1.bf16.msra.mxu1 %v384_v9 }
  0x1b   :  { %221 = vmatprep.subr.bf16.mxu0 %v411_v0  ;;  %366 = vmatprep.subr.bf16.mxu1 %v411_v0 }
  0x1e   :  { %222 = vmatpush1.bf16.msra.mxu0 %v385_v10  ;;  %375 = vmatpush1.bf16.msra.mxu1 %v385_v10 }
  0x1f   :  { %223 = vmatprep.subr.bf16.mxu0 %v411_v0  ;;  %367 = vmatprep.subr.bf16.mxu1 %v411_v0 }
  0x22   :  { %224 = vmatpush1.bf16.msra.mxu0 %v386_v11  ;;  %376 = vmatpush1.bf16.msra.mxu1 %v386_v11 }
  0x25   :  { %240 = vmatmul.mubr.bf16.vlgmr.msra.gmra.mrb[0].mxu0 %v387_v12  ;;  %272 = vmatmul.mubr.bf16.vlgmr.msra.gmra.mrb[0].mxu1 %v390_v13 }
  0x26   :  { %352 = vmatprep.mubr.msk.bf16.mxu0 %vm182_vm0, %v393_v14  ;;  %356 = vmatprep.mubr.msk.bf16.mxu1 %vm182_vm0, %v395_v15 }
  0x2d   :  { %248 = vmatmul.mubr.bf16.gmra.mrb[4].mxu0 %v397_v16  ;;  %280 = vmatmul.mubr.bf16.gmra.mrb[4].mxu1 %v398_v17 }
  0x2e   :  { %353 = vmatprep.mubr.msk.bf16.mxu0 %vm182_vm0, %v399_v18  ;;  %357 = vmatprep.mubr.msk.bf16.mxu1 %vm182_vm0, %v401_v19 }
  0x35   :  { %256 = vmatmul.mubr.bf16.gmra.mrb[8].mxu0 %v403_v20  ;;  %288 = vmatmul.mubr.bf16.gmra.mrb[8].mxu1 %v404_v21 }
  0x36   :  { %354 = vmatprep.mubr.msk.bf16.mxu0 %vm182_vm0, %v405_v22  ;;  %358 = vmatprep.mubr.msk.bf16.mxu1 %vm182_vm0, %v407_v23 }
  0x3d   :  { %264 = vmatmul.mubr.bf16.gmra.mrb[12].mxu0 %v409_v24  ;;  %296 = vmatmul.mubr.bf16.gmra.mrb[12].mxu1 %v410_v25 }
  0xf8   :  { %v241_v27 = vpop.f32.mrb[0].mxu0  ;;  %v273_v28 = vpop.f32.mrb[0].mxu1 }
  0xf9   :  { %v242_v29 = vadd.f32 %v325_v26, %v241_v27  ;;  %v274_v30 = vadd.f32 %v325_v26, %v273_v28  ;;  %v243_v31 = vpop.f32.mrb[1].mxu0  ;;  %v275_v32 = vpop.f32.mrb[1].mxu1 }
  0xfa   :  { %v244_v33 = vpop.f32.mrb[2].mxu0  ;;  %v276_v34 = vpop.f32.mrb[2].mxu1 }
  0xfb   :  { %305 = vst.msk [vmem:[%s585_s3] sm:$0xff] %vm304_vm1, %v242_v29  ;;  %313 = vst.msk [vmem:[%s585_s3 + $0x40] sm:$0xff] %vm304_vm1, %v274_v30  ;;  %v245_v35 = vadd.f32 %v325_v26, %v244_v33  ;;  %v277_v36 = vadd.f32 %v325_v26, %v276_v34  ;;  %v246_v37 = vpop.f32.mrb[3].mxu0  ;;  %v278_v38 = vpop.f32.mrb[3].mxu1 }
  0xfd   :  { %306 = vst.msk [vmem:[%s585_s3 + $0x8] sm:$0xff] %vm304_vm1, %v245_v35  ;;  %314 = vst.msk [vmem:[%s585_s3 + $0x48] sm:$0xff] %vm304_vm1, %v277_v36 }
 0x100   :  { %v249_v39 = vpop.f32.mrb[4].mxu0  ;;  %v281_v40 = vpop.f32.mrb[4].mxu1 }
 0x101   :  { %v250_v41 = vadd.f32 %v325_v26, %v249_v39  ;;  %v282_v42 = vadd.f32 %v325_v26, %v281_v40  ;;  %v251_v43 = vpop.f32.mrb[5].mxu0  ;;  %v283_v44 = vpop.f32.mrb[5].mxu1 }
 0x102   :  { %v252_v45 = vpop.f32.mrb[6].mxu0  ;;  %v284_v46 = vpop.f32.mrb[6].mxu1 }
 0x103   :  { %307 = vst.msk [vmem:[%s585_s3 + $0x10] sm:$0xff] %vm304_vm1, %v250_v41  ;;  %315 = vst.msk [vmem:[%s585_s3 + $0x50] sm:$0xff] %vm304_vm1, %v282_v42  ;;  %v253_v47 = vadd.f32 %v325_v26, %v252_v45  ;;  %v285_v48 = vadd.f32 %v325_v26, %v284_v46  ;;  %v254_v49 = vpop.f32.mrb[7].mxu0  ;;  %v286_v50 = vpop.f32.mrb[7].mxu1 }
 0x105   :  { %308 = vst.msk [vmem:[%s585_s3 + $0x18] sm:$0xff] %vm304_vm1, %v253_v47  ;;  %316 = vst.msk [vmem:[%s585_s3 + $0x58] sm:$0xff] %vm304_vm1, %v285_v48 }
 0x108   :  { %v257_v51 = vpop.f32.mrb[8].mxu0  ;;  %v289_v52 = vpop.f32.mrb[8].mxu1 }
 0x109   :  { %v258_v53 = vadd.f32 %v325_v26, %v257_v51  ;;  %v290_v54 = vadd.f32 %v325_v26, %v289_v52  ;;  %v259_v55 = vpop.f32.mrb[9].mxu0  ;;  %v291_v56 = vpop.f32.mrb[9].mxu1 }
 0x10a   :  { %v260_v57 = vpop.f32.mrb[10].mxu0  ;;  %v292_v58 = vpop.f32.mrb[10].mxu1 }
 0x10b   :  { %309 = vst.msk [vmem:[%s585_s3 + $0x20] sm:$0xff] %vm304_vm1, %v258_v53  ;;  %317 = vst.msk [vmem:[%s585_s3 + $0x60] sm:$0xff] %vm304_vm1, %v290_v54  ;;  %v261_v59 = vadd.f32 %v325_v26, %v260_v57  ;;  %v293_v60 = vadd.f32 %v325_v26, %v292_v58  ;;  %v262_v61 = vpop.f32.mrb[11].mxu0  ;;  %v294_v62 = vpop.f32.mrb[11].mxu1 }
 0x10d   :  { %310 = vst.msk [vmem:[%s585_s3 + $0x28] sm:$0xff] %vm304_vm1, %v261_v59  ;;  %318 = vst.msk [vmem:[%s585_s3 + $0x68] sm:$0xff] %vm304_vm1, %v293_v60 }
 0x110   :  { %v265_v63 = vpop.f32.mrb[12].mxu0  ;;  %v297_v0 = vpop.f32.mrb[12].mxu1 }
 0x111   :  { %v266_v1 = vadd.f32 %v325_v26, %v265_v63  ;;  %v298_v2 = vadd.f32 %v325_v26, %v297_v0  ;;  %v267_v3 = vpop.f32.mrb[13].mxu0  ;;  %v299_v4 = vpop.f32.mrb[13].mxu1 }
 0x112   :  { %v268_v5 = vpop.f32.mrb[14].mxu0  ;;  %v300_v6 = vpop.f32.mrb[14].mxu1 }
 0x113   :  { %311 = vst.msk [vmem:[%s585_s3 + $0x30] sm:$0xff] %vm304_vm1, %v266_v1  ;;  %319 = vst.msk [vmem:[%s585_s3 + $0x70] sm:$0xff] %vm304_vm1, %v298_v2  ;;  %v269_v7 = vadd.f32 %v325_v26, %v268_v5  ;;  %v301_v8 = vadd.f32 %v325_v26, %v300_v6  ;;  %v270_v9 = vpop.f32.mrb[15].mxu0  ;;  %v302_v10 = vpop.f32.mrb[15].mxu1 }
 0x115   :  { %312 = vst.msk [vmem:[%s585_s3 + $0x38] sm:$0xff] %vm304_vm1, %v269_v7  ;;  %320 = vst.msk [vmem:[%s585_s3 + $0x78] sm:$0xff] %vm304_vm1, %v301_v8 }

// kernel: generator_att_forward.15
= control target key start
LH: loop header
LB: loop body
LE: loop exit
PB: predicated region body
PF: predicated region fallthrough
CT: control target
= control target key end

     0   :  { %s887_s12 = smov 0   ;;  %s1037_s0 = inlined_call_operand.vmem [shape: bf16[128,288], index: 0, kind: input, shape index: {}]   ;;  %s1038_s1 = inlined_call_operand.vmem [shape: bf16[288,32], index: 1, kind: input, shape index: {}]   ;;  %s1039_s2 = inlined_call_operand.vmem [shape: f32[1,32], index: 2, kind: input, shape index: {}]   ;;  %s1040_s3 = inlined_call_operand.vmem [shape: f32[128,32], index: 3, kind: output, shape index: {}]  }
   0x1 LB: > { %s694_s13 = sadd.s32 4294967295, %s865_s12   ;;  %p698_p0 = scmp.ge.s32.totalorder %s865_s12, 1  ;;  %s865_s12 = sphi %s887_s12, %s13_s12  }
   0x2   : > { %p139_p1 = scmp.lt.s32.totalorder %s865_s12, 3 }
   0x4   : > { %p140_p2 = pnand %p698_p0, %p139_p1 }
   0x5   : > { %v823_v0 = vld [vmem:[%s1038_s1 + $0x40] sm:$0xff] (!%p140_p2)   ;;  %s699_s16 = sshll.u32 (!%p140_p2), %s694_s13, 3  ;;  %v825_v2 = vld [vmem:[%s1038_s1 + $0x48] sm:$0xff] (!%p140_p2)   ;;  %v827_v4 = vld [vmem:[%s1038_s1 + $0x50] sm:$0xff] (!%p140_p2)   ;;  %vm405_vm0 = vcmask (!%p140_p2), 261120  }
   0x6   : > { %143 = sbr.rel (%p140_p2) target bundleno = 323 (0x143), region = 32  ;;  %v824_v1 = vld [vmem:[%s1038_s1] sm:$0xff] (!%p140_p2)   ;;  %740 = vmatprep.subr.bf16.mxu0 (!%p140_p2), %v823_v0  ;;  %798 = vmatprep.subr.bf16.mxu1 (!%p140_p2), %v823_v0  ;;  %p165_p3 = scmp.lt.s32.totalorder (!%p140_p2), %s699_s16, 15  ;;  %v826_v3 = vld [vmem:[%s1038_s1 + $0x8] sm:$0xff] (!%p140_p2)   ;;  %v828_v5 = vld [vmem:[%s1038_s1 + $0x10] sm:$0xff] (!%p140_p2)  }
   0x7   : > { %741 = vmatpush3.bf16.msra.mxu0 (!%p140_p2), %v824_v1  ;;  %806 = vmatpush3.bf16.msra.mxu1 (!%p140_p2), %v824_v1  ;;  %v829_v6 = vld [vmem:[%s1038_s1 + $0x58] sm:$0xff] (!%p140_p2)   ;;  %v831_v8 = vld [vmem:[%s1038_s1 + $0x60] sm:$0xff] (!%p140_p2)   ;;  %v833_v10 = vld [vmem:[%s1038_s1 + $0x68] sm:$0xff] (!%p140_p2)  }
   0x8   : > { %742 = vmatprep.subr.bf16.mxu0 (!%p140_p2), %v825_v2  ;;  %799 = vmatprep.subr.bf16.mxu1 (!%p140_p2), %v825_v2  ;;  %v830_v7 = vld [vmem:[%s1038_s1 + $0x18] sm:$0xff] (!%p140_p2)   ;;  %v832_v9 = vld [vmem:[%s1038_s1 + $0x20] sm:$0xff] (!%p140_p2)   ;;  %v834_v13 = vld [vmem:[%s1038_s1 + $0x28] sm:$0xff] (!%p140_p2)  }
   0x9   : > { %v835_v14 = vld [vmem:[%s1038_s1 + $0x70] sm:$0xff] (!%p140_p2)   ;;  %v837_v16 = vld [vmem:[%s1038_s1 + $0x78] sm:$0xff] (!%p140_p2)   ;;  %v845_v18 = vld [vmem:[%s1038_s1 + $0x80] sm:$0xff] (!%p140_p2)  }
   0xa   : > { %v836_v15 = vld [vmem:[%s1038_s1 + $0x30] sm:$0xff] (!%p140_p2)   ;;  %v838_v17 = vld [vmem:[%s1038_s1 + $0x38] sm:$0xff] (!%p140_p2)   ;;  %v846_v22 = vld [vmem:[%s1038_s1 + $0x88] sm:$0xff] (!%p140_p2)  }
   0xb   : > { %743 = vmatpush3.bf16.msra.mxu0 (!%p140_p2), %v826_v3  ;;  %807 = vmatpush3.bf16.msra.mxu1 (!%p140_p2), %v826_v3  ;;  %v703_v42 = vld [vmem:[%s1039_s2] ss:$0 sm:$0xff] (!%p140_p2) }
   0xc   : > { %744 = vmatprep.subr.bf16.mxu0 (!%p140_p2), %v827_v4  ;;  %800 = vmatprep.subr.bf16.mxu1 (!%p140_p2), %v827_v4 }
   0xd   : > { %s1042_s16 = smov (!%p165_p3, %s699_s16), 15 }
   0xe   : > { %s814_s29 = smul.u32 12, %s1042_s16  ;;  %s702_s5 = sshll.u32 %s1042_s16, 3 }
   0xf   : > { %745 = vmatpush3.bf16.msra.mxu0 %v828_v5  ;;  %808 = vmatpush3.bf16.msra.mxu1 %v828_v5  ;;  %s175_s16 = scalar_lea.vmem %s1040_s3, %s702_s5 }
  0x10   : > { %746 = vmatprep.subr.bf16.mxu0 %v829_v6  ;;  %801 = vmatprep.subr.bf16.mxu1 %v829_v6  ;;  %s928_s9 = scalar_lea.vmem %s1037_s0, %s814_s29 }
  0x11   : > { %v841_v11 = vld [vmem:[%s928_s9 + $0x4] ss:$12 sps:$4 sm:$0xff]   ;;  %v844_v12 = vld [vmem:[%s928_s9 + $0x4c] ss:$12 sps:$4 sm:$0xff]   ;;  %v842_v20 = vld [vmem:[%s928_s9 + $0x48] ss:$12 sps:$4 sm:$0xff]  }
  0x12   : > { %450 = vmatprep.mubr.bf16.mxu0 %v841_v11  ;;  %474 = vmatprep.mubr.bf16.mxu1 %v844_v12  ;;  %v839_v19 = vld [vmem:[%s928_s9] ss:$12 sps:$4 sm:$0xff]   ;;  %v847_v21 = vld [vmem:[%s928_s9 + $0x1c] ss:$12 sps:$4 sm:$0xff]   ;;  %v850_v24 = vld [vmem:[%s928_s9 + $0x18] ss:$12 sps:$4 sm:$0xff]  }
  0x13   : > { %747 = vmatpush3.bf16.msra.mxu0 %v830_v7  ;;  %809 = vmatpush3.bf16.msra.mxu1 %v830_v7  ;;  %v849_v23 = vld [vmem:[%s928_s9 + $0x8] ss:$12 sps:$4 sm:$0xff]   ;;  %v851_v25 = vld [vmem:[%s928_s9 + $0x20] ss:$12 sps:$4 sm:$0xff]   ;;  %v854_v27 = vld [vmem:[%s928_s9 + $0x38] ss:$12 sps:$4 sm:$0xff]  }
  0x14   : > { %748 = vmatprep.subr.bf16.mxu0 %v831_v8  ;;  %802 = vmatprep.subr.bf16.mxu1 %v831_v8  ;;  %v852_v26 = vld [vmem:[%s928_s9 + $0x34] ss:$12 sps:$4 sm:$0xff]   ;;  %v855_v28 = vld [vmem:[%s928_s9 + $0x30] ss:$12 sps:$4 sm:$0xff]  }
  0x15   : > { %v856_v29 = vld [vmem:[%s928_s9 + $0x50] ss:$12 sps:$4 sm:$0xff]  }
  0x17   : > { %749 = vmatpush3.bf16.msra.mxu0 %v832_v9  ;;  %810 = vmatpush3.bf16.msra.mxu1 %v832_v9 }
  0x18   : > { %750 = vmatprep.subr.bf16.mxu0 %v833_v10  ;;  %803 = vmatprep.subr.bf16.mxu1 %v833_v10 }
  0x1b   : > { %751 = vmatpush3.bf16.msra.mxu0 %v834_v13  ;;  %811 = vmatpush3.bf16.msra.mxu1 %v834_v13 }
  0x1c   : > { %752 = vmatprep.subr.bf16.mxu0 %v835_v14  ;;  %804 = vmatprep.subr.bf16.mxu1 %v835_v14 }
  0x1f   : > { %753 = vmatpush3.bf16.msra.mxu0 %v836_v15  ;;  %812 = vmatpush3.bf16.msra.mxu1 %v836_v15 }
  0x20   : > { %754 = vmatprep.subr.bf16.mxu0 %v837_v16  ;;  %805 = vmatprep.subr.bf16.mxu1 %v837_v16 }
  0x23   : > { %755 = vmatpush3.bf16.msra.mxu0 %v838_v17  ;;  %813 = vmatpush3.bf16.msra.mxu1 %v838_v17 }
  0x24   : > { %786 = vmatprep.subr.bf16.mxu1 %v845_v18 }
  0x26   : > { %451 = vmatmul.mubr.bf16.vlgmr.msra.gmra.mrb[0].mxu0 %v839_v19  ;;  %475 = vmatmul.mubr.bf16.vlgmr.msra.gmra.mrb[0].mxu1 %v842_v20 }
  0x27   : > { %787 = vmatpush3.bf16.msra.mxu1 %v845_v18  ;;  %458 = vmatprep.mubr.bf16.mxu0 %v847_v21 }
  0x28   : > { %788 = vmatprep.subr.bf16.mxu1 %v846_v22  ;;  %790 = vmatprep.mubr.msk.bf16.mxu1 %vm405_vm0, %v849_v23 }
  0x2b   : > { %789 = vmatpush3.bf16.msra.mxu1 %v846_v22 }
  0x2e   : > { %459 = vmatmul.mubr.bf16.gmra.mrb[4].mxu0 %v850_v24  ;;  %791 = vmatmul.mubr.msk.bf16.vlgmr.msra.gmra.mrb[4].mxu1 %vm405_vm0, %v851_v25 }
  0x2f   : > { %466 = vmatprep.mubr.bf16.mxu0 %v852_v26  ;;  %794 = vmatprep.mubr.msk.bf16.mxu1 %vm405_vm0, %v854_v27 }
  0x36   : > { %467 = vmatmul.mubr.bf16.gmra.mrb[8].mxu0 %v855_v28  ;;  %795 = vmatmul.mubr.msk.bf16.gmra.mrb[8].mxu1 %vm405_vm0, %v856_v29 }
  0xf9   : > { %v756_v30 = vpop.f32.mrb[0].mxu0  ;;  %v774_v31 = vpop.f32.mrb[0].mxu1 }
  0xfa   : > { %v757_v32 = vpop.f32.mrb[1].mxu0  ;;  %v775_v33 = vpop.f32.mrb[1].mxu1 }
  0xfb   : > { %v758_v34 = vadd.f32 %v757_v32, %v756_v30  ;;  %v759_v35 = vpop.f32.mrb[2].mxu0  ;;  %v776_v36 = vadd.f32 %v775_v33, %v774_v31  ;;  %v777_v37 = vpop.f32.mrb[2].mxu1 }
  0xfc   : > { %v760_v38 = vpop.f32.mrb[3].mxu0  ;;  %v778_v39 = vpop.f32.mrb[3].mxu1 }
  0xfd   : > { %v761_v40 = vadd.f32 %v760_v38, %v759_v35  ;;  %v779_v41 = vadd.f32 %v778_v39, %v777_v37  ;;  %v453_v45 = vadd.f32 %v758_v34, %v703_v42  ;;  %v477_v0 = vadd.f32 %v776_v36, %v703_v42 }
  0xff   : > { %v456_v53 = vadd.f32 %v761_v40, %v703_v42  ;;  %v480_v12 = vadd.f32 %v779_v41, %v703_v42 }
 0x101   : > { %v762_v43 = vpop.f32.mrb[4].mxu0  ;;  %v792_v44 = vpop.f32.mrb[4].mxu1 }
 0x102   : > { %v763_v46 = vpop.f32.mrb[5].mxu0  ;;  %v517_v47 = vpop.f32.mrb[5].mxu1 }
 0x103   : > { %v764_v48 = vadd.f32 %v763_v46, %v762_v43  ;;  %v976_v49 = vadd.f32 %v517_v47, %v453_v45  ;;  %v765_v50 = vpop.f32.mrb[6].mxu0  ;;  %v793_v51 = vpop.f32.mrb[6].mxu1 }
 0x104   : > { %v766_v52 = vpop.f32.mrb[7].mxu0  ;;  %v520_v54 = vpop.f32.mrb[7].mxu1 }
 0x105   : > { %v461_v55 = vadd.f32 %v764_v48, %v703_v42  ;;  %v767_v56 = vadd.f32 %v766_v52, %v765_v50  ;;  %v569_v57 = vmul.f32 %v976_v49, %v976_v49  ;;  %v980_v58 = vadd.f32 %v520_v54, %v456_v53 }
 0x106   : > { %v548_v61 = vsel %vm405_vm0, %v976_v49, 0.0 }
 0x107   : > { %v982_v59 = vadd.f32 %v792_v44, %v461_v55  ;;  %v464_v60 = vadd.f32 %v767_v56, %v703_v42  ;;  %v549_v62 = vsel %vm405_vm0, %v980_v58, 0.0  ;;  %v570_v63 = vmul.f32 %v980_v58, %v980_v58 }
 0x108   : > { %v550_v3 = vadd.f32 %v549_v62, %v548_v61  ;;  %v577_v7 = vsel %vm405_vm0, %v569_v57, 0.0 }
 0x109   : > { %v571_v1 = vmul.f32 %v982_v59, %v982_v59  ;;  %v992_v2 = vadd.f32 %v793_v51, %v464_v60  ;;  %v551_v4 = vsel %vm405_vm0, %v982_v59, 0.0  ;;  %v768_v5 = vpop.f32.mrb[8].mxu0  ;;  %v796_v6 = vpop.f32.mrb[8].mxu1  ;;  %v578_v8 = vsel %vm405_vm0, %v570_v63, 0.0 }
 0x10a   : > { %v998_v9 = vadd.f32 %v796_v6, %v477_v0  ;;  %v769_v10 = vpop.f32.mrb[9].mxu0  ;;  %v533_v11 = vpop.f32.mrb[9].mxu1  ;;  %v552_v14 = vadd.f32 %v551_v4, %v550_v3  ;;  %v579_v15 = vadd.f32 %v578_v8, %v577_v7 }
 0x10b   : > { %v572_v13 = vmul.f32 %v992_v2, %v992_v2  ;;  %v580_v16 = vsel %vm405_vm0, %v571_v1, 0.0  ;;  %v771_v17 = vpop.f32.mrb[10].mxu0  ;;  %v797_v18 = vpop.f32.mrb[10].mxu1  ;;  %v770_v19 = vadd.f32 %v769_v10, %v768_v5  ;;  %v553_v20 = vsel %vm405_vm0, %v992_v2, 0.0 }
 0x10c   : > { %v772_v21 = vpop.f32.mrb[11].mxu0  ;;  %v536_v22 = vpop.f32.mrb[11].mxu1  ;;  %v581_v23 = vadd.f32 %v580_v16, %v579_v15  ;;  %v554_v24 = vadd.f32 %v553_v20, %v552_v14  ;;  %v545_v26 = vadd.f32 %v797_v18, %v480_v12  ;;  %v575_v36 = vmul.f32 %v998_v9, %v998_v9 }
 0x10d   : > { %v582_v25 = vsel %vm405_vm0, %v572_v13, 0.0  ;;  %v469_v27 = vadd.f32 %v770_v19, %v703_v42  ;;  %v773_v28 = vadd.f32 %v772_v21, %v771_v17  ;;  %v559_v43 = vsel %vm405_vm0, %v998_v9, 0.0 }
 0x10e   : > { %v583_v29 = vadd.f32 %v582_v25, %v581_v23  ;;  %v576_v44 = vmul.f32 %v545_v26, %v545_v26  ;;  %v588_v47 = vsel %vm405_vm0, %v575_v36, 0.0  ;;  %v561_v48 = vsel %vm405_vm0, %v545_v26, 0.0 }
 0x10f   : > { %v534_v30 = vadd.f32 %v533_v11, %v469_v27  ;;  %v472_v31 = vadd.f32 %v773_v28, %v703_v42 }
 0x110   : > { %v590_v52 = vsel %vm405_vm0, %v576_v44, 0.0 }
 0x111   : > { %v555_v32 = vsel %vm405_vm0, %v534_v30, 0.0  ;;  %v573_v33 = vmul.f32 %v534_v30, %v534_v30  ;;  %v537_v34 = vadd.f32 %v536_v22, %v472_v31 }
 0x112   : > { %v556_v35 = vadd.f32 %v555_v32, %v554_v24 }
 0x113   : > { %v584_v37 = vsel %vm405_vm0, %v573_v33, 0.0  ;;  %v557_v38 = vsel %vm405_vm0, %v537_v34, 0.0  ;;  %v574_v39 = vmul.f32 %v537_v34, %v537_v34 }
 0x114   : > { %v585_v40 = vadd.f32 %v584_v37, %v583_v29  ;;  %v558_v41 = vadd.f32 %v557_v38, %v556_v35 }
 0x115   : > { %v586_v42 = vsel %vm405_vm0, %v574_v39, 0.0 }
 0x116   : > { %v560_v45 = vadd.f32 %v559_v43, %v558_v41  ;;  %v587_v46 = vadd.f32 %v586_v42, %v585_v40 }
 0x118   : > { %v562_v50 = vadd.f32 %v561_v48, %v560_v45  ;;  %v589_v51 = vadd.f32 %v588_v47, %v587_v46 }
 0x11a   : > { %v563_v53 = vrot.slane %v562_v50, 4  ;;  %v591_v54 = vadd.f32 %v590_v52, %v589_v51 }
 0x11c   : > { %v564_v55 = vadd.f32 %v563_v53, %v562_v50  ;;  %v592_v56 = vrot.slane %v591_v54, 4 }
 0x11e   : > { %v565_v57 = vrot.slane %v564_v55, 2  ;;  %v593_v60 = vadd.f32 %v592_v56, %v591_v54 }
 0x120   : > { %v566_v61 = vadd.f32 %v565_v57, %v564_v55  ;;  %v594_v62 = vrot.slane %v593_v60, 2 }
 0x122   : > { %v567_v63 = vrot.slane %v566_v61, 1  ;;  %v595_v0 = vadd.f32 %v594_v62, %v593_v60 }
 0x124   : > { %v568_v1 = vadd.f32 %v567_v63, %v566_v61  ;;  %v596_v3 = vrot.slane %v595_v0, 1 }
 0x126   : > { %v597_v4 = vadd.f32 %v596_v3, %v595_v0  ;;  %v598_v5 = vmul.f32 0.015625, %v568_v1 }
 0x128   : > { %v599_v6 = vmul.f32 0.015625, %v597_v4  ;;  %v600_v7 = vmul.f32 %v598_v5, %v598_v5  ;;  %v604_v11 = vsub.f32 0.0, %v598_v5 }
 0x12a   : > { %v601_v8 = vsub.f32 %v599_v6, %v600_v7 }
 0x12c   : > { %v602_v10 = vadd.f32 1e-05, %v601_v8 }
 0x12e   : > { %857 = vrsqrt.f32 %v602_v10 }
 0x138   : > { %v858_v12 = vpop.eup %857 }
 0x139   : > { %v605_v13 = vmul.f32 %v858_v12, %v604_v11  ;;  %v606_v14 = vmul.f32 %v858_v12, %v976_v49  ;;  %v607_v15 = vmul.f32 %v858_v12, %v980_v58  ;;  %v608_v16 = vmul.f32 %v858_v12, %v982_v59 }
 0x13a   : > { %v609_v17 = vmul.f32 %v858_v12, %v992_v2  ;;  %v610_v18 = vmul.f32 %v858_v12, %v534_v30  ;;  %v611_v19 = vmul.f32 %v858_v12, %v537_v34  ;;  %v612_v20 = vmul.f32 %v858_v12, %v998_v9 }
 0x13b   : > { %v613_v21 = vmul.f32 %v858_v12, %v545_v26  ;;  %v614_v22 = vadd.f32 %v606_v14, %v605_v13  ;;  %v615_v23 = vadd.f32 %v607_v15, %v605_v13  ;;  %v616_v24 = vadd.f32 %v608_v16, %v605_v13 }
 0x13c   : > { %v617_v25 = vadd.f32 %v609_v17, %v605_v13  ;;  %v618_v49 = vadd.f32 %v610_v18, %v605_v13  ;;  %v619_v27 = vadd.f32 %v611_v19, %v605_v13  ;;  %v620_v58 = vadd.f32 %v612_v20, %v605_v13 }
 0x13d   : > { %v621_v28 = vadd.f32 %v613_v21, %v605_v13  ;;  %v622_v59 = vmax.f32 %v614_v22, 0.0  ;;  %v623_v29 = vmax.f32 %v615_v23, 0.0  ;;  %v624_v2 = vmax.f32 %v616_v24, 0.0 }
 0x13e   : > { %v625_v30 = vmax.f32 %v617_v25, 0.0  ;;  %v626_v31 = vmax.f32 %v618_v49, 0.0  ;;  %v627_v32 = vmax.f32 %v619_v27, 0.0  ;;  %v628_v9 = vmax.f32 %v620_v58, 0.0 }
 0x13f   : > { %v629_v26 = vmax.f32 %v621_v28, 0.0  ;;  %630 = vst.msk [vmem:[%s175_s16] sm:$0xff] %vm405_vm0, %v622_v59  ;;  %631 = vst.msk [vmem:[%s175_s16 + $0x8] sm:$0xff] %vm405_vm0, %v623_v29 }
 0x140   : > { %632 = vst.msk [vmem:[%s175_s16 + $0x10] sm:$0xff] %vm405_vm0, %v624_v2  ;;  %633 = vst.msk [vmem:[%s175_s16 + $0x18] sm:$0xff] %vm405_vm0, %v625_v30 }
 0x141   : > { %634 = vst.msk [vmem:[%s175_s16 + $0x20] sm:$0xff] %vm405_vm0, %v626_v31  ;;  %635 = vst.msk [vmem:[%s175_s16 + $0x28] sm:$0xff] %vm405_vm0, %v627_v32 }
 0x142   : > { %636 = vst.msk [vmem:[%s175_s16 + $0x30] sm:$0xff] %vm405_vm0, %v628_v9  ;;  %637 = vst.msk [vmem:[%s175_s16 + $0x38] sm:$0xff] %vm405_vm0, %v629_v26 }
 0x143 PF: > { %s13_s12 = sadd.s32 1, %s865_s12  }
 0x144   : > { %p10_p4 = scmp.ge.s32.totalorder %s13_s12, 4  }
 0x146   :  { %12 = sbr.rel (!%p10_p4) target bundleno = 1 (0x1), region = 62 }

// kernel: generator_att_forward.16
= control target key start
LH: loop header
LB: loop body
LE: loop exit
PB: predicated region body
PF: predicated region fallthrough
CT: control target
= control target key end

     0   :  { %vm204_vm0 = vcmask 261120   ;;  %vm309_vm1 = vcmask 523264   ;;  %s522_s1 = inlined_call_operand.vmem [shape: bf16[288,64], index: 1, kind: input, shape index: {}]   ;;  %s523_s0 = inlined_call_operand.vmem [shape: bf16[32,288], index: 0, kind: input, shape index: {}]   ;;  %s524_s2 = inlined_call_operand.vmem [shape: f32[1,64], index: 2, kind: input, shape index: {}]   ;;  %s525_s3 = inlined_call_operand.vmem [shape: f32[32,64], index: 3, kind: output, shape index: {}]  }
   0x1   :  { %v385_v0 = vld [vmem:[%s522_s1 + $0x40] sm:$0xff]   ;;  %v387_v2 = vld [vmem:[%s522_s1 + $0x48] sm:$0xff]   ;;  %v389_v4 = vld [vmem:[%s522_s1 + $0x50] sm:$0xff]  }
   0x2   :  { %v386_v1 = vld [vmem:[%s522_s1] sm:$0xff]   ;;  %345 = vmatprep.subr.bf16.mxu0 %v385_v0  ;;  %v388_v3 = vld [vmem:[%s522_s1 + $0x8] sm:$0xff]   ;;  %v390_v5 = vld [vmem:[%s522_s1 + $0x10] sm:$0xff]  }
   0x3   :  { %346 = vmatpush3.bf16.msra.mxu0 %v386_v1  ;;  %v391_v6 = vld [vmem:[%s522_s1 + $0x58] sm:$0xff]   ;;  %v393_v8 = vld [vmem:[%s522_s1 + $0x60] sm:$0xff]   ;;  %v395_v11 = vld [vmem:[%s522_s1 + $0x68] sm:$0xff]  }
   0x4   :  { %347 = vmatprep.subr.bf16.mxu0 %v387_v2  ;;  %v392_v7 = vld [vmem:[%s522_s1 + $0x18] sm:$0xff]   ;;  %v394_v9 = vld [vmem:[%s522_s1 + $0x20] sm:$0xff]   ;;  %v396_v12 = vld [vmem:[%s522_s1 + $0x28] sm:$0xff]  }
   0x5   :  { %v400_v10 = vld [vmem:[%s522_s1 + $0x80] sm:$0xff]   ;;  %v397_v13 = vld [vmem:[%s522_s1 + $0x70] sm:$0xff]   ;;  %v405_v15 = vld [vmem:[%s522_s1 + $0x88] sm:$0xff]  }
   0x6   :  { %377 = vmatprep.subr.bf16.mxu1 %v400_v10  ;;  %v404_v14 = vld [vmem:[%s523_s0 + $0x4] ss:$12 sps:$4 sm:$0xff]   ;;  %v406_v16 = vld [vmem:[%s523_s0 + $0x8] ss:$12 sps:$4 sm:$0xff]   ;;  %v407_v17 = vld [vmem:[%s523_s0 + $0x20] ss:$12 sps:$4 sm:$0xff]  }
   0x7   :  { %348 = vmatpush3.bf16.msra.mxu0 %v388_v3  ;;  %378 = vmatpush3.bf16.msra.mxu1 %v400_v10  ;;  %v398_v18 = vld [vmem:[%s522_s1 + $0x30] sm:$0xff]   ;;  %v399_v19 = vld [vmem:[%s522_s1 + $0x78] sm:$0xff]   ;;  %v402_v21 = vld [vmem:[%s523_s0] ss:$12 sps:$4 sm:$0xff]  }
   0x8   :  { %349 = vmatprep.subr.bf16.mxu0 %v389_v4  ;;  %243 = vmatprep.mubr.bf16.mxu0 %v404_v14  ;;  %v401_v20 = vld [vmem:[%s522_s1 + $0x38] sm:$0xff]   ;;  %v318_v30 = vld [vmem:[%s524_s2] ss:$0 sm:$0xff] }
   0x9   :  { %379 = vmatprep.subr.bf16.mxu1 %v405_v15  ;;  %381 = vmatprep.mubr.msk.bf16.mxu1 %vm204_vm0, %v406_v16  ;;  %v408_v22 = vld [vmem:[%s523_s0 + $0x1c] ss:$12 sps:$4 sm:$0xff]   ;;  %v410_v23 = vld [vmem:[%s523_s0 + $0x18] ss:$12 sps:$4 sm:$0xff]  }
   0xb   :  { %350 = vmatpush3.bf16.msra.mxu0 %v390_v5  ;;  %380 = vmatpush3.bf16.msra.mxu1 %v405_v15 }
   0xc   :  { %351 = vmatprep.subr.bf16.mxu0 %v391_v6 }
   0xe   :  { %382 = vmatmul.mubr.msk.bf16.vlgmr.msra.gmra.mrb[0].mxu1 %vm204_vm0, %v407_v17 }
   0xf   :  { %352 = vmatpush3.bf16.msra.mxu0 %v392_v7 }
  0x10   :  { %353 = vmatprep.subr.bf16.mxu0 %v393_v8 }
  0x13   :  { %354 = vmatpush3.bf16.msra.mxu0 %v394_v9 }
  0x14   :  { %355 = vmatprep.subr.bf16.mxu0 %v395_v11 }
  0x17   :  { %356 = vmatpush3.bf16.msra.mxu0 %v396_v12 }
  0x18   :  { %357 = vmatprep.subr.bf16.mxu0 %v397_v13 }
  0x1b   :  { %358 = vmatpush3.bf16.msra.mxu0 %v398_v18 }
  0x1c   :  { %359 = vmatprep.subr.bf16.mxu0 %v399_v19 }
  0x1f   :  { %360 = vmatpush3.bf16.msra.mxu0 %v401_v20 }
  0x22   :  { %244 = vmatmul.mubr.bf16.vlgmr.msra.gmra.mrb[0].mxu0 %v402_v21 }
  0x23   :  { %251 = vmatprep.mubr.bf16.mxu0 %v408_v22 }
  0x2a   :  { %252 = vmatmul.mubr.bf16.gmra.mrb[4].mxu0 %v410_v23 }
  0xe1   :  { %v383_v24 = vpop.f32.mrb[0].mxu1 }
  0xe2   :  { %v294_v25 = vpop.f32.mrb[1].mxu1 }
  0xe3   :  { %v384_v26 = vpop.f32.mrb[2].mxu1 }
  0xe4   :  { %v297_v27 = vpop.f32.mrb[3].mxu1 }
  0xf5   :  { %v361_v28 = vpop.f32.mrb[0].mxu0 }
  0xf6   :  { %v362_v29 = vpop.f32.mrb[1].mxu0 }
  0xf7   :  { %v363_v31 = vadd.f32 %v362_v29, %v361_v28  ;;  %v364_v32 = vpop.f32.mrb[2].mxu0 }
  0xf8   :  { %v365_v33 = vpop.f32.mrb[3].mxu0 }
  0xf9   :  { %v366_v34 = vadd.f32 %v365_v33, %v364_v32  ;;  %v246_v35 = vadd.f32 %v363_v31, %v318_v30 }
  0xfb   :  { %v295_v36 = vadd.f32 %v294_v25, %v246_v35  ;;  %v249_v37 = vadd.f32 %v366_v34, %v318_v30 }
  0xfd   :  { %310 = vst.msk [vmem:[%s525_s3] sm:$0xff] %vm309_vm1, %v295_v36  ;;  %v298_v38 = vadd.f32 %v297_v27, %v249_v37  ;;  %v367_v39 = vpop.f32.mrb[4].mxu0 }
  0xfe   :  { %v368_v40 = vpop.f32.mrb[5].mxu0 }
  0xff   :  { %311 = vst.msk [vmem:[%s525_s3 + $0x8] sm:$0xff] %vm309_vm1, %v298_v38  ;;  %v369_v41 = vadd.f32 %v368_v40, %v367_v39  ;;  %v370_v42 = vpop.f32.mrb[6].mxu0 }
 0x100   :  { %v371_v43 = vpop.f32.mrb[7].mxu0 }
 0x101   :  { %v254_v44 = vadd.f32 %v369_v41, %v318_v30  ;;  %v372_v45 = vadd.f32 %v371_v43, %v370_v42 }
 0x103   :  { %v303_v46 = vadd.f32 %v383_v24, %v254_v44  ;;  %v257_v47 = vadd.f32 %v372_v45, %v318_v30 }
 0x105   :  { %312 = vst.msk [vmem:[%s525_s3 + $0x10] sm:$0xff] %vm309_vm1, %v303_v46  ;;  %v306_v48 = vadd.f32 %v384_v26, %v257_v47 }
 0x107   :  { %313 = vst.msk [vmem:[%s525_s3 + $0x18] sm:$0xff] %vm309_vm1, %v306_v48 }

// kernel: generator_att_forward.17
= control target key start
LH: loop header
LB: loop body
LE: loop exit
PB: predicated region body
PF: predicated region fallthrough
CT: control target
= control target key end

     0   :  { %s924_s12 = smov 0   ;;  %s1072_s0 = inlined_call_operand.vmem [shape: bf16[32,576], index: 0, kind: input, shape index: {}]   ;;  %s1073_s1 = inlined_call_operand.vmem [shape: bf16[576,64], index: 1, kind: input, shape index: {}]   ;;  %s1074_s2 = inlined_call_operand.vmem [shape: f32[1,64], index: 2, kind: input, shape index: {}]   ;;  %s1075_s3 = inlined_call_operand.vmem [shape: f32[32,64], index: 3, kind: output, shape index: {}]  }
   0x1 LB: > { %s723_s13 = sadd.s32 4294967295, %s900_s12   ;;  %p727_p0 = scmp.ge.s32.totalorder %s900_s12, 1  ;;  %s900_s12 = sphi %s924_s12, %s13_s12  }
   0x2   : > { %p139_p1 = scmp.lt.s32.totalorder %s900_s12, 3 }
   0x4   : > { %p140_p2 = pnand %p727_p0, %p139_p1 }
   0x5   : > { %v849_v0 = vld [vmem:[%s1073_s1 + $0x40] sm:$0xff] (!%p140_p2)   ;;  %v853_v4 = vld [vmem:[%s1073_s1 + $0x48] sm:$0xff] (!%p140_p2)   ;;  %v857_v8 = vld [vmem:[%s1073_s1 + $0x50] sm:$0xff] (!%p140_p2)   ;;  %s728_s17 = sshll.u32 (!%p140_p2), %s723_s13, 1  ;;  %v902_v33 = vmov (!%p140_p2), 0.0   ;;  %vm903_vm0 = vmmov (!%p140_p2), 0  }
   0x6   : > { %143 = sbr.rel (%p140_p2) target bundleno = 311 (0x137), region = 32  ;;  %v850_v1 = vld [vmem:[%s1073_s1] sm:$0xff] (!%p140_p2)   ;;  %777 = vmatprep.subr.bf16.mxu0 (!%p140_p2), %v849_v0  ;;  %v854_v5 = vld [vmem:[%s1073_s1 + $0x8] sm:$0xff] (!%p140_p2)   ;;  %v858_v9 = vld [vmem:[%s1073_s1 + $0x10] sm:$0xff] (!%p140_p2)   ;;  %p165_p3 = scmp.lt.s32.totalorder (!%p140_p2), %s728_s17, 3  ;;  %vm504_vm1 = vcmask (!%p140_p2), 523264  }
   0x7   : > { %v851_v2 = vld [vmem:[%s1073_s1 + $0xc0] sm:$0xff] (!%p140_p2)   ;;  %778 = vmatpush3.bf16.msra.mxu0 (!%p140_p2), %v850_v1  ;;  %v855_v6 = vld [vmem:[%s1073_s1 + $0xc8] sm:$0xff] (!%p140_p2)   ;;  %v859_v10 = vld [vmem:[%s1073_s1 + $0xd0] sm:$0xff] (!%p140_p2)  }
   0x8   : > { %v852_v3 = vld [vmem:[%s1073_s1 + $0x80] sm:$0xff] (!%p140_p2)   ;;  %799 = vmatprep.subr.bf16.mxu1 (!%p140_p2), %v851_v2  ;;  %779 = vmatprep.subr.bf16.mxu0 (!%p140_p2), %v853_v4  ;;  %v856_v7 = vld [vmem:[%s1073_s1 + $0x88] sm:$0xff] (!%p140_p2)   ;;  %v860_v11 = vld [vmem:[%s1073_s1 + $0x90] sm:$0xff] (!%p140_p2)  }
   0x9   : > { %800 = vmatpush3.bf16.msra.mxu1 (!%p140_p2), %v852_v3  ;;  %v861_v12 = vld [vmem:[%s1073_s1 + $0x58] sm:$0xff] (!%p140_p2)   ;;  %v865_v16 = vld [vmem:[%s1073_s1 + $0x60] sm:$0xff] (!%p140_p2)   ;;  %v869_v20 = vld [vmem:[%s1073_s1 + $0x68] sm:$0xff] (!%p140_p2)  }
   0xa   : > { %801 = vmatprep.subr.bf16.mxu1 (!%p140_p2), %v855_v6  ;;  %v862_v13 = vld [vmem:[%s1073_s1 + $0x18] sm:$0xff] (!%p140_p2)   ;;  %v866_v17 = vld [vmem:[%s1073_s1 + $0x20] sm:$0xff] (!%p140_p2)   ;;  %v870_v21 = vld [vmem:[%s1073_s1 + $0x28] sm:$0xff] (!%p140_p2)  }
   0xb   : > { %780 = vmatpush3.bf16.msra.mxu0 (!%p140_p2), %v854_v5  ;;  %v863_v14 = vld [vmem:[%s1073_s1 + $0xd8] sm:$0xff] (!%p140_p2)   ;;  %v867_v18 = vld [vmem:[%s1073_s1 + $0xe0] sm:$0xff] (!%p140_p2)   ;;  %v871_v22 = vld [vmem:[%s1073_s1 + $0xe8] sm:$0xff] (!%p140_p2)  }
   0xc   : > { %781 = vmatprep.subr.bf16.mxu0 (!%p140_p2), %v857_v8  ;;  %v864_v15 = vld [vmem:[%s1073_s1 + $0x98] sm:$0xff] (!%p140_p2)   ;;  %v868_v19 = vld [vmem:[%s1073_s1 + $0xa0] sm:$0xff] (!%p140_p2)   ;;  %v872_v23 = vld [vmem:[%s1073_s1 + $0xa8] sm:$0xff] (!%p140_p2)  }
   0xd   : > { %802 = vmatpush3.bf16.msra.mxu1 %v856_v7  ;;  %s1077_s17 = smov (!%p165_p3, %s728_s17), 3  ;;  %v873_v24 = vld [vmem:[%s1073_s1 + $0x70] sm:$0xff]   ;;  %v877_v28 = vld [vmem:[%s1073_s1 + $0x78] sm:$0xff]   ;;  %v887_v37 = vld [vmem:[%s1073_s1 + $0x100] sm:$0xff]  }
   0xe   : > { %803 = vmatprep.subr.bf16.mxu1 %v859_v10  ;;  %s838_s14 = smul.u32 20, %s1077_s17  ;;  %v874_v25 = vld [vmem:[%s1073_s1 + $0x30] sm:$0xff]   ;;  %v878_v29 = vld [vmem:[%s1073_s1 + $0x38] sm:$0xff]   ;;  %v888_v38 = vld [vmem:[%s1073_s1 + $0x108] sm:$0xff]   ;;  %s731_s18 = sshll.u32 %s1077_s17, 3 }
   0xf   : > { %782 = vmatpush3.bf16.msra.mxu0 %v858_v9  ;;  %v875_v26 = vld [vmem:[%s1073_s1 + $0xf0] sm:$0xff]   ;;  %v879_v30 = vld [vmem:[%s1073_s1 + $0xf8] sm:$0xff]   ;;  %v732_v43 = vld [vmem:[%s1074_s2] ss:$0 sm:$0xff]  ;;  %s175_s21 = scalar_lea.vmem %s1075_s3, %s731_s18 }
  0x10   : > { %783 = vmatprep.subr.bf16.mxu0 %v861_v12  ;;  %v876_v27 = vld [vmem:[%s1073_s1 + $0xb0] sm:$0xff]   ;;  %s1027_s13 = scalar_lea.vmem %s1072_s0, %s838_s14  ;;  %v883_v34 = vld [vmem:[%s1073_s1 + $0xb8] sm:$0xff]  }
  0x11   : > { %804 = vmatpush3.bf16.msra.mxu1 %v860_v11  ;;  %v880_v31 = vld [vmem:[%s1027_s13] ss:$20 sps:$4 sm:$0xff]   ;;  %v882_v32 = vld [vmem:[%s1027_s13 + $0x4] ss:$20 sps:$4 sm:$0xff]   ;;  %v884_v35 = vld [vmem:[%s1027_s13 + $0x8] ss:$20 sps:$4 sm:$0xff]  }
  0x12   : > { %805 = vmatprep.subr.bf16.mxu1 %v863_v14  ;;  %540 = vmatprep.mubr.bf16.mxu0 %v882_v32  ;;  %v886_v36 = vld [vmem:[%s1027_s13 + $0xc] ss:$20 sps:$4 sm:$0xff]   ;;  %v889_v39 = vld [vmem:[%s1073_s1 + $0x110] sm:$0xff]   ;;  %v890_v40 = vld [vmem:[%s1073_s1 + $0x118] sm:$0xff]  }
  0x13   : > { %784 = vmatpush3.bf16.msra.mxu0 %v862_v13  ;;  %581 = vmatprep.mubr.bf16.mxu1 %v886_v36  ;;  %v891_v41 = vld [vmem:[%s1027_s13 + $0x10] ss:$20 sps:$4 sm:$0xff]  }
  0x14   : > { %785 = vmatprep.subr.bf16.mxu0 %v865_v16 }
  0x15   : > { %806 = vmatpush3.bf16.msra.mxu1 %v864_v15 }
  0x16   : > { %807 = vmatprep.subr.bf16.mxu1 %v867_v18 }
  0x17   : > { %786 = vmatpush3.bf16.msra.mxu0 %v866_v17 }
  0x18   : > { %787 = vmatprep.subr.bf16.mxu0 %v869_v20 }
  0x19   : > { %808 = vmatpush3.bf16.msra.mxu1 %v868_v19 }
  0x1a   : > { %809 = vmatprep.subr.bf16.mxu1 %v871_v22 }
  0x1b   : > { %788 = vmatpush3.bf16.msra.mxu0 %v870_v21 }
  0x1c   : > { %789 = vmatprep.subr.bf16.mxu0 %v873_v24 }
  0x1d   : > { %810 = vmatpush3.bf16.msra.mxu1 %v872_v23 }
  0x1e   : > { %811 = vmatprep.subr.bf16.mxu1 %v875_v26 }
  0x1f   : > { %790 = vmatpush3.bf16.msra.mxu0 %v874_v25 }
  0x20   : > { %791 = vmatprep.subr.bf16.mxu0 %v877_v28 }
  0x21   : > { %812 = vmatpush3.bf16.msra.mxu1 %v876_v27 }
  0x22   : > { %813 = vmatprep.subr.bf16.mxu1 %v879_v30 }
  0x23   : > { %792 = vmatpush3.bf16.msra.mxu0 %v878_v29 }
  0x24   : > { %826 = vmatprep.subr.bf16.mxu0 %v902_v33 }
  0x25   : > { %814 = vmatpush3.bf16.msra.mxu1 %v883_v34 }
  0x26   : > { %541 = vmatmul.mubr.bf16.vlgmr.msra.gmra.mrb[0].mxu0 %v880_v31 }
  0x27   : > { %834 = vmatprep.mubr.msk.bf16.mxu0 %vm903_vm0, %v902_v33  ;;  %827 = vmatpush3.bf16.msra.mxu0 %v887_v37 }
  0x28   : > { %582 = vmatmul.mubr.bf16.vlgmr.msra.gmra.mrb[0].mxu1 %v884_v35  ;;  %828 = vmatprep.subr.bf16.mxu0 %v902_v33 }
  0x2b   : > { %829 = vmatpush3.bf16.msra.mxu0 %v888_v38 }
  0x2c   : > { %830 = vmatprep.subr.bf16.mxu0 %v902_v33 }
  0x2f   : > { %831 = vmatpush3.bf16.msra.mxu0 %v889_v39 }
  0x30   : > { %832 = vmatprep.subr.bf16.mxu0 %v902_v33 }
  0x33   : > { %833 = vmatpush3.bf16.msra.mxu0 %v890_v40 }
  0x36   : > { %835 = vmatmul.mubr.msk.bf16.vlgmr.msra.gmra.mrb[4].mxu0 %vm504_vm1, %v891_v41 }
  0xf9   : > { %v793_v42 = vpop.f32.mrb[0].mxu0 }
  0xfa   : > { %v794_v44 = vpop.f32.mrb[1].mxu0 }
  0xfb   : > { %v795_v45 = vadd.f32 %v794_v44, %v793_v42  ;;  %v796_v46 = vpop.f32.mrb[2].mxu0  ;;  %v815_v47 = vpop.f32.mrb[0].mxu1 }
  0xfc   : > { %v797_v48 = vpop.f32.mrb[3].mxu0  ;;  %v816_v51 = vpop.f32.mrb[1].mxu1 }
  0xfd   : > { %v543_v49 = vadd.f32 %v795_v45, %v732_v43  ;;  %v798_v50 = vadd.f32 %v797_v48, %v796_v46  ;;  %v817_v52 = vadd.f32 %v816_v51, %v815_v47  ;;  %v818_v53 = vpop.f32.mrb[2].mxu1 }
  0xfe   : > { %v819_v55 = vpop.f32.mrb[3].mxu1 }
  0xff   : > { %v546_v54 = vadd.f32 %v798_v50, %v732_v43  ;;  %v820_v56 = vadd.f32 %v819_v55, %v818_v53  ;;  %v584_v57 = vadd.f32 %v817_v52, %v543_v49 }
 0x101   : > { %v587_v58 = vadd.f32 %v820_v56, %v546_v54 }
 0x109   : > { %v624_v59 = vpop.f32.mrb[4].mxu0 }
 0x10a   : > { %v625_v60 = vadd.f32 %v624_v59, %v584_v57  ;;  %v836_v61 = vpop.f32.mrb[5].mxu0 }
 0x10b   : > { %v627_v62 = vpop.f32.mrb[6].mxu0 }
 0x10c   : > { %v640_v63 = vmul.f32 %v625_v60, %v625_v60  ;;  %v628_v0 = vadd.f32 %v627_v62, %v587_v58  ;;  %v837_v1 = vpop.f32.mrb[7].mxu0  ;;  %v631_v2 = vsel %vm504_vm1, %v625_v60, 0.0 }
 0x10e   : > { %v632_v3 = vsel %vm504_vm1, %v628_v0, 0.0  ;;  %v641_v4 = vmul.f32 %v628_v0, %v628_v0  ;;  %v642_v6 = vsel %vm504_vm1, %v640_v63, 0.0 }
 0x10f   : > { %v633_v5 = vadd.f32 %v632_v3, %v631_v2 }
 0x110   : > { %v643_v7 = vsel %vm504_vm1, %v641_v4, 0.0 }
 0x111   : > { %v634_v8 = vrot.slane %v633_v5, 4  ;;  %v644_v9 = vadd.f32 %v643_v7, %v642_v6 }
 0x113   : > { %v635_v10 = vadd.f32 %v634_v8, %v633_v5  ;;  %v645_v11 = vrot.slane %v644_v9, 4 }
 0x115   : > { %v636_v12 = vrot.slane %v635_v10, 2  ;;  %v646_v13 = vadd.f32 %v645_v11, %v644_v9 }
 0x117   : > { %v637_v14 = vadd.f32 %v636_v12, %v635_v10  ;;  %v647_v15 = vrot.slane %v646_v13, 2 }
 0x119   : > { %v638_v16 = vrot.slane %v637_v14, 1  ;;  %v648_v17 = vadd.f32 %v647_v15, %v646_v13 }
 0x11b   : > { %v639_v18 = vadd.f32 %v638_v16, %v637_v14  ;;  %v649_v19 = vrot.slane %v648_v17, 1 }
 0x11d   : > { %v650_v20 = vadd.f32 %v649_v19, %v648_v17  ;;  %v651_v21 = vmul.f32 0.0625, %v639_v18 }
 0x11f   : > { %v652_v22 = vmul.f32 0.0625, %v650_v20  ;;  %v653_v23 = vmul.f32 %v651_v21, %v651_v21  ;;  %v657_v26 = vsub.f32 0.0, %v651_v21 }
 0x121   : > { %v654_v24 = vsub.f32 %v652_v22, %v653_v23 }
 0x123   : > { %v655_v25 = vadd.f32 1e-05, %v654_v24 }
 0x125   : > { %892 = vrsqrt.f32 %v655_v25 }
 0x12f   : > { %v893_v27 = vpop.eup %892 }
 0x130   : > { %v658_v28 = vmul.f32 %v893_v27, %v657_v26  ;;  %v659_v29 = vmul.f32 %v893_v27, %v625_v60  ;;  %v660_v30 = vmul.f32 %v893_v27, %v628_v0 }
 0x132   : > { %v661_v31 = vadd.f32 %v659_v29, %v658_v28  ;;  %v662_v32 = vadd.f32 %v660_v30, %v658_v28 }
 0x134   : > { %v663_v33 = vmax.f32 %v661_v31, 0.0  ;;  %v664_v34 = vmax.f32 %v662_v32, 0.0 }
 0x136   : > { %665 = vst.msk [vmem:[%s175_s21] sm:$0xff] %vm504_vm1, %v663_v33  ;;  %666 = vst.msk [vmem:[%s175_s21 + $0x8] sm:$0xff] %vm504_vm1, %v664_v34 }
 0x137 PF: > { %s13_s12 = sadd.s32 1, %s900_s12  }
 0x138   : > { %p10_p4 = scmp.ge.s32.totalorder %s13_s12, 4  }
 0x13a   :  { %12 = sbr.rel (!%p10_p4) target bundleno = 1 (0x1), region = 62 }

// kernel: generator_att_forward.18
= control target key start
LH: loop header
LB: loop body
LE: loop exit
PB: predicated region body
PF: predicated region fallthrough
CT: control target
= control target key end

     0   :  { %s1412_s30 = smov 0   ;;  %s1414_s10 = smov 0   ;;  %s1787_s0 = inlined_call_operand.vmem [shape: f32[2,16,64], index: 0, kind: input, shape index: {}]   ;;  %s1788_s1 = inlined_call_operand.vmem [shape: f32[8,9,64], index: 1, kind: input, shape index: {}]   ;;  %s1789_s2 = inlined_call_operand.vmem [shape: f32[8,1,64], index: 2, kind: input, shape index: {}]   ;;  %s1790_s3 = inlined_call_operand.vmem [shape: bf16[8,64,64], index: 3, kind: input, shape index: {}]   ;;  %s1791_s4 = inlined_call_operand.vmem [shape: f32[8,1,64], index: 4, kind: input, shape index: {}]   ;;  %s1792_s5 = inlined_call_operand.vmem [shape: f32[8,9,64], index: 5, kind: input, shape index: {}]   ;;  %s1793_s6 = inlined_call_operand.vmem [shape: f32[8,1,64], index: 6, kind: input, shape index: {}]   ;;  %s1794_s7 = inlined_call_operand.vmem [shape: bf16[8,64,64], index: 7, kind: input, shape index: {}]   ;;  %s1795_s8 = inlined_call_operand.vmem [shape: f32[8,1,64], index: 8, kind: input, shape index: {}]   ;;  %s1796_s9 = inlined_call_operand.vmem [shape: f32[2,16,64], index: 9, kind: output, shape index: {}]  }
   0x1   :  { %s1416_s11 = smov 0   ;;  %s1418_s12 = smov 0  }
   0x2   :  { %s1420_s13 = smov 0  }
   0x3 LB: > { %s28_s14 = sadd.s32 1, %s1350_s11  ;;  %s31_s15 = sadd.s32 1, %s1354_s12  ;;  %s1358_s13 = sphi %s1420_s13, %s19_s13   ;;  %s1354_s12 = sphi %s1418_s12, %s1800_s12   ;;  %s1350_s11 = sphi %s1416_s11, %s1799_s11   ;;  %s1346_s10 = sphi %s1414_s10, %s1798_s10   ;;  %s1342_s30 = sphi %s1412_s30, %s1797_s30  }
   0x4   : > { %p29_p0 = scmp.ge.s32.totalorder %s28_s14, 8  ;;  %p1191_p1 = scmp.ge.s32.totalorder %s1358_s13, 1 }
   0x5   : > { %p299_p2 = scmp.lt.s32.totalorder %s1358_s13, 17 }
   0x6   : > { %s1802_s14 = smov (%p29_p0, %s28_s14), 0  ;;  %s1804_s15 = smov (!%p29_p0, %s31_s15), %s1354_s12 }
   0x7   : > { %p300_p3 = pnand %p1191_p1, %p299_p2  ;;  %p33_p4 = scmp.ge.s32.totalorder %s1804_s15, 2 }
   0x8   : > { %p335_p5 = scmp.lt.s32.totalorder (!%p300_p3), %s1346_s10, 1  ;;  %p1196_p6 = scmp.ne.s32.totalorder (!%p300_p3), %s1342_s30, 0 }
   0x9   : > { %s1806_s15 = smov (%p33_p4, %s1804_s15), 0  ;;  %303 = sbr.rel (%p300_p3) target bundleno = 684 (0x2ac), region = 56 }
  0x10   : > { %s1808_s10 = smov (!%p335_p5, %s1346_s10), 1  ;;  %349 = sbr.rel (%p1196_p6) target bundleno = 23 (0x17), region = 60 }
  0x11   : > { %s1224_s16 = sshll.u32 %s1808_s10, 4  ;;  %vm352_vm0 = vcmask (!%p1196_p6), 523264  }
  0x12   : > { %s339_s19 = scalar_lea.vmem %s1787_s0, %s1224_s16  ;;  %s1450_s22 = scalar_lea.vmem %s1796_s9, %s1224_s16 }
  0x13   : > { %v350_v0 = vld [vmem:[%s339_s19] sm:$0xff] (!%p1196_p6)  ;;  %v351_v1 = vld [vmem:[%s339_s19 + $0x8] sm:$0xff] (!%p1196_p6) }
  0x14   : > { %353 = vst.msk [vmem:[#allocation2] sm:$0xff] (!%p1196_p6), %vm352_vm0, %v350_v0  ;;  %354 = vst.msk [vmem:[#allocation2 + $0x8] sm:$0xff] (!%p1196_p6), %vm352_vm0, %v351_v1 }
  0x17 PF: > { %s1226_s23 = sshll.u32 %s1342_s30, 5  ;;  %v357_v4 = vlaneseq  ;;  %v1360_v5 = vmov 0.0   ;;  %vm1361_vm1 = vmmov 0   ;;  %s1201_s27 = sshll.u32 %s1342_s30, 4  ;;  %vm404_vm2 = vcmask 1044480  }
  0x18   : > { %1238 = vmatprep.subr.bf16.mxu0 %v1360_v5  ;;  %s1464_s26 = scalar_lea.vmem %s1790_s3, %s1226_s23  ;;  %1246 = vmatprep.mubr.msk.bf16.mxu0 %vm1361_vm1, %v1360_v5  ;;  %s1484_s10 = scalar_lea.vmem %s1788_s1, %s1201_s27  ;;  %vm433_vm5 = vcmask 1046528   ;;  %vm445_vm8 = vcmask 1041408   ;;  %vm465_vm9 = vcmask 1045504   ;;  %vm477_vm10 = vcmask 1043456  }
  0x19   : > { %v1304_v8 = vld [vmem:[%s1464_s26] sm:$0xff]   ;;  %v1471_v9 = vshrl.u32 %v357_v4, 7  ;;  %1250 = vmatprep.subr.bf16.mxu1 %v1360_v5  ;;  %1258 = vmatprep.mubr.msk.bf16.mxu1 %vm1361_vm1, %v1360_v5  ;;  %v1305_v10 = vld [vmem:[%s1464_s26 + $0x8] sm:$0xff]   ;;  %v1306_v18 = vld [vmem:[%s1464_s26 + $0x10] sm:$0xff]   ;;  %vm516_vm11 = vcmask 1042432   ;;  %s400_s18 = scalar_lea.vmem %s1789_s2, %s1342_s30  ;;  %vm613_vm12 = vcmask 523264   ;;  %s983_s21 = scalar_lea.vmem %s1794_s7, %s1226_s23 }
  0x1a   : > { %1239 = vmatpush3.bf16.msra.mxu0 %v1304_v8  ;;  %v1502_v21 = vld [vmem:[%s1484_s10] sm:$0xff]  ;;  %v1307_v32 = vld [vmem:[%s1464_s26 + $0x18] sm:$0xff]   ;;  %s656_s26 = scalar_lea.vmem %s1791_s4, %s1342_s30  ;;  %s1658_s29 = scalar_lea.vmem %s1792_s5, %s1201_s27 }
  0x1b   : > { %v1454_v2 = vld [vmem:[#allocation2] sm:$0xff]  ;;  %v1456_v3 = vld [vmem:[#allocation2 + $0x8] sm:$0xff]  ;;  %v359_v11 = vadd.s32 8, %v1471_v9  ;;  %1240 = vmatprep.subr.bf16.mxu0 %v1360_v5  ;;  %v364_v12 = vand.u32 3, %v1471_v9  ;;  %v417_v17 = vsub.s32 0, %v1471_v9  ;;  %v425_v27 = vsub.s32 1, %v1471_v9  ;;  %s768_s16 = scalar_lea.vmem %s1793_s6, %s1342_s30  ;;  %s992_s19 = scalar_lea.vmem %s1795_s8, %s1342_s30 }
  0x1c   : > { %v405_v6 = vrot.slane %v1454_v2, 3  ;;  %v406_v7 = vrot.slane %v1456_v3, 3  ;;  %v457_v31 = vsub.s32 2, %v1471_v9  ;;  %v489_v62 = vsub.s32 3, %v1471_v9  ;;  %p1221_p7 = scmp.ne.s32.totalorder %s1342_s30, 7 }
  0x1d   : > { %v371_v13 = vand.u32 3, %v359_v11  ;;  %vm384_vm3 = vcmp.ne.s32.totalorder %v364_v12, 0  ;;  %vm390_vm4 = vcmp.ne.s32.totalorder %v364_v12, 3  ;;  %v418_v25 = vrot.slane %v1502_v21, %v417_v17 }
  0x1e   : > { %v1487_v14 = vsel %vm404_vm2, %v405_v6, %v406_v7  ;;  %v1490_v15 = vsel %vm404_vm2, 0.0, %v405_v6  ;;  %v1493_v16 = vsel %vm404_vm2, %v406_v7, 0.0  ;;  %1241 = vmatpush3.bf16.msra.mxu0 %v1305_v10  ;;  %v1498_v19 = vsel %vm384_vm3, 1.0, %v1360_v5 }
  0x1f   : > { %vm385_vm6 = vcmp.ne.s32.totalorder %v371_v13, 0  ;;  %vm391_vm7 = vcmp.ne.s32.totalorder %v371_v13, 3  ;;  %v1199_v20 = vsel %vm390_vm4, 1.0, %v1360_v5  ;;  %1242 = vmatprep.subr.bf16.mxu0 %v1360_v5  ;;  %v413_v24 = vmul.f32 %v1498_v19, %v1490_v15 }
  0x20   : > { %v1506_v22 = vsel %vm385_vm6, 1.0, %v1360_v5  ;;  %v1200_v23 = vsel %vm391_vm7, 1.0, %v1360_v5  ;;  %v1517_v28 = vrot.slane %v1199_v20, 6  ;;  %v426_v34 = vrot.slane %v1502_v21, %v425_v27 }
  0x21   : > { %v414_v26 = vmul.f32 %v1506_v22, %v1487_v14  ;;  %v419_v29 = vmul.f32 %v418_v25, %v413_v24  ;;  %v1519_v30 = vrot.slane %v1200_v23, 6  ;;  %v458_v38 = vrot.slane %v1502_v21, %v457_v31 }
  0x22   : > { %1243 = vmatpush3.bf16.msra.mxu0 %v1306_v18  ;;  %v452_v35 = vmul.f32 %v1517_v28, %v1490_v15  ;;  %v1540_v39 = vrot.slane %v1498_v19, 4  ;;  %v427_v40 = vmul.f32 %v426_v34, %v1490_v15  ;;  %v428_v41 = vmul.f32 %v426_v34, %v1487_v14 }
  0x23   : > { %v420_v33 = vmul.f32 %v418_v25, %v414_v26  ;;  %1244 = vmatprep.subr.bf16.mxu0 %v1360_v5  ;;  %v1532_v36 = vsel %vm445_vm8, %v1517_v28, %v1519_v30  ;;  %v454_v37 = vmul.f32 %v1519_v30, %v1493_v16  ;;  %v429_v42 = vmul.f32 %v426_v34, %v1493_v16 }
  0x24   : > { %v453_v43 = vmul.f32 %v1532_v36, %v1487_v14  ;;  %v459_v44 = vmul.f32 %v458_v38, %v452_v35  ;;  %v1548_v46 = vrot.slane %v1506_v22, 4  ;;  %v484_v47 = vmul.f32 %v1540_v39, %v1490_v15 }
  0x25   : > { %v461_v45 = vmul.f32 %v458_v38, %v454_v37  ;;  %v434_v48 = vrot.slane %v427_v40, 1  ;;  %v435_v49 = vrot.slane %v428_v41, 1  ;;  %v437_v50 = vrot.slane %v429_v42, 1 }
  0x26   : > { %1245 = vmatpush3.bf16.msra.mxu0 %v1307_v32  ;;  %v460_v51 = vmul.f32 %v458_v38, %v453_v43  ;;  %v466_v52 = vrot.slane %v459_v44, 2  ;;  %v1555_v54 = vsel %vm477_vm10, %v1540_v39, %v1548_v46  ;;  %v486_v55 = vmul.f32 %v1548_v46, %v1493_v16 }
  0x27   : > { %v469_v53 = vrot.slane %v461_v45, 2  ;;  %v436_v56 = vsel %vm433_vm5, %v434_v48, %v435_v49  ;;  %v438_v57 = vsel %vm433_vm5, %v435_v49, %v437_v50  ;;  %v485_v59 = vmul.f32 %v1555_v54, %v1487_v14 }
  0x28   : > { %v467_v58 = vrot.slane %v460_v51, 2  ;;  %v441_v60 = vadd.f32 %v436_v56, %v419_v29  ;;  %v442_v61 = vadd.f32 %v438_v57, %v420_v33  ;;  %v508_v63 = vsub.s32 4, %v1471_v9  ;;  %v1202_v57 = vld [vmem:[%s1484_s10 + $0x8] ss:$0 sm:$0xff] }
  0x29   : > { %v1567_v4 = vrot.slane %v1199_v20, 2  ;;  %v490_v8 = vrot.slane %v1502_v21, %v489_v62  ;;  %v1575_v11 = vrot.slane %v1200_v23, 2  ;;  %v537_v13 = vsub.s32 5, %v1471_v9 }
  0x2a   : > { %v468_v0 = vsel %vm465_vm9, %v466_v52, %v467_v58  ;;  %v470_v1 = vsel %vm465_vm9, %v467_v58, %v469_v53  ;;  %v509_v10 = vrot.slane %v1502_v21, %v508_v63  ;;  %v554_v18 = vmul.f32 %v1498_v19, %v1487_v14 }
  0x2b   : > { %v473_v6 = vadd.f32 %v468_v0, %v441_v60  ;;  %v474_v7 = vadd.f32 %v470_v1, %v442_v61  ;;  %v532_v12 = vmul.f32 %v1567_v4, %v1490_v15  ;;  %v491_v20 = vmul.f32 %v490_v8, %v484_v47 }
  0x2c   : > { %v492_v24 = vmul.f32 %v490_v8, %v485_v59  ;;  %v493_v25 = vmul.f32 %v490_v8, %v486_v55  ;;  %v510_v26 = vmul.f32 %v509_v10, %v1490_v15  ;;  %v511_v29 = vmul.f32 %v509_v10, %v1487_v14 }
  0x2d   : > { %v512_v32 = vmul.f32 %v509_v10, %v1493_v16  ;;  %v1588_v23 = vsel %vm465_vm9, %v1567_v4, %v1575_v11  ;;  %v534_v33 = vmul.f32 %v1575_v11, %v1493_v16  ;;  %v497_v34 = vrot.slane %v491_v20, 4 }
  0x2e   : > { %v498_v35 = vrot.slane %v492_v24, 4  ;;  %v500_v37 = vrot.slane %v493_v25, 4  ;;  %v517_v38 = vrot.slane %v510_v26, 5  ;;  %v518_v40 = vrot.slane %v511_v29, 5 }
  0x2f   : > { %v520_v41 = vrot.slane %v512_v32, 5  ;;  %v533_v15 = vmul.f32 %v1588_v23, %v1487_v14  ;;  %v538_v42 = vrot.slane %v1502_v21, %v537_v13  ;;  %v555_v45 = vmul.f32 %v1506_v22, %v1493_v16 }
  0x30   : > { %v499_v43 = vsel %vm477_vm10, %v497_v34, %v498_v35  ;;  %v501_v44 = vsel %vm477_vm10, %v498_v35, %v500_v37  ;;  %v558_v47 = vsub.s32 6, %v1471_v9  ;;  %v519_v50 = vsel %vm516_vm11, %v517_v38, %v518_v40 }
  0x31   : > { %v504_v48 = vadd.f32 %v499_v43, %v473_v6  ;;  %v505_v49 = vadd.f32 %v501_v44, %v474_v7  ;;  %v521_v51 = vsel %vm516_vm11, %v518_v40, %v520_v41  ;;  %v539_v52 = vmul.f32 %v538_v42, %v532_v12 }
  0x32   : > { %v540_v53 = vmul.f32 %v538_v42, %v533_v15  ;;  %v541_v55 = vmul.f32 %v538_v42, %v534_v33  ;;  %v559_v56 = vrot.slane %v1502_v21, %v558_v47  ;;  %v566_v60 = vsub.s32 7, %v1471_v9 }
  0x33   : > { %v524_v58 = vadd.f32 %v519_v50, %v504_v48  ;;  %v525_v59 = vadd.f32 %v521_v51, %v505_v49  ;;  %v583_v61 = vmul.f32 %v1517_v28, %v1487_v14  ;;  %v545_v0 = vrot.slane %v539_v52, 6  ;;  %v1203_v50 = vld [vmem:[%s400_s18] ss:$0 sm:$0xff] }
  0x34   : > { %v546_v1 = vrot.slane %v540_v53, 6  ;;  %v548_v6 = vrot.slane %v541_v55, 6  ;;  %v560_v7 = vmul.f32 %v559_v56, %v554_v18  ;;  %v561_v8 = vmul.f32 %v559_v56, %v555_v45 }
  0x35   : > { %v567_v10 = vrot.slane %v1502_v21, %v566_v60  ;;  %v584_v12 = vmul.f32 %v1532_v36, %v1493_v16  ;;  %v1617_v20 = vmul.f32 0.0, %v1519_v30  ;;  %v590_v26 = vmul.f32 %v1202_v57, %v583_v61 }
  0x36   : > { %v547_v24 = vsel %vm445_vm8, %v545_v0, %v546_v1  ;;  %v549_v25 = vsel %vm445_vm8, %v546_v1, %v548_v6 }
  0x37   : > { %v552_v29 = vadd.f32 %v547_v24, %v524_v58  ;;  %v553_v32 = vadd.f32 %v549_v25, %v525_v59  ;;  %v568_v18 = vmul.f32 %v567_v10, %v1487_v14  ;;  %v569_v33 = vmul.f32 %v567_v10, %v1493_v16 }
  0x38   : > { %v570_v34 = vmul.f32 0.0, %v567_v10  ;;  %v591_v21 = vmul.f32 %v1202_v57, %v584_v12  ;;  %v592_v35 = vmul.f32 %v1202_v57, %v1617_v20  ;;  %v596_v37 = vrot.slane %v590_v26, 2 }
  0x39   : > { %v562_v38 = vadd.f32 %v560_v7, %v552_v29  ;;  %v563_v40 = vadd.f32 %v561_v8, %v553_v32  ;;  %v574_v41 = vrot.slane %v568_v18, 1  ;;  %v575_v15 = vrot.slane %v569_v33, 1 }
  0x3a   : > { %v577_v42 = vrot.slane %v570_v34, 1  ;;  %v597_v43 = vrot.slane %v591_v21, 2  ;;  %v599_v44 = vrot.slane %v592_v35, 2 }
  0x3b   : > { %v576_v14 = vsel %vm433_vm5, %v574_v41, %v575_v15 }
  0x3c   : > { %v578_v16 = vsel %vm433_vm5, %v575_v15, %v577_v42  ;;  %v581_v45 = vadd.f32 %v576_v14, %v562_v38  ;;  %v598_v48 = vsel %vm465_vm9, %v596_v37, %v597_v43  ;;  %v600_v49 = vsel %vm465_vm9, %v597_v43, %v599_v44 }
  0x3d   : > { %v582_v51 = vadd.f32 %v578_v16, %v563_v40 }
  0x3e   : > { %v603_v52 = vadd.f32 %v598_v48, %v581_v45  ;;  %v1308_v45 = vld [vmem:[%s983_s21] sm:$0xff]   ;;  %v1309_v48 = vld [vmem:[%s983_s21 + $0x8] sm:$0xff]  }
  0x3f   : > { %v604_v53 = vadd.f32 %v600_v49, %v582_v51  ;;  %1251 = vmatpush3.bf16.msra.mxu1 %v1308_v45  ;;  %v1310_v49 = vld [vmem:[%s983_s21 + $0x10] sm:$0xff]   ;;  %v1206_v51 = vld [vmem:[%s656_s26] ss:$0 sm:$0xff] }
  0x40   : > { %v611_v55 = vadd.f32 %v1203_v50, %v603_v52  ;;  %1252 = vmatprep.subr.bf16.mxu1 %v1360_v5 }
  0x41   : > { %v612_v56 = vadd.f32 %v1203_v50, %v604_v53  ;;  %v1311_v50 = vld [vmem:[%s983_s21 + $0x18] sm:$0xff]  }
  0x42   : > { %v614_v57 = vsel %vm613_vm12, %v611_v55, 0.0  ;;  %v625_v58 = vmul.f32 %v611_v55, %v611_v55 }
  0x43   : > { %v615_v59 = vsel %vm613_vm12, %v612_v56, 0.0  ;;  %v626_v61 = vmul.f32 %v612_v56, %v612_v56  ;;  %1253 = vmatpush3.bf16.msra.mxu1 %v1309_v48 }
  0x44   : > { %v616_v0 = vadd.f32 %v615_v59, %v614_v57  ;;  %v627_v1 = vsel %vm613_vm12, %v625_v58, 0.0  ;;  %1254 = vmatprep.subr.bf16.mxu1 %v1360_v5 }
  0x45   : > { %v628_v6 = vsel %vm613_vm12, %v626_v61, 0.0 }
  0x46   : > { %v617_v7 = vrot.slane %v616_v0, 4  ;;  %v629_v8 = vadd.f32 %v628_v6, %v627_v1 }
  0x47   : > { %1255 = vmatpush3.bf16.msra.mxu1 %v1310_v49 }
  0x48   : > { %v618_v10 = vadd.f32 %v617_v7, %v616_v0  ;;  %v630_v12 = vrot.slane %v629_v8, 4  ;;  %1256 = vmatprep.subr.bf16.mxu1 %v1360_v5 }
  0x4a   : > { %v619_v24 = vrot.slane %v618_v10, 2  ;;  %v631_v25 = vadd.f32 %v630_v12, %v629_v8 }
  0x4b   : > { %1257 = vmatpush3.bf16.msra.mxu1 %v1311_v50 }
  0x4c   : > { %v620_v26 = vadd.f32 %v619_v24, %v618_v10  ;;  %v632_v29 = vrot.slane %v631_v25, 2 }
  0x4e   : > { %v621_v32 = vrot.slane %v620_v26, 1  ;;  %v633_v18 = vadd.f32 %v632_v29, %v631_v25 }
  0x50   : > { %v622_v33 = vadd.f32 %v621_v32, %v620_v26  ;;  %v634_v34 = vrot.slane %v633_v18, 1 }
  0x52   : > { %v624_v21 = vmul.f32 0.0625, %v622_v33  ;;  %v635_v35 = vadd.f32 %v634_v34, %v633_v18 }
  0x54   : > { %v636_v37 = vmul.f32 0.0625, %v635_v35  ;;  %v637_v38 = vmul.f32 %v624_v21, %v624_v21  ;;  %v639_v15 = vsub.f32 %v611_v55, %v624_v21  ;;  %v640_v42 = vsub.f32 %v612_v56, %v624_v21 }
  0x56   : > { %v638_v40 = vsub.f32 %v636_v37, %v637_v38 }
  0x58   : > { %v641_v41 = vadd.f32 1e-05, %v638_v40 }
  0x5a   : > { %1312 = vrsqrt.f32 %v641_v41 }
  0x64   : > { %v1313_v43 = vpop.eup %1312 }
  0x65   : > { %v643_v44 = vmul.f32 %v1313_v43, %v639_v15  ;;  %v644_v14 = vmul.f32 %v1313_v43, %v640_v42 }
  0x67   : > { %v658_v16 = vpack.c.bf16 %v644_v14, %v643_v44  ;;  %v766_v44 = vld [vmem:[%s1658_s29] sm:$0xff] }
  0x68   : > { %v1663_v14 = vrot.slane %v766_v44, %v566_v60  ;;  %v815_v60 = vrot.slane %v766_v44, %v457_v31 }
  0x69   : > { %1247 = vmatmul.mubr.msk.bf16.vlgmr.msra.gmra.mrb[0].mxu0 %vm613_vm12, %v658_v16 }
 0x13c   : > { %v726_v52 = vpop.f32.mrb[0].mxu0 }
 0x13d   : > { %v727_v53 = vadd.f32 %v1206_v51, %v726_v52  ;;  %v1248_v55 = vpop.f32.mrb[1].mxu0  ;;  %v793_v52 = vrot.slane %v766_v44, %v425_v27  ;;  %v1682_v27 = vrot.slane %v766_v44, %v558_v47 }
 0x13e   : > { %v729_v56 = vpop.f32.mrb[2].mxu0 }
 0x13f   : > { %v743_v57 = vmul.f32 %v727_v53, %v727_v53  ;;  %v730_v58 = vadd.f32 %v1206_v51, %v729_v56  ;;  %v1249_v59 = vpop.f32.mrb[3].mxu0  ;;  %v733_v61 = vsel %vm613_vm12, %v727_v53, 0.0  ;;  %v1666_v51 = vmul.f32 0.0, %v1663_v14 }
 0x140   : > { %v785_v56 = vrot.slane %v766_v44, %v417_v17  ;;  %v878_v59 = vrot.slane %v766_v44, %v537_v13 }
 0x141   : > { %v734_v0 = vsel %vm613_vm12, %v730_v58, 0.0  ;;  %v744_v1 = vmul.f32 %v730_v58, %v730_v58  ;;  %v745_v5 = vsel %vm613_vm12, %v743_v57, 0.0  ;;  %v837_v57 = vrot.slane %v766_v44, %v489_v62 }
 0x142   : > { %v735_v6 = vadd.f32 %v734_v0, %v733_v61  ;;  %v917_v62 = vrot.slane %v1666_v51, 1 }
 0x143   : > { %v746_v7 = vsel %vm613_vm12, %v744_v1, 0.0 }
 0x144   : > { %v736_v8 = vrot.slane %v735_v6, 4  ;;  %v747_v10 = vadd.f32 %v746_v7, %v745_v5 }
 0x146   : > { %v737_v12 = vadd.f32 %v736_v8, %v735_v6  ;;  %v748_v24 = vrot.slane %v747_v10, 4 }
 0x148   : > { %v738_v25 = vrot.slane %v737_v12, 2  ;;  %v749_v26 = vadd.f32 %v748_v24, %v747_v10 }
 0x14a   : > { %v739_v29 = vadd.f32 %v738_v25, %v737_v12  ;;  %v750_v32 = vrot.slane %v749_v26, 2 }
 0x14c   : > { %v740_v18 = vrot.slane %v739_v29, 1  ;;  %v751_v33 = vadd.f32 %v750_v32, %v749_v26 }
 0x14e   : > { %v741_v34 = vadd.f32 %v740_v18, %v739_v29  ;;  %v752_v21 = vrot.slane %v751_v33, 1 }
 0x150   : > { %v742_v35 = vmul.f32 0.0625, %v741_v34  ;;  %v753_v37 = vadd.f32 %v752_v21, %v751_v33 }
 0x152   : > { %v754_v38 = vmul.f32 0.0625, %v753_v37  ;;  %v755_v40 = vmul.f32 %v742_v35, %v742_v35  ;;  %v757_v41 = vsub.f32 %v727_v53, %v742_v35  ;;  %v758_v15 = vsub.f32 %v730_v58, %v742_v35 }
 0x153   : > { %v856_v58 = vrot.slane %v766_v44, %v508_v63 }
 0x154   : > { %v756_v42 = vsub.f32 %v754_v38, %v755_v40 }
 0x156   : > { %v759_v43 = vadd.f32 1e-05, %v756_v42 }
 0x158   : > { %1314 = vrsqrt.f32 %v759_v43 }
 0x162   : > { %v1315_v16 = vpop.eup %1314 }
 0x163   : > { %v761_v45 = vmul.f32 %v1315_v16, %v757_v41  ;;  %v762_v48 = vmul.f32 %v1315_v16, %v758_v15  ;;  %v1212_v16 = vld [vmem:[%s1658_s29 + $0x8] ss:$0 sm:$0xff] }
 0x165   : > { %v763_v49 = vmax.f32 %v761_v45, 0.0  ;;  %v764_v50 = vmax.f32 %v762_v48, 0.0 }
 0x167   : > { %v772_v53 = vrot.slane %v763_v49, 3  ;;  %v773_v55 = vrot.slane %v764_v50, 3 }
 0x169   : > { %v1685_v61 = vsel %vm404_vm2, %v772_v53, %v773_v55  ;;  %v778_v17 = vsel %vm404_vm2, 0.0, %v772_v53  ;;  %v1689_v31 = vsel %vm404_vm2, %v773_v55, 0.0 }
 0x16a   : > { %v780_v0 = vmul.f32 %v1498_v19, %v778_v17  ;;  %v781_v63 = vmul.f32 %v1506_v22, %v1685_v61  ;;  %v794_v13 = vmul.f32 %v793_v52, %v778_v17  ;;  %v795_v9 = vmul.f32 %v793_v52, %v1685_v61 }
 0x16b   : > { %v796_v47 = vmul.f32 %v793_v52, %v1689_v31  ;;  %v809_v1 = vmul.f32 %v778_v17, %v1517_v28  ;;  %v810_v6 = vmul.f32 %v1685_v61, %v1532_v36  ;;  %v811_v5 = vmul.f32 %v1689_v31, %v1519_v30 }
 0x16c   : > { %v786_v7 = vmul.f32 %v785_v56, %v780_v0  ;;  %v800_v8 = vrot.slane %v794_v13, 1  ;;  %v801_v10 = vrot.slane %v795_v9, 1  ;;  %v831_v12 = vmul.f32 %v778_v17, %v1540_v39 }
 0x16d   : > { %v803_v24 = vrot.slane %v796_v47, 1  ;;  %v816_v25 = vmul.f32 %v815_v60, %v809_v1  ;;  %v817_v26 = vmul.f32 %v815_v60, %v810_v6  ;;  %v818_v29 = vmul.f32 %v815_v60, %v811_v5 }
 0x16e   : > { %v832_v32 = vmul.f32 %v1685_v61, %v1555_v54  ;;  %v833_v18 = vmul.f32 %v1689_v31, %v1548_v46  ;;  %v838_v33 = vmul.f32 %v837_v57, %v831_v12  ;;  %v857_v34 = vmul.f32 %v856_v58, %v778_v17 }
 0x16f   : > { %v804_v30 = vsel %vm433_vm5, %v801_v10, %v803_v24  ;;  %v822_v21 = vrot.slane %v816_v25, 2  ;;  %v823_v35 = vrot.slane %v817_v26, 2  ;;  %v825_v37 = vrot.slane %v818_v29, 2 }
 0x170   : > { %v840_v38 = vmul.f32 %v837_v57, %v833_v18  ;;  %v844_v39 = vrot.slane %v838_v33, 4  ;;  %v859_v40 = vmul.f32 %v856_v58, %v1689_v31  ;;  %v863_v41 = vrot.slane %v857_v34, 5 }
 0x171   : > { %v872_v15 = vmul.f32 %v778_v17, %v1567_v4  ;;  %v874_v54 = vmul.f32 %v1689_v31, %v1575_v11  ;;  %v787_v42 = vmul.f32 %v785_v56, %v781_v63  ;;  %v802_v46 = vsel %vm433_vm5, %v800_v8, %v801_v10 }
 0x172   : > { %v847_v43 = vrot.slane %v840_v38, 4  ;;  %v866_v44 = vrot.slane %v859_v40, 5  ;;  %v807_v45 = vadd.f32 %v802_v46, %v786_v7  ;;  %v824_v48 = vsel %vm465_vm9, %v822_v21, %v823_v35 }
 0x173   : > { %v881_v49 = vmul.f32 %v878_v59, %v874_v54  ;;  %v808_v50 = vadd.f32 %v804_v30, %v787_v42  ;;  %v826_v52 = vsel %vm465_vm9, %v823_v35, %v825_v37  ;;  %v839_v53 = vmul.f32 %v837_v57, %v832_v32 }
 0x174   : > { %v829_v55 = vadd.f32 %v824_v48, %v807_v45  ;;  %v858_v4 = vmul.f32 %v856_v58, %v1685_v61  ;;  %v873_v11 = vmul.f32 %v1685_v61, %v1588_v23  ;;  %v879_v56 = vmul.f32 %v878_v59, %v872_v15 }
 0x175   : > { %v830_v60 = vadd.f32 %v826_v52, %v808_v50  ;;  %v845_v17 = vrot.slane %v839_v53, 4  ;;  %v894_v0 = vmul.f32 %v1498_v19, %v1685_v61  ;;  %v931_v63 = vmul.f32 %v1212_v16, %v1617_v20 }
 0x176   : > { %v888_v13 = vrot.slane %v881_v49, 6  ;;  %v864_v9 = vrot.slane %v858_v4, 5  ;;  %v880_v47 = vmul.f32 %v878_v59, %v873_v11  ;;  %v885_v1 = vrot.slane %v879_v56, 6 }
 0x177   : > { %v846_v57 = vsel %vm477_vm10, %v844_v39, %v845_v17  ;;  %v848_v6 = vsel %vm477_vm10, %v845_v17, %v847_v43  ;;  %v895_v58 = vmul.f32 %v1506_v22, %v1689_v31  ;;  %v908_v23 = vmul.f32 %v1663_v14, %v1685_v61 }
 0x178   : > { %v851_v5 = vadd.f32 %v846_v57, %v829_v55  ;;  %v852_v7 = vadd.f32 %v848_v6, %v830_v60  ;;  %v865_v19 = vsel %vm516_vm11, %v863_v41, %v864_v9  ;;  %v867_v20 = vsel %vm516_vm11, %v864_v9, %v866_v44  ;;  %v1213_v41 = vld [vmem:[%s768_s16] ss:$0 sm:$0xff] }
 0x179   : > { %v886_v8 = vrot.slane %v880_v47, 6  ;;  %v900_v59 = vmul.f32 %v1682_v27, %v894_v0  ;;  %v909_v10 = vmul.f32 %v1663_v14, %v1689_v31  ;;  %v914_v12 = vrot.slane %v908_v23, 1 }
 0x17a   : > { %v870_v24 = vadd.f32 %v865_v19, %v851_v5  ;;  %v871_v25 = vadd.f32 %v867_v20, %v852_v7  ;;  %v923_v22 = vmul.f32 %v1685_v61, %v1517_v28  ;;  %v924_v26 = vmul.f32 %v1689_v31, %v1532_v36 }
 0x17b   : > { %v887_v29 = vsel %vm445_vm8, %v885_v1, %v886_v8  ;;  %v889_v32 = vsel %vm445_vm8, %v886_v8, %v888_v13  ;;  %v901_v18 = vmul.f32 %v1682_v27, %v895_v58  ;;  %v915_v33 = vrot.slane %v909_v10, 1 }
 0x17c   : > { %v892_v34 = vadd.f32 %v887_v29, %v870_v24  ;;  %v893_v30 = vadd.f32 %v889_v32, %v871_v25  ;;  %v929_v14 = vmul.f32 %v1212_v16, %v923_v22  ;;  %v930_v21 = vmul.f32 %v1212_v16, %v924_v26 }
 0x17d   : > { %v916_v35 = vsel %vm433_vm5, %v914_v12, %v915_v33  ;;  %v938_v37 = vrot.slane %v931_v63, 2  ;;  %v918_v27 = vsel %vm433_vm5, %v915_v33, %v917_v62 }
 0x17e   : > { %v902_v28 = vadd.f32 %v900_v59, %v892_v34  ;;  %v903_v36 = vadd.f32 %v901_v18, %v893_v30  ;;  %v935_v61 = vrot.slane %v929_v14, 2  ;;  %v936_v31 = vrot.slane %v930_v21, 2  ;;  %v1215_v59 = vld [vmem:[%s992_s19] ss:$0 sm:$0xff] }
 0x180   : > { %v921_v38 = vadd.f32 %v916_v35, %v902_v28  ;;  %v922_v39 = vadd.f32 %v918_v27, %v903_v36  ;;  %v937_v40 = vsel %vm465_vm9, %v935_v61, %v936_v31  ;;  %v939_v15 = vsel %vm465_vm9, %v936_v31, %v938_v37 }
 0x182   : > { %v942_v54 = vadd.f32 %v937_v40, %v921_v38  ;;  %v943_v42 = vadd.f32 %v939_v15, %v922_v39 }
 0x184   : > { %v950_v46 = vadd.f32 %v1213_v41, %v942_v54  ;;  %v951_v43 = vadd.f32 %v1213_v41, %v943_v42 }
 0x186   : > { %v952_v44 = vsel %vm613_vm12, %v950_v46, 0.0  ;;  %v953_v16 = vsel %vm613_vm12, %v951_v43, 0.0  ;;  %v962_v45 = vmul.f32 %v950_v46, %v950_v46  ;;  %v963_v48 = vmul.f32 %v951_v43, %v951_v43 }
 0x187   : > { %v954_v51 = vadd.f32 %v953_v16, %v952_v44 }
 0x188   : > { %v964_v62 = vsel %vm613_vm12, %v962_v45, 0.0  ;;  %v965_v49 = vsel %vm613_vm12, %v963_v48, 0.0 }
 0x189   : > { %v955_v50 = vrot.slane %v954_v51, 4  ;;  %v966_v52 = vadd.f32 %v965_v49, %v964_v62 }
 0x18b   : > { %v956_v53 = vadd.f32 %v955_v50, %v954_v51  ;;  %v967_v55 = vrot.slane %v966_v52, 4 }
 0x18d   : > { %v957_v4 = vrot.slane %v956_v53, 2  ;;  %v968_v11 = vadd.f32 %v967_v55, %v966_v52 }
 0x18f   : > { %v958_v56 = vadd.f32 %v957_v4, %v956_v53  ;;  %v969_v60 = vrot.slane %v968_v11, 2 }
 0x191   : > { %v959_v17 = vrot.slane %v958_v56, 1  ;;  %v970_v0 = vadd.f32 %v969_v60, %v968_v11 }
 0x193   : > { %v960_v63 = vadd.f32 %v959_v17, %v958_v56  ;;  %v971_v13 = vrot.slane %v970_v0, 1 }
 0x195   : > { %v961_v9 = vmul.f32 0.0625, %v960_v63  ;;  %v972_v47 = vadd.f32 %v971_v13, %v970_v0 }
 0x197   : > { %v973_v1 = vmul.f32 0.0625, %v972_v47  ;;  %v974_v57 = vmul.f32 %v961_v9, %v961_v9  ;;  %v976_v6 = vsub.f32 %v950_v46, %v961_v9  ;;  %v977_v58 = vsub.f32 %v951_v43, %v961_v9 }
 0x199   : > { %v975_v23 = vsub.f32 %v973_v1, %v974_v57 }
 0x19b   : > { %v978_v5 = vadd.f32 1e-05, %v975_v23 }
 0x19d   : > { %1316 = vrsqrt.f32 %v978_v5 }
 0x1a7   : > { %v1317_v7 = vpop.eup %1316 }
 0x1a8   : > { %v980_v19 = vmul.f32 %v1317_v7, %v976_v6  ;;  %v981_v20 = vmul.f32 %v1317_v7, %v977_v58 }
 0x1aa   : > { %v994_v8 = vpack.c.bf16 %v981_v20, %v980_v19 }
 0x1ac   : > { %1259 = vmatmul.mubr.msk.bf16.vlgmr.msra.gmra.mrb[0].mxu1 %vm613_vm12, %v994_v8 }
 0x27f   : > { %v1062_v10 = vpop.f32.mrb[0].mxu1 }
 0x280   : > { %v1063_v12 = vadd.f32 %v1215_v59, %v1062_v10  ;;  %v1260_v24 = vpop.f32.mrb[1].mxu1 }
 0x281   : > { %v1065_v25 = vpop.f32.mrb[2].mxu1 }
 0x282   : > { %v1079_v22 = vmul.f32 %v1063_v12, %v1063_v12  ;;  %v1066_v26 = vadd.f32 %v1215_v59, %v1065_v25  ;;  %v1261_v29 = vpop.f32.mrb[3].mxu1  ;;  %v1069_v32 = vsel %vm613_vm12, %v1063_v12, 0.0 }
 0x284   : > { %v1070_v18 = vsel %vm613_vm12, %v1066_v26, 0.0  ;;  %v1080_v33 = vmul.f32 %v1066_v26, %v1066_v26  ;;  %v1081_v30 = vsel %vm613_vm12, %v1079_v22, 0.0 }
 0x285   : > { %v1071_v34 = vadd.f32 %v1070_v18, %v1069_v32 }
 0x286   : > { %v1082_v14 = vsel %vm613_vm12, %v1080_v33, 0.0 }
 0x287   : > { %v1072_v21 = vrot.slane %v1071_v34, 4  ;;  %v1083_v35 = vadd.f32 %v1082_v14, %v1081_v30 }
 0x289   : > { %v1073_v37 = vadd.f32 %v1072_v21, %v1071_v34  ;;  %v1084_v28 = vrot.slane %v1083_v35, 4 }
 0x28b   : > { %v1074_v36 = vrot.slane %v1073_v37, 2  ;;  %v1085_v61 = vadd.f32 %v1084_v28, %v1083_v35 }
 0x28d   : > { %v1075_v31 = vadd.f32 %v1074_v36, %v1073_v37  ;;  %v1086_v27 = vrot.slane %v1085_v61, 2 }
 0x28f   : > { %v1076_v38 = vrot.slane %v1075_v31, 1  ;;  %v1087_v39 = vadd.f32 %v1086_v27, %v1085_v61 }
 0x291   : > { %v1077_v40 = vadd.f32 %v1076_v38, %v1075_v31  ;;  %v1088_v41 = vrot.slane %v1087_v39, 1 }
 0x293   : > { %v1078_v15 = vmul.f32 0.0625, %v1077_v40  ;;  %v1089_v54 = vadd.f32 %v1088_v41, %v1087_v39 }
 0x295   : > { %v1090_v42 = vmul.f32 0.0625, %v1089_v54  ;;  %v1091_v46 = vmul.f32 %v1078_v15, %v1078_v15  ;;  %v1093_v43 = vsub.f32 %v1063_v12, %v1078_v15  ;;  %v1094_v44 = vsub.f32 %v1066_v26, %v1078_v15 }
 0x297   : > { %v1092_v16 = vsub.f32 %v1090_v42, %v1091_v46 }
 0x299   : > { %v1095_v45 = vadd.f32 1e-05, %v1092_v16 }
 0x29b   : > { %1318 = vrsqrt.f32 %v1095_v45 }
 0x2a4   : > { %1106 = sbr.rel (%p1221_p7) target bundleno = 684 (0x2ac), region = 64 }
 0x2a5   : > { %v1319_v48 = vpop.eup %1318 }
 0x2a6   : > { %v1097_v51 = vmul.f32 %v1319_v48, %v1093_v43  ;;  %v1098_v62 = vmul.f32 %v1319_v48, %v1094_v44 }
 0x2a8   : > { %v1099_v49 = vadd.f32 %v1097_v51, %v1454_v2  ;;  %v1100_v50 = vadd.f32 %v1098_v62, %v1456_v3 }
 0x2aa   : > { %1101 = vst.msk [vmem:[#allocation2] sm:$0xff] %vm613_vm12, %v1099_v49  ;;  %1102 = vst.msk [vmem:[#allocation2 + $0x8] sm:$0xff] %vm613_vm12, %v1100_v50 }
 0x2ab   : > { %1107 = vst.msk [vmem:[%s1450_s22] sm:$0xff] %vm613_vm12, %v1099_v49  ;;  %1108 = vst.msk [vmem:[%s1450_s22 + $0x8] sm:$0xff] %vm613_vm12, %v1100_v50 }
 0x2ac PF: > { %s19_s13 = sadd.s32 1, %s1358_s13   ;;  %s1797_s30 = smov %s1350_s11 }
 0x2ad   : > { %p16_p8 = scmp.ge.s32.totalorder %s19_s13, 18   ;;  %s1798_s10 = smov %s1354_s12 }
 0x2ae   : > { %s1799_s11 = smov %s1802_s14  ;;  %s1800_s12 = smov %s1806_s15 }
 0x2af   :  { %18 = sbr.rel (!%p16_p8) target bundleno = 3 (0x3), region = 102 }

// kernel: generator_att_forward.19
= control target key start
LH: loop header
LB: loop body
LE: loop exit
PB: predicated region body
PF: predicated region fallthrough
CT: control target
= control target key end

     0   :  { %s636_s12 = smov 0   ;;  %s731_s0 = inlined_call_operand.vmem [shape: bf16[32,256], index: 0, kind: input, shape index: {}]   ;;  %s732_s1 = inlined_call_operand.vmem [shape: bf16[256,128], index: 1, kind: input, shape index: {}]   ;;  %s733_s2 = inlined_call_operand.vmem [shape: f32[1,128], index: 2, kind: input, shape index: {}]   ;;  %s734_s3 = inlined_call_operand.vmem [shape: f32[32,128], index: 3, kind: output, shape index: {}]  }
   0x1 LB: > { %s519_s13 = sadd.s32 4294967295, %s611_s12   ;;  %p523_p0 = scmp.ge.s32.totalorder %s611_s12, 1  ;;  %s611_s12 = sphi %s636_s12, %s13_s12  }
   0x2   : > { %p139_p1 = scmp.lt.s32.totalorder %s611_s12, 3 }
   0x4   : > { %p140_p2 = pnand %p523_p0, %p139_p1 }
   0x5   : > { %v584_v0 = vld [vmem:[%s732_s1 + $0x40] sm:$0xff] (!%p140_p2)   ;;  %s524_s16 = sshll.u32 (!%p140_p2), %s519_s13, 1  ;;  %v586_v2 = vld [vmem:[%s732_s1 + $0x48] sm:$0xff] (!%p140_p2)   ;;  %v588_v4 = vld [vmem:[%s732_s1 + $0x50] sm:$0xff] (!%p140_p2)   ;;  %s613_s28 = smov (!%p140_p2), 32   ;;  %v447_v63 = vlaneseq (!%p140_p2)  ;;  %vm428_vm0 = vcmask (!%p140_p2), 261120  }
   0x6   : > { %143 = sbr.rel (%p140_p2) target bundleno = 547 (0x223), region = 32  ;;  %v585_v1 = vld [vmem:[%s732_s1] sm:$0xff] (!%p140_p2)   ;;  %551 = vmatprep.subr.bf16.mxu0 (!%p140_p2), %v584_v0  ;;  %v587_v3 = vld [vmem:[%s732_s1 + $0x8] sm:$0xff] (!%p140_p2)   ;;  %p165_p3 = scmp.lt.s32.totalorder (!%p140_p2), %s524_s16, 3  ;;  %v589_v5 = vld [vmem:[%s732_s1 + $0x10] sm:$0xff] (!%p140_p2)   ;;  %vm430_vm1 = vcmask (!%p140_p2), 523264  }
   0x7   : > { %552 = vmatpush3.bf16.msra.mxu0 (!%p140_p2), %v585_v1  ;;  %v590_v6 = vld [vmem:[%s732_s1 + $0x58] sm:$0xff] (!%p140_p2)   ;;  %v592_v8 = vld [vmem:[%s732_s1 + $0x60] sm:$0xff] (!%p140_p2)   ;;  %v594_v10 = vld [vmem:[%s732_s1 + $0x68] sm:$0xff] (!%p140_p2)   ;;  %s614_s29 = smov (!%p140_p2), 96   ;;  %s615_s30 = smov (!%p140_p2), 64   ;;  %v448_v0 = vshrl.u32 (!%p140_p2), %v447_v63, 7 }
   0x8   : > { %553 = vmatprep.subr.bf16.mxu0 (!%p140_p2), %v586_v2  ;;  %v591_v7 = vld [vmem:[%s732_s1 + $0x18] sm:$0xff] (!%p140_p2)   ;;  %v593_v9 = vld [vmem:[%s732_s1 + $0x20] sm:$0xff] (!%p140_p2)   ;;  %v595_v12 = vld [vmem:[%s732_s1 + $0x28] sm:$0xff] (!%p140_p2)   ;;  %vm432_vm2 = vcmask (!%p140_p2), 785408  }
   0x9   : > { %v596_v13 = vld [vmem:[%s732_s1 + $0x70] sm:$0xff] (!%p140_p2)   ;;  %v598_v15 = vld [vmem:[%s732_s1 + $0x78] sm:$0xff] (!%p140_p2)   ;;  %v529_v19 = vld [vmem:[%s733_s2] ss:$0 sm:$0xff] (!%p140_p2) }
   0xa   : > { %v597_v14 = vld [vmem:[%s732_s1 + $0x30] sm:$0xff] (!%p140_p2)   ;;  %v599_v16 = vld [vmem:[%s732_s1 + $0x38] sm:$0xff] (!%p140_p2)  }
   0xb   : > { %554 = vmatpush3.bf16.msra.mxu0 (!%p140_p2), %v587_v3 }
   0xc   : > { %555 = vmatprep.subr.bf16.mxu0 (!%p140_p2), %v588_v4  ;;  %v449_v4 = vsub.s32 (!%p140_p2), 0, %v448_v0 }
   0xd   : > { %s736_s16 = smov (!%p165_p3, %s524_s16), 3 }
   0xe   : > { %s550_s4 = sshll.u32 %s736_s16, 3 }
   0xf   : > { %556 = vmatpush3.bf16.msra.mxu0 %v589_v5  ;;  %s169_s9 = scalar_lea.vmem %s731_s0, %s550_s4  ;;  %s175_s7 = scalar_lea.vmem %s734_s3, %s550_s4 }
  0x10   : > { %557 = vmatprep.subr.bf16.mxu0 %v590_v6  ;;  %v602_v11 = vld [vmem:[%s169_s9 + $0x4] ss:$8 sps:$4 sm:$0xff]   ;;  %v600_v17 = vld [vmem:[%s169_s9] ss:$8 sps:$4 sm:$0xff]  }
  0x11   : > { %357 = vmatprep.mubr.bf16.mxu0 %v602_v11 }
  0x13   : > { %558 = vmatpush3.bf16.msra.mxu0 %v591_v7 }
  0x14   : > { %559 = vmatprep.subr.bf16.mxu0 %v592_v8 }
  0x17   : > { %560 = vmatpush3.bf16.msra.mxu0 %v593_v9 }
  0x18   : > { %561 = vmatprep.subr.bf16.mxu0 %v594_v10 }
  0x1b   : > { %562 = vmatpush3.bf16.msra.mxu0 %v595_v12 }
  0x1c   : > { %563 = vmatprep.subr.bf16.mxu0 %v596_v13 }
  0x1f   : > { %564 = vmatpush3.bf16.msra.mxu0 %v597_v14 }
  0x20   : > { %565 = vmatprep.subr.bf16.mxu0 %v598_v15 }
  0x23   : > { %566 = vmatpush3.bf16.msra.mxu0 %v599_v16 }
  0x26   : > { %358 = vmatmul.mubr.bf16.vlgmr.msra.gmra.mrb[0].mxu0 %v600_v17 }
  0xf9   : > { %v567_v18 = vpop.f32.mrb[0].mxu0 }
  0xfa   : > { %v568_v20 = vpop.f32.mrb[1].mxu0 }
  0xfb   : > { %v569_v21 = vadd.f32 %v568_v20, %v567_v18  ;;  %v570_v22 = vpop.f32.mrb[2].mxu0 }
  0xfc   : > { %v571_v23 = vpop.f32.mrb[3].mxu0 }
  0xfd   : > { %v703_v24 = vadd.f32 %v569_v21, %v529_v19  ;;  %v572_v25 = vadd.f32 %v571_v23, %v570_v22 }
  0xff   : > { %v705_v26 = vadd.f32 %v572_v25, %v529_v19  ;;  %v373_v27 = vmul.f32 %v703_v24, %v703_v24 }
 0x101   : > { %v366_v28 = vadd.f32 %v705_v26, %v703_v24  ;;  %v374_v29 = vmul.f32 %v705_v26, %v705_v26 }
 0x103   : > { %v367_v30 = vrot.slane %v366_v28, 4  ;;  %v375_v31 = vadd.f32 %v374_v29, %v373_v27 }
 0x105   : > { %v368_v32 = vadd.f32 %v367_v30, %v366_v28  ;;  %v376_v33 = vrot.slane %v375_v31, 4 }
 0x107   : > { %v369_v34 = vrot.slane %v368_v32, 2  ;;  %v377_v35 = vadd.f32 %v376_v33, %v375_v31 }
 0x109   : > { %v370_v36 = vadd.f32 %v369_v34, %v368_v32  ;;  %v378_v37 = vrot.slane %v377_v35, 2 }
 0x10b   : > { %v371_v38 = vrot.slane %v370_v36, 1  ;;  %v379_v39 = vadd.f32 %v378_v37, %v377_v35 }
 0x10d   : > { %v372_v40 = vadd.f32 %v371_v38, %v370_v36  ;;  %v380_v41 = vrot.slane %v379_v39, 1 }
 0x10f   : > { %392 = vrot.lane.b32.xlu1 %v372_v40, %s613_s28  ;;  %384 = vrot.lane.b32.xlu0 %v372_v40, %s614_s29  ;;  %v381_v42 = vadd.f32 %v380_v41, %v379_v39 }
 0x113   : > { %398 = vrot.lane.b32.xlu1 %v381_v42, %s614_s29  ;;  %388 = vrot.lane.b32.xlu0 %v372_v40, %s615_s30 }
 0x117   : > { %406 = vrot.lane.b32.xlu1 %v381_v42, %s613_s28  ;;  %402 = vrot.lane.b32.xlu0 %v381_v42, %s615_s30 }
 0x181   : > { %v393_v43 = vpop.permute.xlu1 %392  ;;  %v385_v44 = vpop.permute.xlu0 %384 }
 0x182   : > { %v387_v45 = vadd.f32 %v385_v44, %v372_v40 }
 0x185   : > { %v399_v46 = vpop.permute.xlu1 %398  ;;  %v389_v47 = vpop.permute.xlu0 %388 }
 0x186   : > { %v391_v48 = vadd.f32 %v389_v47, %v387_v45  ;;  %v401_v49 = vadd.f32 %v399_v46, %v381_v42 }
 0x188   : > { %v395_v50 = vadd.f32 %v393_v43, %v391_v48 }
 0x189   : > { %v403_v51 = vpop.permute.xlu0 %402  ;;  %v407_v54 = vpop.permute.xlu1 %406 }
 0x18a   : > { %v410_v52 = vmul.f32 0.015625, %v395_v50  ;;  %v405_v53 = vadd.f32 %v403_v51, %v401_v49 }
 0x18c   : > { %v409_v55 = vadd.f32 %v407_v54, %v405_v53  ;;  %v412_v56 = vmul.f32 %v410_v52, %v410_v52  ;;  %v416_v61 = vsub.f32 0.0, %v410_v52 }
 0x18e   : > { %v411_v57 = vmul.f32 0.015625, %v409_v55 }
 0x190   : > { %v413_v58 = vsub.f32 %v411_v57, %v412_v56 }
 0x192   : > { %v414_v59 = vadd.f32 1e-05, %v413_v58 }
 0x194   : > { %603 = vrsqrt.f32 %v414_v59 }
 0x19e   : > { %v604_v60 = vpop.eup %603 }
 0x19f   : > { %422 = vrot.lane.b32.xlu1 %v604_v60, %s615_s30  ;;  %419 = vrot.lane.b32.xlu0 %v604_v60, %s613_s28  ;;  %v417_v62 = vmul.f32 %v604_v60, %v416_v61 }
 0x1a3   : > { %425 = vrot.lane.b32.xlu0 %v604_v60, %s614_s29  ;;  %435 = vrot.lane.b32.xlu1 %v417_v62, %s613_s28 }
 0x1a7   : > { %438 = vrot.lane.b32.xlu0 %v417_v62, %s615_s30  ;;  %441 = vrot.lane.b32.xlu1 %v417_v62, %s614_s29 }
 0x211   : > { %v423_v1 = vpop.permute.xlu1 %422  ;;  %v420_v2 = vpop.permute.xlu0 %419 }
 0x212   : > { %v429_v3 = vsel %vm428_vm0, %v604_v60, %v420_v2 }
 0x213   : > { %v431_v5 = vsel %vm430_vm1, %v429_v3, %v423_v1 }
 0x215   : > { %v426_v6 = vpop.permute.xlu0 %425  ;;  %v436_v7 = vpop.permute.xlu1 %435 }
 0x216   : > { %v433_v8 = vsel %vm432_vm2, %v431_v5, %v426_v6  ;;  %v444_v10 = vsel %vm428_vm0, %v417_v62, %v436_v7 }
 0x217   : > { %v450_v9 = vrot.slane %v433_v8, %v449_v4 }
 0x219   : > { %v439_v11 = vpop.permute.xlu0 %438  ;;  %v442_v12 = vpop.permute.xlu1 %441  ;;  %v451_v15 = vmul.f32 %v450_v9, %v703_v24  ;;  %v452_v16 = vmul.f32 %v450_v9, %v705_v26 }
 0x21a   : > { %v445_v13 = vsel %vm430_vm1, %v444_v10, %v439_v11 }
 0x21b   : > { %v446_v14 = vsel %vm432_vm2, %v445_v13, %v442_v12 }
 0x21c   : > { %v456_v17 = vrot.slane %v446_v14, %v449_v4 }
 0x21e   : > { %v457_v18 = vadd.f32 %v456_v17, %v451_v15  ;;  %v458_v19 = vadd.f32 %v456_v17, %v452_v16 }
 0x220   : > { %v459_v20 = vmax.f32 %v457_v18, 0.0  ;;  %v460_v21 = vmax.f32 %v458_v19, 0.0 }
 0x222   : > { %461 = vst [vmem:[%s175_s7] sm:$0xff] %v459_v20  ;;  %462 = vst [vmem:[%s175_s7 + $0x8] sm:$0xff] %v460_v21 }
 0x223 PF: > { %s13_s12 = sadd.s32 1, %s611_s12  }
 0x224   : > { %p10_p4 = scmp.ge.s32.totalorder %s13_s12, 4  }
 0x226   :  { %12 = sbr.rel (!%p10_p4) target bundleno = 1 (0x1), region = 62 }

// kernel: generator_att_forward.20
= control target key start
LH: loop header
LB: loop body
LE: loop exit
PB: predicated region body
PF: predicated region fallthrough
CT: control target
= control target key end

     0   :  { %s693_s12 = smov 0   ;;  %s819_s0 = inlined_call_operand.vmem [shape: bf16[128,128], index: 0, kind: input, shape index: {}]   ;;  %s820_s1 = inlined_call_operand.vmem [shape: bf16[128,64], index: 1, kind: input, shape index: {}]   ;;  %s821_s2 = inlined_call_operand.vmem [shape: f32[1,64], index: 2, kind: input, shape index: {}]   ;;  %s822_s3 = inlined_call_operand.vmem [shape: f32[128,64], index: 3, kind: output, shape index: {}]  }
   0x1 LB: > { %s555_s13 = sadd.s32 4294967295, %s665_s12   ;;  %p559_p0 = scmp.ge.s32.totalorder %s665_s12, 1  ;;  %s665_s12 = sphi %s693_s12, %s13_s12  }
   0x2   : > { %p138_p1 = scmp.lt.s32.totalorder %s665_s12, 3 }
   0x4   : > { %p139_p2 = pnand %p559_p0, %p138_p1 }
   0x5   : > { %v645_v0 = vld [vmem:[%s820_s1] sm:$0xff] (!%p139_p2)   ;;  %s560_s16 = sshll.u32 (!%p139_p2), %s555_s13, 3  ;;  %v646_v1 = vld [vmem:[%s820_s1 + $0x8] sm:$0xff] (!%p139_p2)   ;;  %v647_v2 = vld [vmem:[%s820_s1 + $0x10] sm:$0xff] (!%p139_p2)   ;;  %vm343_vm0 = vcmask (!%p139_p2), 523264   ;;  %s667_s10 = smov (!%p139_p2), 80  }
   0x6   : > { %142 = sbr.rel (%p139_p2) target bundleno = 561 (0x231), region = 32  ;;  %p163_p3 = scmp.lt.s32.totalorder (!%p139_p2), %s560_s16, 15  ;;  %591 = vmatprep.subr.bf16.mxu0 (!%p139_p2), %v645_v0  ;;  %615 = vmatprep.subr.bf16.mxu1 (!%p139_p2), %v645_v0  ;;  %v648_v3 = vld [vmem:[%s820_s1 + $0x18] sm:$0xff] (!%p139_p2)   ;;  %v649_v6 = vld [vmem:[%s820_s1 + $0x20] sm:$0xff] (!%p139_p2)   ;;  %v650_v7 = vld [vmem:[%s820_s1 + $0x28] sm:$0xff] (!%p139_p2)   ;;  %vm440_vm1 = vcmask (!%p139_p2), 130048  }
   0x7   : > { %592 = vmatpush3.bf16.msra.mxu0 (!%p139_p2), %v645_v0  ;;  %623 = vmatpush3.bf16.msra.mxu1 (!%p139_p2), %v645_v0  ;;  %v651_v8 = vld [vmem:[%s820_s1 + $0x30] sm:$0xff] (!%p139_p2)   ;;  %v652_v9 = vld [vmem:[%s820_s1 + $0x38] sm:$0xff] (!%p139_p2)   ;;  %v564_v12 = vld [vmem:[%s821_s2] ss:$0 sm:$0xff] (!%p139_p2)  ;;  %s668_s11 = smov (!%p139_p2), 112   ;;  %s669_s13 = smov (!%p139_p2), 96  }
   0x8   : > { %593 = vmatprep.subr.bf16.mxu0 (!%p139_p2), %v646_v1  ;;  %616 = vmatprep.subr.bf16.mxu1 (!%p139_p2), %v646_v1  ;;  %s670_s14 = smov (!%p139_p2), 32   ;;  %s671_s15 = smov (!%p139_p2), 16   ;;  %vm442_vm2 = vcmask (!%p139_p2), 261120   ;;  %vm444_vm3 = vcmask (!%p139_p2), 392192  }
   0x9   : > { %s672_s17 = smov (!%p139_p2), 48  }
   0xb   : > { %594 = vmatpush3.bf16.msra.mxu0 (!%p139_p2), %v646_v1  ;;  %624 = vmatpush3.bf16.msra.mxu1 (!%p139_p2), %v646_v1 }
   0xc   : > { %595 = vmatprep.subr.bf16.mxu0 (!%p139_p2), %v647_v2  ;;  %617 = vmatprep.subr.bf16.mxu1 (!%p139_p2), %v647_v2 }
   0xd   : > { %s824_s16 = smov (!%p163_p3, %s560_s16), 15 }
   0xe   : > { %s561_s21 = sshll.u32 %s824_s16, 2  ;;  %s563_s18 = sshll.u32 %s824_s16, 3 }
   0xf   : > { %s716_s24 = scalar_lea.vmem %s819_s0, %s561_s21  ;;  %596 = vmatpush3.bf16.msra.mxu0 %v647_v2  ;;  %625 = vmatpush3.bf16.msra.mxu1 %v647_v2  ;;  %s172_s20 = scalar_lea.vmem %s822_s3, %s563_s18 }
  0x10   : > { %v653_v4 = vld [vmem:[%s716_s24] sm:$0xff]   ;;  %v655_v5 = vld [vmem:[%s716_s24 + $0x10] sm:$0xff]   ;;  %597 = vmatprep.subr.bf16.mxu0 %v648_v3  ;;  %618 = vmatprep.subr.bf16.mxu1 %v648_v3  ;;  %v654_v10 = vld [vmem:[%s716_s24 + $0x8] sm:$0xff]  }
  0x11   : > { %607 = vmatprep.mubr.bf16.mxu0 %v653_v4  ;;  %611 = vmatprep.mubr.bf16.mxu1 %v655_v5  ;;  %v656_v11 = vld [vmem:[%s716_s24 + $0x18] sm:$0xff]  }
  0x13   : > { %598 = vmatpush3.bf16.msra.mxu0 %v648_v3  ;;  %626 = vmatpush3.bf16.msra.mxu1 %v648_v3 }
  0x14   : > { %599 = vmatprep.subr.bf16.mxu0 %v649_v6  ;;  %619 = vmatprep.subr.bf16.mxu1 %v649_v6 }
  0x17   : > { %600 = vmatpush3.bf16.msra.mxu0 %v649_v6  ;;  %627 = vmatpush3.bf16.msra.mxu1 %v649_v6 }
  0x18   : > { %601 = vmatprep.subr.bf16.mxu0 %v650_v7  ;;  %620 = vmatprep.subr.bf16.mxu1 %v650_v7 }
  0x1b   : > { %602 = vmatpush3.bf16.msra.mxu0 %v650_v7  ;;  %628 = vmatpush3.bf16.msra.mxu1 %v650_v7 }
  0x1c   : > { %603 = vmatprep.subr.bf16.mxu0 %v651_v8  ;;  %621 = vmatprep.subr.bf16.mxu1 %v651_v8 }
  0x1f   : > { %604 = vmatpush3.bf16.msra.mxu0 %v651_v8  ;;  %629 = vmatpush3.bf16.msra.mxu1 %v651_v8 }
  0x20   : > { %605 = vmatprep.subr.bf16.mxu0 %v652_v9  ;;  %622 = vmatprep.subr.bf16.mxu1 %v652_v9 }
  0x23   : > { %606 = vmatpush3.bf16.msra.mxu0 %v652_v9  ;;  %630 = vmatpush3.bf16.msra.mxu1 %v652_v9 }
  0x26   : > { %608 = vmatmul.mubr.bf16.vlgmr.msra.gmra.mrb[0].mxu0 %v654_v10  ;;  %612 = vmatmul.mubr.bf16.vlgmr.msra.gmra.mrb[0].mxu1 %v656_v11 }
  0xf9   : > { %v609_v13 = vpop.f32.mrb[0].mxu0  ;;  %v613_v14 = vpop.f32.mrb[0].mxu1 }
  0xfa   : > { %v312_v15 = vpop.f32.mrb[1].mxu0  ;;  %v328_v16 = vpop.f32.mrb[1].mxu1  ;;  %v740_v17 = vadd.f32 %v609_v13, %v564_v12  ;;  %v773_v42 = vadd.f32 %v613_v14, %v564_v12 }
  0xfb   : > { %v742_v18 = vadd.f32 %v564_v12, %v312_v15  ;;  %v610_v19 = vpop.f32.mrb[2].mxu0  ;;  %v614_v20 = vpop.f32.mrb[2].mxu1  ;;  %v750_v26 = vadd.f32 %v564_v12, %v328_v16 }
  0xfc   : > { %v744_v21 = vadd.f32 %v610_v19, %v564_v12  ;;  %v315_v22 = vpop.f32.mrb[3].mxu0  ;;  %v331_v23 = vpop.f32.mrb[3].mxu1  ;;  %v367_v27 = vmul.f32 %v740_v17, %v740_v17  ;;  %v347_v31 = vsel %vm343_vm0, %v740_v17, 0.0  ;;  %v779_v48 = vadd.f32 %v614_v20, %v564_v12 }
  0xfd   : > { %v365_v24 = vmul.f32 %v742_v18, %v742_v18  ;;  %v748_v25 = vadd.f32 %v564_v12, %v315_v22  ;;  %v344_v28 = vsel %vm343_vm0, %v742_v18, 0.0  ;;  %v369_v36 = vmul.f32 %v750_v26, %v750_v26 }
  0xfe   : > { %v368_v32 = vmul.f32 %v744_v21, %v744_v21  ;;  %v768_v37 = vadd.f32 %v564_v12, %v331_v23  ;;  %v376_v40 = vsel %vm343_vm0, %v367_v27, 0.0  ;;  %v349_v41 = vsel %vm343_vm0, %v744_v21, 0.0 }
  0xff   : > { %v345_v29 = vsel %vm343_vm0, %v748_v25, 0.0  ;;  %v366_v30 = vmul.f32 %v748_v25, %v748_v25  ;;  %v373_v34 = vsel %vm343_vm0, %v365_v24, 0.0  ;;  %v351_v43 = vsel %vm343_vm0, %v750_v26, 0.0 }
 0x100   : > { %v346_v33 = vadd.f32 %v345_v29, %v344_v28  ;;  %v378_v46 = vsel %vm343_vm0, %v368_v32, 0.0  ;;  %v380_v47 = vsel %vm343_vm0, %v369_v36, 0.0  ;;  %v370_v49 = vmul.f32 %v768_v37, %v768_v37 }
 0x101   : > { %v374_v35 = vsel %vm343_vm0, %v366_v30, 0.0  ;;  %v371_v52 = vmul.f32 %v773_v42, %v773_v42  ;;  %v353_v53 = vsel %vm343_vm0, %v768_v37, 0.0  ;;  %v355_v56 = vsel %vm343_vm0, %v773_v42, 0.0 }
 0x102   : > { %v348_v38 = vadd.f32 %v347_v31, %v346_v33  ;;  %v375_v39 = vadd.f32 %v374_v35, %v373_v34  ;;  %v372_v57 = vmul.f32 %v779_v48, %v779_v48  ;;  %v382_v58 = vsel %vm343_vm0, %v370_v49, 0.0 }
 0x103   : > { %v384_v61 = vsel %vm343_vm0, %v371_v52, 0.0  ;;  %v357_v62 = vsel %vm343_vm0, %v779_v48, 0.0 }
 0x104   : > { %v377_v44 = vadd.f32 %v376_v40, %v375_v39  ;;  %v350_v45 = vadd.f32 %v349_v41, %v348_v38  ;;  %v386_v1 = vsel %vm343_vm0, %v372_v57, 0.0  ;;  %v459_v41 = vlaneseq }
 0x106   : > { %v352_v50 = vadd.f32 %v351_v43, %v350_v45  ;;  %v379_v51 = vadd.f32 %v378_v46, %v377_v44  ;;  %v460_v43 = vshrl.u32 %v459_v41, 7 }
 0x108   : > { %v381_v54 = vadd.f32 %v380_v47, %v379_v51  ;;  %v354_v55 = vadd.f32 %v353_v53, %v352_v50  ;;  %v461_v47 = vsub.s32 0, %v460_v43 }
 0x10a   : > { %v356_v59 = vadd.f32 %v355_v56, %v354_v55  ;;  %v383_v60 = vadd.f32 %v382_v58, %v381_v54 }
 0x10c   : > { %v358_v63 = vadd.f32 %v357_v62, %v356_v59  ;;  %v385_v0 = vadd.f32 %v384_v61, %v383_v60 }
 0x10e   : > { %v359_v2 = vrot.slane %v358_v63, 4  ;;  %v387_v3 = vadd.f32 %v386_v1, %v385_v0 }
 0x110   : > { %v360_v4 = vadd.f32 %v359_v2, %v358_v63  ;;  %v388_v5 = vrot.slane %v387_v3, 4 }
 0x112   : > { %v361_v6 = vrot.slane %v360_v4, 2  ;;  %v389_v7 = vadd.f32 %v388_v5, %v387_v3 }
 0x114   : > { %v362_v8 = vadd.f32 %v361_v6, %v360_v4  ;;  %v390_v9 = vrot.slane %v389_v7, 2 }
 0x116   : > { %v363_v10 = vrot.slane %v362_v8, 1  ;;  %v391_v11 = vadd.f32 %v390_v9, %v389_v7 }
 0x118   : > { %v364_v12 = vadd.f32 %v363_v10, %v362_v8  ;;  %v392_v13 = vrot.slane %v391_v11, 1 }
 0x11a   : > { %404 = vrot.lane.b32.xlu1 %v364_v12, %s667_s10  ;;  %396 = vrot.lane.b32.xlu0 %v364_v12, %s668_s11  ;;  %v393_v14 = vadd.f32 %v392_v13, %v391_v11 }
 0x11e   : > { %410 = vrot.lane.b32.xlu1 %v393_v14, %s668_s11  ;;  %400 = vrot.lane.b32.xlu0 %v364_v12, %s669_s13 }
 0x122   : > { %418 = vrot.lane.b32.xlu1 %v393_v14, %s667_s10  ;;  %414 = vrot.lane.b32.xlu0 %v393_v14, %s669_s13 }
 0x18c   : > { %v405_v15 = vpop.permute.xlu1 %404  ;;  %v397_v16 = vpop.permute.xlu0 %396 }
 0x18d   : > { %v399_v19 = vadd.f32 %v397_v16, %v364_v12 }
 0x190   : > { %v411_v20 = vpop.permute.xlu1 %410  ;;  %v401_v22 = vpop.permute.xlu0 %400 }
 0x191   : > { %v403_v23 = vadd.f32 %v401_v22, %v399_v19  ;;  %v413_v24 = vadd.f32 %v411_v20, %v393_v14 }
 0x193   : > { %v407_v27 = vadd.f32 %v405_v15, %v403_v23 }
 0x194   : > { %v415_v28 = vpop.permute.xlu0 %414  ;;  %v419_v31 = vpop.permute.xlu1 %418 }
 0x195   : > { %v422_v29 = vmul.f32 0.00390625, %v407_v27  ;;  %v417_v30 = vadd.f32 %v415_v28, %v413_v24 }
 0x197   : > { %v421_v32 = vadd.f32 %v419_v31, %v417_v30  ;;  %v424_v33 = vmul.f32 %v422_v29, %v422_v29  ;;  %v428_v39 = vsub.f32 0.0, %v422_v29 }
 0x199   : > { %v423_v34 = vmul.f32 0.00390625, %v421_v32 }
 0x19b   : > { %v425_v35 = vsub.f32 %v423_v34, %v424_v33 }
 0x19d   : > { %v426_v36 = vadd.f32 1e-05, %v425_v35 }
 0x19f   : > { %657 = vrsqrt.f32 %v426_v36 }
 0x1a9   : > { %v658_v38 = vpop.eup %657 }
 0x1aa   : > { %434 = vrot.lane.b32.xlu1 %v658_v38, %s670_s14  ;;  %431 = vrot.lane.b32.xlu0 %v658_v38, %s671_s15  ;;  %v429_v40 = vmul.f32 %v658_v38, %v428_v39 }
 0x1ae   : > { %437 = vrot.lane.b32.xlu0 %v658_v38, %s672_s17  ;;  %447 = vrot.lane.b32.xlu1 %v429_v40, %s671_s15 }
 0x1b2   : > { %450 = vrot.lane.b32.xlu0 %v429_v40, %s670_s14  ;;  %453 = vrot.lane.b32.xlu1 %v429_v40, %s672_s17 }
 0x21c   : > { %v435_v44 = vpop.permute.xlu1 %434  ;;  %v432_v45 = vpop.permute.xlu0 %431 }
 0x21d   : > { %v441_v46 = vsel %vm440_vm1, %v658_v38, %v432_v45 }
 0x21e   : > { %v443_v49 = vsel %vm442_vm2, %v441_v46, %v435_v44 }
 0x220   : > { %v438_v50 = vpop.permute.xlu0 %437  ;;  %v448_v51 = vpop.permute.xlu1 %447 }
 0x221   : > { %v445_v52 = vsel %vm444_vm3, %v443_v49, %v438_v50  ;;  %v456_v56 = vsel %vm440_vm1, %v429_v40, %v448_v51 }
 0x222   : > { %v462_v53 = vrot.slane %v445_v52, %v461_v47 }
 0x224   : > { %v451_v54 = vpop.permute.xlu0 %450  ;;  %v454_v55 = vpop.permute.xlu1 %453  ;;  %v463_v58 = vmul.f32 %v462_v53, %v742_v18  ;;  %v464_v60 = vmul.f32 %v462_v53, %v748_v25  ;;  %v465_v61 = vmul.f32 %v462_v53, %v740_v17  ;;  %v466_v62 = vmul.f32 %v462_v53, %v744_v21 }
 0x225   : > { %v457_v57 = vsel %vm442_vm2, %v456_v56, %v451_v54  ;;  %v467_v0 = vmul.f32 %v462_v53, %v750_v26  ;;  %v468_v1 = vmul.f32 %v462_v53, %v768_v37  ;;  %v469_v2 = vmul.f32 %v462_v53, %v773_v42 }
 0x226   : > { %v458_v59 = vsel %vm444_vm3, %v457_v57, %v454_v55  ;;  %v470_v3 = vmul.f32 %v462_v53, %v779_v48 }
 0x227   : > { %v474_v63 = vrot.slane %v458_v59, %v461_v47 }
 0x229   : > { %v475_v4 = vadd.f32 %v474_v63, %v463_v58  ;;  %v476_v5 = vadd.f32 %v474_v63, %v464_v60  ;;  %v477_v18 = vadd.f32 %v474_v63, %v465_v61  ;;  %v478_v6 = vadd.f32 %v474_v63, %v466_v62 }
 0x22a   : > { %v479_v17 = vadd.f32 %v474_v63, %v467_v0  ;;  %v480_v25 = vadd.f32 %v474_v63, %v468_v1  ;;  %v481_v21 = vadd.f32 %v474_v63, %v469_v2  ;;  %v482_v7 = vadd.f32 %v474_v63, %v470_v3 }
 0x22b   : > { %v483_v8 = vmax.f32 %v475_v4, 0.0  ;;  %v484_v26 = vmax.f32 %v476_v5, 0.0  ;;  %v485_v9 = vmax.f32 %v477_v18, 0.0  ;;  %v486_v37 = vmax.f32 %v478_v6, 0.0 }
 0x22c   : > { %v487_v10 = vmax.f32 %v479_v17, 0.0  ;;  %v488_v42 = vmax.f32 %v480_v25, 0.0  ;;  %v489_v11 = vmax.f32 %v481_v21, 0.0  ;;  %v490_v48 = vmax.f32 %v482_v7, 0.0 }
 0x22d   : > { %491 = vst.msk [vmem:[%s172_s20] sm:$0xff] %vm343_vm0, %v483_v8  ;;  %492 = vst.msk [vmem:[%s172_s20 + $0x8] sm:$0xff] %vm343_vm0, %v484_v26 }
 0x22e   : > { %493 = vst.msk [vmem:[%s172_s20 + $0x10] sm:$0xff] %vm343_vm0, %v485_v9  ;;  %494 = vst.msk [vmem:[%s172_s20 + $0x18] sm:$0xff] %vm343_vm0, %v486_v37 }
 0x22f   : > { %495 = vst.msk [vmem:[%s172_s20 + $0x20] sm:$0xff] %vm343_vm0, %v487_v10  ;;  %496 = vst.msk [vmem:[%s172_s20 + $0x28] sm:$0xff] %vm343_vm0, %v488_v42 }
 0x230   : > { %497 = vst.msk [vmem:[%s172_s20 + $0x30] sm:$0xff] %vm343_vm0, %v489_v11  ;;  %498 = vst.msk [vmem:[%s172_s20 + $0x38] sm:$0xff] %vm343_vm0, %v490_v48 }
 0x231 PF: > { %s13_s12 = sadd.s32 1, %s665_s12  }
 0x232   : > { %p10_p4 = scmp.ge.s32.totalorder %s13_s12, 4  }
 0x234   :  { %12 = sbr.rel (!%p10_p4) target bundleno = 1 (0x1), region = 62 }

// kernel: generator_att_forward.21
= control target key start
LH: loop header
LB: loop body
LE: loop exit
PB: predicated region body
PF: predicated region fallthrough
CT: control target
= control target key end

     0   :  { %s2885_s12 = smov 0   ;;  %s3490_s0 = inlined_call_operand.vmem [shape: bf16[512,784], index: 0, kind: input, shape index: {}]   ;;  %s3491_s1 = inlined_call_operand.vmem [shape: bf16[784,27], index: 1, kind: input, shape index: {}]   ;;  %s3492_s2 = inlined_call_operand.vmem [shape: f32[1,27], index: 2, kind: input, shape index: {}]   ;;  %s3493_s3 = inlined_call_operand.vmem [shape: f32[512,27], index: 3, kind: output, shape index: {}]  }
   0x1 LB: > { %s2047_s13 = sadd.s32 4294967295, %s2863_s12   ;;  %p2051_p0 = scmp.ge.s32.totalorder %s2863_s12, 1  ;;  %s2863_s12 = sphi %s2885_s12, %s13_s12  }
   0x2   : > { %p139_p1 = scmp.lt.s32.totalorder %s2863_s12, 3 }
   0x4   : > { %p140_p2 = pnand %p2051_p0, %p139_p1 }
   0x5   : > { %v2648_v0 = vld [vmem:[%s3491_s1 + $0x40] sm:$0xff] (!%p140_p2)   ;;  %s2052_s16 = sshll.u32 (!%p140_p2), %s2047_s13, 5  ;;  %v2650_v2 = vld [vmem:[%s3491_s1 + $0x48] sm:$0xff] (!%p140_p2)   ;;  %v2652_v4 = vld [vmem:[%s3491_s1 + $0x50] sm:$0xff] (!%p140_p2)   ;;  %vm1265_vm0 = vcmask (!%p140_p2), 130048   ;;  %vm1958_vm1 = vcmask (!%p140_p2), 220160  }
   0x6   : > { %143 = sbr.rel (%p140_p2) target bundleno = 476 (0x1dc), region = 32  ;;  %v2649_v1 = vld [vmem:[%s3491_s1] sm:$0xff] (!%p140_p2)   ;;  %2236 = vmatprep.subr.bf16.mxu0 (!%p140_p2), %v2648_v0  ;;  %2623 = vmatprep.subr.bf16.mxu1 (!%p140_p2), %v2648_v0  ;;  %p165_p3 = scmp.lt.s32.totalorder (!%p140_p2), %s2052_s16, 63  ;;  %v2651_v3 = vld [vmem:[%s3491_s1 + $0x8] sm:$0xff] (!%p140_p2)   ;;  %v2653_v5 = vld [vmem:[%s3491_s1 + $0x10] sm:$0xff] (!%p140_p2)  }
   0x7   : > { %2237 = vmatpush3.bf16.msra.mxu0 (!%p140_p2), %v2649_v1  ;;  %2631 = vmatpush3.bf16.msra.mxu1 (!%p140_p2), %v2649_v1  ;;  %v2654_v6 = vld [vmem:[%s3491_s1 + $0x58] sm:$0xff] (!%p140_p2)   ;;  %v2656_v8 = vld [vmem:[%s3491_s1 + $0x60] sm:$0xff] (!%p140_p2)   ;;  %v2658_v10 = vld [vmem:[%s3491_s1 + $0x68] sm:$0xff] (!%p140_p2)  }
   0x8   : > { %2238 = vmatprep.subr.bf16.mxu0 (!%p140_p2), %v2650_v2  ;;  %2624 = vmatprep.subr.bf16.mxu1 (!%p140_p2), %v2650_v2  ;;  %v2655_v7 = vld [vmem:[%s3491_s1 + $0x18] sm:$0xff] (!%p140_p2)   ;;  %v2657_v9 = vld [vmem:[%s3491_s1 + $0x20] sm:$0xff] (!%p140_p2)   ;;  %v2659_v13 = vld [vmem:[%s3491_s1 + $0x28] sm:$0xff] (!%p140_p2)  }
   0x9   : > { %v2660_v14 = vld [vmem:[%s3491_s1 + $0x70] sm:$0xff] (!%p140_p2)   ;;  %v2662_v16 = vld [vmem:[%s3491_s1 + $0x78] sm:$0xff] (!%p140_p2)   ;;  %v2670_v18 = vld [vmem:[%s3491_s1 + $0xc0] sm:$0xff] (!%p140_p2)  }
   0xa   : > { %v2661_v15 = vld [vmem:[%s3491_s1 + $0x30] sm:$0xff] (!%p140_p2)   ;;  %v2663_v17 = vld [vmem:[%s3491_s1 + $0x38] sm:$0xff] (!%p140_p2)   ;;  %v2671_v21 = vld [vmem:[%s3491_s1 + $0x140] sm:$0xff] (!%p140_p2)  }
   0xb   : > { %2239 = vmatpush3.bf16.msra.mxu0 (!%p140_p2), %v2651_v3  ;;  %2632 = vmatpush3.bf16.msra.mxu1 (!%p140_p2), %v2651_v3  ;;  %v2672_v22 = vld [vmem:[%s3491_s1 + $0x80] sm:$0xff] (!%p140_p2)   ;;  %v2674_v24 = vld [vmem:[%s3491_s1 + $0xc8] sm:$0xff] (!%p140_p2)   ;;  %v2682_v32 = vld [vmem:[%s3491_s1 + $0xd0] sm:$0xff] (!%p140_p2)  }
   0xc   : > { %2240 = vmatprep.subr.bf16.mxu0 (!%p140_p2), %v2652_v4  ;;  %2625 = vmatprep.subr.bf16.mxu1 (!%p140_p2), %v2652_v4  ;;  %v2673_v23 = vld [vmem:[%s3491_s1 + $0x100] sm:$0xff] (!%p140_p2)   ;;  %v2685_v27 = vld [vmem:[%s3491_s1 + $0x148] sm:$0xff] (!%p140_p2)   ;;  %v2683_v33 = vld [vmem:[%s3491_s1 + $0x90] sm:$0xff] (!%p140_p2)  }
   0xd   : > { %s3495_s16 = smov (!%p165_p3, %s2052_s16), 63  ;;  %v2675_v28 = vld [vmem:[%s3491_s1 + $0x88] sm:$0xff]   ;;  %v2684_v34 = vld [vmem:[%s3491_s1 + $0xd8] sm:$0xff]   ;;  %v2694_v38 = vld [vmem:[%s3491_s1 + $0xe0] sm:$0xff]  }
   0xe   : > { %s2639_s29 = smul.u32 28, %s3495_s16  ;;  %v2687_v29 = vld [vmem:[%s3491_s1 + $0x108] sm:$0xff]   ;;  %v2686_v37 = vld [vmem:[%s3491_s1 + $0x98] sm:$0xff]   ;;  %v2705_v41 = vld [vmem:[%s3491_s1 + $0x150] sm:$0xff]   ;;  %s2055_s21 = sshll.u32 %s3495_s16, 3 }
   0xf   : > { %2241 = vmatpush3.bf16.msra.mxu0 %v2653_v5  ;;  %2633 = vmatpush3.bf16.msra.mxu1 %v2653_v5  ;;  %v2695_v42 = vld [vmem:[%s3491_s1 + $0xa0] sm:$0xff]   ;;  %v2696_v43 = vld [vmem:[%s3491_s1 + $0xe8] sm:$0xff]   ;;  %v2707_v44 = vld [vmem:[%s3491_s1 + $0x110] sm:$0xff]   ;;  %s3383_s24 = scalar_lea.vmem %s3493_s3, %s2055_s21 }
  0x10   : > { %2242 = vmatprep.subr.bf16.mxu0 %v2654_v6  ;;  %2626 = vmatprep.subr.bf16.mxu1 %v2654_v6  ;;  %s2926_s9 = scalar_lea.vmem %s3490_s0, %s2639_s29  ;;  %v2697_v47 = vld [vmem:[%s3491_s1 + $0xa8] sm:$0xff]   ;;  %v2704_v48 = vld [vmem:[%s3491_s1 + $0xf0] sm:$0xff]   ;;  %v2716_v51 = vld [vmem:[%s3491_s1 + $0x158] sm:$0xff]  }
  0x11   : > { %v2666_v11 = vld [vmem:[%s2926_s9 + $0x4] ss:$28 sps:$4 sm:$0xff]   ;;  %v2676_v25 = vld [vmem:[%s2926_s9 + $0x3c] ss:$28 sps:$4 sm:$0xff]   ;;  %v2688_v35 = vld [vmem:[%s2926_s9 + $0x74] ss:$28 sps:$4 sm:$0xff]  }
  0x12   : > { %v2669_v12 = vld [vmem:[%s2926_s9 + $0x2a4] ss:$28 sps:$4 sm:$0xff]   ;;  %1346 = vmatprep.mubr.bf16.mxu0 %v2666_v11  ;;  %v2678_v26 = vld [vmem:[%s2926_s9 + $0x2dc] ss:$28 sps:$4 sm:$0xff]   ;;  %v2690_v36 = vld [vmem:[%s2926_s9 + $0x314] ss:$28 sps:$4 sm:$0xff]  }
  0x13   : > { %2243 = vmatpush3.bf16.msra.mxu0 %v2655_v7  ;;  %2634 = vmatpush3.bf16.msra.mxu1 %v2655_v7  ;;  %v2664_v19 = vld [vmem:[%s2926_s9] ss:$28 sps:$4 sm:$0xff]   ;;  %v2680_v30 = vld [vmem:[%s2926_s9 + $0x38] ss:$28 sps:$4 sm:$0xff]   ;;  %v2692_v39 = vld [vmem:[%s2926_s9 + $0x70] ss:$28 sps:$4 sm:$0xff]  }
  0x14   : > { %2244 = vmatprep.subr.bf16.mxu0 %v2656_v8  ;;  %2627 = vmatprep.subr.bf16.mxu1 %v2656_v8  ;;  %v2667_v20 = vld [vmem:[%s2926_s9 + $0x2a0] ss:$28 sps:$4 sm:$0xff]   ;;  %v2681_v31 = vld [vmem:[%s2926_s9 + $0x2d8] ss:$28 sps:$4 sm:$0xff]   ;;  %v2693_v40 = vld [vmem:[%s2926_s9 + $0x310] ss:$28 sps:$4 sm:$0xff]  }
  0x15   : > { %1442 = vmatprep.mubr.bf16.mxu1 %v2669_v12  ;;  %v2698_v45 = vld [vmem:[%s2926_s9 + $0xac] ss:$28 sps:$4 sm:$0xff]   ;;  %v2706_v52 = vld [vmem:[%s3491_s1 + $0xb0] sm:$0xff]   ;;  %v2718_v53 = vld [vmem:[%s3491_s1 + $0x118] sm:$0xff]  }
  0x16   : > { %v2700_v46 = vld [vmem:[%s2926_s9 + $0x34c] ss:$28 sps:$4 sm:$0xff]   ;;  %v2710_v54 = vld [vmem:[%s2926_s9 + $0xe4] ss:$28 sps:$4 sm:$0xff]   ;;  %v2708_v55 = vld [vmem:[%s3491_s1 + $0xf8] sm:$0xff]  }
  0x17   : > { %2245 = vmatpush3.bf16.msra.mxu0 %v2657_v9  ;;  %2635 = vmatpush3.bf16.msra.mxu1 %v2657_v9  ;;  %v2702_v49 = vld [vmem:[%s2926_s9 + $0xa8] ss:$28 sps:$4 sm:$0xff]   ;;  %v2709_v57 = vld [vmem:[%s3491_s1 + $0xb8] sm:$0xff]   ;;  %v2725_v5 = vld [vmem:[%s2926_s9 + $0x154] ss:$28 sps:$4 sm:$0xff]  }
  0x18   : > { %2246 = vmatprep.subr.bf16.mxu0 %v2658_v10  ;;  %2628 = vmatprep.subr.bf16.mxu1 %v2658_v10  ;;  %v2703_v50 = vld [vmem:[%s2926_s9 + $0x348] ss:$28 sps:$4 sm:$0xff]   ;;  %v2715_v62 = vld [vmem:[%s2926_s9 + $0xe0] ss:$28 sps:$4 sm:$0xff]   ;;  %v2723_v3 = vld [vmem:[%s2926_s9 + $0x118] ss:$28 sps:$4 sm:$0xff]  }
  0x19   : > { %v2714_v56 = vld [vmem:[%s2926_s9 + $0xc] ss:$28 sps:$4 sm:$0xff]   ;;  %v2717_v58 = vld [vmem:[%s3491_s1 + $0x180] sm:$0xff]   ;;  %v2719_v63 = vld [vmem:[%s2926_s9 + $0x11c] ss:$28 sps:$4 sm:$0xff]  }
  0x1a   : > { %v2712_v59 = vld [vmem:[%s2926_s9 + $0x8] ss:$28 sps:$4 sm:$0xff]   ;;  %v2724_v4 = vld [vmem:[%s2926_s9 + $0x40] ss:$28 sps:$4 sm:$0xff]   ;;  %v2753_v7 = vld [vmem:[%s3491_s1 + $0x170] sm:$0xff]  }
  0x1b   : > { %2247 = vmatpush3.bf16.msra.mxu0 %v2659_v13  ;;  %2636 = vmatpush3.bf16.msra.mxu1 %v2659_v13  ;;  %v2731_v60 = vld [vmem:[%s3491_s1 + $0x160] sm:$0xff]   ;;  %v2739_v1 = vld [vmem:[%s3491_s1 + $0x168] sm:$0xff]   ;;  %v2727_v6 = vld [vmem:[%s2926_s9 + $0x7c] ss:$28 sps:$4 sm:$0xff]  }
  0x1c   : > { %2248 = vmatprep.subr.bf16.mxu0 %v2660_v14  ;;  %2629 = vmatprep.subr.bf16.mxu1 %v2660_v14  ;;  %v2732_v61 = vld [vmem:[%s3491_s1 + $0x120] sm:$0xff]   ;;  %v2740_v2 = vld [vmem:[%s3491_s1 + $0x128] sm:$0xff]   ;;  %v2754_v8 = vld [vmem:[%s3491_s1 + $0x130] sm:$0xff]  }
  0x1d   : > { %v2721_v0 = vld [vmem:[%s2926_s9 + $0x44] ss:$28 sps:$4 sm:$0xff]   ;;  %v2729_v9 = vld [vmem:[%s2926_s9 + $0x150] ss:$28 sps:$4 sm:$0xff]   ;;  %v2730_v10 = vld [vmem:[%s2926_s9 + $0x78] ss:$28 sps:$4 sm:$0xff]  }
  0x1e   : > { %v2733_v11 = vld [vmem:[%s2926_s9 + $0x18c] ss:$28 sps:$4 sm:$0xff]   ;;  %v2761_v12 = vld [vmem:[%s3491_s1 + $0x178] sm:$0xff]   ;;  %v2735_v14 = vld [vmem:[%s2926_s9 + $0xb4] ss:$28 sps:$4 sm:$0xff]  }
  0x1f   : > { %2249 = vmatpush3.bf16.msra.mxu0 %v2661_v15  ;;  %2637 = vmatpush3.bf16.msra.mxu1 %v2661_v15  ;;  %v2762_v13 = vld [vmem:[%s3491_s1 + $0x138] sm:$0xff]   ;;  %v2737_v15 = vld [vmem:[%s2926_s9 + $0x188] ss:$28 sps:$4 sm:$0xff]  }
  0x20   : > { %2250 = vmatprep.subr.bf16.mxu0 %v2662_v16  ;;  %2630 = vmatprep.subr.bf16.mxu1 %v2662_v16  ;;  %v2738_v16 = vld [vmem:[%s2926_s9 + $0xb0] ss:$28 sps:$4 sm:$0xff]  }
  0x23   : > { %2251 = vmatpush3.bf16.msra.mxu0 %v2663_v17  ;;  %2638 = vmatpush3.bf16.msra.mxu1 %v2663_v17  ;;  %v2741_v17 = vld [vmem:[%s2926_s9 + $0x1c4] ss:$28 sps:$4 sm:$0xff]  }
  0x24   : > { %2348 = vmatprep.subr.bf16.mxu1 %v2670_v18  ;;  %2460 = vmatprep.subr.bf16.mxu0 %v2671_v21  ;;  %v2743_v18 = vld [vmem:[%s2926_s9 + $0xec] ss:$28 sps:$4 sm:$0xff]   ;;  %v2747_v21 = vld [vmem:[%s2926_s9 + $0x1fc] ss:$28 sps:$4 sm:$0xff]  }
  0x26   : > { %1347 = vmatmul.mubr.bf16.vlgmr.msra.gmra.mrb[0].mxu0 %v2664_v19  ;;  %1443 = vmatmul.mubr.bf16.vlgmr.msra.gmra.mrb[0].mxu1 %v2667_v20  ;;  %v2745_v19 = vld [vmem:[%s2926_s9 + $0x1c0] ss:$28 sps:$4 sm:$0xff]   ;;  %v2746_v20 = vld [vmem:[%s2926_s9 + $0xe8] ss:$28 sps:$4 sm:$0xff]  }
  0x27   : > { %2349 = vmatpush3.bf16.msra.mxu1 %v2672_v22  ;;  %2461 = vmatpush3.bf16.msra.mxu0 %v2673_v23  ;;  %v2749_v22 = vld [vmem:[%s2926_s9 + $0x124] ss:$28 sps:$4 sm:$0xff]   ;;  %v2751_v23 = vld [vmem:[%s2926_s9 + $0x1f8] ss:$28 sps:$4 sm:$0xff]  }
  0x28   : > { %2350 = vmatprep.subr.bf16.mxu1 %v2674_v24  ;;  %1354 = vmatprep.mubr.bf16.mxu0 %v2676_v25  ;;  %v2752_v24 = vld [vmem:[%s2926_s9 + $0x120] ss:$28 sps:$4 sm:$0xff]   ;;  %v2755_v25 = vld [vmem:[%s2926_s9 + $0x234] ss:$28 sps:$4 sm:$0xff]  }
  0x29   : > { %1450 = vmatprep.mubr.bf16.mxu1 %v2678_v26  ;;  %2462 = vmatprep.subr.bf16.mxu0 %v2685_v27  ;;  %v2757_v26 = vld [vmem:[%s2926_s9 + $0x15c] ss:$28 sps:$4 sm:$0xff]   ;;  %v2759_v27 = vld [vmem:[%s2926_s9 + $0x230] ss:$28 sps:$4 sm:$0xff]  }
  0x2b   : > { %2351 = vmatpush3.bf16.msra.mxu1 %v2675_v28  ;;  %2463 = vmatpush3.bf16.msra.mxu0 %v2687_v29  ;;  %v2760_v28 = vld [vmem:[%s2926_s9 + $0x158] ss:$28 sps:$4 sm:$0xff]   ;;  %v2763_v29 = vld [vmem:[%s2926_s9 + $0x26c] ss:$28 sps:$4 sm:$0xff]  }
  0x2c   : > { %2352 = vmatprep.subr.bf16.mxu1 %v2682_v32  ;;  %2464 = vmatprep.subr.bf16.mxu0 %v2705_v41  ;;  %v2768_v32 = vld [vmem:[%s2926_s9 + $0x190] ss:$28 sps:$4 sm:$0xff]   ;;  %v2781_v41 = vld [vmem:[%s2926_s9 + $0x23c] ss:$28 sps:$4 sm:$0xff]  }
  0x2e   : > { %1355 = vmatmul.mubr.bf16.gmra.mrb[4].mxu0 %v2680_v30  ;;  %1451 = vmatmul.mubr.bf16.gmra.mrb[4].mxu1 %v2681_v31  ;;  %v2765_v30 = vld [vmem:[%s2926_s9 + $0x194] ss:$28 sps:$4 sm:$0xff]   ;;  %v2767_v31 = vld [vmem:[%s2926_s9 + $0x268] ss:$28 sps:$4 sm:$0xff]  }
  0x2f   : > { %2353 = vmatpush3.bf16.msra.mxu1 %v2683_v33  ;;  %1362 = vmatprep.mubr.bf16.mxu0 %v2688_v35  ;;  %v2769_v33 = vld [vmem:[%s2926_s9 + $0x1cc] ss:$28 sps:$4 sm:$0xff]  }
  0x30   : > { %2354 = vmatprep.subr.bf16.mxu1 %v2684_v34  ;;  %1458 = vmatprep.mubr.bf16.mxu1 %v2690_v36  ;;  %v2773_v34 = vld [vmem:[%s2926_s9 + $0x14] ss:$28 sps:$4 sm:$0xff]   ;;  %v2774_v36 = vld [vmem:[%s2926_s9 + $0x1c8] ss:$28 sps:$4 sm:$0xff]  }
  0x31   : > { %2465 = vmatpush3.bf16.msra.mxu0 %v2707_v44  ;;  %v2771_v35 = vld [vmem:[%s2926_s9 + $0x10] ss:$28 sps:$4 sm:$0xff]   ;;  %v2786_v44 = vld [vmem:[%s2926_s9 + $0x80] ss:$28 sps:$4 sm:$0xff]  }
  0x32   : > { %2466 = vmatprep.subr.bf16.mxu0 %v2716_v51  ;;  %v2797_v51 = vld [vmem:[%s2926_s9 + $0x2a8] ss:$28 sps:$4 sm:$0xff]  }
  0x33   : > { %2355 = vmatpush3.bf16.msra.mxu1 %v2686_v37  ;;  %v2775_v37 = vld [vmem:[%s2926_s9 + $0x204] ss:$28 sps:$4 sm:$0xff]  }
  0x34   : > { %2356 = vmatprep.subr.bf16.mxu1 %v2694_v38  ;;  %v2777_v38 = vld [vmem:[%s2926_s9 + $0x4c] ss:$28 sps:$4 sm:$0xff]  }
  0x35   : > { %2467 = vmatpush3.bf16.msra.mxu0 %v2718_v53  ;;  %v2799_v53 = vld [vmem:[%s2926_s9 + $0x2e4] ss:$28 sps:$4 sm:$0xff]  }
  0x36   : > { %1363 = vmatmul.mubr.bf16.gmra.mrb[8].mxu0 %v2692_v39  ;;  %1459 = vmatmul.mubr.bf16.gmra.mrb[8].mxu1 %v2693_v40  ;;  %v2779_v39 = vld [vmem:[%s2926_s9 + $0x200] ss:$28 sps:$4 sm:$0xff]   ;;  %v2780_v40 = vld [vmem:[%s2926_s9 + $0x48] ss:$28 sps:$4 sm:$0xff]  }
  0x37   : > { %2357 = vmatpush3.bf16.msra.mxu1 %v2695_v42  ;;  %1370 = vmatprep.mubr.bf16.mxu0 %v2698_v45  ;;  %v2783_v42 = vld [vmem:[%s2926_s9 + $0x84] ss:$28 sps:$4 sm:$0xff]   ;;  %v2787_v45 = vld [vmem:[%s2926_s9 + $0x274] ss:$28 sps:$4 sm:$0xff]  }
  0x38   : > { %2358 = vmatprep.subr.bf16.mxu1 %v2696_v43  ;;  %1466 = vmatprep.mubr.bf16.mxu1 %v2700_v46  ;;  %v2785_v43 = vld [vmem:[%s2926_s9 + $0x238] ss:$28 sps:$4 sm:$0xff]  }
  0x39   : > { %2468 = vmatprep.subr.bf16.mxu0 %v2731_v60  ;;  %v2789_v46 = vld [vmem:[%s2926_s9 + $0xbc] ss:$28 sps:$4 sm:$0xff]  }
  0x3a   : > { %2469 = vmatpush3.bf16.msra.mxu0 %v2732_v61  ;;  %v2810_v60 = vld [vmem:[%s2926_s9 + $0x160] ss:$28 sps:$4 sm:$0xff]   ;;  %v2811_v61 = vld [vmem:[%s2926_s9 + $0x354] ss:$28 sps:$4 sm:$0xff]  }
  0x3b   : > { %2359 = vmatpush3.bf16.msra.mxu1 %v2697_v47  ;;  %2470 = vmatprep.subr.bf16.mxu0 %v2739_v1  ;;  %v2791_v47 = vld [vmem:[%s2926_s9 + $0x270] ss:$28 sps:$4 sm:$0xff]  }
  0x3c   : > { %2360 = vmatprep.subr.bf16.mxu1 %v2704_v48  ;;  %v2792_v48 = vld [vmem:[%s2926_s9 + $0xb8] ss:$28 sps:$4 sm:$0xff]  }
  0x3d   : > { %v2817_v1 = vld [vmem:[%s2926_s9 + $0x1d4] ss:$28 sps:$4 sm:$0xff]  }
  0x3e   : > { %1371 = vmatmul.mubr.bf16.gmra.mrb[12].mxu0 %v2702_v49  ;;  %1467 = vmatmul.mubr.bf16.gmra.mrb[12].mxu1 %v2703_v50  ;;  %v2793_v49 = vld [vmem:[%s2926_s9 + $0x2ac] ss:$28 sps:$4 sm:$0xff]   ;;  %v2795_v50 = vld [vmem:[%s2926_s9 + $0xf4] ss:$28 sps:$4 sm:$0xff]  }
  0x3f   : > { %2361 = vmatpush3.bf16.msra.mxu1 %v2706_v52  ;;  %1378 = vmatprep.mubr.bf16.mxu0 %v2710_v54  ;;  %v2798_v52 = vld [vmem:[%s2926_s9 + $0xf0] ss:$28 sps:$4 sm:$0xff]  }
  0x40   : > { %2362 = vmatprep.subr.bf16.mxu1 %v2708_v55  ;;  %1507 = vmatprep.mubr.bf16.mxu1 %v2714_v56  ;;  %v2801_v54 = vld [vmem:[%s2926_s9 + $0x12c] ss:$28 sps:$4 sm:$0xff]   ;;  %v2803_v55 = vld [vmem:[%s2926_s9 + $0x2e0] ss:$28 sps:$4 sm:$0xff]  }
  0x41   : > { %2471 = vmatpush3.bf16.msra.mxu0 %v2740_v2  ;;  %v2804_v56 = vld [vmem:[%s2926_s9 + $0x128] ss:$28 sps:$4 sm:$0xff]   ;;  %v2819_v2 = vld [vmem:[%s2926_s9 + $0x18] ss:$28 sps:$4 sm:$0xff]  }
  0x42   : > { %2472 = vmatprep.subr.bf16.mxu0 %v2753_v7  ;;  %v2825_v7 = vld [vmem:[%s2926_s9 + $0x208] ss:$28 sps:$4 sm:$0xff]  }
  0x43   : > { %2363 = vmatpush3.bf16.msra.mxu1 %v2709_v57  ;;  %v2805_v57 = vld [vmem:[%s2926_s9 + $0x31c] ss:$28 sps:$4 sm:$0xff]  }
  0x44   : > { %2589 = vmatprep.subr.bf16.mxu1 %v2717_v58 }
  0x45   : > { %2473 = vmatpush3.bf16.msra.mxu0 %v2754_v8  ;;  %v2826_v8 = vld [vmem:[%s2926_s9 + $0xc0] ss:$28 sps:$4 sm:$0xff]  }
  0x46   : > { %1379 = vmatmul.mubr.bf16.gmra.mrb[16].mxu0 %v2715_v62  ;;  %1508 = vmatmul.mubr.bf16.vlgmr.msra.gmra.mrb[16].mxu1 %v2712_v59  ;;  %v2809_v59 = vld [vmem:[%s2926_s9 + $0x318] ss:$28 sps:$4 sm:$0xff]  }
  0x47   : > { %2590 = vmatpush3.bf16.msra.mxu1 %v2717_v58  ;;  %1386 = vmatprep.mubr.bf16.mxu0 %v2719_v63  ;;  %v2807_v58 = vld [vmem:[%s2926_s9 + $0x164] ss:$28 sps:$4 sm:$0xff]   ;;  %v2813_v62 = vld [vmem:[%s2926_s9 + $0x19c] ss:$28 sps:$4 sm:$0xff]   ;;  %v2815_v63 = vld [vmem:[%s2926_s9 + $0x350] ss:$28 sps:$4 sm:$0xff]  }
  0x48   : > { %1515 = vmatprep.mubr.bf16.mxu1 %v2721_v0  ;;  %2474 = vmatprep.subr.bf16.mxu0 %v2761_v12  ;;  %v2816_v0 = vld [vmem:[%s2926_s9 + $0x198] ss:$28 sps:$4 sm:$0xff]   ;;  %v2831_v12 = vld [vmem:[%s2926_s9 + $0x130] ss:$28 sps:$4 sm:$0xff]  }
  0x49   : > { %2475 = vmatpush3.bf16.msra.mxu0 %v2762_v13  ;;  %v2832_v13 = vld [vmem:[%s2926_s9 + $0x27c] ss:$28 sps:$4 sm:$0xff]  }
  0x4e   : > { %1387 = vmatmul.mubr.bf16.gmra.mrb[20].mxu0 %v2723_v3  ;;  %1516 = vmatmul.mubr.bf16.gmra.mrb[20].mxu1 %v2724_v4  ;;  %v2820_v3 = vld [vmem:[%s2926_s9 + $0x1d0] ss:$28 sps:$4 sm:$0xff]  }
  0x4f   : > { %1394 = vmatprep.mubr.bf16.mxu0 %v2725_v5  ;;  %1523 = vmatprep.mubr.bf16.mxu1 %v2727_v6  ;;  %v2821_v4 = vld [vmem:[%s2926_s9 + $0x50] ss:$28 sps:$4 sm:$0xff]   ;;  %v2824_v6 = vld [vmem:[%s2926_s9 + $0x88] ss:$28 sps:$4 sm:$0xff]  }
  0x50   : > { %v2822_v5 = vld [vmem:[%s2926_s9 + $0x20c] ss:$28 sps:$4 sm:$0xff]  }
  0x56   : > { %1395 = vmatmul.mubr.bf16.gmra.mrb[24].mxu0 %v2729_v9  ;;  %1524 = vmatmul.mubr.bf16.gmra.mrb[24].mxu1 %v2730_v10  ;;  %v2827_v9 = vld [vmem:[%s2926_s9 + $0x244] ss:$28 sps:$4 sm:$0xff]   ;;  %v2829_v10 = vld [vmem:[%s2926_s9 + $0xf8] ss:$28 sps:$4 sm:$0xff]  }
  0x57   : > { %1402 = vmatprep.mubr.bf16.mxu0 %v2733_v11  ;;  %1531 = vmatprep.mubr.bf16.mxu1 %v2735_v14  ;;  %v2830_v11 = vld [vmem:[%s2926_s9 + $0x240] ss:$28 sps:$4 sm:$0xff]   ;;  %v2834_v14 = vld [vmem:[%s2926_s9 + $0x168] ss:$28 sps:$4 sm:$0xff]  }
  0x5e   : > { %1403 = vmatmul.mubr.bf16.gmra.mrb[28].mxu0 %v2737_v15  ;;  %1532 = vmatmul.mubr.bf16.gmra.mrb[28].mxu1 %v2738_v16  ;;  %v2835_v15 = vld [vmem:[%s2926_s9 + $0x278] ss:$28 sps:$4 sm:$0xff]   ;;  %v2836_v16 = vld [vmem:[%s2926_s9 + $0x1a0] ss:$28 sps:$4 sm:$0xff]  }
  0x5f   : > { %1410 = vmatprep.mubr.bf16.mxu0 %v2741_v17  ;;  %1539 = vmatprep.mubr.bf16.mxu1 %v2743_v18  ;;  %v2837_v17 = vld [vmem:[%s2926_s9 + $0x2b4] ss:$28 sps:$4 sm:$0xff]  }
  0x60   : > { %v2839_v18 = vld [vmem:[%s2926_s9 + $0x1d8] ss:$28 sps:$4 sm:$0xff]  }
  0x66   : > { %1411 = vmatmul.mubr.bf16.gmra.mrb[32].mxu0 %v2745_v19  ;;  %1540 = vmatmul.mubr.bf16.gmra.mrb[32].mxu1 %v2746_v20  ;;  %v2840_v19 = vld [vmem:[%s2926_s9 + $0x2b0] ss:$28 sps:$4 sm:$0xff]  }
  0x67   : > { %1418 = vmatprep.mubr.bf16.mxu0 %v2747_v21  ;;  %1547 = vmatprep.mubr.bf16.mxu1 %v2749_v22  ;;  %v2841_v20 = vld [vmem:[%s2926_s9 + $0x210] ss:$28 sps:$4 sm:$0xff]   ;;  %v2844_v22 = vld [vmem:[%s2926_s9 + $0x248] ss:$28 sps:$4 sm:$0xff]  }
  0x68   : > { %v2842_v21 = vld [vmem:[%s2926_s9 + $0x2ec] ss:$28 sps:$4 sm:$0xff]  }
  0x6e   : > { %1419 = vmatmul.mubr.bf16.gmra.mrb[36].mxu0 %v2751_v23  ;;  %1548 = vmatmul.mubr.bf16.gmra.mrb[36].mxu1 %v2752_v24  ;;  %v2845_v23 = vld [vmem:[%s2926_s9 + $0x2e8] ss:$28 sps:$4 sm:$0xff]   ;;  %v2846_v24 = vld [vmem:[%s2926_s9 + $0x280] ss:$28 sps:$4 sm:$0xff]  }
  0x6f   : > { %1426 = vmatprep.mubr.bf16.mxu0 %v2755_v25  ;;  %1555 = vmatprep.mubr.bf16.mxu1 %v2757_v26  ;;  %v2847_v25 = vld [vmem:[%s2926_s9 + $0x324] ss:$28 sps:$4 sm:$0xff]   ;;  %v2849_v26 = vld [vmem:[%s2926_s9 + $0x2b8] ss:$28 sps:$4 sm:$0xff]  }
  0x76   : > { %1427 = vmatmul.mubr.bf16.gmra.mrb[40].mxu0 %v2759_v27  ;;  %1556 = vmatmul.mubr.bf16.gmra.mrb[40].mxu1 %v2760_v28  ;;  %v2850_v27 = vld [vmem:[%s2926_s9 + $0x320] ss:$28 sps:$4 sm:$0xff]   ;;  %v2851_v28 = vld [vmem:[%s2926_s9 + $0x2f0] ss:$28 sps:$4 sm:$0xff]  }
  0x77   : > { %1434 = vmatprep.mubr.bf16.mxu0 %v2763_v29  ;;  %1563 = vmatprep.mubr.bf16.mxu1 %v2765_v30  ;;  %v2852_v29 = vld [vmem:[%s2926_s9 + $0x35c] ss:$28 sps:$4 sm:$0xff]   ;;  %v2854_v30 = vld [vmem:[%s2926_s9 + $0x328] ss:$28 sps:$4 sm:$0xff]  }
  0x7e   : > { %1435 = vmatmul.mubr.bf16.gmra.mrb[44].mxu0 %v2767_v31  ;;  %1564 = vmatmul.mubr.bf16.gmra.mrb[44].mxu1 %v2768_v32 }
  0x7f   : > { %1571 = vmatprep.mubr.bf16.mxu1 %v2769_v33  ;;  %1668 = vmatprep.mubr.bf16.mxu0 %v2773_v34 }
  0x86   : > { %1572 = vmatmul.mubr.bf16.gmra.mrb[48].mxu1 %v2774_v36  ;;  %1669 = vmatmul.mubr.bf16.vlgmr.msra.gmra.mrb[48].mxu0 %v2771_v35  ;;  %v2855_v35 = vld [vmem:[%s2926_s9 + $0x358] ss:$28 sps:$4 sm:$0xff]   ;;  %v2856_v36 = vld [vmem:[%s2926_s9 + $0x360] ss:$28 sps:$4 sm:$0xff]  }
  0x87   : > { %1579 = vmatprep.mubr.bf16.mxu1 %v2775_v37  ;;  %1676 = vmatprep.mubr.bf16.mxu0 %v2777_v38 }
  0x8e   : > { %1580 = vmatmul.mubr.bf16.gmra.mrb[52].mxu1 %v2779_v39  ;;  %1677 = vmatmul.mubr.bf16.gmra.mrb[52].mxu0 %v2780_v40 }
  0x8f   : > { %1587 = vmatprep.mubr.bf16.mxu1 %v2781_v41  ;;  %1684 = vmatprep.mubr.bf16.mxu0 %v2783_v42 }
  0x96   : > { %1588 = vmatmul.mubr.bf16.gmra.mrb[56].mxu1 %v2785_v43  ;;  %1685 = vmatmul.mubr.bf16.gmra.mrb[56].mxu0 %v2786_v44 }
  0x97   : > { %1595 = vmatprep.mubr.bf16.mxu1 %v2787_v45  ;;  %1692 = vmatprep.mubr.bf16.mxu0 %v2789_v46 }
  0x9e   : > { %1596 = vmatmul.mubr.bf16.gmra.mrb[60].mxu1 %v2791_v47  ;;  %1693 = vmatmul.mubr.bf16.gmra.mrb[60].mxu0 %v2792_v48 }
  0x9f   : > { %1603 = vmatprep.mubr.bf16.mxu1 %v2793_v49  ;;  %1700 = vmatprep.mubr.bf16.mxu0 %v2795_v50 }
  0xa6   : > { %1604 = vmatmul.mubr.bf16.gmra.mrb[64].mxu1 %v2797_v51  ;;  %1701 = vmatmul.mubr.bf16.gmra.mrb[64].mxu0 %v2798_v52 }
  0xa7   : > { %1611 = vmatprep.mubr.bf16.mxu1 %v2799_v53  ;;  %1708 = vmatprep.mubr.bf16.mxu0 %v2801_v54 }
  0xae   : > { %1612 = vmatmul.mubr.bf16.gmra.mrb[68].mxu1 %v2803_v55  ;;  %1709 = vmatmul.mubr.bf16.gmra.mrb[68].mxu0 %v2804_v56 }
  0xaf   : > { %1619 = vmatprep.mubr.bf16.mxu1 %v2805_v57  ;;  %1716 = vmatprep.mubr.bf16.mxu0 %v2807_v58 }
  0xb6   : > { %1620 = vmatmul.mubr.bf16.gmra.mrb[72].mxu1 %v2809_v59  ;;  %1717 = vmatmul.mubr.bf16.gmra.mrb[72].mxu0 %v2810_v60 }
  0xb7   : > { %1627 = vmatprep.mubr.bf16.mxu1 %v2811_v61  ;;  %1724 = vmatprep.mubr.bf16.mxu0 %v2813_v62 }
  0xbe   : > { %1628 = vmatmul.mubr.bf16.gmra.mrb[76].mxu1 %v2815_v63  ;;  %1725 = vmatmul.mubr.bf16.gmra.mrb[76].mxu0 %v2816_v0 }
  0xbf   : > { %1732 = vmatprep.mubr.bf16.mxu0 %v2817_v1  ;;  %2591 = vmatprep.mubr.msk.bf16.mxu1 %vm1265_vm0, %v2819_v2 }
  0xc6   : > { %1733 = vmatmul.mubr.bf16.gmra.mrb[80].mxu0 %v2820_v3  ;;  %2592 = vmatmul.mubr.msk.bf16.vlgmr.msra.gmra.mrb[80].mxu1 %vm1265_vm0, %v2821_v4 }
  0xc7   : > { %1740 = vmatprep.mubr.bf16.mxu0 %v2822_v5  ;;  %2595 = vmatprep.mubr.msk.bf16.mxu1 %vm1265_vm0, %v2824_v6 }
  0xce   : > { %1741 = vmatmul.mubr.bf16.gmra.mrb[84].mxu0 %v2825_v7  ;;  %2596 = vmatmul.mubr.msk.bf16.gmra.mrb[84].mxu1 %vm1265_vm0, %v2826_v8 }
  0xcf   : > { %1748 = vmatprep.mubr.bf16.mxu0 %v2827_v9  ;;  %2599 = vmatprep.mubr.msk.bf16.mxu1 %vm1265_vm0, %v2829_v10 }
  0xd6   : > { %1749 = vmatmul.mubr.bf16.gmra.mrb[88].mxu0 %v2830_v11  ;;  %2600 = vmatmul.mubr.msk.bf16.gmra.mrb[88].mxu1 %vm1265_vm0, %v2831_v12 }
  0xd7   : > { %1756 = vmatprep.mubr.bf16.mxu0 %v2832_v13  ;;  %2603 = vmatprep.mubr.msk.bf16.mxu1 %vm1265_vm0, %v2834_v14 }
  0xde   : > { %1757 = vmatmul.mubr.bf16.gmra.mrb[92].mxu0 %v2835_v15  ;;  %2604 = vmatmul.mubr.msk.bf16.gmra.mrb[92].mxu1 %vm1265_vm0, %v2836_v16 }
  0xdf   : > { %1764 = vmatprep.mubr.bf16.mxu0 %v2837_v17  ;;  %2607 = vmatprep.mubr.msk.bf16.mxu1 %vm1265_vm0, %v2839_v18  ;;  %v3195_v17 = vld [vmem:[%s3492_s2] ss:$0 sm:$0xff] }
  0xe6   : > { %1765 = vmatmul.mubr.bf16.gmra.mrb[96].mxu0 %v2840_v19  ;;  %2608 = vmatmul.mubr.msk.bf16.gmra.mrb[96].mxu1 %vm1265_vm0, %v2841_v20 }
  0xe7   : > { %1772 = vmatprep.mubr.bf16.mxu0 %v2842_v21  ;;  %2611 = vmatprep.mubr.msk.bf16.mxu1 %vm1265_vm0, %v2844_v22 }
  0xee   : > { %1773 = vmatmul.mubr.bf16.gmra.mrb[100].mxu0 %v2845_v23  ;;  %2612 = vmatmul.mubr.msk.bf16.gmra.mrb[100].mxu1 %vm1265_vm0, %v2846_v24 }
  0xef   : > { %1780 = vmatprep.mubr.bf16.mxu0 %v2847_v25  ;;  %2615 = vmatprep.mubr.msk.bf16.mxu1 %vm1265_vm0, %v2849_v26 }
  0xf6   : > { %1781 = vmatmul.mubr.bf16.gmra.mrb[104].mxu0 %v2850_v27  ;;  %2616 = vmatmul.mubr.msk.bf16.gmra.mrb[104].mxu1 %vm1265_vm0, %v2851_v28 }
  0xf7   : > { %1788 = vmatprep.mubr.bf16.mxu0 %v2852_v29  ;;  %2619 = vmatprep.mubr.msk.bf16.mxu1 %vm1265_vm0, %v2854_v30 }
  0xf9   : > { %v2252_v31 = vpop.f32.mrb[0].mxu0  ;;  %v2324_v32 = vpop.f32.mrb[0].mxu1 }
  0xfa   : > { %v2253_v33 = vpop.f32.mrb[1].mxu0  ;;  %v2325_v34 = vpop.f32.mrb[1].mxu1 }
  0xfb   : > { %v2254_v37 = vadd.f32 %v2253_v33, %v2252_v31  ;;  %v2255_v38 = vpop.f32.mrb[2].mxu0  ;;  %v3175_v39 = vadd.f32 %v2325_v34, %v2324_v32  ;;  %v2327_v40 = vpop.f32.mrb[2].mxu1 }
  0xfc   : > { %v2256_v41 = vpop.f32.mrb[3].mxu0  ;;  %v2328_v42 = vpop.f32.mrb[3].mxu1 }
  0xfd   : > { %v2257_v43 = vadd.f32 %v2256_v41, %v2255_v38  ;;  %v3177_v44 = vadd.f32 %v2328_v42, %v2327_v40  ;;  %v1349_v22 = vadd.f32 %v2254_v37, %v3195_v17 }
  0xfe   : > { %1789 = vmatmul.mubr.bf16.gmra.mrb[108].mxu0 %v2855_v35  ;;  %2620 = vmatmul.mubr.msk.bf16.gmra.mrb[108].mxu1 %vm1265_vm0, %v2856_v36 }
  0xff   : > { %v1352_v29 = vadd.f32 %v2257_v43, %v3195_v17 }
 0x101   : > { %v2258_v45 = vpop.f32.mrb[4].mxu0  ;;  %v2330_v46 = vpop.f32.mrb[4].mxu1 }
 0x102   : > { %v2259_v47 = vpop.f32.mrb[5].mxu0  ;;  %v2331_v48 = vpop.f32.mrb[5].mxu1 }
 0x103   : > { %v2260_v49 = vadd.f32 %v2259_v47, %v2258_v45  ;;  %v2261_v50 = vpop.f32.mrb[6].mxu0  ;;  %v3180_v51 = vadd.f32 %v2331_v48, %v2330_v46  ;;  %v2333_v52 = vpop.f32.mrb[6].mxu1 }
 0x104   : > { %v2262_v53 = vpop.f32.mrb[7].mxu0  ;;  %v2334_v54 = vpop.f32.mrb[7].mxu1 }
 0x105   : > { %v2263_v55 = vadd.f32 %v2262_v53, %v2261_v50  ;;  %v3182_v56 = vadd.f32 %v2334_v54, %v2333_v52  ;;  %v1357_v37 = vadd.f32 %v2260_v49, %v3195_v17 }
 0x107   : > { %v1360_v43 = vadd.f32 %v2263_v55, %v3195_v17 }
 0x109   : > { %v2264_v57 = vpop.f32.mrb[8].mxu0  ;;  %v2336_v58 = vpop.f32.mrb[8].mxu1 }
 0x10a   : > { %v2265_v59 = vpop.f32.mrb[9].mxu0  ;;  %v2337_v60 = vpop.f32.mrb[9].mxu1 }
 0x10b   : > { %v2266_v61 = vadd.f32 %v2265_v59, %v2264_v57  ;;  %v2267_v62 = vpop.f32.mrb[10].mxu0  ;;  %v3184_v63 = vadd.f32 %v2337_v60, %v2336_v58  ;;  %v2339_v0 = vpop.f32.mrb[10].mxu1 }
 0x10c   : > { %v2268_v1 = vpop.f32.mrb[11].mxu0  ;;  %v2340_v2 = vpop.f32.mrb[11].mxu1 }
 0x10d   : > { %v2269_v3 = vadd.f32 %v2268_v1, %v2267_v62  ;;  %v3186_v4 = vadd.f32 %v2340_v2, %v2339_v0  ;;  %v1365_v49 = vadd.f32 %v2266_v61, %v3195_v17 }
 0x10f   : > { %v1368_v55 = vadd.f32 %v2269_v3, %v3195_v17 }
 0x111   : > { %v2270_v5 = vpop.f32.mrb[12].mxu0  ;;  %v2342_v6 = vpop.f32.mrb[12].mxu1 }
 0x112   : > { %v2271_v7 = vpop.f32.mrb[13].mxu0  ;;  %v2343_v8 = vpop.f32.mrb[13].mxu1 }
 0x113   : > { %v2272_v9 = vadd.f32 %v2271_v7, %v2270_v5  ;;  %v2273_v10 = vpop.f32.mrb[14].mxu0  ;;  %v3188_v11 = vadd.f32 %v2343_v8, %v2342_v6  ;;  %v2345_v12 = vpop.f32.mrb[14].mxu1 }
 0x114   : > { %v2274_v13 = vpop.f32.mrb[15].mxu0  ;;  %v2346_v14 = vpop.f32.mrb[15].mxu1 }
 0x115   : > { %v2275_v15 = vadd.f32 %v2274_v13, %v2273_v10  ;;  %v3190_v16 = vadd.f32 %v2346_v14, %v2345_v12  ;;  %v1373_v61 = vadd.f32 %v2272_v9, %v3195_v17 }
 0x117   : > { %v1376_v3 = vadd.f32 %v2275_v15, %v3195_v17 }
 0x119   : > { %v2276_v18 = vpop.f32.mrb[16].mxu0  ;;  %v2364_v19 = vpop.f32.mrb[16].mxu1 }
 0x11a   : > { %v2277_v20 = vpop.f32.mrb[17].mxu0  ;;  %v2365_v21 = vpop.f32.mrb[17].mxu1 }
 0x11b   : > { %v3198_v23 = vadd.f32 %v2277_v20, %v2276_v18  ;;  %v2366_v24 = vadd.f32 %v2365_v21, %v2364_v19  ;;  %v2279_v25 = vpop.f32.mrb[18].mxu0  ;;  %v2367_v26 = vpop.f32.mrb[18].mxu1 }
 0x11c   : > { %v2280_v27 = vpop.f32.mrb[19].mxu0  ;;  %v2368_v28 = vpop.f32.mrb[19].mxu1 }
 0x11d   : > { %v3201_v30 = vadd.f32 %v2366_v24, %v1349_v22  ;;  %v2281_v31 = vadd.f32 %v2280_v27, %v2279_v25  ;;  %v2369_v32 = vadd.f32 %v2368_v28, %v2367_v26  ;;  %v1381_v9 = vadd.f32 %v3198_v23, %v3195_v17 }
 0x11f   : > { %v3203_v33 = vadd.f32 %v2369_v32, %v1352_v29 }
 0x121   : > { %v2282_v34 = vpop.f32.mrb[20].mxu0  ;;  %v2370_v35 = vpop.f32.mrb[20].mxu1 }
 0x122   : > { %v2283_v36 = vpop.f32.mrb[21].mxu0  ;;  %v2371_v38 = vpop.f32.mrb[21].mxu1 }
 0x123   : > { %v3206_v40 = vadd.f32 %v2283_v36, %v2282_v34  ;;  %v2372_v41 = vadd.f32 %v2371_v38, %v2370_v35  ;;  %v2285_v42 = vpop.f32.mrb[22].mxu0  ;;  %v2373_v45 = vpop.f32.mrb[22].mxu1 }
 0x124   : > { %v2286_v46 = vpop.f32.mrb[23].mxu0  ;;  %v2374_v47 = vpop.f32.mrb[23].mxu1 }
 0x125   : > { %v3209_v48 = vadd.f32 %v2372_v41, %v1357_v37  ;;  %v2287_v50 = vadd.f32 %v2286_v46, %v2285_v42  ;;  %v2375_v52 = vadd.f32 %v2374_v47, %v2373_v45  ;;  %v1384_v46 = vadd.f32 %v2281_v31, %v3195_v17 }
 0x126   : > { %v1389_v23 = vadd.f32 %v3206_v40, %v3195_v17 }
 0x127   : > { %v3211_v53 = vadd.f32 %v2375_v52, %v1360_v43 }
 0x129   : > { %v2288_v54 = vpop.f32.mrb[24].mxu0  ;;  %v2376_v57 = vpop.f32.mrb[24].mxu1 }
 0x12a   : > { %v2289_v58 = vpop.f32.mrb[25].mxu0  ;;  %v2377_v59 = vpop.f32.mrb[25].mxu1 }
 0x12b   : > { %v3214_v60 = vadd.f32 %v2289_v58, %v2288_v54  ;;  %v2378_v62 = vadd.f32 %v2377_v59, %v2376_v57  ;;  %v2291_v0 = vpop.f32.mrb[26].mxu0  ;;  %v2379_v1 = vpop.f32.mrb[26].mxu1 }
 0x12c   : > { %v2292_v2 = vpop.f32.mrb[27].mxu0  ;;  %v2380_v5 = vpop.f32.mrb[27].mxu1 }
 0x12d   : > { %v3217_v6 = vadd.f32 %v2378_v62, %v1365_v49  ;;  %v2293_v7 = vadd.f32 %v2292_v2, %v2291_v0  ;;  %v2381_v8 = vadd.f32 %v2380_v5, %v2379_v1  ;;  %v1397_v40 = vadd.f32 %v3214_v60, %v3195_v17 }
 0x12f   : > { %v3219_v10 = vadd.f32 %v2381_v8, %v1368_v55  ;;  %v1392_v55 = vadd.f32 %v2287_v50, %v3195_v17 }
 0x131   : > { %v2294_v12 = vpop.f32.mrb[28].mxu0  ;;  %v2382_v13 = vpop.f32.mrb[28].mxu1 }
 0x132   : > { %v2295_v14 = vpop.f32.mrb[29].mxu0  ;;  %v2383_v18 = vpop.f32.mrb[29].mxu1 }
 0x133   : > { %v3222_v19 = vadd.f32 %v2295_v14, %v2294_v12  ;;  %v2384_v20 = vadd.f32 %v2383_v18, %v2382_v13  ;;  %v2297_v21 = vpop.f32.mrb[30].mxu0  ;;  %v2385_v22 = vpop.f32.mrb[30].mxu1 }
 0x134   : > { %v2298_v24 = vpop.f32.mrb[31].mxu0  ;;  %v2386_v25 = vpop.f32.mrb[31].mxu1 }
 0x135   : > { %v3225_v26 = vadd.f32 %v2384_v20, %v1373_v61  ;;  %v2299_v27 = vadd.f32 %v2298_v24, %v2297_v21  ;;  %v2387_v28 = vadd.f32 %v2386_v25, %v2385_v22 }
 0x137   : > { %v3227_v29 = vadd.f32 %v2387_v28, %v1376_v3 }
 0x139   : > { %v2300_v32 = vpop.f32.mrb[32].mxu0  ;;  %v2388_v34 = vpop.f32.mrb[32].mxu1 }
 0x13a   : > { %v2301_v35 = vpop.f32.mrb[33].mxu0  ;;  %v2389_v36 = vpop.f32.mrb[33].mxu1 }
 0x13b   : > { %v3231_v38 = vadd.f32 %v2301_v35, %v2300_v32  ;;  %v2390_v37 = vadd.f32 %v2389_v36, %v2388_v34  ;;  %v2303_v41 = vpop.f32.mrb[34].mxu0  ;;  %v2391_v42 = vpop.f32.mrb[34].mxu1  ;;  %v1400_v32 = vadd.f32 %v2293_v7, %v3195_v17 }
 0x13c   : > { %v2304_v45 = vpop.f32.mrb[35].mxu0  ;;  %v2392_v15 = vpop.f32.mrb[35].mxu1 }
 0x13d   : > { %v3234_v47 = vadd.f32 %v2390_v37, %v1381_v9  ;;  %v2305_v43 = vadd.f32 %v2304_v45, %v2303_v41  ;;  %v2393_v52 = vadd.f32 %v2392_v15, %v2391_v42  ;;  %v1405_v45 = vadd.f32 %v3222_v19, %v3195_v17 }
 0x13f   : > { %v3236_v54 = vadd.f32 %v2393_v52, %v1384_v46 }
 0x141   : > { %v2306_v57 = vpop.f32.mrb[36].mxu0  ;;  %v2394_v58 = vpop.f32.mrb[36].mxu1 }
 0x142   : > { %v2307_v59 = vpop.f32.mrb[37].mxu0  ;;  %v2395_v49 = vpop.f32.mrb[37].mxu1 }
 0x143   : > { %v3240_v62 = vadd.f32 %v2307_v59, %v2306_v57  ;;  %v2396_v0 = vadd.f32 %v2395_v49, %v2394_v58  ;;  %v2309_v1 = vpop.f32.mrb[38].mxu0  ;;  %v2397_v2 = vpop.f32.mrb[38].mxu1  ;;  %v1408_v59 = vadd.f32 %v2299_v27, %v3195_v17  ;;  %v1416_v27 = vadd.f32 %v2305_v43, %v3195_v17 }
 0x144   : > { %v2310_v5 = vpop.f32.mrb[39].mxu0  ;;  %v2398_v31 = vpop.f32.mrb[39].mxu1 }
 0x145   : > { %v3243_v8 = vadd.f32 %v2396_v0, %v1389_v23  ;;  %v2311_v12 = vadd.f32 %v2310_v5, %v2309_v1  ;;  %v2399_v13 = vadd.f32 %v2398_v31, %v2397_v2  ;;  %v1421_v43 = vadd.f32 %v3240_v62, %v3195_v17 }
 0x147   : > { %v3245_v14 = vadd.f32 %v2399_v13, %v1392_v55  ;;  %v1413_v55 = vadd.f32 %v3231_v38, %v3195_v17 }
 0x149   : > { %v2312_v18 = vpop.f32.mrb[40].mxu0  ;;  %v2400_v61 = vpop.f32.mrb[40].mxu1 }
 0x14a   : > { %v2313_v20 = vpop.f32.mrb[41].mxu0  ;;  %v2401_v21 = vpop.f32.mrb[41].mxu1 }
 0x14b   : > { %v3249_v22 = vadd.f32 %v2313_v20, %v2312_v18  ;;  %v2402_v24 = vadd.f32 %v2401_v21, %v2400_v61  ;;  %v2315_v25 = vpop.f32.mrb[42].mxu0  ;;  %v2403_v3 = vpop.f32.mrb[42].mxu1 }
 0x14c   : > { %v2316_v28 = vpop.f32.mrb[43].mxu0  ;;  %v2404_v50 = vpop.f32.mrb[43].mxu1 }
 0x14d   : > { %v3252_v34 = vadd.f32 %v2402_v24, %v1397_v40  ;;  %v3254_v35 = vadd.f32 %v2316_v28, %v2315_v25  ;;  %v2405_v36 = vadd.f32 %v2404_v50, %v2403_v3 }
 0x14f   : > { %v3256_v9 = vadd.f32 %v2405_v36, %v1400_v32 }
 0x151   : > { %v2318_v37 = vpop.f32.mrb[44].mxu0  ;;  %v2406_v41 = vpop.f32.mrb[44].mxu1 }
 0x152   : > { %v2319_v42 = vpop.f32.mrb[45].mxu0  ;;  %v2407_v60 = vpop.f32.mrb[45].mxu1 }
 0x153   : > { %v3260_v15 = vadd.f32 %v2319_v42, %v2318_v37  ;;  %v2408_v46 = vadd.f32 %v2407_v60, %v2406_v41  ;;  %v2321_v52 = vpop.f32.mrb[46].mxu0  ;;  %v2409_v57 = vpop.f32.mrb[46].mxu1 }
 0x154   : > { %v2322_v7 = vpop.f32.mrb[47].mxu0  ;;  %v2410_v58 = vpop.f32.mrb[47].mxu1 }
 0x155   : > { %v3263_v49 = vadd.f32 %v2408_v46, %v1405_v45  ;;  %v3265_v23 = vadd.f32 %v2322_v7, %v2321_v52  ;;  %v2411_v0 = vadd.f32 %v2410_v58, %v2409_v57  ;;  %v1424_v52 = vadd.f32 %v2311_v12, %v3195_v17 }
 0x156   : > { %v1429_v12 = vadd.f32 %v3249_v22, %v3195_v17 }
 0x157   : > { %v3267_v1 = vadd.f32 %v2411_v0, %v1408_v59 }
 0x159   : > { %v2412_v2 = vpop.f32.mrb[48].mxu1  ;;  %v2476_v5 = vpop.f32.mrb[48].mxu0 }
 0x15a   : > { %v2413_v31 = vpop.f32.mrb[49].mxu1  ;;  %v2477_v19 = vpop.f32.mrb[49].mxu0 }
 0x15b   : > { %v2414_v13 = vadd.f32 %v2413_v31, %v2412_v2  ;;  %v2478_v18 = vadd.f32 %v2477_v19, %v2476_v5  ;;  %v2415_v61 = vpop.f32.mrb[50].mxu1  ;;  %v2479_v20 = vpop.f32.mrb[50].mxu0 }
 0x15c   : > { %v2416_v21 = vpop.f32.mrb[51].mxu1  ;;  %v2480_v40 = vpop.f32.mrb[51].mxu0 }
 0x15d   : > { %v3272_v24 = vadd.f32 %v2414_v13, %v1413_v55  ;;  %v2417_v25 = vadd.f32 %v2416_v21, %v2415_v61  ;;  %v2481_v3 = vadd.f32 %v2480_v40, %v2479_v20  ;;  %v3275_v28 = vadd.f32 %v2478_v18, %v3201_v30 }
 0x15f   : > { %v3277_v50 = vadd.f32 %v2417_v25, %v1416_v27  ;;  %v3280_v32 = vadd.f32 %v2481_v3, %v3203_v33 }
 0x161   : > { %v2418_v38 = vpop.f32.mrb[52].mxu1  ;;  %v2482_v36 = vpop.f32.mrb[52].mxu0 }
 0x162   : > { %v2419_v37 = vpop.f32.mrb[53].mxu1  ;;  %v2483_v41 = vpop.f32.mrb[53].mxu0 }
 0x163   : > { %v2420_v42 = vadd.f32 %v2419_v37, %v2418_v38  ;;  %v2484_v60 = vadd.f32 %v2483_v41, %v2482_v36  ;;  %v2421_v45 = vpop.f32.mrb[54].mxu1  ;;  %v2485_v46 = vpop.f32.mrb[54].mxu0 }
 0x164   : > { %v2422_v30 = vpop.f32.mrb[55].mxu1  ;;  %v2486_v57 = vpop.f32.mrb[55].mxu0 }
 0x165   : > { %v3285_v7 = vadd.f32 %v2420_v42, %v1421_v43  ;;  %v2423_v58 = vadd.f32 %v2422_v30, %v2421_v45  ;;  %v2487_v33 = vadd.f32 %v2486_v57, %v2485_v46  ;;  %v3288_v59 = vadd.f32 %v2484_v60, %v3209_v48 }
 0x166   : > { %v1432_v48 = vadd.f32 %v3254_v35, %v3195_v17  ;;  %v1437_v35 = vadd.f32 %v3260_v15, %v3195_v17 }
 0x167   : > { %v3290_v0 = vadd.f32 %v2423_v58, %v1424_v52  ;;  %v3293_v2 = vadd.f32 %v2487_v33, %v3211_v53 }
 0x169   : > { %v2424_v62 = vpop.f32.mrb[56].mxu1  ;;  %v2488_v5 = vpop.f32.mrb[56].mxu0 }
 0x16a   : > { %v2425_v31 = vpop.f32.mrb[57].mxu1  ;;  %v2489_v19 = vpop.f32.mrb[57].mxu0 }
 0x16b   : > { %v2426_v55 = vadd.f32 %v2425_v31, %v2424_v62  ;;  %v2490_v13 = vadd.f32 %v2489_v19, %v2488_v5  ;;  %v2427_v18 = vpop.f32.mrb[58].mxu1  ;;  %v2491_v61 = vpop.f32.mrb[58].mxu0 }
 0x16c   : > { %v2428_v20 = vpop.f32.mrb[59].mxu1  ;;  %v2492_v27 = vpop.f32.mrb[59].mxu0 }
 0x16d   : > { %v3299_v21 = vadd.f32 %v2426_v55, %v1429_v12  ;;  %v2429_v53 = vadd.f32 %v2428_v20, %v2427_v18  ;;  %v2493_v40 = vadd.f32 %v2492_v27, %v2491_v61  ;;  %v3302_v25 = vadd.f32 %v2490_v13, %v3217_v6 }
 0x16e   : > { %v1440_v6 = vadd.f32 %v3265_v23, %v3195_v17  ;;  %v1445_v23 = vadd.f32 %v3175_v39, %v3195_v17 }
 0x16f   : > { %v3304_v3 = vadd.f32 %v2429_v53, %v1432_v48  ;;  %v3307_v22 = vadd.f32 %v2493_v40, %v3219_v10 }
 0x171   : > { %v2430_v38 = vpop.f32.mrb[60].mxu1  ;;  %v2494_v36 = vpop.f32.mrb[60].mxu0 }
 0x172   : > { %v2431_v37 = vpop.f32.mrb[61].mxu1  ;;  %v2495_v41 = vpop.f32.mrb[61].mxu0 }
 0x173   : > { %v2432_v43 = vadd.f32 %v2431_v37, %v2430_v38  ;;  %v2496_v42 = vadd.f32 %v2495_v41, %v2494_v36  ;;  %v2433_v60 = vpop.f32.mrb[62].mxu1  ;;  %v2497_v45 = vpop.f32.mrb[62].mxu0 }
 0x174   : > { %v2434_v46 = vpop.f32.mrb[63].mxu1  ;;  %v2498_v52 = vpop.f32.mrb[63].mxu0 }
 0x175   : > { %v3313_v30 = vadd.f32 %v2432_v43, %v1437_v35  ;;  %v2435_v10 = vadd.f32 %v2434_v46, %v2433_v60  ;;  %v2499_v57 = vadd.f32 %v2498_v52, %v2497_v45  ;;  %v3316_v58 = vadd.f32 %v2496_v42, %v3225_v26 }
 0x176   : > { %v1448_v26 = vadd.f32 %v3177_v44, %v3195_v17  ;;  %v1453_v44 = vadd.f32 %v3180_v51, %v3195_v17 }
 0x177   : > { %v3318_v33 = vadd.f32 %v2435_v10, %v1440_v6  ;;  %v3321_v15 = vadd.f32 %v2499_v57, %v3227_v29 }
 0x179   : > { %v2436_v62 = vpop.f32.mrb[64].mxu1  ;;  %v2500_v5 = vpop.f32.mrb[64].mxu0 }
 0x17a   : > { %v2437_v31 = vpop.f32.mrb[65].mxu1  ;;  %v2501_v19 = vpop.f32.mrb[65].mxu0 }
 0x17b   : > { %v2438_v12 = vadd.f32 %v2437_v31, %v2436_v62  ;;  %v2502_v55 = vadd.f32 %v2501_v19, %v2500_v5  ;;  %v2439_v13 = vpop.f32.mrb[66].mxu1  ;;  %v2503_v18 = vpop.f32.mrb[66].mxu0 }
 0x17c   : > { %v2440_v61 = vpop.f32.mrb[67].mxu1  ;;  %v2504_v48 = vpop.f32.mrb[67].mxu0 }
 0x17d   : > { %v3327_v20 = vadd.f32 %v2438_v12, %v1445_v23  ;;  %v2441_v29 = vadd.f32 %v2440_v61, %v2439_v13  ;;  %v2505_v27 = vadd.f32 %v2504_v48, %v2503_v18  ;;  %v3330_v53 = vadd.f32 %v2502_v55, %v3234_v47 }
 0x17e   : > { %v1456_v47 = vadd.f32 %v3182_v56, %v3195_v17  ;;  %v1461_v56 = vadd.f32 %v3184_v63, %v3195_v17 }
 0x17f   : > { %v3332_v40 = vadd.f32 %v2441_v29, %v1448_v26  ;;  %v3335_v39 = vadd.f32 %v2505_v27, %v3236_v54 }
 0x181   : > { %v2442_v38 = vpop.f32.mrb[68].mxu1  ;;  %v2506_v36 = vpop.f32.mrb[68].mxu0 }
 0x182   : > { %v2443_v37 = vpop.f32.mrb[69].mxu1  ;;  %v2507_v41 = vpop.f32.mrb[69].mxu0 }
 0x183   : > { %v2444_v35 = vadd.f32 %v2443_v37, %v2442_v38  ;;  %v2508_v43 = vadd.f32 %v2507_v41, %v2506_v36  ;;  %v2445_v42 = vpop.f32.mrb[70].mxu1  ;;  %v2509_v60 = vpop.f32.mrb[70].mxu0 }
 0x184   : > { %v2446_v45 = vpop.f32.mrb[71].mxu1  ;;  %v2510_v6 = vpop.f32.mrb[71].mxu0 }
 0x185   : > { %v3341_v46 = vadd.f32 %v2444_v35, %v1453_v44  ;;  %v2447_v54 = vadd.f32 %v2446_v45, %v2445_v42  ;;  %v2511_v52 = vadd.f32 %v2510_v6, %v2509_v60  ;;  %v3344_v10 = vadd.f32 %v2508_v43, %v3243_v8 }
 0x186   : > { %v1464_v8 = vadd.f32 %v3186_v4, %v3195_v17  ;;  %v1469_v4 = vadd.f32 %v3188_v11, %v3195_v17 }
 0x187   : > { %v3346_v57 = vadd.f32 %v2447_v54, %v1456_v47  ;;  %v3349_v51 = vadd.f32 %v2511_v52, %v3245_v14 }
 0x189   : > { %v2448_v62 = vpop.f32.mrb[72].mxu1  ;;  %v2512_v5 = vpop.f32.mrb[72].mxu0 }
 0x18a   : > { %v2449_v31 = vpop.f32.mrb[73].mxu1  ;;  %v2513_v19 = vpop.f32.mrb[73].mxu0 }
 0x18b   : > { %v2450_v23 = vadd.f32 %v2449_v31, %v2448_v62  ;;  %v2514_v12 = vadd.f32 %v2513_v19, %v2512_v5  ;;  %v2451_v55 = vpop.f32.mrb[74].mxu1  ;;  %v2515_v13 = vpop.f32.mrb[74].mxu0 }
 0x18c   : > { %v2452_v18 = vpop.f32.mrb[75].mxu1  ;;  %v2516_v26 = vpop.f32.mrb[75].mxu0 }
 0x18d   : > { %v3355_v61 = vadd.f32 %v2450_v23, %v1461_v56  ;;  %v2453_v14 = vadd.f32 %v2452_v18, %v2451_v55  ;;  %v2517_v48 = vadd.f32 %v2516_v26, %v2515_v13  ;;  %v3358_v29 = vadd.f32 %v2514_v12, %v3252_v34 }
 0x18e   : > { %v1472_v34 = vadd.f32 %v3190_v16, %v3195_v17 }
 0x18f   : > { %v3360_v27 = vadd.f32 %v2453_v14, %v1464_v8  ;;  %v3363_v63 = vadd.f32 %v2517_v48, %v3256_v9 }
 0x191   : > { %v2454_v38 = vpop.f32.mrb[76].mxu1  ;;  %v2518_v36 = vpop.f32.mrb[76].mxu0 }
 0x192   : > { %v2455_v37 = vpop.f32.mrb[77].mxu1  ;;  %v2519_v41 = vpop.f32.mrb[77].mxu0 }
 0x193   : > { %v2456_v44 = vadd.f32 %v2455_v37, %v2454_v38  ;;  %v2520_v35 = vadd.f32 %v2519_v41, %v2518_v36  ;;  %v2457_v43 = vpop.f32.mrb[78].mxu1  ;;  %v2521_v42 = vpop.f32.mrb[78].mxu0 }
 0x194   : > { %v2458_v60 = vpop.f32.mrb[79].mxu1  ;;  %v2522_v47 = vpop.f32.mrb[79].mxu0 }
 0x195   : > { %v3369_v45 = vadd.f32 %v2456_v44, %v1469_v4  ;;  %v2459_v9 = vadd.f32 %v2458_v60, %v2457_v43  ;;  %v2523_v6 = vadd.f32 %v2522_v47, %v2521_v42  ;;  %v3372_v54 = vadd.f32 %v2520_v35, %v3263_v49 }
 0x197   : > { %v3375_v52 = vadd.f32 %v2459_v9, %v1472_v34  ;;  %v3378_v11 = vadd.f32 %v2523_v6, %v3267_v1 }
 0x199   : > { %v2524_v62 = vpop.f32.mrb[80].mxu0  ;;  %v2593_v16 = vpop.f32.mrb[80].mxu1 }
 0x19a   : > { %v1840_v17 = vadd.f32 %v2593_v16, %v3288_v59  ;;  %v2525_v49 = vpop.f32.mrb[81].mxu0  ;;  %v1831_v5 = vpop.f32.mrb[81].mxu1 }
 0x19b   : > { %v2526_v31 = vadd.f32 %v2525_v49, %v2524_v62  ;;  %v1832_v1 = vadd.f32 %v1831_v5, %v3275_v28  ;;  %v2527_v19 = vpop.f32.mrb[82].mxu0  ;;  %v2594_v56 = vpop.f32.mrb[82].mxu1 }
 0x19c   : > { %1961 = vst.msk [vmem:[%s3383_s24 + $0x10] sm:$0xff] %vm1958_vm1, %v1840_v17  ;;  %v1843_v23 = vadd.f32 %v2594_v56, %v3293_v2  ;;  %v2528_v12 = vpop.f32.mrb[83].mxu0  ;;  %v1834_v55 = vpop.f32.mrb[83].mxu1 }
 0x19d   : > { %1959 = vst.msk [vmem:[%s3383_s24] sm:$0xff] %vm1958_vm1, %v1832_v1  ;;  %v2529_v13 = vadd.f32 %v2528_v12, %v2527_v19  ;;  %v1835_v59 = vadd.f32 %v1834_v55, %v3280_v32  ;;  %v3394_v8 = vadd.f32 %v2526_v31, %v3272_v24 }
 0x19e   : > { %1962 = vst.msk [vmem:[%s3383_s24 + $0x18] sm:$0xff] %vm1958_vm1, %v1843_v23 }
 0x19f   : > { %1960 = vst.msk [vmem:[%s3383_s24 + $0x8] sm:$0xff] %vm1958_vm1, %v1835_v59  ;;  %v3401_v28 = vadd.f32 %v2529_v13, %v3277_v50 }
 0x1a1   : > { %v2530_v2 = vpop.f32.mrb[84].mxu0  ;;  %v2597_v18 = vpop.f32.mrb[84].mxu1 }
 0x1a2   : > { %v1856_v26 = vadd.f32 %v2597_v18, %v3316_v58  ;;  %v2531_v14 = vpop.f32.mrb[85].mxu0  ;;  %v1847_v48 = vpop.f32.mrb[85].mxu1 }
 0x1a3   : > { %v2532_v32 = vadd.f32 %v2531_v14, %v2530_v2  ;;  %v1848_v24 = vadd.f32 %v1847_v48, %v3302_v25  ;;  %v2533_v38 = vpop.f32.mrb[86].mxu0  ;;  %v2598_v36 = vpop.f32.mrb[86].mxu1 }
 0x1a4   : > { %1965 = vst.msk [vmem:[%s3383_s24 + $0x30] sm:$0xff] %vm1958_vm1, %v1856_v26  ;;  %v1859_v37 = vadd.f32 %v2598_v36, %v3321_v15  ;;  %v2534_v41 = vpop.f32.mrb[87].mxu0  ;;  %v1850_v50 = vpop.f32.mrb[87].mxu1 }
 0x1a5   : > { %1963 = vst.msk [vmem:[%s3383_s24 + $0x20] sm:$0xff] %vm1958_vm1, %v1848_v24  ;;  %v2535_v4 = vadd.f32 %v2534_v41, %v2533_v38  ;;  %v1851_v58 = vadd.f32 %v1850_v50, %v3307_v22  ;;  %v1743_v44 = vadd.f32 %v2532_v32, %v3285_v7 }
 0x1a6   : > { %1966 = vst.msk [vmem:[%s3383_s24 + $0x38] sm:$0xff] %vm1958_vm1, %v1859_v37 }
 0x1a7   : > { %1964 = vst.msk [vmem:[%s3383_s24 + $0x28] sm:$0xff] %vm1958_vm1, %v1851_v58  ;;  %v1746_v25 = vadd.f32 %v2535_v4, %v3290_v0 }
 0x1a9   : > { %v2536_v35 = vpop.f32.mrb[88].mxu0  ;;  %v2601_v43 = vpop.f32.mrb[88].mxu1 }
 0x1aa   : > { %v1872_v15 = vadd.f32 %v2601_v43, %v3344_v10  ;;  %v2537_v42 = vpop.f32.mrb[89].mxu0  ;;  %v1863_v34 = vpop.f32.mrb[89].mxu1 }
 0x1ab   : > { %v2538_v60 = vadd.f32 %v2537_v42, %v2536_v35  ;;  %v1864_v22 = vadd.f32 %v1863_v34, %v3330_v53  ;;  %v2539_v47 = vpop.f32.mrb[90].mxu0  ;;  %v2602_v7 = vpop.f32.mrb[90].mxu1 }
 0x1ac   : > { %1969 = vst.msk [vmem:[%s3383_s24 + $0x50] sm:$0xff] %vm1958_vm1, %v1872_v15  ;;  %v1875_v9 = vadd.f32 %v2602_v7, %v3349_v51  ;;  %v2540_v6 = vpop.f32.mrb[91].mxu0  ;;  %v1866_v62 = vpop.f32.mrb[91].mxu1 }
 0x1ad   : > { %1967 = vst.msk [vmem:[%s3383_s24 + $0x40] sm:$0xff] %vm1958_vm1, %v1864_v22  ;;  %v2541_v0 = vadd.f32 %v2540_v6, %v2539_v47  ;;  %v1867_v10 = vadd.f32 %v1866_v62, %v3335_v39  ;;  %v1751_v16 = vadd.f32 %v2538_v60, %v3299_v21 }
 0x1ae   : > { %1970 = vst.msk [vmem:[%s3383_s24 + $0x58] sm:$0xff] %vm1958_vm1, %v1875_v9 }
 0x1af   : > { %1968 = vst.msk [vmem:[%s3383_s24 + $0x48] sm:$0xff] %vm1958_vm1, %v1867_v10  ;;  %v1754_v53 = vadd.f32 %v2541_v0, %v3304_v3 }
 0x1b1   : > { %v2542_v17 = vpop.f32.mrb[92].mxu0  ;;  %v2605_v49 = vpop.f32.mrb[92].mxu1 }
 0x1b2   : > { %v1888_v51 = vadd.f32 %v2605_v49, %v3372_v54  ;;  %v2543_v5 = vpop.f32.mrb[93].mxu0  ;;  %v1879_v31 = vpop.f32.mrb[93].mxu1 }
 0x1b3   : > { %v2544_v1 = vadd.f32 %v2543_v5, %v2542_v17  ;;  %v1880_v39 = vadd.f32 %v1879_v31, %v3358_v29  ;;  %v2545_v19 = vpop.f32.mrb[94].mxu0  ;;  %v2606_v21 = vpop.f32.mrb[94].mxu1 }
 0x1b4   : > { %1973 = vst.msk [vmem:[%s3383_s24 + $0x70] sm:$0xff] %vm1958_vm1, %v1888_v51  ;;  %v1891_v56 = vadd.f32 %v2606_v21, %v3378_v11  ;;  %v2546_v23 = vpop.f32.mrb[95].mxu0  ;;  %v1882_v12 = vpop.f32.mrb[95].mxu1 }
 0x1b5   : > { %1971 = vst.msk [vmem:[%s3383_s24 + $0x60] sm:$0xff] %vm1958_vm1, %v1880_v39  ;;  %v2547_v3 = vadd.f32 %v2546_v23, %v2545_v19  ;;  %v1883_v54 = vadd.f32 %v1882_v12, %v3363_v63  ;;  %v1759_v55 = vadd.f32 %v2544_v1, %v3313_v30 }
 0x1b6   : > { %1974 = vst.msk [vmem:[%s3383_s24 + $0x78] sm:$0xff] %vm1958_vm1, %v1891_v56 }
 0x1b7   : > { %1972 = vst.msk [vmem:[%s3383_s24 + $0x68] sm:$0xff] %vm1958_vm1, %v1883_v54  ;;  %v1762_v29 = vadd.f32 %v2547_v3, %v3318_v33 }
 0x1b9   : > { %v2548_v13 = vpop.f32.mrb[96].mxu0  ;;  %v2609_v59 = vpop.f32.mrb[96].mxu1 }
 0x1ba   : > { %v1904_v11 = vadd.f32 %v2609_v59, %v1743_v44  ;;  %v2549_v2 = vpop.f32.mrb[97].mxu0  ;;  %v1895_v18 = vpop.f32.mrb[97].mxu1 }
 0x1bb   : > { %v2550_v26 = vadd.f32 %v2549_v2, %v2548_v13  ;;  %v1896_v14 = vadd.f32 %v1895_v18, %v3394_v8  ;;  %v2551_v63 = vpop.f32.mrb[98].mxu0  ;;  %v2610_v48 = vpop.f32.mrb[98].mxu1 }
 0x1bc   : > { %1977 = vst.msk [vmem:[%s3383_s24 + $0x90] sm:$0xff] %vm1958_vm1, %v1904_v11  ;;  %v1907_v30 = vadd.f32 %v2610_v48, %v1746_v25  ;;  %v2552_v32 = vpop.f32.mrb[99].mxu0  ;;  %v1898_v24 = vpop.f32.mrb[99].mxu1 }
 0x1bd   : > { %1975 = vst.msk [vmem:[%s3383_s24 + $0x80] sm:$0xff] %vm1958_vm1, %v1896_v14  ;;  %v2553_v33 = vadd.f32 %v2552_v32, %v2551_v63  ;;  %v1899_v38 = vadd.f32 %v1898_v24, %v3401_v28  ;;  %v1767_v36 = vadd.f32 %v2550_v26, %v3327_v20 }
 0x1be   : > { %1978 = vst.msk [vmem:[%s3383_s24 + $0x98] sm:$0xff] %vm1958_vm1, %v1907_v30 }
 0x1bf   : > { %1976 = vst.msk [vmem:[%s3383_s24 + $0x88] sm:$0xff] %vm1958_vm1, %v1899_v38  ;;  %v1770_v8 = vadd.f32 %v2553_v33, %v3332_v40 }
 0x1c1   : > { %v2554_v37 = vpop.f32.mrb[100].mxu0  ;;  %v2613_v41 = vpop.f32.mrb[100].mxu1 }
 0x1c2   : > { %v1920_v50 = vadd.f32 %v2613_v41, %v1759_v55  ;;  %v2555_v4 = vpop.f32.mrb[101].mxu0  ;;  %v1911_v58 = vpop.f32.mrb[101].mxu1 }
 0x1c3   : > { %v2556_v44 = vadd.f32 %v2555_v4, %v2554_v37  ;;  %v1912_v25 = vadd.f32 %v1911_v58, %v1751_v16  ;;  %v2557_v35 = vpop.f32.mrb[102].mxu0  ;;  %v2614_v28 = vpop.f32.mrb[102].mxu1 }
 0x1c4   : > { %1981 = vst.msk [vmem:[%s3383_s24 + $0xb0] sm:$0xff] %vm1958_vm1, %v1920_v50  ;;  %v1923_v20 = vadd.f32 %v2614_v28, %v1762_v29  ;;  %v2558_v43 = vpop.f32.mrb[103].mxu0  ;;  %v1914_v15 = vpop.f32.mrb[103].mxu1 }
 0x1c5   : > { %1979 = vst.msk [vmem:[%s3383_s24 + $0xa0] sm:$0xff] %vm1958_vm1, %v1912_v25  ;;  %v2559_v40 = vadd.f32 %v2558_v43, %v2557_v35  ;;  %v1915_v42 = vadd.f32 %v1914_v15, %v1754_v53  ;;  %v1775_v34 = vadd.f32 %v2556_v44, %v3341_v46 }
 0x1c6   : > { %1982 = vst.msk [vmem:[%s3383_s24 + $0xb8] sm:$0xff] %vm1958_vm1, %v1923_v20 }
 0x1c7   : > { %1980 = vst.msk [vmem:[%s3383_s24 + $0xa8] sm:$0xff] %vm1958_vm1, %v1915_v42  ;;  %v1778_v60 = vadd.f32 %v2559_v40, %v3346_v57 }
 0x1c9   : > { %v2560_v22 = vpop.f32.mrb[104].mxu0  ;;  %v2617_v47 = vpop.f32.mrb[104].mxu1 }
 0x1ca   : > { %v1936_v7 = vadd.f32 %v2617_v47, %v1775_v34  ;;  %v2561_v9 = vpop.f32.mrb[105].mxu0  ;;  %v1927_v6 = vpop.f32.mrb[105].mxu1 }
 0x1cb   : > { %v2562_v62 = vadd.f32 %v2561_v9, %v2560_v22  ;;  %v1928_v0 = vadd.f32 %v1927_v6, %v1767_v36  ;;  %v2563_v10 = vpop.f32.mrb[106].mxu0  ;;  %v2618_v16 = vpop.f32.mrb[106].mxu1 }
 0x1cc   : > { %1985 = vst.msk [vmem:[%s3383_s24 + $0xd0] sm:$0xff] %vm1958_vm1, %v1936_v7  ;;  %v1939_v46 = vadd.f32 %v2618_v16, %v1778_v60  ;;  %v2564_v53 = vpop.f32.mrb[107].mxu0  ;;  %v1930_v17 = vpop.f32.mrb[107].mxu1 }
 0x1cd   : > { %1983 = vst.msk [vmem:[%s3383_s24 + $0xc0] sm:$0xff] %vm1958_vm1, %v1928_v0  ;;  %v2565_v49 = vadd.f32 %v2564_v53, %v2563_v10  ;;  %v1931_v57 = vadd.f32 %v1930_v17, %v1770_v8  ;;  %v1783_v51 = vadd.f32 %v2562_v62, %v3355_v61 }
 0x1ce   : > { %1986 = vst.msk [vmem:[%s3383_s24 + $0xd8] sm:$0xff] %vm1958_vm1, %v1939_v46 }
 0x1cf   : > { %1984 = vst.msk [vmem:[%s3383_s24 + $0xc8] sm:$0xff] %vm1958_vm1, %v1931_v57  ;;  %v1786_v5 = vadd.f32 %v2565_v49, %v3360_v27 }
 0x1d1   : > { %v2566_v31 = vpop.f32.mrb[108].mxu0  ;;  %v2621_v1 = vpop.f32.mrb[108].mxu1 }
 0x1d2   : > { %v2567_v39 = vpop.f32.mrb[109].mxu0  ;;  %v1943_v19 = vpop.f32.mrb[109].mxu1 }
 0x1d3   : > { %v2568_v21 = vadd.f32 %v2567_v39, %v2566_v31  ;;  %v1944_v56 = vadd.f32 %v1943_v19, %v1783_v51  ;;  %v2569_v23 = vpop.f32.mrb[110].mxu0  ;;  %v2622_v12 = vpop.f32.mrb[110].mxu1 }
 0x1d4   : > { %v2570_v3 = vpop.f32.mrb[111].mxu0  ;;  %v1946_v54 = vpop.f32.mrb[111].mxu1 }
 0x1d5   : > { %v1791_v61 = vadd.f32 %v2568_v21, %v3369_v45  ;;  %1987 = vst.msk [vmem:[%s3383_s24 + $0xe0] sm:$0xff] %vm1958_vm1, %v1944_v56  ;;  %v2571_v55 = vadd.f32 %v2570_v3, %v2569_v23  ;;  %v1947_v29 = vadd.f32 %v1946_v54, %v1786_v5 }
 0x1d7   : > { %v1952_v27 = vadd.f32 %v2621_v1, %v1791_v61  ;;  %v1794_v13 = vadd.f32 %v2571_v55, %v3375_v52  ;;  %1988 = vst.msk [vmem:[%s3383_s24 + $0xe8] sm:$0xff] %vm1958_vm1, %v1947_v29 }
 0x1d9   : > { %1989 = vst.msk [vmem:[%s3383_s24 + $0xf0] sm:$0xff] %vm1958_vm1, %v1952_v27  ;;  %v1955_v59 = vadd.f32 %v2622_v12, %v1794_v13 }
 0x1db   : > { %1990 = vst.msk [vmem:[%s3383_s24 + $0xf8] sm:$0xff] %vm1958_vm1, %v1955_v59 }
 0x1dc PF: > { %s13_s12 = sadd.s32 1, %s2863_s12  }
 0x1dd   : > { %p10_p4 = scmp.ge.s32.totalorder %s13_s12, 4  }
 0x1df   :  { %12 = sbr.rel (!%p10_p4) target bundleno = 1 (0x1), region = 62 }

// kernel: generator_att_forward.24
= control target key start
LH: loop header
LB: loop body
LE: loop exit
PB: predicated region body
PF: predicated region fallthrough
CT: control target
= control target key end

     0   :  { %s752_s12 = smov 0   ;;  %s913_s0 = inlined_call_operand.vmem [shape: bf16[512,16], index: 0, kind: input, shape index: {}]   ;;  %s914_s1 = inlined_call_operand.vmem [shape: bf16[16,10], index: 1, kind: input, shape index: {}]   ;;  %s915_s2 = inlined_call_operand.vmem [shape: f32[1,10], index: 2, kind: input, shape index: {}]   ;;  %s916_s3 = inlined_call_operand.vmem [shape: f32[512,10], index: 3, kind: output, shape index: {}]  }
   0x1 LB: > { %s601_s13 = sadd.s32 4294967295, %s730_s12   ;;  %p605_p0 = scmp.ge.s32.totalorder %s730_s12, 1  ;;  %s730_s12 = sphi %s752_s12, %s13_s12  }
   0x2   : > { %p138_p1 = scmp.lt.s32.totalorder %s730_s12, 3 }
   0x4   : > { %p139_p2 = pnand %p605_p0, %p138_p1 }
   0x5   : > { %v707_v0 = vld [vmem:[%s914_s1] sm:$0xff] (!%p139_p2)   ;;  %s606_s16 = sshll.u32 (!%p139_p2), %s601_s13, 5  ;;  %vm302_vm0 = vcmask (!%p139_p2), 130048   ;;  %vm512_vm1 = vcmask (!%p139_p2), 80896  }
   0x6   : > { %142 = sbr.rel (%p139_p2) target bundleno = 261 (0x105), region = 32  ;;  %p163_p3 = scmp.lt.s32.totalorder (!%p139_p2), %s606_s16, 63  ;;  %663 = vmatprep.subr.bf16.mxu0 (!%p139_p2), %v707_v0  ;;  %697 = vmatprep.subr.bf16.mxu1 (!%p139_p2), %v707_v0  ;;  %v807_v17 = vld [vmem:[%s915_s2] ss:$0 sm:$0xff] (!%p139_p2) }
   0x7   : > { %664 = vmatpush3.bf16.msra.mxu0 (!%p139_p2), %v707_v0  ;;  %698 = vmatpush3.bf16.msra.mxu1 (!%p139_p2), %v707_v0 }
   0xd   : > { %s918_s16 = smov (!%p163_p3, %s606_s16), 63 }
   0xe   : > { %s607_s17 = sshll.u32 %s918_s16, 2  ;;  %s609_s21 = sshll.u32 %s918_s16, 3 }
   0xf   : > { %s769_s20 = scalar_lea.vmem %s913_s0, %s607_s17  ;;  %s812_s26 = scalar_lea.vmem %s916_s3, %s609_s21 }
  0x10   : > { %v708_v1 = vld [vmem:[%s769_s20] sm:$0xff]   ;;  %v710_v3 = vld [vmem:[%s769_s20 + $0x8] sm:$0xff]   ;;  %v712_v5 = vld [vmem:[%s769_s20 + $0x10] sm:$0xff]  }
  0x11   : > { %v709_v2 = vld [vmem:[%s769_s20 + $0x40] sm:$0xff]   ;;  %665 = vmatprep.mubr.msk.bf16.mxu0 %vm302_vm0, %v708_v1  ;;  %v711_v4 = vld [vmem:[%s769_s20 + $0x48] sm:$0xff]   ;;  %v713_v6 = vld [vmem:[%s769_s20 + $0x50] sm:$0xff]  }
  0x12   : > { %681 = vmatprep.mubr.msk.bf16.mxu1 %vm302_vm0, %v709_v2  ;;  %666 = vmatmul.mubr.msk.bf16.vlgmr.msra.gmra.mrb[0].mxu0 %vm302_vm0, %v710_v3  ;;  %v714_v7 = vld [vmem:[%s769_s20 + $0x18] sm:$0xff]   ;;  %v716_v9 = vld [vmem:[%s769_s20 + $0x20] sm:$0xff]   ;;  %v718_v11 = vld [vmem:[%s769_s20 + $0x28] sm:$0xff]  }
  0x13   : > { %682 = vmatmul.mubr.msk.bf16.vlgmr.msra.gmra.mrb[0].mxu1 %vm302_vm0, %v711_v4  ;;  %669 = vmatprep.mubr.msk.bf16.mxu0 %vm302_vm0, %v712_v5  ;;  %v715_v8 = vld [vmem:[%s769_s20 + $0x58] sm:$0xff]   ;;  %v717_v10 = vld [vmem:[%s769_s20 + $0x60] sm:$0xff]   ;;  %v719_v12 = vld [vmem:[%s769_s20 + $0x68] sm:$0xff]  }
  0x14   : > { %685 = vmatprep.mubr.msk.bf16.mxu1 %vm302_vm0, %v713_v6  ;;  %v720_v13 = vld [vmem:[%s769_s20 + $0x30] sm:$0xff]   ;;  %v722_v15 = vld [vmem:[%s769_s20 + $0x38] sm:$0xff]  }
  0x15   : > { %v721_v14 = vld [vmem:[%s769_s20 + $0x70] sm:$0xff]   ;;  %v723_v16 = vld [vmem:[%s769_s20 + $0x78] sm:$0xff]  }
  0x1a   : > { %670 = vmatmul.mubr.msk.bf16.gmra.mrb[4].mxu0 %vm302_vm0, %v714_v7 }
  0x1b   : > { %686 = vmatmul.mubr.msk.bf16.gmra.mrb[4].mxu1 %vm302_vm0, %v715_v8  ;;  %673 = vmatprep.mubr.msk.bf16.mxu0 %vm302_vm0, %v716_v9 }
  0x1c   : > { %689 = vmatprep.mubr.msk.bf16.mxu1 %vm302_vm0, %v717_v10 }
  0x22   : > { %674 = vmatmul.mubr.msk.bf16.gmra.mrb[8].mxu0 %vm302_vm0, %v718_v11 }
  0x23   : > { %690 = vmatmul.mubr.msk.bf16.gmra.mrb[8].mxu1 %vm302_vm0, %v719_v12  ;;  %677 = vmatprep.mubr.msk.bf16.mxu0 %vm302_vm0, %v720_v13 }
  0x24   : > { %693 = vmatprep.mubr.msk.bf16.mxu1 %vm302_vm0, %v721_v14 }
  0x2a   : > { %678 = vmatmul.mubr.msk.bf16.gmra.mrb[12].mxu0 %vm302_vm0, %v722_v15 }
  0x2b   : > { %694 = vmatmul.mubr.msk.bf16.gmra.mrb[12].mxu1 %vm302_vm0, %v723_v16 }
  0xe5   : > { %v667_v18 = vpop.f32.mrb[0].mxu0 }
  0xe6   : > { %v394_v19 = vadd.f32 %v667_v18, %v807_v17  ;;  %v683_v20 = vpop.f32.mrb[0].mxu1  ;;  %v385_v21 = vpop.f32.mrb[1].mxu0 }
  0xe7   : > { %v458_v22 = vadd.f32 %v683_v20, %v807_v17  ;;  %v386_v23 = vadd.f32 %v807_v17, %v385_v21  ;;  %v449_v24 = vpop.f32.mrb[1].mxu1  ;;  %v668_v25 = vpop.f32.mrb[2].mxu0 }
  0xe8   : > { %515 = vst.msk [vmem:[%s812_s26 + $0x10] sm:$0xff] %vm512_vm1, %v394_v19  ;;  %v450_v26 = vadd.f32 %v807_v17, %v449_v24  ;;  %v397_v27 = vadd.f32 %v668_v25, %v807_v17  ;;  %v684_v28 = vpop.f32.mrb[2].mxu1  ;;  %v388_v29 = vpop.f32.mrb[3].mxu0 }
  0xe9   : > { %531 = vst.msk [vmem:[%s812_s26 + $0x90] sm:$0xff] %vm512_vm1, %v458_v22  ;;  %513 = vst.msk [vmem:[%s812_s26] sm:$0xff] %vm512_vm1, %v386_v23  ;;  %v461_v30 = vadd.f32 %v684_v28, %v807_v17  ;;  %v389_v31 = vadd.f32 %v807_v17, %v388_v29  ;;  %v452_v32 = vpop.f32.mrb[3].mxu1 }
  0xea   : > { %529 = vst.msk [vmem:[%s812_s26 + $0x80] sm:$0xff] %vm512_vm1, %v450_v26  ;;  %516 = vst.msk [vmem:[%s812_s26 + $0x18] sm:$0xff] %vm512_vm1, %v397_v27  ;;  %v453_v33 = vadd.f32 %v807_v17, %v452_v32 }
  0xeb   : > { %532 = vst.msk [vmem:[%s812_s26 + $0x98] sm:$0xff] %vm512_vm1, %v461_v30  ;;  %514 = vst.msk [vmem:[%s812_s26 + $0x8] sm:$0xff] %vm512_vm1, %v389_v31 }
  0xec   : > { %530 = vst.msk [vmem:[%s812_s26 + $0x88] sm:$0xff] %vm512_vm1, %v453_v33 }
  0xed   : > { %v671_v34 = vpop.f32.mrb[4].mxu0 }
  0xee   : > { %v410_v35 = vadd.f32 %v671_v34, %v807_v17  ;;  %v687_v36 = vpop.f32.mrb[4].mxu1  ;;  %v401_v37 = vpop.f32.mrb[5].mxu0 }
  0xef   : > { %v474_v38 = vadd.f32 %v687_v36, %v807_v17  ;;  %v402_v39 = vadd.f32 %v807_v17, %v401_v37  ;;  %v465_v40 = vpop.f32.mrb[5].mxu1  ;;  %v672_v41 = vpop.f32.mrb[6].mxu0 }
  0xf0   : > { %519 = vst.msk [vmem:[%s812_s26 + $0x30] sm:$0xff] %vm512_vm1, %v410_v35  ;;  %v466_v42 = vadd.f32 %v807_v17, %v465_v40  ;;  %v413_v43 = vadd.f32 %v672_v41, %v807_v17  ;;  %v688_v44 = vpop.f32.mrb[6].mxu1  ;;  %v404_v45 = vpop.f32.mrb[7].mxu0 }
  0xf1   : > { %535 = vst.msk [vmem:[%s812_s26 + $0xb0] sm:$0xff] %vm512_vm1, %v474_v38  ;;  %517 = vst.msk [vmem:[%s812_s26 + $0x20] sm:$0xff] %vm512_vm1, %v402_v39  ;;  %v477_v46 = vadd.f32 %v688_v44, %v807_v17  ;;  %v405_v47 = vadd.f32 %v807_v17, %v404_v45  ;;  %v468_v48 = vpop.f32.mrb[7].mxu1 }
  0xf2   : > { %533 = vst.msk [vmem:[%s812_s26 + $0xa0] sm:$0xff] %vm512_vm1, %v466_v42  ;;  %520 = vst.msk [vmem:[%s812_s26 + $0x38] sm:$0xff] %vm512_vm1, %v413_v43  ;;  %v469_v49 = vadd.f32 %v807_v17, %v468_v48 }
  0xf3   : > { %536 = vst.msk [vmem:[%s812_s26 + $0xb8] sm:$0xff] %vm512_vm1, %v477_v46  ;;  %518 = vst.msk [vmem:[%s812_s26 + $0x28] sm:$0xff] %vm512_vm1, %v405_v47 }
  0xf4   : > { %534 = vst.msk [vmem:[%s812_s26 + $0xa8] sm:$0xff] %vm512_vm1, %v469_v49 }
  0xf5   : > { %v675_v50 = vpop.f32.mrb[8].mxu0 }
  0xf6   : > { %v426_v51 = vadd.f32 %v675_v50, %v807_v17  ;;  %v691_v52 = vpop.f32.mrb[8].mxu1  ;;  %v417_v53 = vpop.f32.mrb[9].mxu0 }
  0xf7   : > { %v490_v54 = vadd.f32 %v691_v52, %v807_v17  ;;  %v418_v55 = vadd.f32 %v807_v17, %v417_v53  ;;  %v481_v56 = vpop.f32.mrb[9].mxu1  ;;  %v676_v57 = vpop.f32.mrb[10].mxu0 }
  0xf8   : > { %523 = vst.msk [vmem:[%s812_s26 + $0x50] sm:$0xff] %vm512_vm1, %v426_v51  ;;  %v482_v58 = vadd.f32 %v807_v17, %v481_v56  ;;  %v429_v59 = vadd.f32 %v676_v57, %v807_v17  ;;  %v692_v60 = vpop.f32.mrb[10].mxu1  ;;  %v420_v61 = vpop.f32.mrb[11].mxu0 }
  0xf9   : > { %539 = vst.msk [vmem:[%s812_s26 + $0xd0] sm:$0xff] %vm512_vm1, %v490_v54  ;;  %521 = vst.msk [vmem:[%s812_s26 + $0x40] sm:$0xff] %vm512_vm1, %v418_v55  ;;  %v493_v62 = vadd.f32 %v692_v60, %v807_v17  ;;  %v421_v63 = vadd.f32 %v807_v17, %v420_v61  ;;  %v484_v0 = vpop.f32.mrb[11].mxu1 }
  0xfa   : > { %537 = vst.msk [vmem:[%s812_s26 + $0xc0] sm:$0xff] %vm512_vm1, %v482_v58  ;;  %524 = vst.msk [vmem:[%s812_s26 + $0x58] sm:$0xff] %vm512_vm1, %v429_v59  ;;  %v485_v1 = vadd.f32 %v807_v17, %v484_v0 }
  0xfb   : > { %540 = vst.msk [vmem:[%s812_s26 + $0xd8] sm:$0xff] %vm512_vm1, %v493_v62  ;;  %522 = vst.msk [vmem:[%s812_s26 + $0x48] sm:$0xff] %vm512_vm1, %v421_v63 }
  0xfc   : > { %538 = vst.msk [vmem:[%s812_s26 + $0xc8] sm:$0xff] %vm512_vm1, %v485_v1 }
  0xfd   : > { %v679_v2 = vpop.f32.mrb[12].mxu0 }
  0xfe   : > { %v442_v3 = vadd.f32 %v679_v2, %v807_v17  ;;  %v695_v4 = vpop.f32.mrb[12].mxu1  ;;  %v433_v5 = vpop.f32.mrb[13].mxu0 }
  0xff   : > { %v506_v6 = vadd.f32 %v695_v4, %v807_v17  ;;  %v434_v7 = vadd.f32 %v807_v17, %v433_v5  ;;  %v497_v8 = vpop.f32.mrb[13].mxu1  ;;  %v680_v9 = vpop.f32.mrb[14].mxu0 }
 0x100   : > { %527 = vst.msk [vmem:[%s812_s26 + $0x70] sm:$0xff] %vm512_vm1, %v442_v3  ;;  %v498_v10 = vadd.f32 %v807_v17, %v497_v8  ;;  %v445_v11 = vadd.f32 %v680_v9, %v807_v17  ;;  %v696_v12 = vpop.f32.mrb[14].mxu1  ;;  %v436_v13 = vpop.f32.mrb[15].mxu0 }
 0x101   : > { %543 = vst.msk [vmem:[%s812_s26 + $0xf0] sm:$0xff] %vm512_vm1, %v506_v6  ;;  %525 = vst.msk [vmem:[%s812_s26 + $0x60] sm:$0xff] %vm512_vm1, %v434_v7  ;;  %v509_v14 = vadd.f32 %v696_v12, %v807_v17  ;;  %v437_v15 = vadd.f32 %v807_v17, %v436_v13  ;;  %v500_v16 = vpop.f32.mrb[15].mxu1 }
 0x102   : > { %541 = vst.msk [vmem:[%s812_s26 + $0xe0] sm:$0xff] %vm512_vm1, %v498_v10  ;;  %528 = vst.msk [vmem:[%s812_s26 + $0x78] sm:$0xff] %vm512_vm1, %v445_v11  ;;  %v501_v18 = vadd.f32 %v807_v17, %v500_v16 }
 0x103   : > { %544 = vst.msk [vmem:[%s812_s26 + $0xf8] sm:$0xff] %vm512_vm1, %v509_v14  ;;  %526 = vst.msk [vmem:[%s812_s26 + $0x68] sm:$0xff] %vm512_vm1, %v437_v15 }
 0x104   : > { %542 = vst.msk [vmem:[%s812_s26 + $0xe8] sm:$0xff] %vm512_vm1, %v501_v18 }
 0x105 PF: > { %s13_s12 = sadd.s32 1, %s730_s12  }
 0x106   : > { %p10_p4 = scmp.ge.s32.totalorder %s13_s12, 4  }
 0x108   :  { %12 = sbr.rel (!%p10_p4) target bundleno = 1 (0x1), region = 62 }

// kernel: generator_att_forward.25
= control target key start
LH: loop header
LB: loop body
LE: loop exit
PB: predicated region body
PF: predicated region fallthrough
CT: control target
= control target key end

     0   :  { %s920_s21 = smov 0   ;;  %s1130_s0 = inlined_call_operand.vmem [shape: f32[2,3,256], index: 0, kind: input, shape index: {}]   ;;  %s1131_s1 = inlined_call_operand.vmem [shape: f32[2,27,256], index: 1, kind: input, shape index: {}]   ;;  %s1132_s2 = inlined_call_operand.vmem [shape: f32[2,10,256], index: 2, kind: input, shape index: {}]   ;;  %s1133_s3 = inlined_call_operand.vmem [shape: f32[2,27,256], index: 3, kind: output, shape index: {0}]   ;;  %s1134_s4 = inlined_call_operand.vmem [shape: f32[2,10,256], index: 4, kind: output, shape index: {1}]   ;;  %s1135_s5 = inlined_call_operand.vmem [shape: f32[2,30,256], index: 5, kind: output, shape index: {2}]   ;;  %s1136_s6 = inlined_call_operand.vmem [shape: f32[2,3,256], index: 6, kind: output, shape index: {3}]  }
   0x1 LB: > { %s807_s22 = sadd.s32 4294967295, %s883_s21   ;;  %p811_p0 = scmp.ge.s32.totalorder %s883_s21, 1  ;;  %s883_s21 = sphi %s920_s21, %s17_s21  }
   0x2   : > { %p239_p1 = scmp.lt.s32.totalorder %s883_s21, 3 }
   0x4   : > { %p240_p2 = pnand %p811_p0, %p239_p1 }
   0x5   : > { %p294_p3 = scmp.lt.s32.totalorder (!%p240_p2), %s807_s22, 1  ;;  %vm349_vm0 = vcmask (!%p240_p2), 1041408   ;;  %vm498_vm1 = vcmask (!%p240_p2), 1045508   ;;  %vm467_vm2 = vcmask (!%p240_p2), 1040384   ;;  %vm468_vm3 = vcmask (!%p240_p2), 1044484  }
   0x6   : > { %243 = sbr.rel (%p240_p2) target bundleno = 109 (0x6d), region = 32  ;;  %vm1049_vm4 = vmor (!%p240_p2), %vm349_vm0, %vm498_vm1 }
   0x7   : > { %vm1057_vm5 = vmor (!%p240_p2), %vm467_vm2, %vm468_vm3 }
   0xd   : > { %s1142_s22 = smov (!%p294_p3, %s807_s22), 1 }
   0xe   : > { %s931_s23 = sshll.u32 %s1142_s22, 6  ;;  %s836_s24 = sshll.u32 %s1142_s22, 5 }
   0xf   : > { %s303_s27 = scalar_lea.vmem %s1131_s1, %s931_s23  ;;  %s308_s30 = scalar_lea.vmem %s1132_s2, %s836_s24 }
  0x10   : > { %v329_v0 = vld [vmem:[%s303_s27] sm:$0xff]  ;;  %v330_v1 = vld [vmem:[%s303_s27 + $0x8] sm:$0xff]  ;;  %v331_v2 = vld [vmem:[%s303_s27 + $0x10] sm:$0xff]  ;;  %s313_s9 = scalar_lea.vmem %s1133_s3, %s931_s23  ;;  %s834_s10 = sshll.u32 %s1142_s22, 3 }
  0x11   : > { %v332_v3 = vld [vmem:[%s303_s27 + $0x18] sm:$0xff]  ;;  %849 = vtanh.f32 %v329_v0  ;;  %v333_v4 = vld [vmem:[%s303_s27 + $0x20] sm:$0xff]  ;;  %v334_v5 = vld [vmem:[%s303_s27 + $0x28] sm:$0xff]  ;;  %v413_v0 = vlaneseq  ;;  %s318_s13 = scalar_lea.vmem %s1134_s4, %s836_s24  ;;  %s298_s16 = scalar_lea.vmem %s1130_s0, %s834_s10 }
  0x12   : > { %851 = vtanh.f32 %v330_v1  ;;  %v345_v6 = vld [vmem:[%s308_s30] sm:$0xff]  ;;  %v346_v7 = vld [vmem:[%s308_s30 + $0x8] sm:$0xff]  ;;  %v347_v8 = vld [vmem:[%s308_s30 + $0x10] sm:$0x3]  ;;  %s1017_s19 = scalar_lea.vmem %s1135_s5, %s931_s23  ;;  %s328_s24 = scalar_lea.vmem %s1136_s6, %s834_s10 }
  0x13   : > { %853 = vtanh.f32 %v331_v2  ;;  %v348_v9 = vld [vmem:[%s308_s30 + $0x18] sm:$0x3]  ;;  %v335_v10 = vld [vmem:[%s303_s27 + $0x30] sm:$0x7]  ;;  %v350_v11 = vsel %vm349_vm0, %v347_v8, -inf  ;;  %v975_v1 = vshrl.u32 %v413_v0, 7 }
  0x14   : > { %855 = vtanh.f32 %v332_v3  ;;  %v358_v12 = vsel %vm349_vm0, %v348_v9, -inf  ;;  %v336_v13 = vld [vmem:[%s303_s27 + $0x38] sm:$0x7]  ;;  %v351_v14 = vmax.f32 %v345_v6, %v350_v11 }
  0x15   : > { %857 = vtanh.f32 %v333_v4  ;;  %v359_v15 = vmax.f32 %v346_v7, %v358_v12  ;;  %v415_v2 = vsub.s32 1, %v975_v1  ;;  %v980_v3 = vsub.s32 0, %v975_v1 }
  0x16   : > { %859 = vtanh.f32 %v334_v5  ;;  %v352_v16 = vrot.slane %v351_v14, 4  ;;  %v478_v4 = vsub.s32 2, %v975_v1  ;;  %v544_v11 = vsub.s32 5, %v975_v1 }
  0x17   : > { %861 = vtanh.f32 %v335_v10  ;;  %v360_v17 = vrot.slane %v359_v15, 4  ;;  %v527_v10 = vsub.s32 4, %v975_v1 }
  0x18   : > { %863 = vtanh.f32 %v336_v13  ;;  %v353_v18 = vmax.f32 %v351_v14, %v352_v16  ;;  %v572_v14 = vsub.s32 6, %v975_v1 }
  0x19   : > { %v361_v19 = vmax.f32 %v359_v15, %v360_v17  ;;  %v594_v15 = vsub.s32 7, %v975_v1 }
  0x1a   : > { %v354_v21 = vrot.slane %v353_v18, 2 }
  0x1b   : > { %v949_v20 = vpop.eup %849  ;;  %v362_v22 = vrot.slane %v361_v19, 2 }
  0x1c   : > { %v951_v23 = vpop.eup %851  ;;  %401 = vst [vmem:[%s313_s9] sm:$0xff] %v949_v20  ;;  %v355_v25 = vmax.f32 %v353_v18, %v354_v21 }
  0x1d   : > { %v954_v24 = vpop.eup %853  ;;  %402 = vst [vmem:[%s313_s9 + $0x8] sm:$0xff] %v951_v23  ;;  %v363_v26 = vmax.f32 %v361_v19, %v362_v22 }
  0x1e   : > { %v957_v27 = vpop.eup %855  ;;  %403 = vst [vmem:[%s313_s9 + $0x10] sm:$0xff] %v954_v24  ;;  %v356_v29 = vrot.slane %v355_v25, 1 }
  0x1f   : > { %v960_v28 = vpop.eup %857  ;;  %404 = vst [vmem:[%s313_s9 + $0x18] sm:$0xff] %v957_v27  ;;  %v364_v30 = vrot.slane %v363_v26, 1 }
  0x20   : > { %v963_v31 = vpop.eup %859  ;;  %405 = vst [vmem:[%s313_s9 + $0x20] sm:$0xff] %v960_v28  ;;  %v357_v33 = vmax.f32 %v355_v25, %v356_v29  ;;  %v400_v29 = vld [vmem:[%s298_s16] sm:$0x77] }
  0x21   : > { %v966_v32 = vpop.eup %861  ;;  %406 = vst [vmem:[%s313_s9 + $0x28] sm:$0xff] %v963_v31  ;;  %v365_v34 = vmax.f32 %v363_v26, %v364_v30 }
  0x22   : > { %v969_v35 = vpop.eup %863  ;;  %407 = vst [vmem:[%s313_s9 + $0x30] sm:$0x7] %v966_v32  ;;  %v366_v36 = vsub.f32 %v345_v6, %v357_v33  ;;  %v368_v38 = vsub.f32 %v347_v8, %v357_v33  ;;  %v508_v6 = vsub.s32 3, %v975_v1 }
  0x23   : > { %408 = vst [vmem:[%s313_s9 + $0x38] sm:$0x7] %v969_v35  ;;  %v367_v37 = vsub.f32 %v346_v7, %v365_v34  ;;  %v369_v39 = vsub.f32 %v348_v9, %v365_v34 }
  0x24   : > { %v370_v40 = vmul.f32 1.442695, %v366_v36  ;;  %v374_v42 = vmul.f32 1.442695, %v368_v38 }
  0x25   : > { %v372_v41 = vmul.f32 1.442695, %v367_v37  ;;  %v376_v43 = vmul.f32 1.442695, %v369_v39 }
  0x26   : > { %865 = vpow2.f32 %v370_v40 }
  0x27   : > { %867 = vpow2.f32 %v372_v41 }
  0x28   : > { %869 = vpow2.f32 %v374_v42 }
  0x29   : > { %871 = vpow2.f32 %v376_v43 }
  0x30   : > { %v866_v44 = vpop.eup %865 }
  0x31   : > { %v868_v45 = vpop.eup %867 }
  0x32   : > { %v870_v46 = vpop.eup %869 }
  0x33   : > { %v872_v47 = vpop.eup %871  ;;  %v378_v48 = vsel %vm349_vm0, %v870_v46, 0.0 }
  0x34   : > { %v379_v49 = vadd.f32 %v866_v44, %v378_v48  ;;  %v386_v50 = vsel %vm349_vm0, %v872_v47, 0.0 }
  0x35   : > { %v387_v51 = vadd.f32 %v868_v45, %v386_v50 }
  0x36   : > { %v380_v52 = vrot.slane %v379_v49, 4 }
  0x37   : > { %v388_v53 = vrot.slane %v387_v51, 4 }
  0x38   : > { %v381_v54 = vadd.f32 %v380_v52, %v379_v49 }
  0x39   : > { %v389_v55 = vadd.f32 %v388_v53, %v387_v51 }
  0x3a   : > { %v382_v56 = vrot.slane %v381_v54, 2 }
  0x3b   : > { %v390_v57 = vrot.slane %v389_v55, 2 }
  0x3c   : > { %v383_v58 = vadd.f32 %v382_v56, %v381_v54 }
  0x3d   : > { %v391_v59 = vadd.f32 %v390_v57, %v389_v55 }
  0x3e   : > { %v384_v60 = vrot.slane %v383_v58, 1 }
  0x3f   : > { %v392_v61 = vrot.slane %v391_v59, 1 }
  0x40   : > { %v385_v62 = vadd.f32 %v384_v60, %v383_v58 }
  0x41   : > { %v393_v63 = vadd.f32 %v392_v61, %v391_v59 }
  0x42   : > { %873 = vrcp.f32 %v385_v62 }
  0x43   : > { %875 = vrcp.f32 %v393_v63 }
  0x4c   : > { %v874_v5 = vpop.eup %873 }
  0x4d   : > { %v876_v7 = vpop.eup %875  ;;  %v989_v8 = vmul.f32 %v874_v5, %v866_v44  ;;  %v991_v9 = vmul.f32 %v874_v5, %v870_v46 }
  0x4e   : > { %v995_v12 = vmul.f32 %v876_v7, %v868_v45  ;;  %v997_v13 = vmul.f32 %v876_v7, %v872_v47 }
  0x4f   : > { %409 = vst [vmem:[%s318_s13] sm:$0xff] %v989_v8  ;;  %411 = vst [vmem:[%s318_s13 + $0x10] sm:$0x3] %v991_v9  ;;  %v416_v16 = vrot.slane %v991_v9, %v415_v2  ;;  %v437_v17 = vrot.slane %v989_v8, %v980_v3  ;;  %v454_v18 = vrot.slane %v989_v8, %v415_v2 }
  0x50   : > { %v479_v19 = vrot.slane %v989_v8, %v478_v4  ;;  %410 = vst [vmem:[%s318_s13 + $0x8] sm:$0xff] %v995_v12  ;;  %412 = vst [vmem:[%s318_s13 + $0x18] sm:$0x3] %v997_v13  ;;  %v420_v21 = vrot.slane %v997_v13, %v415_v2  ;;  %v441_v22 = vrot.slane %v995_v12, %v980_v3 }
  0x51   : > { %v458_v25 = vrot.slane %v995_v12, %v415_v2  ;;  %v483_v26 = vrot.slane %v995_v12, %v478_v4  ;;  %v442_v30 = vmul.f32 %v949_v20, %v437_v17  ;;  %v459_v33 = vmul.f32 %v949_v20, %v454_v18 }
  0x52   : > { %v484_v34 = vmul.f32 %v949_v20, %v479_v19  ;;  %v486_v36 = vmul.f32 %v954_v24, %v479_v19  ;;  %v423_v37 = vcombine.low %v416_v16, %v420_v21  ;;  %v443_v38 = vmul.f32 %v951_v23, %v441_v22 }
  0x53   : > { %v460_v39 = vmul.f32 %v951_v23, %v458_v25  ;;  %v485_v40 = vmul.f32 %v951_v23, %v483_v26  ;;  %444 = vst [vmem:[%s1017_s19] sm:$0x7] %v442_v30  ;;  %461 = vst [vmem:[%s1017_s19] sm:$0x38] %v459_v33  ;;  %v487_v41 = vmul.f32 %v957_v27, %v483_v26 }
  0x54   : > { %488 = vst [vmem:[%s1017_s19] sm:$0xc0] %v484_v34  ;;  %490 = vst [vmem:[%s1017_s19 + $0x10] sm:$0x1] %v486_v36  ;;  %v509_v20 = vrot.slane %v989_v8, %v508_v6  ;;  %v513_v42 = vrot.slane %v995_v12, %v508_v6  ;;  %v528_v43 = vrot.slane %v989_v8, %v527_v10 }
  0x55   : > { %v425_v44 = vmul.f32 %v423_v37, %v400_v29  ;;  %445 = vst [vmem:[%s1017_s19 + $0x8] sm:$0x7] %v443_v38  ;;  %v448_v45 = vcombine.low %v442_v30, %v443_v38  ;;  %462 = vst [vmem:[%s1017_s19 + $0x8] sm:$0x38] %v460_v39  ;;  %v465_v23 = vcombine.low %v459_v33, %v460_v39 }
  0x56   : > { %v466_v46 = vcombine.high %v459_v33, %v460_v39  ;;  %489 = vst [vmem:[%s1017_s19 + $0x8] sm:$0xc0] %v485_v40  ;;  %v496_v47 = vcombine.high %v484_v34, %v485_v40  ;;  %491 = vst [vmem:[%s1017_s19 + $0x18] sm:$0x1] %v487_v41  ;;  %v497_v48 = vcombine.low %v486_v36, %v487_v41 }
  0x57   : > { %v514_v50 = vmul.f32 %v954_v24, %v509_v20  ;;  %v515_v51 = vmul.f32 %v957_v27, %v513_v42  ;;  %v428_v52 = vrot.slane %v425_v44, 5  ;;  %v427_v53 = vcombine.high %v425_v44, %v425_v44 }
  0x58   : > { %v450_v54 = vadd.f32 %v448_v45, %v425_v44  ;;  %v826_v55 = vrot.slane %v465_v23, 11  ;;  %v472_v57 = vrot.slane %v466_v46, 7  ;;  %v827_v58 = vrot.slane %v496_v47, 10 }
  0x59   : > { %v502_v59 = vrot.slane %v497_v48, 6  ;;  %516 = vst [vmem:[%s1017_s19 + $0x10] sm:$0xe] %v514_v50  ;;  %517 = vst [vmem:[%s1017_s19 + $0x18] sm:$0xe] %v515_v51  ;;  %v520_v60 = vcombine.low %v514_v50, %v515_v51  ;;  %v429_v61 = vrot.slane %v427_v53, 5  ;;  %v533_v62 = vmul.f32 %v954_v24, %v528_v43 }
  0x5a   : > { %432 = vst [vmem:[%s1017_s19 + $0x30] sm:$0x38] %v428_v52  ;;  %v532_v63 = vrot.slane %v995_v12, %v527_v10  ;;  %v545_v0 = vrot.slane %v989_v8, %v544_v11  ;;  %v473_v4 = vsel %vm1057_vm5, %v826_v55, %v472_v57  ;;  %v549_v6 = vrot.slane %v995_v12, %v544_v11 }
  0x5b   : > { %v503_v2 = vsel %vm1049_vm4, %v827_v58, %v502_v59  ;;  %v828_v5 = vrot.slane %v520_v60, 9  ;;  %433 = vst [vmem:[%s1017_s19 + $0x38] sm:$0x38] %v429_v61  ;;  %v475_v7 = vadd.f32 %v473_v4, %v450_v54  ;;  %535 = vst [vmem:[%s1017_s19 + $0x10] sm:$0x70] %v533_v62  ;;  %v573_v21 = vrot.slane %v989_v8, %v572_v14 }
  0x5c   : > { %v534_v10 = vmul.f32 %v957_v27, %v532_v63  ;;  %v550_v16 = vmul.f32 %v954_v24, %v545_v0  ;;  %v552_v17 = vmul.f32 %v960_v28, %v545_v0  ;;  %v551_v18 = vmul.f32 %v957_v27, %v549_v6 }
  0x5d   : > { %v553_v19 = vmul.f32 %v963_v31, %v549_v6  ;;  %v577_v11 = vrot.slane %v995_v12, %v572_v14  ;;  %v505_v22 = vadd.f32 %v503_v2, %v475_v7  ;;  %v595_v24 = vrot.slane %v989_v8, %v594_v15 }
  0x5e   : > { %536 = vst [vmem:[%s1017_s19 + $0x18] sm:$0x70] %v534_v10  ;;  %v539_v25 = vcombine.high %v533_v62, %v534_v10  ;;  %554 = vst [vmem:[%s1017_s19 + $0x10] sm:$0x80] %v550_v16  ;;  %v599_v27 = vrot.slane %v995_v12, %v594_v15  ;;  %v562_v26 = vcombine.high %v550_v16, %v551_v18 }
  0x5f   : > { %556 = vst [vmem:[%s1017_s19 + $0x20] sm:$0x3] %v552_v17  ;;  %555 = vst [vmem:[%s1017_s19 + $0x18] sm:$0x80] %v551_v18  ;;  %v563_v14 = vcombine.low %v552_v17, %v553_v19  ;;  %v578_v29 = vmul.f32 %v960_v28, %v573_v21  ;;  %v579_v30 = vmul.f32 %v963_v31, %v577_v11 }
  0x60   : > { %557 = vst [vmem:[%s1017_s19 + $0x28] sm:$0x3] %v553_v19  ;;  %v524_v33 = vadd.f32 %v828_v5, %v505_v22  ;;  %v600_v34 = vmul.f32 %v960_v28, %v595_v24  ;;  %v601_v36 = vmul.f32 %v963_v31, %v599_v27  ;;  %v614_v1 = vrot.slane %v991_v9, %v980_v3 }
  0x61   : > { %v829_v8 = vrot.slane %v562_v26, 11  ;;  %v566_v12 = vrot.slane %v563_v14, 7  ;;  %580 = vst [vmem:[%s1017_s19 + $0x20] sm:$0x1c] %v578_v29  ;;  %581 = vst [vmem:[%s1017_s19 + $0x28] sm:$0x1c] %v579_v30  ;;  %v584_v15 = vcombine.low %v578_v29, %v579_v30  ;;  %v585_v37 = vcombine.high %v578_v29, %v579_v30 }
  0x62   : > { %v541_v38 = vadd.f32 %v539_v25, %v524_v33  ;;  %602 = vst [vmem:[%s1017_s19 + $0x20] sm:$0xe0] %v600_v34  ;;  %603 = vst [vmem:[%s1017_s19 + $0x28] sm:$0xe0] %v601_v36  ;;  %v606_v39 = vcombine.high %v600_v34, %v601_v36  ;;  %v619_v28 = vmul.f32 %v966_v32, %v614_v1 }
  0x63   : > { %v618_v31 = vrot.slane %v997_v13, %v980_v3  ;;  %v830_v40 = vrot.slane %v584_v15, 10  ;;  %v588_v9 = vrot.slane %v585_v37, 6  ;;  %v567_v41 = vsel %vm1057_vm5, %v829_v8, %v566_v12 }
  0x64   : > { %v831_v20 = vrot.slane %v606_v39, 9  ;;  %621 = vst [vmem:[%s1017_s19 + $0x30] sm:$0x7] %v619_v28  ;;  %v569_v43 = vadd.f32 %v567_v41, %v541_v38 }
  0x65   : > { %v620_v42 = vmul.f32 %v969_v35, %v618_v31  ;;  %v589_v44 = vsel %vm1049_vm4, %v830_v40, %v588_v9 }
  0x66   : > { %v591_v45 = vadd.f32 %v589_v44, %v569_v43 }
  0x67   : > { %622 = vst [vmem:[%s1017_s19 + $0x38] sm:$0x7] %v620_v42  ;;  %v625_v23 = vcombine.low %v619_v28, %v620_v42 }
  0x68   : > { %v610_v32 = vadd.f32 %v831_v20, %v591_v45 }
  0x6a   : > { %v627_v3 = vadd.f32 %v625_v23, %v610_v32 }
  0x6c   : > { %628 = vst [vmem:[%s328_s24] sm:$0x77] %v627_v3 }
  0x6d PF: > { %s17_s21 = sadd.s32 1, %s883_s21  }
  0x6e   : > { %p14_p4 = scmp.ge.s32.totalorder %s17_s21, 4  }
  0x70   :  { %16 = sbr.rel (!%p14_p4) target bundleno = 1 (0x1), region = 104 }

</bundles_post_ra>
